<compile_context>
chip_gen: v7x
topology: tpu7x:2x2x1
jax: 0.10.0
libtpu: 0.0.40
codegen_flags: <defaults>
</compile_context>

<pallas_src>
import jax
import jax.numpy as jnp
from jax.experimental import pallas as pl
from jax.experimental.pallas import tpu as pltpu

INPUT_DIM = 2          # joint angles
COND_DIM = 2           # end-effector position
HIDDEN = 32            # hidden width per net (module default is 256; kept small per task)
NUM_LAYERS = 10        # alternating mask_type = l % 2
HF = 2 * HIDDEN        # fused hidden width (scale net ++ translation net)
NEG_SLOPE = 0.2        # nn.LeakyReLU(0.2) in the PyTorch module


def _leaky_relu(x):
    return jnp.where(x >= 0, x, NEG_SLOPE * x)


# ----------------------------- Pallas kernel ------------------------------- #

def realnvp_fwd_kernel(io_ref, w1f_ref, w2t_ref, b2_ref, w3t_ref, b3_ref,
                       w4t_ref, b4_ref, out_ref):
    # io_ref:  [8, TB]        rows = (x0, x1, cond_x, cond_y, 0, 0, 0, 0), batch on lanes
    # w1f:     [L, HF, 4] f32 first layer, columns = (x_masked w, cond_x w, cond_y w, bias)
    # w2t/w3t: [L, HF, HF]    block-diagonal fused hidden weights (bf16 or f32)
    # b2/b3:   [L, HF, 1] f32
    # w4t:     [L, 8, HF]     head padded to 8 rows: 0 -> scale pre-tanh, 1 -> translation
    # b4:      [L, 8, 1]  f32
    # out_ref: [8, TB]        rows = (z0, z1, log_det, 0...)
    blk = io_ref[...]
    x0 = blk[0:1, :]                     # [1, TB]
    x1 = blk[1:2, :]
    c0 = blk[2:3, :]
    c1 = blk[3:4, :]
    tb = blk.shape[1]
    mxu_dtype = w2t_ref.dtype            # bf16 (perf path) or f32 (exact path)

    log_det = jnp.zeros((1, tb), jnp.float32)

    for l in range(NUM_LAYERS):          # static unroll over coupling layers
        if l % 2 == 0:
            xm, xt = x0, x1
        else:
            xm, xt = x1, x0

        # First layer of both nets as pure VPU broadcast-FMAs (no K=3 matmul, no scratch).
        w1 = w1f_ref[l]                                                         # [HF, 4]
        h = _leaky_relu(w1[:, 0:1] * xm + w1[:, 1:2] * c0
                        + w1[:, 2:3] * c1 + w1[:, 3:4])                         # [HF, TB]

        # Fused block-diagonal hidden layers + padded head; bf16 only at the MXU boundary.
        h = _leaky_relu(jnp.dot(w2t_ref[l], h.astype(mxu_dtype),
                                preferred_element_type=jnp.float32) + b2_ref[l])
        h = _leaky_relu(jnp.dot(w3t_ref[l], h.astype(mxu_dtype),
                                preferred_element_type=jnp.float32) + b3_ref[l])
        head = jnp.dot(w4t_ref[l], h.astype(mxu_dtype),
                       preferred_element_type=jnp.float32) + b4_ref[l]          # [8, TB]

        scale = jnp.tanh(head[0:1, :]) * 2.0                                    # [1, TB]
        trans = head[1:2, :]                                                    # [1, TB]
        new = xt * jnp.exp(scale) + trans

        if l % 2 == 0:
            x1 = new
        else:
            x0 = new
        log_det = log_det + scale        # scale.sum(dim=1) of a [B,1] is scale itself

    # Single unmasked (8,128)-aligned store.
    out_ref[...] = jnp.concatenate(
        [x0, x1, log_det, jnp.zeros((5, tb), jnp.float32)], axis=0)


# ------------------------------ host wrapper -------------------------------- #

def realnvp_forward(x, cond, packed, *, tile_b=2048):
    """x: [B, 2], cond: [B, 2], packed: tuple from pack_params(). Returns (z [B,2], log_det [B]).

    tile_b is the primary tuning knob (sweep 1024/2048/4096). On v7x keep it small
    enough that the batch grid has >= 2 tiles so both TensorCores get work.
    """
    B = x.shape[0]
    tb = tile_b if B >= tile_b else max(128, ((B + 127) // 128) * 128)
    b_pad = ((B + tb - 1) // tb) * tb
    grid = (b_pad // tb,)

    # One (8,128)-aligned lane-dense input slab. Padded lanes are all-zero; they compute
    # finite garbage that is sliced off below (no NaN/Inf path in the forward transform).
    inp = jnp.zeros((8, b_pad), jnp.float32)
    inp = inp.at[0:2, :B].set(x.astype(jnp.float32).T)
    inp = inp.at[2:4, :B].set(cond.astype(jnp.float32).T)

    (w1f, w2t, b2, w3t, b3, w4t, b4) = packed

    def resident(a):   # whole array resident in VMEM, fetched once (constant block index)
        return pl.BlockSpec(a.shape, lambda i, _nd=a.ndim: (0,) * _nd)

    weight_bytes = sum(int(a.size) * a.dtype.itemsize for a in packed)
    cost = pl.CostEstimate(
        flops=NUM_LAYERS * (8 * HF + 4 * HF * HF + 16 * HF + 16) * b_pad,
        transcendentals=2 * NUM_LAYERS * b_pad,
        bytes_accessed=16 * 4 * b_pad + weight_bytes,
    )

    out = pl.pallas_call(
        realnvp_fwd_kernel,
        out_shape=jax.ShapeDtypeStruct((8, b_pad), jnp.float32),
        grid=grid,
        in_specs=[pl.BlockSpec((8, tb), lambda i: (0, i)),
                  resident(w1f), resident(w2t), resident(b2),
                  resident(w3t), resident(b3), resident(w4t), resident(b4)],
        out_specs=pl.BlockSpec((8, tb), lambda i: (0, i)),
        compiler_params=pltpu.CompilerParams(
            dimension_semantics=("parallel",),
            vmem_limit_bytes=48 * 1024 * 1024),
        cost_estimate=cost,
    )(inp, w1f, w2t, b2, w3t, b3, w4t, b4)

    return out[0:2, :B].T, out[2, :B]


# ------------------- parameter init (PyTorch nn.Linear layout) -------------- #

def init_params(key):
    """Raw per-layer params, PyTorch convention: weight [out, in], bias [out]."""
    def make_net(key):
        ks = jax.random.split(key, 8)

        def lin(k, fan_in, shape):
            bound = fan_in ** -0.5
            return jax.random.uniform(k, shape, jnp.float32, -bound, bound)

        cin = 1 + COND_DIM
        return dict(
            w1=lin(ks[0], cin, (NUM_LAYERS, HIDDEN, cin)),
            b1=lin(ks[1], cin, (NUM_LAYERS, HIDDEN)),
            w2=lin(ks[2], HIDDEN, (NUM_LAYERS, HIDDEN, HIDDEN)),
            b2=lin(ks[3], HIDDEN, (NUM_LAYERS, HIDDEN)),
            w3=lin(ks[4], HIDDEN, (NUM_LAYERS, HIDDEN, HIDDEN)),
            b3=lin(ks[5], HIDDEN, (NUM_LAYERS, HIDDEN)),
            w4=lin(ks[6], HIDDEN, (NUM_LAYERS, 1, HIDDEN)),
            b4=lin(ks[7], HIDDEN, (NUM_LAYERS, 1)),
        )

    k_s, k_t = jax.random.split(key)
    return dict(s=make_net(k_s), t=make_net(k_t))


def pack_params(raw, mxu_dtype=jnp.bfloat16):
    """Repack raw (PyTorch-layout) params into fused, kernel-friendly arrays (host side).

    mxu_dtype applies ONLY to the MXU-side weights (w2t/w3t/w4t); first-layer weights,
    biases and all in-kernel elementwise math stay f32.
    """
    s, t = raw["s"], raw["t"]
    L, H = NUM_LAYERS, HIDDEN

    # First layer fused (scale ++ translation): columns = (x_masked w, cond_x w, cond_y w, bias).
    def first(net):
        return jnp.concatenate([net["w1"], net["b1"][:, :, None]], axis=-1)     # [L, H, 4]
    w1f = jnp.concatenate([first(s), first(t)], axis=1)                          # [L, HF, 4]

    def block_diag(a, b):   # [L,H,H],[L,H,H] -> [L,HF,HF]
        z = jnp.zeros((L, H, H), jnp.float32)
        return jnp.concatenate([jnp.concatenate([a, z], axis=2),
                                jnp.concatenate([z, b], axis=2)], axis=1)

    w2t = block_diag(s["w2"], t["w2"]).astype(mxu_dtype)
    w3t = block_diag(s["w3"], t["w3"]).astype(mxu_dtype)
    b2 = jnp.concatenate([s["b2"], t["b2"]], axis=1)[:, :, None]                 # [L, HF, 1]
    b3 = jnp.concatenate([s["b3"], t["b3"]], axis=1)[:, :, None]

    # Head padded to 8 sublane rows: row 0 -> scale pre-tanh, row 1 -> translation, 2..7 -> 0.
    zH = jnp.zeros((L, 1, H), jnp.float32)
    z6 = jnp.zeros((L, 6, HF), jnp.float32)
    w4t = jnp.concatenate([jnp.concatenate([s["w4"], zH], axis=2),
                           jnp.concatenate([zH, t["w4"]], axis=2),
                           z6], axis=1).astype(mxu_dtype)                        # [L, 8, HF]
    b4 = jnp.concatenate([jnp.stack([s["b4"][:, 0], t["b4"][:, 0]], axis=1),
                          jnp.zeros((L, 6), jnp.float32)], axis=1)[:, :, None]   # [L, 8, 1]

    return (w1f, w2t, b2, w3t, b3, w4t, b4)


# -------------------------- pure-JAX reference ------------------------------ #

def realnvp_forward_ref(x, cond, raw, mxu_dtype=jnp.float32):
    """Mirrors the PyTorch module. mxu_dtype=bf16 applies the same MXU-boundary cast as
    the bf16 kernel (first-layer Linear and all elementwise math stay f32)."""
    def mm(a, b):
        return jnp.dot(a.astype(mxu_dtype), b.astype(mxu_dtype),
                       preferred_element_type=jnp.float32)

    def mlp(h, net, l):
        h = _leaky_relu(h @ net["w1"][l].T + net["b1"][l])
        h = _leaky_relu(mm(h, net["w2"][l].T) + net["b2"][l])
        h = _leaky_relu(mm(h, net["w3"][l].T) + net["b3"][l])
        return mm(h, net["w4"][l].T) + net["b4"][l]

    z = x
    log_det = jnp.zeros((x.shape[0],), jnp.float32)
    for l in range(NUM_LAYERS):
        if l % 2 == 0:
            xm, xt = z[:, 0:1], z[:, 1:2]
        else:
            xm, xt = z[:, 1:2], z[:, 0:1]
        ci = jnp.concatenate([xm, cond], axis=1)
        scale = jnp.tanh(mlp(ci, raw["s"], l)) * 2.0
        trans = mlp(ci, raw["t"], l)
        new = xt * jnp.exp(scale) + trans
        if l % 2 == 0:
            z = jnp.concatenate([xm, new], axis=1)
        else:
            z = jnp.concatenate([new, xm], axis=1)
        log_det = log_det + scale[:, 0]
    return z, log_det


# ---------------------------------- main ------------------------------------ #

if __name__ == "__main__":
    key = jax.random.PRNGKey(0)
    k_x, k_c, k_p = jax.random.split(key, 3)

    B = 8
    x = jax.random.normal(k_x, (B, INPUT_DIM), jnp.float32)
    condition = jax.random.normal(k_c, (B, COND_DIM), jnp.float32)

    raw_params = init_params(k_p)

    # Exact-f32 MXU path (v5e / validation config).
    packed_f32 = pack_params(raw_params, mxu_dtype=jnp.float32)
    z32, ld32 = realnvp_forward(x, condition, packed_f32)
    z32 = jax.block_until_ready(z32)
    ld32 = jax.block_until_ready(ld32)
    z_ref32, ld_ref32 = realnvp_forward_ref(x, condition, raw_params, mxu_dtype=jnp.float32)
    assert jnp.allclose(z32, z_ref32, atol=2e-4, rtol=2e-4), "f32 z mismatch vs reference"
    assert jnp.allclose(ld32, ld_ref32, atol=2e-4, rtol=2e-4), "f32 log_det mismatch vs reference"

    # bf16-at-the-MXU-boundary path (v6e/v7x perf config), checked against a reference
    # that applies the identical boundary cast so the tight tolerance still holds.
    packed_bf16 = pack_params(raw_params, mxu_dtype=jnp.bfloat16)
    z16, ld16 = realnvp_forward(x, condition, packed_bf16)
    z16 = jax.block_until_ready(z16)
    ld16 = jax.block_until_ready(ld16)
    z_ref16, ld_ref16 = realnvp_forward_ref(x, condition, raw_params, mxu_dtype=jnp.bfloat16)
    assert jnp.allclose(z16, z_ref16, atol=2e-4, rtol=2e-4), "bf16 z mismatch vs reference"
    assert jnp.allclose(ld16, ld_ref16, atol=2e-4, rtol=2e-4), "bf16 log_det mismatch vs reference"

    print("KERNEL_OK")
</pallas_src>

<mosaic_0001>
module attributes {stable_mosaic.version = 11 : i64} {
  func.func @realnvp_fwd_kernel(%arg0: i32, %arg1: memref<8x128xf32, #tpu.memory_space<vmem>>, %arg2: memref<10x64x4xf32, #tpu.memory_space<vmem>>, %arg3: memref<10x64x64xf32, #tpu.memory_space<vmem>>, %arg4: memref<10x64x1xf32, #tpu.memory_space<vmem>>, %arg5: memref<10x64x64xf32, #tpu.memory_space<vmem>>, %arg6: memref<10x64x1xf32, #tpu.memory_space<vmem>>, %arg7: memref<10x8x64xf32, #tpu.memory_space<vmem>>, %arg8: memref<10x8x1xf32, #tpu.memory_space<vmem>>, %arg9: memref<8x128xf32, #tpu.memory_space<vmem>>) attributes {dimension_semantics = [#tpu.dimension_semantics<parallel>], iteration_bounds = array<i64: 1>, scalar_prefetch = 0 : i64, scratch_operands = 0 : i64, tpu.core_type = #tpu.core_type<tc>, window_params = [{transform_indices = @transform_0, window_bounds = array<i64: 8, 128>}, {pipeline_mode = #tpu.pipeline_mode<synchronous>, transform_indices = @transform_1, window_bounds = array<i64: 10, 64, 4>}, {pipeline_mode = #tpu.pipeline_mode<synchronous>, transform_indices = @transform_2, window_bounds = array<i64: 10, 64, 64>}, {pipeline_mode = #tpu.pipeline_mode<synchronous>, transform_indices = @transform_3, window_bounds = array<i64: 10, 64, 1>}, {pipeline_mode = #tpu.pipeline_mode<synchronous>, transform_indices = @transform_4, window_bounds = array<i64: 10, 64, 64>}, {pipeline_mode = #tpu.pipeline_mode<synchronous>, transform_indices = @transform_5, window_bounds = array<i64: 10, 64, 1>}, {pipeline_mode = #tpu.pipeline_mode<synchronous>, transform_indices = @transform_6, window_bounds = array<i64: 10, 8, 64>}, {pipeline_mode = #tpu.pipeline_mode<synchronous>, transform_indices = @transform_7, window_bounds = array<i64: 10, 8, 1>}, {transform_indices = @transform_8, window_bounds = array<i64: 8, 128>}]} {
    %c0 = arith.constant 0 : index
    %c0_0 = arith.constant 0 : index
    %0 = vector.load %arg1[%c0, %c0_0] : memref<8x128xf32, #tpu.memory_space<vmem>>, vector<8x128xf32>
    %1 = vector.extract_strided_slice %0 {offsets = [0, 0], sizes = [1, 128], strides = [1, 1]} : vector<8x128xf32> to vector<1x128xf32>
    %2 = vector.extract_strided_slice %0 {offsets = [1, 0], sizes = [1, 128], strides = [1, 1]} : vector<8x128xf32> to vector<1x128xf32>
    %3 = vector.extract_strided_slice %0 {offsets = [2, 0], sizes = [1, 128], strides = [1, 1]} : vector<8x128xf32> to vector<1x128xf32>
    %4 = vector.extract_strided_slice %0 {offsets = [3, 0], sizes = [1, 128], strides = [1, 1]} : vector<8x128xf32> to vector<1x128xf32>
    %cst = arith.constant 0.000000e+00 : f32
    %5 = vector.broadcast %cst : f32 to vector<1x128xf32>
    %c0_1 = arith.constant 0 : index
    %c0_2 = arith.constant 0 : index
    %c0_3 = arith.constant 0 : index
    %6 = vector.load %arg2[%c0_1, %c0_2, %c0_3] : memref<10x64x4xf32, #tpu.memory_space<vmem>>, vector<1x64x4xf32>
    %7 = vector.shape_cast %6 : vector<1x64x4xf32> to vector<64x4xf32>
    %8 = vector.extract_strided_slice %7 {offsets = [0, 0], sizes = [64, 1], strides = [1, 1]} : vector<64x4xf32> to vector<64x1xf32>
    %9 = vector.broadcast %8 : vector<64x1xf32> to vector<64x128xf32>
    %10 = vector.broadcast %1 : vector<1x128xf32> to vector<64x128xf32>
    %11 = arith.mulf %9, %10 : vector<64x128xf32>
    %12 = vector.extract_strided_slice %7 {offsets = [0, 1], sizes = [64, 1], strides = [1, 1]} : vector<64x4xf32> to vector<64x1xf32>
    %13 = vector.broadcast %12 : vector<64x1xf32> to vector<64x128xf32>
    %14 = vector.broadcast %3 : vector<1x128xf32> to vector<64x128xf32>
    %15 = arith.mulf %13, %14 : vector<64x128xf32>
    %16 = arith.addf %11, %15 : vector<64x128xf32>
    %17 = vector.extract_strided_slice %7 {offsets = [0, 2], sizes = [64, 1], strides = [1, 1]} : vector<64x4xf32> to vector<64x1xf32>
    %18 = vector.broadcast %17 : vector<64x1xf32> to vector<64x128xf32>
    %19 = vector.broadcast %4 : vector<1x128xf32> to vector<64x128xf32>
    %20 = arith.mulf %18, %19 : vector<64x128xf32>
    %21 = arith.addf %16, %20 : vector<64x128xf32>
    %22 = vector.extract_strided_slice %7 {offsets = [0, 3], sizes = [64, 1], strides = [1, 1]} : vector<64x4xf32> to vector<64x1xf32>
    %23 = vector.broadcast %22 : vector<64x1xf32> to vector<64x128xf32>
    %24 = arith.addf %21, %23 : vector<64x128xf32>
    %cst_4 = arith.constant 0.000000e+00 : f32
    %25 = vector.broadcast %cst_4 : f32 to vector<64x128xf32>
    %26 = arith.cmpf oge, %24, %25 : vector<64x128xf32>
    %cst_5 = arith.constant 2.000000e-01 : f32
    %27 = vector.broadcast %cst_5 : f32 to vector<64x128xf32>
    %28 = arith.mulf %27, %24 : vector<64x128xf32>
    %29 = arith.select %26, %24, %28 : vector<64x128xi1>, vector<64x128xf32>
    %c0_6 = arith.constant 0 : index
    %c0_7 = arith.constant 0 : index
    %c0_8 = arith.constant 0 : index
    %30 = vector.load %arg3[%c0_6, %c0_7, %c0_8] : memref<10x64x64xf32, #tpu.memory_space<vmem>>, vector<1x64x64xf32>
    %31 = vector.shape_cast %30 : vector<1x64x64xf32> to vector<64x64xf32>
    %cst_9 = arith.constant dense<0.000000e+00> : vector<64x128xf32>
    %32 = tpu.matmul %31, %29, %cst_9 {dimension_numbers = #tpu.dot_dimension_numbers<[1], [0], [0], [1], [0, 0, 1, 1], [], []>} : vector<64x64xf32>, vector<64x128xf32>, vector<64x128xf32> -> vector<64x128xf32>
    %c0_10 = arith.constant 0 : index
    %c0_11 = arith.constant 0 : index
    %c0_12 = arith.constant 0 : index
    %33 = vector.load %arg4[%c0_10, %c0_11, %c0_12] : memref<10x64x1xf32, #tpu.memory_space<vmem>>, vector<1x64x1xf32>
    %34 = vector.shape_cast %33 : vector<1x64x1xf32> to vector<64x1xf32>
    %35 = vector.broadcast %34 : vector<64x1xf32> to vector<64x128xf32>
    %36 = arith.addf %32, %35 : vector<64x128xf32>
    %cst_13 = arith.constant 0.000000e+00 : f32
    %37 = vector.broadcast %cst_13 : f32 to vector<64x128xf32>
    %38 = arith.cmpf oge, %36, %37 : vector<64x128xf32>
    %cst_14 = arith.constant 2.000000e-01 : f32
    %39 = vector.broadcast %cst_14 : f32 to vector<64x128xf32>
    %40 = arith.mulf %39, %36 : vector<64x128xf32>
    %41 = arith.select %38, %36, %40 : vector<64x128xi1>, vector<64x128xf32>
    %c0_15 = arith.constant 0 : index
    %c0_16 = arith.constant 0 : index
    %c0_17 = arith.constant 0 : index
    %42 = vector.load %arg5[%c0_15, %c0_16, %c0_17] : memref<10x64x64xf32, #tpu.memory_space<vmem>>, vector<1x64x64xf32>
    %43 = vector.shape_cast %42 : vector<1x64x64xf32> to vector<64x64xf32>
    %cst_18 = arith.constant dense<0.000000e+00> : vector<64x128xf32>
    %44 = tpu.matmul %43, %41, %cst_18 {dimension_numbers = #tpu.dot_dimension_numbers<[1], [0], [0], [1], [0, 0, 1, 1], [], []>} : vector<64x64xf32>, vector<64x128xf32>, vector<64x128xf32> -> vector<64x128xf32>
    %c0_19 = arith.constant 0 : index
    %c0_20 = arith.constant 0 : index
    %c0_21 = arith.constant 0 : index
    %45 = vector.load %arg6[%c0_19, %c0_20, %c0_21] : memref<10x64x1xf32, #tpu.memory_space<vmem>>, vector<1x64x1xf32>
    %46 = vector.shape_cast %45 : vector<1x64x1xf32> to vector<64x1xf32>
    %47 = vector.broadcast %46 : vector<64x1xf32> to vector<64x128xf32>
    %48 = arith.addf %44, %47 : vector<64x128xf32>
    %cst_22 = arith.constant 0.000000e+00 : f32
    %49 = vector.broadcast %cst_22 : f32 to vector<64x128xf32>
    %50 = arith.cmpf oge, %48, %49 : vector<64x128xf32>
    %cst_23 = arith.constant 2.000000e-01 : f32
    %51 = vector.broadcast %cst_23 : f32 to vector<64x128xf32>
    %52 = arith.mulf %51, %48 : vector<64x128xf32>
    %53 = arith.select %50, %48, %52 : vector<64x128xi1>, vector<64x128xf32>
    %c0_24 = arith.constant 0 : index
    %c0_25 = arith.constant 0 : index
    %c0_26 = arith.constant 0 : index
    %54 = vector.load %arg7[%c0_24, %c0_25, %c0_26] : memref<10x8x64xf32, #tpu.memory_space<vmem>>, vector<1x8x64xf32>
    %55 = vector.shape_cast %54 : vector<1x8x64xf32> to vector<8x64xf32>
    %cst_27 = arith.constant dense<0.000000e+00> : vector<8x128xf32>
    %56 = tpu.matmul %55, %53, %cst_27 {dimension_numbers = #tpu.dot_dimension_numbers<[1], [0], [0], [1], [0, 0, 1, 1], [], []>} : vector<8x64xf32>, vector<64x128xf32>, vector<8x128xf32> -> vector<8x128xf32>
    %c0_28 = arith.constant 0 : index
    %c0_29 = arith.constant 0 : index
    %c0_30 = arith.constant 0 : index
    %57 = vector.load %arg8[%c0_28, %c0_29, %c0_30] : memref<10x8x1xf32, #tpu.memory_space<vmem>>, vector<1x8x1xf32>
    %58 = vector.shape_cast %57 : vector<1x8x1xf32> to vector<8x1xf32>
    %59 = vector.broadcast %58 : vector<8x1xf32> to vector<8x128xf32>
    %60 = arith.addf %56, %59 : vector<8x128xf32>
    %61 = vector.extract_strided_slice %60 {offsets = [0, 0], sizes = [1, 128], strides = [1, 1]} : vector<8x128xf32> to vector<1x128xf32>
    %62 = math.tanh %61 : vector<1x128xf32>
    %cst_31 = arith.constant 2.000000e+00 : f32
    %63 = vector.broadcast %cst_31 : f32 to vector<1x128xf32>
    %64 = arith.mulf %62, %63 : vector<1x128xf32>
    %65 = vector.extract_strided_slice %60 {offsets = [1, 0], sizes = [1, 128], strides = [1, 1]} : vector<8x128xf32> to vector<1x128xf32>
    %66 = math.exp %64 : vector<1x128xf32>
    %67 = arith.mulf %2, %66 : vector<1x128xf32>
    %68 = arith.addf %67, %65 : vector<1x128xf32>
    %69 = arith.addf %5, %64 : vector<1x128xf32>
    %c1 = arith.constant 1 : index
    %c0_32 = arith.constant 0 : index
    %c0_33 = arith.constant 0 : index
    %70 = vector.load %arg2[%c1, %c0_32, %c0_33] : memref<10x64x4xf32, #tpu.memory_space<vmem>>, vector<1x64x4xf32>
    %71 = vector.shape_cast %70 : vector<1x64x4xf32> to vector<64x4xf32>
    %72 = vector.extract_strided_slice %71 {offsets = [0, 0], sizes = [64, 1], strides = [1, 1]} : vector<64x4xf32> to vector<64x1xf32>
    %73 = vector.broadcast %72 : vector<64x1xf32> to vector<64x128xf32>
    %74 = vector.broadcast %68 : vector<1x128xf32> to vector<64x128xf32>
    %75 = arith.mulf %73, %74 : vector<64x128xf32>
    %76 = vector.extract_strided_slice %71 {offsets = [0, 1], sizes = [64, 1], strides = [1, 1]} : vector<64x4xf32> to vector<64x1xf32>
    %77 = vector.broadcast %76 : vector<64x1xf32> to vector<64x128xf32>
    %78 = vector.broadcast %3 : vector<1x128xf32> to vector<64x128xf32>
    %79 = arith.mulf %77, %78 : vector<64x128xf32>
    %80 = arith.addf %75, %79 : vector<64x128xf32>
    %81 = vector.extract_strided_slice %71 {offsets = [0, 2], sizes = [64, 1], strides = [1, 1]} : vector<64x4xf32> to vector<64x1xf32>
    %82 = vector.broadcast %81 : vector<64x1xf32> to vector<64x128xf32>
    %83 = vector.broadcast %4 : vector<1x128xf32> to vector<64x128xf32>
    %84 = arith.mulf %82, %83 : vector<64x128xf32>
    %85 = arith.addf %80, %84 : vector<64x128xf32>
    %86 = vector.extract_strided_slice %71 {offsets = [0, 3], sizes = [64, 1], strides = [1, 1]} : vector<64x4xf32> to vector<64x1xf32>
    %87 = vector.broadcast %86 : vector<64x1xf32> to vector<64x128xf32>
    %88 = arith.addf %85, %87 : vector<64x128xf32>
    %cst_34 = arith.constant 0.000000e+00 : f32
    %89 = vector.broadcast %cst_34 : f32 to vector<64x128xf32>
    %90 = arith.cmpf oge, %88, %89 : vector<64x128xf32>
    %cst_35 = arith.constant 2.000000e-01 : f32
    %91 = vector.broadcast %cst_35 : f32 to vector<64x128xf32>
    %92 = arith.mulf %91, %88 : vector<64x128xf32>
    %93 = arith.select %90, %88, %92 : vector<64x128xi1>, vector<64x128xf32>
    %c1_36 = arith.constant 1 : index
    %c0_37 = arith.constant 0 : index
    %c0_38 = arith.constant 0 : index
    %94 = vector.load %arg3[%c1_36, %c0_37, %c0_38] : memref<10x64x64xf32, #tpu.memory_space<vmem>>, vector<1x64x64xf32>
    %95 = vector.shape_cast %94 : vector<1x64x64xf32> to vector<64x64xf32>
    %cst_39 = arith.constant dense<0.000000e+00> : vector<64x128xf32>
    %96 = tpu.matmul %95, %93, %cst_39 {dimension_numbers = #tpu.dot_dimension_numbers<[1], [0], [0], [1], [0, 0, 1, 1], [], []>} : vector<64x64xf32>, vector<64x128xf32>, vector<64x128xf32> -> vector<64x128xf32>
    %c1_40 = arith.constant 1 : index
    %c0_41 = arith.constant 0 : index
    %c0_42 = arith.constant 0 : index
    %97 = vector.load %arg4[%c1_40, %c0_41, %c0_42] : memref<10x64x1xf32, #tpu.memory_space<vmem>>, vector<1x64x1xf32>
    %98 = vector.shape_cast %97 : vector<1x64x1xf32> to vector<64x1xf32>
    %99 = vector.broadcast %98 : vector<64x1xf32> to vector<64x128xf32>
    %100 = arith.addf %96, %99 : vector<64x128xf32>
    %cst_43 = arith.constant 0.000000e+00 : f32
    %101 = vector.broadcast %cst_43 : f32 to vector<64x128xf32>
    %102 = arith.cmpf oge, %100, %101 : vector<64x128xf32>
    %cst_44 = arith.constant 2.000000e-01 : f32
    %103 = vector.broadcast %cst_44 : f32 to vector<64x128xf32>
    %104 = arith.mulf %103, %100 : vector<64x128xf32>
    %105 = arith.select %102, %100, %104 : vector<64x128xi1>, vector<64x128xf32>
    %c1_45 = arith.constant 1 : index
    %c0_46 = arith.constant 0 : index
    %c0_47 = arith.constant 0 : index
    %106 = vector.load %arg5[%c1_45, %c0_46, %c0_47] : memref<10x64x64xf32, #tpu.memory_space<vmem>>, vector<1x64x64xf32>
    %107 = vector.shape_cast %106 : vector<1x64x64xf32> to vector<64x64xf32>
    %cst_48 = arith.constant dense<0.000000e+00> : vector<64x128xf32>
    %108 = tpu.matmul %107, %105, %cst_48 {dimension_numbers = #tpu.dot_dimension_numbers<[1], [0], [0], [1], [0, 0, 1, 1], [], []>} : vector<64x64xf32>, vector<64x128xf32>, vector<64x128xf32> -> vector<64x128xf32>
    %c1_49 = arith.constant 1 : index
    %c0_50 = arith.constant 0 : index
    %c0_51 = arith.constant 0 : index
    %109 = vector.load %arg6[%c1_49, %c0_50, %c0_51] : memref<10x64x1xf32, #tpu.memory_space<vmem>>, vector<1x64x1xf32>
    %110 = vector.shape_cast %109 : vector<1x64x1xf32> to vector<64x1xf32>
    %111 = vector.broadcast %110 : vector<64x1xf32> to vector<64x128xf32>
    %112 = arith.addf %108, %111 : vector<64x128xf32>
    %cst_52 = arith.constant 0.000000e+00 : f32
    %113 = vector.broadcast %cst_52 : f32 to vector<64x128xf32>
    %114 = arith.cmpf oge, %112, %113 : vector<64x128xf32>
    %cst_53 = arith.constant 2.000000e-01 : f32
    %115 = vector.broadcast %cst_53 : f32 to vector<64x128xf32>
    %116 = arith.mulf %115, %112 : vector<64x128xf32>
    %117 = arith.select %114, %112, %116 : vector<64x128xi1>, vector<64x128xf32>
    %c1_54 = arith.constant 1 : index
    %c0_55 = arith.constant 0 : index
    %c0_56 = arith.constant 0 : index
    %118 = vector.load %arg7[%c1_54, %c0_55, %c0_56] : memref<10x8x64xf32, #tpu.memory_space<vmem>>, vector<1x8x64xf32>
    %119 = vector.shape_cast %118 : vector<1x8x64xf32> to vector<8x64xf32>
    %cst_57 = arith.constant dense<0.000000e+00> : vector<8x128xf32>
    %120 = tpu.matmul %119, %117, %cst_57 {dimension_numbers = #tpu.dot_dimension_numbers<[1], [0], [0], [1], [0, 0, 1, 1], [], []>} : vector<8x64xf32>, vector<64x128xf32>, vector<8x128xf32> -> vector<8x128xf32>
    %c1_58 = arith.constant 1 : index
    %c0_59 = arith.constant 0 : index
    %c0_60 = arith.constant 0 : index
    %121 = vector.load %arg8[%c1_58, %c0_59, %c0_60] : memref<10x8x1xf32, #tpu.memory_space<vmem>>, vector<1x8x1xf32>
    %122 = vector.shape_cast %121 : vector<1x8x1xf32> to vector<8x1xf32>
    %123 = vector.broadcast %122 : vector<8x1xf32> to vector<8x128xf32>
    %124 = arith.addf %120, %123 : vector<8x128xf32>
    %125 = vector.extract_strided_slice %124 {offsets = [0, 0], sizes = [1, 128], strides = [1, 1]} : vector<8x128xf32> to vector<1x128xf32>
    %126 = math.tanh %125 : vector<1x128xf32>
    %cst_61 = arith.constant 2.000000e+00 : f32
    %127 = vector.broadcast %cst_61 : f32 to vector<1x128xf32>
    %128 = arith.mulf %126, %127 : vector<1x128xf32>
    %129 = vector.extract_strided_slice %124 {offsets = [1, 0], sizes = [1, 128], strides = [1, 1]} : vector<8x128xf32> to vector<1x128xf32>
    %130 = math.exp %128 : vector<1x128xf32>
    %131 = arith.mulf %1, %130 : vector<1x128xf32>
    %132 = arith.addf %131, %129 : vector<1x128xf32>
    %133 = arith.addf %69, %128 : vector<1x128xf32>
    %c2 = arith.constant 2 : index
    %c0_62 = arith.constant 0 : index
    %c0_63 = arith.constant 0 : index
    %134 = vector.load %arg2[%c2, %c0_62, %c0_63] : memref<10x64x4xf32, #tpu.memory_space<vmem>>, vector<1x64x4xf32>
    %135 = vector.shape_cast %134 : vector<1x64x4xf32> to vector<64x4xf32>
    %136 = vector.extract_strided_slice %135 {offsets = [0, 0], sizes = [64, 1], strides = [1, 1]} : vector<64x4xf32> to vector<64x1xf32>
    %137 = vector.broadcast %136 : vector<64x1xf32> to vector<64x128xf32>
    %138 = vector.broadcast %132 : vector<1x128xf32> to vector<64x128xf32>
    %139 = arith.mulf %137, %138 : vector<64x128xf32>
    %140 = vector.extract_strided_slice %135 {offsets = [0, 1], sizes = [64, 1], strides = [1, 1]} : vector<64x4xf32> to vector<64x1xf32>
    %141 = vector.broadcast %140 : vector<64x1xf32> to vector<64x128xf32>
    %142 = vector.broadcast %3 : vector<1x128xf32> to vector<64x128xf32>
    %143 = arith.mulf %141, %142 : vector<64x128xf32>
    %144 = arith.addf %139, %143 : vector<64x128xf32>
    %145 = vector.extract_strided_slice %135 {offsets = [0, 2], sizes = [64, 1], strides = [1, 1]} : vector<64x4xf32> to vector<64x1xf32>
    %146 = vector.broadcast %145 : vector<64x1xf32> to vector<64x128xf32>
    %147 = vector.broadcast %4 : vector<1x128xf32> to vector<64x128xf32>
    %148 = arith.mulf %146, %147 : vector<64x128xf32>
    %149 = arith.addf %144, %148 : vector<64x128xf32>
    %150 = vector.extract_strided_slice %135 {offsets = [0, 3], sizes = [64, 1], strides = [1, 1]} : vector<64x4xf32> to vector<64x1xf32>
    %151 = vector.broadcast %150 : vector<64x1xf32> to vector<64x128xf32>
    %152 = arith.addf %149, %151 : vector<64x128xf32>
    %cst_64 = arith.constant 0.000000e+00 : f32
    %153 = vector.broadcast %cst_64 : f32 to vector<64x128xf32>
    %154 = arith.cmpf oge, %152, %153 : vector<64x128xf32>
    %cst_65 = arith.constant 2.000000e-01 : f32
    %155 = vector.broadcast %cst_65 : f32 to vector<64x128xf32>
    %156 = arith.mulf %155, %152 : vector<64x128xf32>
    %157 = arith.select %154, %152, %156 : vector<64x128xi1>, vector<64x128xf32>
    %c2_66 = arith.constant 2 : index
    %c0_67 = arith.constant 0 : index
    %c0_68 = arith.constant 0 : index
    %158 = vector.load %arg3[%c2_66, %c0_67, %c0_68] : memref<10x64x64xf32, #tpu.memory_space<vmem>>, vector<1x64x64xf32>
    %159 = vector.shape_cast %158 : vector<1x64x64xf32> to vector<64x64xf32>
    %cst_69 = arith.constant dense<0.000000e+00> : vector<64x128xf32>
    %160 = tpu.matmul %159, %157, %cst_69 {dimension_numbers = #tpu.dot_dimension_numbers<[1], [0], [0], [1], [0, 0, 1, 1], [], []>} : vector<64x64xf32>, vector<64x128xf32>, vector<64x128xf32> -> vector<64x128xf32>
    %c2_70 = arith.constant 2 : index
    %c0_71 = arith.constant 0 : index
    %c0_72 = arith.constant 0 : index
    %161 = vector.load %arg4[%c2_70, %c0_71, %c0_72] : memref<10x64x1xf32, #tpu.memory_space<vmem>>, vector<1x64x1xf32>
    %162 = vector.shape_cast %161 : vector<1x64x1xf32> to vector<64x1xf32>
    %163 = vector.broadcast %162 : vector<64x1xf32> to vector<64x128xf32>
    %164 = arith.addf %160, %163 : vector<64x128xf32>
    %cst_73 = arith.constant 0.000000e+00 : f32
    %165 = vector.broadcast %cst_73 : f32 to vector<64x128xf32>
    %166 = arith.cmpf oge, %164, %165 : vector<64x128xf32>
    %cst_74 = arith.constant 2.000000e-01 : f32
    %167 = vector.broadcast %cst_74 : f32 to vector<64x128xf32>
    %168 = arith.mulf %167, %164 : vector<64x128xf32>
    %169 = arith.select %166, %164, %168 : vector<64x128xi1>, vector<64x128xf32>
    %c2_75 = arith.constant 2 : index
    %c0_76 = arith.constant 0 : index
    %c0_77 = arith.constant 0 : index
    %170 = vector.load %arg5[%c2_75, %c0_76, %c0_77] : memref<10x64x64xf32, #tpu.memory_space<vmem>>, vector<1x64x64xf32>
    %171 = vector.shape_cast %170 : vector<1x64x64xf32> to vector<64x64xf32>
    %cst_78 = arith.constant dense<0.000000e+00> : vector<64x128xf32>
    %172 = tpu.matmul %171, %169, %cst_78 {dimension_numbers = #tpu.dot_dimension_numbers<[1], [0], [0], [1], [0, 0, 1, 1], [], []>} : vector<64x64xf32>, vector<64x128xf32>, vector<64x128xf32> -> vector<64x128xf32>
    %c2_79 = arith.constant 2 : index
    %c0_80 = arith.constant 0 : index
    %c0_81 = arith.constant 0 : index
    %173 = vector.load %arg6[%c2_79, %c0_80, %c0_81] : memref<10x64x1xf32, #tpu.memory_space<vmem>>, vector<1x64x1xf32>
    %174 = vector.shape_cast %173 : vector<1x64x1xf32> to vector<64x1xf32>
    %175 = vector.broadcast %174 : vector<64x1xf32> to vector<64x128xf32>
    %176 = arith.addf %172, %175 : vector<64x128xf32>
    %cst_82 = arith.constant 0.000000e+00 : f32
    %177 = vector.broadcast %cst_82 : f32 to vector<64x128xf32>
    %178 = arith.cmpf oge, %176, %177 : vector<64x128xf32>
    %cst_83 = arith.constant 2.000000e-01 : f32
    %179 = vector.broadcast %cst_83 : f32 to vector<64x128xf32>
    %180 = arith.mulf %179, %176 : vector<64x128xf32>
    %181 = arith.select %178, %176, %180 : vector<64x128xi1>, vector<64x128xf32>
    %c2_84 = arith.constant 2 : index
    %c0_85 = arith.constant 0 : index
    %c0_86 = arith.constant 0 : index
    %182 = vector.load %arg7[%c2_84, %c0_85, %c0_86] : memref<10x8x64xf32, #tpu.memory_space<vmem>>, vector<1x8x64xf32>
    %183 = vector.shape_cast %182 : vector<1x8x64xf32> to vector<8x64xf32>
    %cst_87 = arith.constant dense<0.000000e+00> : vector<8x128xf32>
    %184 = tpu.matmul %183, %181, %cst_87 {dimension_numbers = #tpu.dot_dimension_numbers<[1], [0], [0], [1], [0, 0, 1, 1], [], []>} : vector<8x64xf32>, vector<64x128xf32>, vector<8x128xf32> -> vector<8x128xf32>
    %c2_88 = arith.constant 2 : index
    %c0_89 = arith.constant 0 : index
    %c0_90 = arith.constant 0 : index
    %185 = vector.load %arg8[%c2_88, %c0_89, %c0_90] : memref<10x8x1xf32, #tpu.memory_space<vmem>>, vector<1x8x1xf32>
    %186 = vector.shape_cast %185 : vector<1x8x1xf32> to vector<8x1xf32>
    %187 = vector.broadcast %186 : vector<8x1xf32> to vector<8x128xf32>
    %188 = arith.addf %184, %187 : vector<8x128xf32>
    %189 = vector.extract_strided_slice %188 {offsets = [0, 0], sizes = [1, 128], strides = [1, 1]} : vector<8x128xf32> to vector<1x128xf32>
    %190 = math.tanh %189 : vector<1x128xf32>
    %cst_91 = arith.constant 2.000000e+00 : f32
    %191 = vector.broadcast %cst_91 : f32 to vector<1x128xf32>
    %192 = arith.mulf %190, %191 : vector<1x128xf32>
    %193 = vector.extract_strided_slice %188 {offsets = [1, 0], sizes = [1, 128], strides = [1, 1]} : vector<8x128xf32> to vector<1x128xf32>
    %194 = math.exp %192 : vector<1x128xf32>
    %195 = arith.mulf %68, %194 : vector<1x128xf32>
    %196 = arith.addf %195, %193 : vector<1x128xf32>
    %197 = arith.addf %133, %192 : vector<1x128xf32>
    %c3 = arith.constant 3 : index
    %c0_92 = arith.constant 0 : index
    %c0_93 = arith.constant 0 : index
    %198 = vector.load %arg2[%c3, %c0_92, %c0_93] : memref<10x64x4xf32, #tpu.memory_space<vmem>>, vector<1x64x4xf32>
    %199 = vector.shape_cast %198 : vector<1x64x4xf32> to vector<64x4xf32>
    %200 = vector.extract_strided_slice %199 {offsets = [0, 0], sizes = [64, 1], strides = [1, 1]} : vector<64x4xf32> to vector<64x1xf32>
    %201 = vector.broadcast %200 : vector<64x1xf32> to vector<64x128xf32>
    %202 = vector.broadcast %196 : vector<1x128xf32> to vector<64x128xf32>
    %203 = arith.mulf %201, %202 : vector<64x128xf32>
    %204 = vector.extract_strided_slice %199 {offsets = [0, 1], sizes = [64, 1], strides = [1, 1]} : vector<64x4xf32> to vector<64x1xf32>
    %205 = vector.broadcast %204 : vector<64x1xf32> to vector<64x128xf32>
    %206 = vector.broadcast %3 : vector<1x128xf32> to vector<64x128xf32>
    %207 = arith.mulf %205, %206 : vector<64x128xf32>
    %208 = arith.addf %203, %207 : vector<64x128xf32>
    %209 = vector.extract_strided_slice %199 {offsets = [0, 2], sizes = [64, 1], strides = [1, 1]} : vector<64x4xf32> to vector<64x1xf32>
    %210 = vector.broadcast %209 : vector<64x1xf32> to vector<64x128xf32>
    %211 = vector.broadcast %4 : vector<1x128xf32> to vector<64x128xf32>
    %212 = arith.mulf %210, %211 : vector<64x128xf32>
    %213 = arith.addf %208, %212 : vector<64x128xf32>
    %214 = vector.extract_strided_slice %199 {offsets = [0, 3], sizes = [64, 1], strides = [1, 1]} : vector<64x4xf32> to vector<64x1xf32>
    %215 = vector.broadcast %214 : vector<64x1xf32> to vector<64x128xf32>
    %216 = arith.addf %213, %215 : vector<64x128xf32>
    %cst_94 = arith.constant 0.000000e+00 : f32
    %217 = vector.broadcast %cst_94 : f32 to vector<64x128xf32>
    %218 = arith.cmpf oge, %216, %217 : vector<64x128xf32>
    %cst_95 = arith.constant 2.000000e-01 : f32
    %219 = vector.broadcast %cst_95 : f32 to vector<64x128xf32>
    %220 = arith.mulf %219, %216 : vector<64x128xf32>
    %221 = arith.select %218, %216, %220 : vector<64x128xi1>, vector<64x128xf32>
    %c3_96 = arith.constant 3 : index
    %c0_97 = arith.constant 0 : index
    %c0_98 = arith.constant 0 : index
    %222 = vector.load %arg3[%c3_96, %c0_97, %c0_98] : memref<10x64x64xf32, #tpu.memory_space<vmem>>, vector<1x64x64xf32>
    %223 = vector.shape_cast %222 : vector<1x64x64xf32> to vector<64x64xf32>
    %cst_99 = arith.constant dense<0.000000e+00> : vector<64x128xf32>
    %224 = tpu.matmul %223, %221, %cst_99 {dimension_numbers = #tpu.dot_dimension_numbers<[1], [0], [0], [1], [0, 0, 1, 1], [], []>} : vector<64x64xf32>, vector<64x128xf32>, vector<64x128xf32> -> vector<64x128xf32>
    %c3_100 = arith.constant 3 : index
    %c0_101 = arith.constant 0 : index
    %c0_102 = arith.constant 0 : index
    %225 = vector.load %arg4[%c3_100, %c0_101, %c0_102] : memref<10x64x1xf32, #tpu.memory_space<vmem>>, vector<1x64x1xf32>
    %226 = vector.shape_cast %225 : vector<1x64x1xf32> to vector<64x1xf32>
    %227 = vector.broadcast %226 : vector<64x1xf32> to vector<64x128xf32>
    %228 = arith.addf %224, %227 : vector<64x128xf32>
    %cst_103 = arith.constant 0.000000e+00 : f32
    %229 = vector.broadcast %cst_103 : f32 to vector<64x128xf32>
    %230 = arith.cmpf oge, %228, %229 : vector<64x128xf32>
    %cst_104 = arith.constant 2.000000e-01 : f32
    %231 = vector.broadcast %cst_104 : f32 to vector<64x128xf32>
    %232 = arith.mulf %231, %228 : vector<64x128xf32>
    %233 = arith.select %230, %228, %232 : vector<64x128xi1>, vector<64x128xf32>
    %c3_105 = arith.constant 3 : index
    %c0_106 = arith.constant 0 : index
    %c0_107 = arith.constant 0 : index
    %234 = vector.load %arg5[%c3_105, %c0_106, %c0_107] : memref<10x64x64xf32, #tpu.memory_space<vmem>>, vector<1x64x64xf32>
    %235 = vector.shape_cast %234 : vector<1x64x64xf32> to vector<64x64xf32>
    %cst_108 = arith.constant dense<0.000000e+00> : vector<64x128xf32>
    %236 = tpu.matmul %235, %233, %cst_108 {dimension_numbers = #tpu.dot_dimension_numbers<[1], [0], [0], [1], [0, 0, 1, 1], [], []>} : vector<64x64xf32>, vector<64x128xf32>, vector<64x128xf32> -> vector<64x128xf32>
    %c3_109 = arith.constant 3 : index
    %c0_110 = arith.constant 0 : index
    %c0_111 = arith.constant 0 : index
    %237 = vector.load %arg6[%c3_109, %c0_110, %c0_111] : memref<10x64x1xf32, #tpu.memory_space<vmem>>, vector<1x64x1xf32>
    %238 = vector.shape_cast %237 : vector<1x64x1xf32> to vector<64x1xf32>
    %239 = vector.broadcast %238 : vector<64x1xf32> to vector<64x128xf32>
    %240 = arith.addf %236, %239 : vector<64x128xf32>
    %cst_112 = arith.constant 0.000000e+00 : f32
    %241 = vector.broadcast %cst_112 : f32 to vector<64x128xf32>
    %242 = arith.cmpf oge, %240, %241 : vector<64x128xf32>
    %cst_113 = arith.constant 2.000000e-01 : f32
    %243 = vector.broadcast %cst_113 : f32 to vector<64x128xf32>
    %244 = arith.mulf %243, %240 : vector<64x128xf32>
    %245 = arith.select %242, %240, %244 : vector<64x128xi1>, vector<64x128xf32>
    %c3_114 = arith.constant 3 : index
    %c0_115 = arith.constant 0 : index
    %c0_116 = arith.constant 0 : index
    %246 = vector.load %arg7[%c3_114, %c0_115, %c0_116] : memref<10x8x64xf32, #tpu.memory_space<vmem>>, vector<1x8x64xf32>
    %247 = vector.shape_cast %246 : vector<1x8x64xf32> to vector<8x64xf32>
    %cst_117 = arith.constant dense<0.000000e+00> : vector<8x128xf32>
    %248 = tpu.matmul %247, %245, %cst_117 {dimension_numbers = #tpu.dot_dimension_numbers<[1], [0], [0], [1], [0, 0, 1, 1], [], []>} : vector<8x64xf32>, vector<64x128xf32>, vector<8x128xf32> -> vector<8x128xf32>
    %c3_118 = arith.constant 3 : index
    %c0_119 = arith.constant 0 : index
    %c0_120 = arith.constant 0 : index
    %249 = vector.load %arg8[%c3_118, %c0_119, %c0_120] : memref<10x8x1xf32, #tpu.memory_space<vmem>>, vector<1x8x1xf32>
    %250 = vector.shape_cast %249 : vector<1x8x1xf32> to vector<8x1xf32>
    %251 = vector.broadcast %250 : vector<8x1xf32> to vector<8x128xf32>
    %252 = arith.addf %248, %251 : vector<8x128xf32>
    %253 = vector.extract_strided_slice %252 {offsets = [0, 0], sizes = [1, 128], strides = [1, 1]} : vector<8x128xf32> to vector<1x128xf32>
    %254 = math.tanh %253 : vector<1x128xf32>
    %cst_121 = arith.constant 2.000000e+00 : f32
    %255 = vector.broadcast %cst_121 : f32 to vector<1x128xf32>
    %256 = arith.mulf %254, %255 : vector<1x128xf32>
    %257 = vector.extract_strided_slice %252 {offsets = [1, 0], sizes = [1, 128], strides = [1, 1]} : vector<8x128xf32> to vector<1x128xf32>
    %258 = math.exp %256 : vector<1x128xf32>
    %259 = arith.mulf %132, %258 : vector<1x128xf32>
    %260 = arith.addf %259, %257 : vector<1x128xf32>
    %261 = arith.addf %197, %256 : vector<1x128xf32>
    %c4 = arith.constant 4 : index
    %c0_122 = arith.constant 0 : index
    %c0_123 = arith.constant 0 : index
    %262 = vector.load %arg2[%c4, %c0_122, %c0_123] : memref<10x64x4xf32, #tpu.memory_space<vmem>>, vector<1x64x4xf32>
    %263 = vector.shape_cast %262 : vector<1x64x4xf32> to vector<64x4xf32>
    %264 = vector.extract_strided_slice %263 {offsets = [0, 0], sizes = [64, 1], strides = [1, 1]} : vector<64x4xf32> to vector<64x1xf32>
    %265 = vector.broadcast %264 : vector<64x1xf32> to vector<64x128xf32>
    %266 = vector.broadcast %260 : vector<1x128xf32> to vector<64x128xf32>
    %267 = arith.mulf %265, %266 : vector<64x128xf32>
    %268 = vector.extract_strided_slice %263 {offsets = [0, 1], sizes = [64, 1], strides = [1, 1]} : vector<64x4xf32> to vector<64x1xf32>
    %269 = vector.broadcast %268 : vector<64x1xf32> to vector<64x128xf32>
    %270 = vector.broadcast %3 : vector<1x128xf32> to vector<64x128xf32>
    %271 = arith.mulf %269, %270 : vector<64x128xf32>
    %272 = arith.addf %267, %271 : vector<64x128xf32>
    %273 = vector.extract_strided_slice %263 {offsets = [0, 2], sizes = [64, 1], strides = [1, 1]} : vector<64x4xf32> to vector<64x1xf32>
    %274 = vector.broadcast %273 : vector<64x1xf32> to vector<64x128xf32>
    %275 = vector.broadcast %4 : vector<1x128xf32> to vector<64x128xf32>
    %276 = arith.mulf %274, %275 : vector<64x128xf32>
    %277 = arith.addf %272, %276 : vector<64x128xf32>
    %278 = vector.extract_strided_slice %263 {offsets = [0, 3], sizes = [64, 1], strides = [1, 1]} : vector<64x4xf32> to vector<64x1xf32>
    %279 = vector.broadcast %278 : vector<64x1xf32> to vector<64x128xf32>
    %280 = arith.addf %277, %279 : vector<64x128xf32>
    %cst_124 = arith.constant 0.000000e+00 : f32
    %281 = vector.broadcast %cst_124 : f32 to vector<64x128xf32>
    %282 = arith.cmpf oge, %280, %281 : vector<64x128xf32>
    %cst_125 = arith.constant 2.000000e-01 : f32
    %283 = vector.broadcast %cst_125 : f32 to vector<64x128xf32>
    %284 = arith.mulf %283, %280 : vector<64x128xf32>
    %285 = arith.select %282, %280, %284 : vector<64x128xi1>, vector<64x128xf32>
    %c4_126 = arith.constant 4 : index
    %c0_127 = arith.constant 0 : index
    %c0_128 = arith.constant 0 : index
    %286 = vector.load %arg3[%c4_126, %c0_127, %c0_128] : memref<10x64x64xf32, #tpu.memory_space<vmem>>, vector<1x64x64xf32>
    %287 = vector.shape_cast %286 : vector<1x64x64xf32> to vector<64x64xf32>
    %cst_129 = arith.constant dense<0.000000e+00> : vector<64x128xf32>
    %288 = tpu.matmul %287, %285, %cst_129 {dimension_numbers = #tpu.dot_dimension_numbers<[1], [0], [0], [1], [0, 0, 1, 1], [], []>} : vector<64x64xf32>, vector<64x128xf32>, vector<64x128xf32> -> vector<64x128xf32>
    %c4_130 = arith.constant 4 : index
    %c0_131 = arith.constant 0 : index
    %c0_132 = arith.constant 0 : index
    %289 = vector.load %arg4[%c4_130, %c0_131, %c0_132] : memref<10x64x1xf32, #tpu.memory_space<vmem>>, vector<1x64x1xf32>
    %290 = vector.shape_cast %289 : vector<1x64x1xf32> to vector<64x1xf32>
    %291 = vector.broadcast %290 : vector<64x1xf32> to vector<64x128xf32>
    %292 = arith.addf %288, %291 : vector<64x128xf32>
    %cst_133 = arith.constant 0.000000e+00 : f32
    %293 = vector.broadcast %cst_133 : f32 to vector<64x128xf32>
    %294 = arith.cmpf oge, %292, %293 : vector<64x128xf32>
    %cst_134 = arith.constant 2.000000e-01 : f32
    %295 = vector.broadcast %cst_134 : f32 to vector<64x128xf32>
    %296 = arith.mulf %295, %292 : vector<64x128xf32>
    %297 = arith.select %294, %292, %296 : vector<64x128xi1>, vector<64x128xf32>
    %c4_135 = arith.constant 4 : index
    %c0_136 = arith.constant 0 : index
    %c0_137 = arith.constant 0 : index
    %298 = vector.load %arg5[%c4_135, %c0_136, %c0_137] : memref<10x64x64xf32, #tpu.memory_space<vmem>>, vector<1x64x64xf32>
    %299 = vector.shape_cast %298 : vector<1x64x64xf32> to vector<64x64xf32>
    %cst_138 = arith.constant dense<0.000000e+00> : vector<64x128xf32>
    %300 = tpu.matmul %299, %297, %cst_138 {dimension_numbers = #tpu.dot_dimension_numbers<[1], [0], [0], [1], [0, 0, 1, 1], [], []>} : vector<64x64xf32>, vector<64x128xf32>, vector<64x128xf32> -> vector<64x128xf32>
    %c4_139 = arith.constant 4 : index
    %c0_140 = arith.constant 0 : index
    %c0_141 = arith.constant 0 : index
    %301 = vector.load %arg6[%c4_139, %c0_140, %c0_141] : memref<10x64x1xf32, #tpu.memory_space<vmem>>, vector<1x64x1xf32>
    %302 = vector.shape_cast %301 : vector<1x64x1xf32> to vector<64x1xf32>
    %303 = vector.broadcast %302 : vector<64x1xf32> to vector<64x128xf32>
    %304 = arith.addf %300, %303 : vector<64x128xf32>
    %cst_142 = arith.constant 0.000000e+00 : f32
    %305 = vector.broadcast %cst_142 : f32 to vector<64x128xf32>
    %306 = arith.cmpf oge, %304, %305 : vector<64x128xf32>
    %cst_143 = arith.constant 2.000000e-01 : f32
    %307 = vector.broadcast %cst_143 : f32 to vector<64x128xf32>
    %308 = arith.mulf %307, %304 : vector<64x128xf32>
    %309 = arith.select %306, %304, %308 : vector<64x128xi1>, vector<64x128xf32>
    %c4_144 = arith.constant 4 : index
    %c0_145 = arith.constant 0 : index
    %c0_146 = arith.constant 0 : index
    %310 = vector.load %arg7[%c4_144, %c0_145, %c0_146] : memref<10x8x64xf32, #tpu.memory_space<vmem>>, vector<1x8x64xf32>
    %311 = vector.shape_cast %310 : vector<1x8x64xf32> to vector<8x64xf32>
    %cst_147 = arith.constant dense<0.000000e+00> : vector<8x128xf32>
    %312 = tpu.matmul %311, %309, %cst_147 {dimension_numbers = #tpu.dot_dimension_numbers<[1], [0], [0], [1], [0, 0, 1, 1], [], []>} : vector<8x64xf32>, vector<64x128xf32>, vector<8x128xf32> -> vector<8x128xf32>
    %c4_148 = arith.constant 4 : index
    %c0_149 = arith.constant 0 : index
    %c0_150 = arith.constant 0 : index
    %313 = vector.load %arg8[%c4_148, %c0_149, %c0_150] : memref<10x8x1xf32, #tpu.memory_space<vmem>>, vector<1x8x1xf32>
    %314 = vector.shape_cast %313 : vector<1x8x1xf32> to vector<8x1xf32>
    %315 = vector.broadcast %314 : vector<8x1xf32> to vector<8x128xf32>
    %316 = arith.addf %312, %315 : vector<8x128xf32>
    %317 = vector.extract_strided_slice %316 {offsets = [0, 0], sizes = [1, 128], strides = [1, 1]} : vector<8x128xf32> to vector<1x128xf32>
    %318 = math.tanh %317 : vector<1x128xf32>
    %cst_151 = arith.constant 2.000000e+00 : f32
    %319 = vector.broadcast %cst_151 : f32 to vector<1x128xf32>
    %320 = arith.mulf %318, %319 : vector<1x128xf32>
    %321 = vector.extract_strided_slice %316 {offsets = [1, 0], sizes = [1, 128], strides = [1, 1]} : vector<8x128xf32> to vector<1x128xf32>
    %322 = math.exp %320 : vector<1x128xf32>
    %323 = arith.mulf %196, %322 : vector<1x128xf32>
    %324 = arith.addf %323, %321 : vector<1x128xf32>
    %325 = arith.addf %261, %320 : vector<1x128xf32>
    %c5 = arith.constant 5 : index
    %c0_152 = arith.constant 0 : index
    %c0_153 = arith.constant 0 : index
    %326 = vector.load %arg2[%c5, %c0_152, %c0_153] : memref<10x64x4xf32, #tpu.memory_space<vmem>>, vector<1x64x4xf32>
    %327 = vector.shape_cast %326 : vector<1x64x4xf32> to vector<64x4xf32>
    %328 = vector.extract_strided_slice %327 {offsets = [0, 0], sizes = [64, 1], strides = [1, 1]} : vector<64x4xf32> to vector<64x1xf32>
    %329 = vector.broadcast %328 : vector<64x1xf32> to vector<64x128xf32>
    %330 = vector.broadcast %324 : vector<1x128xf32> to vector<64x128xf32>
    %331 = arith.mulf %329, %330 : vector<64x128xf32>
    %332 = vector.extract_strided_slice %327 {offsets = [0, 1], sizes = [64, 1], strides = [1, 1]} : vector<64x4xf32> to vector<64x1xf32>
    %333 = vector.broadcast %332 : vector<64x1xf32> to vector<64x128xf32>
    %334 = vector.broadcast %3 : vector<1x128xf32> to vector<64x128xf32>
    %335 = arith.mulf %333, %334 : vector<64x128xf32>
    %336 = arith.addf %331, %335 : vector<64x128xf32>
    %337 = vector.extract_strided_slice %327 {offsets = [0, 2], sizes = [64, 1], strides = [1, 1]} : vector<64x4xf32> to vector<64x1xf32>
    %338 = vector.broadcast %337 : vector<64x1xf32> to vector<64x128xf32>
    %339 = vector.broadcast %4 : vector<1x128xf32> to vector<64x128xf32>
    %340 = arith.mulf %338, %339 : vector<64x128xf32>
    %341 = arith.addf %336, %340 : vector<64x128xf32>
    %342 = vector.extract_strided_slice %327 {offsets = [0, 3], sizes = [64, 1], strides = [1, 1]} : vector<64x4xf32> to vector<64x1xf32>
    %343 = vector.broadcast %342 : vector<64x1xf32> to vector<64x128xf32>
    %344 = arith.addf %341, %343 : vector<64x128xf32>
    %cst_154 = arith.constant 0.000000e+00 : f32
    %345 = vector.broadcast %cst_154 : f32 to vector<64x128xf32>
    %346 = arith.cmpf oge, %344, %345 : vector<64x128xf32>
    %cst_155 = arith.constant 2.000000e-01 : f32
    %347 = vector.broadcast %cst_155 : f32 to vector<64x128xf32>
    %348 = arith.mulf %347, %344 : vector<64x128xf32>
    %349 = arith.select %346, %344, %348 : vector<64x128xi1>, vector<64x128xf32>
    %c5_156 = arith.constant 5 : index
    %c0_157 = arith.constant 0 : index
    %c0_158 = arith.constant 0 : index
    %350 = vector.load %arg3[%c5_156, %c0_157, %c0_158] : memref<10x64x64xf32, #tpu.memory_space<vmem>>, vector<1x64x64xf32>
    %351 = vector.shape_cast %350 : vector<1x64x64xf32> to vector<64x64xf32>
    %cst_159 = arith.constant dense<0.000000e+00> : vector<64x128xf32>
    %352 = tpu.matmul %351, %349, %cst_159 {dimension_numbers = #tpu.dot_dimension_numbers<[1], [0], [0], [1], [0, 0, 1, 1], [], []>} : vector<64x64xf32>, vector<64x128xf32>, vector<64x128xf32> -> vector<64x128xf32>
    %c5_160 = arith.constant 5 : index
    %c0_161 = arith.constant 0 : index
    %c0_162 = arith.constant 0 : index
    %353 = vector.load %arg4[%c5_160, %c0_161, %c0_162] : memref<10x64x1xf32, #tpu.memory_space<vmem>>, vector<1x64x1xf32>
    %354 = vector.shape_cast %353 : vector<1x64x1xf32> to vector<64x1xf32>
    %355 = vector.broadcast %354 : vector<64x1xf32> to vector<64x128xf32>
    %356 = arith.addf %352, %355 : vector<64x128xf32>
    %cst_163 = arith.constant 0.000000e+00 : f32
    %357 = vector.broadcast %cst_163 : f32 to vector<64x128xf32>
    %358 = arith.cmpf oge, %356, %357 : vector<64x128xf32>
    %cst_164 = arith.constant 2.000000e-01 : f32
    %359 = vector.broadcast %cst_164 : f32 to vector<64x128xf32>
    %360 = arith.mulf %359, %356 : vector<64x128xf32>
    %361 = arith.select %358, %356, %360 : vector<64x128xi1>, vector<64x128xf32>
    %c5_165 = arith.constant 5 : index
    %c0_166 = arith.constant 0 : index
    %c0_167 = arith.constant 0 : index
    %362 = vector.load %arg5[%c5_165, %c0_166, %c0_167] : memref<10x64x64xf32, #tpu.memory_space<vmem>>, vector<1x64x64xf32>
    %363 = vector.shape_cast %362 : vector<1x64x64xf32> to vector<64x64xf32>
    %cst_168 = arith.constant dense<0.000000e+00> : vector<64x128xf32>
    %364 = tpu.matmul %363, %361, %cst_168 {dimension_numbers = #tpu.dot_dimension_numbers<[1], [0], [0], [1], [0, 0, 1, 1], [], []>} : vector<64x64xf32>, vector<64x128xf32>, vector<64x128xf32> -> vector<64x128xf32>
    %c5_169 = arith.constant 5 : index
    %c0_170 = arith.constant 0 : index
    %c0_171 = arith.constant 0 : index
    %365 = vector.load %arg6[%c5_169, %c0_170, %c0_171] : memref<10x64x1xf32, #tpu.memory_space<vmem>>, vector<1x64x1xf32>
    %366 = vector.shape_cast %365 : vector<1x64x1xf32> to vector<64x1xf32>
    %367 = vector.broadcast %366 : vector<64x1xf32> to vector<64x128xf32>
    %368 = arith.addf %364, %367 : vector<64x128xf32>
    %cst_172 = arith.constant 0.000000e+00 : f32
    %369 = vector.broadcast %cst_172 : f32 to vector<64x128xf32>
    %370 = arith.cmpf oge, %368, %369 : vector<64x128xf32>
    %cst_173 = arith.constant 2.000000e-01 : f32
    %371 = vector.broadcast %cst_173 : f32 to vector<64x128xf32>
    %372 = arith.mulf %371, %368 : vector<64x128xf32>
    %373 = arith.select %370, %368, %372 : vector<64x128xi1>, vector<64x128xf32>
    %c5_174 = arith.constant 5 : index
    %c0_175 = arith.constant 0 : index
    %c0_176 = arith.constant 0 : index
    %374 = vector.load %arg7[%c5_174, %c0_175, %c0_176] : memref<10x8x64xf32, #tpu.memory_space<vmem>>, vector<1x8x64xf32>
    %375 = vector.shape_cast %374 : vector<1x8x64xf32> to vector<8x64xf32>
    %cst_177 = arith.constant dense<0.000000e+00> : vector<8x128xf32>
    %376 = tpu.matmul %375, %373, %cst_177 {dimension_numbers = #tpu.dot_dimension_numbers<[1], [0], [0], [1], [0, 0, 1, 1], [], []>} : vector<8x64xf32>, vector<64x128xf32>, vector<8x128xf32> -> vector<8x128xf32>
    %c5_178 = arith.constant 5 : index
    %c0_179 = arith.constant 0 : index
    %c0_180 = arith.constant 0 : index
    %377 = vector.load %arg8[%c5_178, %c0_179, %c0_180] : memref<10x8x1xf32, #tpu.memory_space<vmem>>, vector<1x8x1xf32>
    %378 = vector.shape_cast %377 : vector<1x8x1xf32> to vector<8x1xf32>
    %379 = vector.broadcast %378 : vector<8x1xf32> to vector<8x128xf32>
    %380 = arith.addf %376, %379 : vector<8x128xf32>
    %381 = vector.extract_strided_slice %380 {offsets = [0, 0], sizes = [1, 128], strides = [1, 1]} : vector<8x128xf32> to vector<1x128xf32>
    %382 = math.tanh %381 : vector<1x128xf32>
    %cst_181 = arith.constant 2.000000e+00 : f32
    %383 = vector.broadcast %cst_181 : f32 to vector<1x128xf32>
    %384 = arith.mulf %382, %383 : vector<1x128xf32>
    %385 = vector.extract_strided_slice %380 {offsets = [1, 0], sizes = [1, 128], strides = [1, 1]} : vector<8x128xf32> to vector<1x128xf32>
    %386 = math.exp %384 : vector<1x128xf32>
    %387 = arith.mulf %260, %386 : vector<1x128xf32>
    %388 = arith.addf %387, %385 : vector<1x128xf32>
    %389 = arith.addf %325, %384 : vector<1x128xf32>
    %c6 = arith.constant 6 : index
    %c0_182 = arith.constant 0 : index
    %c0_183 = arith.constant 0 : index
    %390 = vector.load %arg2[%c6, %c0_182, %c0_183] : memref<10x64x4xf32, #tpu.memory_space<vmem>>, vector<1x64x4xf32>
    %391 = vector.shape_cast %390 : vector<1x64x4xf32> to vector<64x4xf32>
    %392 = vector.extract_strided_slice %391 {offsets = [0, 0], sizes = [64, 1], strides = [1, 1]} : vector<64x4xf32> to vector<64x1xf32>
    %393 = vector.broadcast %392 : vector<64x1xf32> to vector<64x128xf32>
    %394 = vector.broadcast %388 : vector<1x128xf32> to vector<64x128xf32>
    %395 = arith.mulf %393, %394 : vector<64x128xf32>
    %396 = vector.extract_strided_slice %391 {offsets = [0, 1], sizes = [64, 1], strides = [1, 1]} : vector<64x4xf32> to vector<64x1xf32>
    %397 = vector.broadcast %396 : vector<64x1xf32> to vector<64x128xf32>
    %398 = vector.broadcast %3 : vector<1x128xf32> to vector<64x128xf32>
    %399 = arith.mulf %397, %398 : vector<64x128xf32>
    %400 = arith.addf %395, %399 : vector<64x128xf32>
    %401 = vector.extract_strided_slice %391 {offsets = [0, 2], sizes = [64, 1], strides = [1, 1]} : vector<64x4xf32> to vector<64x1xf32>
    %402 = vector.broadcast %401 : vector<64x1xf32> to vector<64x128xf32>
    %403 = vector.broadcast %4 : vector<1x128xf32> to vector<64x128xf32>
    %404 = arith.mulf %402, %403 : vector<64x128xf32>
    %405 = arith.addf %400, %404 : vector<64x128xf32>
    %406 = vector.extract_strided_slice %391 {offsets = [0, 3], sizes = [64, 1], strides = [1, 1]} : vector<64x4xf32> to vector<64x1xf32>
    %407 = vector.broadcast %406 : vector<64x1xf32> to vector<64x128xf32>
    %408 = arith.addf %405, %407 : vector<64x128xf32>
    %cst_184 = arith.constant 0.000000e+00 : f32
    %409 = vector.broadcast %cst_184 : f32 to vector<64x128xf32>
    %410 = arith.cmpf oge, %408, %409 : vector<64x128xf32>
    %cst_185 = arith.constant 2.000000e-01 : f32
    %411 = vector.broadcast %cst_185 : f32 to vector<64x128xf32>
    %412 = arith.mulf %411, %408 : vector<64x128xf32>
    %413 = arith.select %410, %408, %412 : vector<64x128xi1>, vector<64x128xf32>
    %c6_186 = arith.constant 6 : index
    %c0_187 = arith.constant 0 : index
    %c0_188 = arith.constant 0 : index
    %414 = vector.load %arg3[%c6_186, %c0_187, %c0_188] : memref<10x64x64xf32, #tpu.memory_space<vmem>>, vector<1x64x64xf32>
    %415 = vector.shape_cast %414 : vector<1x64x64xf32> to vector<64x64xf32>
    %cst_189 = arith.constant dense<0.000000e+00> : vector<64x128xf32>
    %416 = tpu.matmul %415, %413, %cst_189 {dimension_numbers = #tpu.dot_dimension_numbers<[1], [0], [0], [1], [0, 0, 1, 1], [], []>} : vector<64x64xf32>, vector<64x128xf32>, vector<64x128xf32> -> vector<64x128xf32>
    %c6_190 = arith.constant 6 : index
    %c0_191 = arith.constant 0 : index
    %c0_192 = arith.constant 0 : index
    %417 = vector.load %arg4[%c6_190, %c0_191, %c0_192] : memref<10x64x1xf32, #tpu.memory_space<vmem>>, vector<1x64x1xf32>
    %418 = vector.shape_cast %417 : vector<1x64x1xf32> to vector<64x1xf32>
    %419 = vector.broadcast %418 : vector<64x1xf32> to vector<64x128xf32>
    %420 = arith.addf %416, %419 : vector<64x128xf32>
    %cst_193 = arith.constant 0.000000e+00 : f32
    %421 = vector.broadcast %cst_193 : f32 to vector<64x128xf32>
    %422 = arith.cmpf oge, %420, %421 : vector<64x128xf32>
    %cst_194 = arith.constant 2.000000e-01 : f32
    %423 = vector.broadcast %cst_194 : f32 to vector<64x128xf32>
    %424 = arith.mulf %423, %420 : vector<64x128xf32>
    %425 = arith.select %422, %420, %424 : vector<64x128xi1>, vector<64x128xf32>
    %c6_195 = arith.constant 6 : index
    %c0_196 = arith.constant 0 : index
    %c0_197 = arith.constant 0 : index
    %426 = vector.load %arg5[%c6_195, %c0_196, %c0_197] : memref<10x64x64xf32, #tpu.memory_space<vmem>>, vector<1x64x64xf32>
    %427 = vector.shape_cast %426 : vector<1x64x64xf32> to vector<64x64xf32>
    %cst_198 = arith.constant dense<0.000000e+00> : vector<64x128xf32>
    %428 = tpu.matmul %427, %425, %cst_198 {dimension_numbers = #tpu.dot_dimension_numbers<[1], [0], [0], [1], [0, 0, 1, 1], [], []>} : vector<64x64xf32>, vector<64x128xf32>, vector<64x128xf32> -> vector<64x128xf32>
    %c6_199 = arith.constant 6 : index
    %c0_200 = arith.constant 0 : index
    %c0_201 = arith.constant 0 : index
    %429 = vector.load %arg6[%c6_199, %c0_200, %c0_201] : memref<10x64x1xf32, #tpu.memory_space<vmem>>, vector<1x64x1xf32>
    %430 = vector.shape_cast %429 : vector<1x64x1xf32> to vector<64x1xf32>
    %431 = vector.broadcast %430 : vector<64x1xf32> to vector<64x128xf32>
    %432 = arith.addf %428, %431 : vector<64x128xf32>
    %cst_202 = arith.constant 0.000000e+00 : f32
    %433 = vector.broadcast %cst_202 : f32 to vector<64x128xf32>
    %434 = arith.cmpf oge, %432, %433 : vector<64x128xf32>
    %cst_203 = arith.constant 2.000000e-01 : f32
    %435 = vector.broadcast %cst_203 : f32 to vector<64x128xf32>
    %436 = arith.mulf %435, %432 : vector<64x128xf32>
    %437 = arith.select %434, %432, %436 : vector<64x128xi1>, vector<64x128xf32>
    %c6_204 = arith.constant 6 : index
    %c0_205 = arith.constant 0 : index
    %c0_206 = arith.constant 0 : index
    %438 = vector.load %arg7[%c6_204, %c0_205, %c0_206] : memref<10x8x64xf32, #tpu.memory_space<vmem>>, vector<1x8x64xf32>
    %439 = vector.shape_cast %438 : vector<1x8x64xf32> to vector<8x64xf32>
    %cst_207 = arith.constant dense<0.000000e+00> : vector<8x128xf32>
    %440 = tpu.matmul %439, %437, %cst_207 {dimension_numbers = #tpu.dot_dimension_numbers<[1], [0], [0], [1], [0, 0, 1, 1], [], []>} : vector<8x64xf32>, vector<64x128xf32>, vector<8x128xf32> -> vector<8x128xf32>
    %c6_208 = arith.constant 6 : index
    %c0_209 = arith.constant 0 : index
    %c0_210 = arith.constant 0 : index
    %441 = vector.load %arg8[%c6_208, %c0_209, %c0_210] : memref<10x8x1xf32, #tpu.memory_space<vmem>>, vector<1x8x1xf32>
    %442 = vector.shape_cast %441 : vector<1x8x1xf32> to vector<8x1xf32>
    %443 = vector.broadcast %442 : vector<8x1xf32> to vector<8x128xf32>
    %444 = arith.addf %440, %443 : vector<8x128xf32>
    %445 = vector.extract_strided_slice %444 {offsets = [0, 0], sizes = [1, 128], strides = [1, 1]} : vector<8x128xf32> to vector<1x128xf32>
    %446 = math.tanh %445 : vector<1x128xf32>
    %cst_211 = arith.constant 2.000000e+00 : f32
    %447 = vector.broadcast %cst_211 : f32 to vector<1x128xf32>
    %448 = arith.mulf %446, %447 : vector<1x128xf32>
    %449 = vector.extract_strided_slice %444 {offsets = [1, 0], sizes = [1, 128], strides = [1, 1]} : vector<8x128xf32> to vector<1x128xf32>
    %450 = math.exp %448 : vector<1x128xf32>
    %451 = arith.mulf %324, %450 : vector<1x128xf32>
    %452 = arith.addf %451, %449 : vector<1x128xf32>
    %453 = arith.addf %389, %448 : vector<1x128xf32>
    %c7 = arith.constant 7 : index
    %c0_212 = arith.constant 0 : index
    %c0_213 = arith.constant 0 : index
    %454 = vector.load %arg2[%c7, %c0_212, %c0_213] : memref<10x64x4xf32, #tpu.memory_space<vmem>>, vector<1x64x4xf32>
    %455 = vector.shape_cast %454 : vector<1x64x4xf32> to vector<64x4xf32>
    %456 = vector.extract_strided_slice %455 {offsets = [0, 0], sizes = [64, 1], strides = [1, 1]} : vector<64x4xf32> to vector<64x1xf32>
    %457 = vector.broadcast %456 : vector<64x1xf32> to vector<64x128xf32>
    %458 = vector.broadcast %452 : vector<1x128xf32> to vector<64x128xf32>
    %459 = arith.mulf %457, %458 : vector<64x128xf32>
    %460 = vector.extract_strided_slice %455 {offsets = [0, 1], sizes = [64, 1], strides = [1, 1]} : vector<64x4xf32> to vector<64x1xf32>
    %461 = vector.broadcast %460 : vector<64x1xf32> to vector<64x128xf32>
    %462 = vector.broadcast %3 : vector<1x128xf32> to vector<64x128xf32>
    %463 = arith.mulf %461, %462 : vector<64x128xf32>
    %464 = arith.addf %459, %463 : vector<64x128xf32>
    %465 = vector.extract_strided_slice %455 {offsets = [0, 2], sizes = [64, 1], strides = [1, 1]} : vector<64x4xf32> to vector<64x1xf32>
    %466 = vector.broadcast %465 : vector<64x1xf32> to vector<64x128xf32>
    %467 = vector.broadcast %4 : vector<1x128xf32> to vector<64x128xf32>
    %468 = arith.mulf %466, %467 : vector<64x128xf32>
    %469 = arith.addf %464, %468 : vector<64x128xf32>
    %470 = vector.extract_strided_slice %455 {offsets = [0, 3], sizes = [64, 1], strides = [1, 1]} : vector<64x4xf32> to vector<64x1xf32>
    %471 = vector.broadcast %470 : vector<64x1xf32> to vector<64x128xf32>
    %472 = arith.addf %469, %471 : vector<64x128xf32>
    %cst_214 = arith.constant 0.000000e+00 : f32
    %473 = vector.broadcast %cst_214 : f32 to vector<64x128xf32>
    %474 = arith.cmpf oge, %472, %473 : vector<64x128xf32>
    %cst_215 = arith.constant 2.000000e-01 : f32
    %475 = vector.broadcast %cst_215 : f32 to vector<64x128xf32>
    %476 = arith.mulf %475, %472 : vector<64x128xf32>
    %477 = arith.select %474, %472, %476 : vector<64x128xi1>, vector<64x128xf32>
    %c7_216 = arith.constant 7 : index
    %c0_217 = arith.constant 0 : index
    %c0_218 = arith.constant 0 : index
    %478 = vector.load %arg3[%c7_216, %c0_217, %c0_218] : memref<10x64x64xf32, #tpu.memory_space<vmem>>, vector<1x64x64xf32>
    %479 = vector.shape_cast %478 : vector<1x64x64xf32> to vector<64x64xf32>
    %cst_219 = arith.constant dense<0.000000e+00> : vector<64x128xf32>
    %480 = tpu.matmul %479, %477, %cst_219 {dimension_numbers = #tpu.dot_dimension_numbers<[1], [0], [0], [1], [0, 0, 1, 1], [], []>} : vector<64x64xf32>, vector<64x128xf32>, vector<64x128xf32> -> vector<64x128xf32>
    %c7_220 = arith.constant 7 : index
    %c0_221 = arith.constant 0 : index
    %c0_222 = arith.constant 0 : index
    %481 = vector.load %arg4[%c7_220, %c0_221, %c0_222] : memref<10x64x1xf32, #tpu.memory_space<vmem>>, vector<1x64x1xf32>
    %482 = vector.shape_cast %481 : vector<1x64x1xf32> to vector<64x1xf32>
    %483 = vector.broadcast %482 : vector<64x1xf32> to vector<64x128xf32>
    %484 = arith.addf %480, %483 : vector<64x128xf32>
    %cst_223 = arith.constant 0.000000e+00 : f32
    %485 = vector.broadcast %cst_223 : f32 to vector<64x128xf32>
    %486 = arith.cmpf oge, %484, %485 : vector<64x128xf32>
    %cst_224 = arith.constant 2.000000e-01 : f32
    %487 = vector.broadcast %cst_224 : f32 to vector<64x128xf32>
    %488 = arith.mulf %487, %484 : vector<64x128xf32>
    %489 = arith.select %486, %484, %488 : vector<64x128xi1>, vector<64x128xf32>
    %c7_225 = arith.constant 7 : index
    %c0_226 = arith.constant 0 : index
    %c0_227 = arith.constant 0 : index
    %490 = vector.load %arg5[%c7_225, %c0_226, %c0_227] : memref<10x64x64xf32, #tpu.memory_space<vmem>>, vector<1x64x64xf32>
    %491 = vector.shape_cast %490 : vector<1x64x64xf32> to vector<64x64xf32>
    %cst_228 = arith.constant dense<0.000000e+00> : vector<64x128xf32>
    %492 = tpu.matmul %491, %489, %cst_228 {dimension_numbers = #tpu.dot_dimension_numbers<[1], [0], [0], [1], [0, 0, 1, 1], [], []>} : vector<64x64xf32>, vector<64x128xf32>, vector<64x128xf32> -> vector<64x128xf32>
    %c7_229 = arith.constant 7 : index
    %c0_230 = arith.constant 0 : index
    %c0_231 = arith.constant 0 : index
    %493 = vector.load %arg6[%c7_229, %c0_230, %c0_231] : memref<10x64x1xf32, #tpu.memory_space<vmem>>, vector<1x64x1xf32>
    %494 = vector.shape_cast %493 : vector<1x64x1xf32> to vector<64x1xf32>
    %495 = vector.broadcast %494 : vector<64x1xf32> to vector<64x128xf32>
    %496 = arith.addf %492, %495 : vector<64x128xf32>
    %cst_232 = arith.constant 0.000000e+00 : f32
    %497 = vector.broadcast %cst_232 : f32 to vector<64x128xf32>
    %498 = arith.cmpf oge, %496, %497 : vector<64x128xf32>
    %cst_233 = arith.constant 2.000000e-01 : f32
    %499 = vector.broadcast %cst_233 : f32 to vector<64x128xf32>
    %500 = arith.mulf %499, %496 : vector<64x128xf32>
    %501 = arith.select %498, %496, %500 : vector<64x128xi1>, vector<64x128xf32>
    %c7_234 = arith.constant 7 : index
    %c0_235 = arith.constant 0 : index
    %c0_236 = arith.constant 0 : index
    %502 = vector.load %arg7[%c7_234, %c0_235, %c0_236] : memref<10x8x64xf32, #tpu.memory_space<vmem>>, vector<1x8x64xf32>
    %503 = vector.shape_cast %502 : vector<1x8x64xf32> to vector<8x64xf32>
    %cst_237 = arith.constant dense<0.000000e+00> : vector<8x128xf32>
    %504 = tpu.matmul %503, %501, %cst_237 {dimension_numbers = #tpu.dot_dimension_numbers<[1], [0], [0], [1], [0, 0, 1, 1], [], []>} : vector<8x64xf32>, vector<64x128xf32>, vector<8x128xf32> -> vector<8x128xf32>
    %c7_238 = arith.constant 7 : index
    %c0_239 = arith.constant 0 : index
    %c0_240 = arith.constant 0 : index
    %505 = vector.load %arg8[%c7_238, %c0_239, %c0_240] : memref<10x8x1xf32, #tpu.memory_space<vmem>>, vector<1x8x1xf32>
    %506 = vector.shape_cast %505 : vector<1x8x1xf32> to vector<8x1xf32>
    %507 = vector.broadcast %506 : vector<8x1xf32> to vector<8x128xf32>
    %508 = arith.addf %504, %507 : vector<8x128xf32>
    %509 = vector.extract_strided_slice %508 {offsets = [0, 0], sizes = [1, 128], strides = [1, 1]} : vector<8x128xf32> to vector<1x128xf32>
    %510 = math.tanh %509 : vector<1x128xf32>
    %cst_241 = arith.constant 2.000000e+00 : f32
    %511 = vector.broadcast %cst_241 : f32 to vector<1x128xf32>
    %512 = arith.mulf %510, %511 : vector<1x128xf32>
    %513 = vector.extract_strided_slice %508 {offsets = [1, 0], sizes = [1, 128], strides = [1, 1]} : vector<8x128xf32> to vector<1x128xf32>
    %514 = math.exp %512 : vector<1x128xf32>
    %515 = arith.mulf %388, %514 : vector<1x128xf32>
    %516 = arith.addf %515, %513 : vector<1x128xf32>
    %517 = arith.addf %453, %512 : vector<1x128xf32>
    %c8 = arith.constant 8 : index
    %c0_242 = arith.constant 0 : index
    %c0_243 = arith.constant 0 : index
    %518 = vector.load %arg2[%c8, %c0_242, %c0_243] : memref<10x64x4xf32, #tpu.memory_space<vmem>>, vector<1x64x4xf32>
    %519 = vector.shape_cast %518 : vector<1x64x4xf32> to vector<64x4xf32>
    %520 = vector.extract_strided_slice %519 {offsets = [0, 0], sizes = [64, 1], strides = [1, 1]} : vector<64x4xf32> to vector<64x1xf32>
    %521 = vector.broadcast %520 : vector<64x1xf32> to vector<64x128xf32>
    %522 = vector.broadcast %516 : vector<1x128xf32> to vector<64x128xf32>
    %523 = arith.mulf %521, %522 : vector<64x128xf32>
    %524 = vector.extract_strided_slice %519 {offsets = [0, 1], sizes = [64, 1], strides = [1, 1]} : vector<64x4xf32> to vector<64x1xf32>
    %525 = vector.broadcast %524 : vector<64x1xf32> to vector<64x128xf32>
    %526 = vector.broadcast %3 : vector<1x128xf32> to vector<64x128xf32>
    %527 = arith.mulf %525, %526 : vector<64x128xf32>
    %528 = arith.addf %523, %527 : vector<64x128xf32>
    %529 = vector.extract_strided_slice %519 {offsets = [0, 2], sizes = [64, 1], strides = [1, 1]} : vector<64x4xf32> to vector<64x1xf32>
    %530 = vector.broadcast %529 : vector<64x1xf32> to vector<64x128xf32>
    %531 = vector.broadcast %4 : vector<1x128xf32> to vector<64x128xf32>
    %532 = arith.mulf %530, %531 : vector<64x128xf32>
    %533 = arith.addf %528, %532 : vector<64x128xf32>
    %534 = vector.extract_strided_slice %519 {offsets = [0, 3], sizes = [64, 1], strides = [1, 1]} : vector<64x4xf32> to vector<64x1xf32>
    %535 = vector.broadcast %534 : vector<64x1xf32> to vector<64x128xf32>
    %536 = arith.addf %533, %535 : vector<64x128xf32>
    %cst_244 = arith.constant 0.000000e+00 : f32
    %537 = vector.broadcast %cst_244 : f32 to vector<64x128xf32>
    %538 = arith.cmpf oge, %536, %537 : vector<64x128xf32>
    %cst_245 = arith.constant 2.000000e-01 : f32
    %539 = vector.broadcast %cst_245 : f32 to vector<64x128xf32>
    %540 = arith.mulf %539, %536 : vector<64x128xf32>
    %541 = arith.select %538, %536, %540 : vector<64x128xi1>, vector<64x128xf32>
    %c8_246 = arith.constant 8 : index
    %c0_247 = arith.constant 0 : index
    %c0_248 = arith.constant 0 : index
    %542 = vector.load %arg3[%c8_246, %c0_247, %c0_248] : memref<10x64x64xf32, #tpu.memory_space<vmem>>, vector<1x64x64xf32>
    %543 = vector.shape_cast %542 : vector<1x64x64xf32> to vector<64x64xf32>
    %cst_249 = arith.constant dense<0.000000e+00> : vector<64x128xf32>
    %544 = tpu.matmul %543, %541, %cst_249 {dimension_numbers = #tpu.dot_dimension_numbers<[1], [0], [0], [1], [0, 0, 1, 1], [], []>} : vector<64x64xf32>, vector<64x128xf32>, vector<64x128xf32> -> vector<64x128xf32>
    %c8_250 = arith.constant 8 : index
    %c0_251 = arith.constant 0 : index
    %c0_252 = arith.constant 0 : index
    %545 = vector.load %arg4[%c8_250, %c0_251, %c0_252] : memref<10x64x1xf32, #tpu.memory_space<vmem>>, vector<1x64x1xf32>
    %546 = vector.shape_cast %545 : vector<1x64x1xf32> to vector<64x1xf32>
    %547 = vector.broadcast %546 : vector<64x1xf32> to vector<64x128xf32>
    %548 = arith.addf %544, %547 : vector<64x128xf32>
    %cst_253 = arith.constant 0.000000e+00 : f32
    %549 = vector.broadcast %cst_253 : f32 to vector<64x128xf32>
    %550 = arith.cmpf oge, %548, %549 : vector<64x128xf32>
    %cst_254 = arith.constant 2.000000e-01 : f32
    %551 = vector.broadcast %cst_254 : f32 to vector<64x128xf32>
    %552 = arith.mulf %551, %548 : vector<64x128xf32>
    %553 = arith.select %550, %548, %552 : vector<64x128xi1>, vector<64x128xf32>
    %c8_255 = arith.constant 8 : index
    %c0_256 = arith.constant 0 : index
    %c0_257 = arith.constant 0 : index
    %554 = vector.load %arg5[%c8_255, %c0_256, %c0_257] : memref<10x64x64xf32, #tpu.memory_space<vmem>>, vector<1x64x64xf32>
    %555 = vector.shape_cast %554 : vector<1x64x64xf32> to vector<64x64xf32>
    %cst_258 = arith.constant dense<0.000000e+00> : vector<64x128xf32>
    %556 = tpu.matmul %555, %553, %cst_258 {dimension_numbers = #tpu.dot_dimension_numbers<[1], [0], [0], [1], [0, 0, 1, 1], [], []>} : vector<64x64xf32>, vector<64x128xf32>, vector<64x128xf32> -> vector<64x128xf32>
    %c8_259 = arith.constant 8 : index
    %c0_260 = arith.constant 0 : index
    %c0_261 = arith.constant 0 : index
    %557 = vector.load %arg6[%c8_259, %c0_260, %c0_261] : memref<10x64x1xf32, #tpu.memory_space<vmem>>, vector<1x64x1xf32>
    %558 = vector.shape_cast %557 : vector<1x64x1xf32> to vector<64x1xf32>
    %559 = vector.broadcast %558 : vector<64x1xf32> to vector<64x128xf32>
    %560 = arith.addf %556, %559 : vector<64x128xf32>
    %cst_262 = arith.constant 0.000000e+00 : f32
    %561 = vector.broadcast %cst_262 : f32 to vector<64x128xf32>
    %562 = arith.cmpf oge, %560, %561 : vector<64x128xf32>
    %cst_263 = arith.constant 2.000000e-01 : f32
    %563 = vector.broadcast %cst_263 : f32 to vector<64x128xf32>
    %564 = arith.mulf %563, %560 : vector<64x128xf32>
    %565 = arith.select %562, %560, %564 : vector<64x128xi1>, vector<64x128xf32>
    %c8_264 = arith.constant 8 : index
    %c0_265 = arith.constant 0 : index
    %c0_266 = arith.constant 0 : index
    %566 = vector.load %arg7[%c8_264, %c0_265, %c0_266] : memref<10x8x64xf32, #tpu.memory_space<vmem>>, vector<1x8x64xf32>
    %567 = vector.shape_cast %566 : vector<1x8x64xf32> to vector<8x64xf32>
    %cst_267 = arith.constant dense<0.000000e+00> : vector<8x128xf32>
    %568 = tpu.matmul %567, %565, %cst_267 {dimension_numbers = #tpu.dot_dimension_numbers<[1], [0], [0], [1], [0, 0, 1, 1], [], []>} : vector<8x64xf32>, vector<64x128xf32>, vector<8x128xf32> -> vector<8x128xf32>
    %c8_268 = arith.constant 8 : index
    %c0_269 = arith.constant 0 : index
    %c0_270 = arith.constant 0 : index
    %569 = vector.load %arg8[%c8_268, %c0_269, %c0_270] : memref<10x8x1xf32, #tpu.memory_space<vmem>>, vector<1x8x1xf32>
    %570 = vector.shape_cast %569 : vector<1x8x1xf32> to vector<8x1xf32>
    %571 = vector.broadcast %570 : vector<8x1xf32> to vector<8x128xf32>
    %572 = arith.addf %568, %571 : vector<8x128xf32>
    %573 = vector.extract_strided_slice %572 {offsets = [0, 0], sizes = [1, 128], strides = [1, 1]} : vector<8x128xf32> to vector<1x128xf32>
    %574 = math.tanh %573 : vector<1x128xf32>
    %cst_271 = arith.constant 2.000000e+00 : f32
    %575 = vector.broadcast %cst_271 : f32 to vector<1x128xf32>
    %576 = arith.mulf %574, %575 : vector<1x128xf32>
    %577 = vector.extract_strided_slice %572 {offsets = [1, 0], sizes = [1, 128], strides = [1, 1]} : vector<8x128xf32> to vector<1x128xf32>
    %578 = math.exp %576 : vector<1x128xf32>
    %579 = arith.mulf %452, %578 : vector<1x128xf32>
    %580 = arith.addf %579, %577 : vector<1x128xf32>
    %581 = arith.addf %517, %576 : vector<1x128xf32>
    %c9 = arith.constant 9 : index
    %c0_272 = arith.constant 0 : index
    %c0_273 = arith.constant 0 : index
    %582 = vector.load %arg2[%c9, %c0_272, %c0_273] : memref<10x64x4xf32, #tpu.memory_space<vmem>>, vector<1x64x4xf32>
    %583 = vector.shape_cast %582 : vector<1x64x4xf32> to vector<64x4xf32>
    %584 = vector.extract_strided_slice %583 {offsets = [0, 0], sizes = [64, 1], strides = [1, 1]} : vector<64x4xf32> to vector<64x1xf32>
    %585 = vector.broadcast %584 : vector<64x1xf32> to vector<64x128xf32>
    %586 = vector.broadcast %580 : vector<1x128xf32> to vector<64x128xf32>
    %587 = arith.mulf %585, %586 : vector<64x128xf32>
    %588 = vector.extract_strided_slice %583 {offsets = [0, 1], sizes = [64, 1], strides = [1, 1]} : vector<64x4xf32> to vector<64x1xf32>
    %589 = vector.broadcast %588 : vector<64x1xf32> to vector<64x128xf32>
    %590 = vector.broadcast %3 : vector<1x128xf32> to vector<64x128xf32>
    %591 = arith.mulf %589, %590 : vector<64x128xf32>
    %592 = arith.addf %587, %591 : vector<64x128xf32>
    %593 = vector.extract_strided_slice %583 {offsets = [0, 2], sizes = [64, 1], strides = [1, 1]} : vector<64x4xf32> to vector<64x1xf32>
    %594 = vector.broadcast %593 : vector<64x1xf32> to vector<64x128xf32>
    %595 = vector.broadcast %4 : vector<1x128xf32> to vector<64x128xf32>
    %596 = arith.mulf %594, %595 : vector<64x128xf32>
    %597 = arith.addf %592, %596 : vector<64x128xf32>
    %598 = vector.extract_strided_slice %583 {offsets = [0, 3], sizes = [64, 1], strides = [1, 1]} : vector<64x4xf32> to vector<64x1xf32>
    %599 = vector.broadcast %598 : vector<64x1xf32> to vector<64x128xf32>
    %600 = arith.addf %597, %599 : vector<64x128xf32>
    %cst_274 = arith.constant 0.000000e+00 : f32
    %601 = vector.broadcast %cst_274 : f32 to vector<64x128xf32>
    %602 = arith.cmpf oge, %600, %601 : vector<64x128xf32>
    %cst_275 = arith.constant 2.000000e-01 : f32
    %603 = vector.broadcast %cst_275 : f32 to vector<64x128xf32>
    %604 = arith.mulf %603, %600 : vector<64x128xf32>
    %605 = arith.select %602, %600, %604 : vector<64x128xi1>, vector<64x128xf32>
    %c9_276 = arith.constant 9 : index
    %c0_277 = arith.constant 0 : index
    %c0_278 = arith.constant 0 : index
    %606 = vector.load %arg3[%c9_276, %c0_277, %c0_278] : memref<10x64x64xf32, #tpu.memory_space<vmem>>, vector<1x64x64xf32>
    %607 = vector.shape_cast %606 : vector<1x64x64xf32> to vector<64x64xf32>
    %cst_279 = arith.constant dense<0.000000e+00> : vector<64x128xf32>
    %608 = tpu.matmul %607, %605, %cst_279 {dimension_numbers = #tpu.dot_dimension_numbers<[1], [0], [0], [1], [0, 0, 1, 1], [], []>} : vector<64x64xf32>, vector<64x128xf32>, vector<64x128xf32> -> vector<64x128xf32>
    %c9_280 = arith.constant 9 : index
    %c0_281 = arith.constant 0 : index
    %c0_282 = arith.constant 0 : index
    %609 = vector.load %arg4[%c9_280, %c0_281, %c0_282] : memref<10x64x1xf32, #tpu.memory_space<vmem>>, vector<1x64x1xf32>
    %610 = vector.shape_cast %609 : vector<1x64x1xf32> to vector<64x1xf32>
    %611 = vector.broadcast %610 : vector<64x1xf32> to vector<64x128xf32>
    %612 = arith.addf %608, %611 : vector<64x128xf32>
    %cst_283 = arith.constant 0.000000e+00 : f32
    %613 = vector.broadcast %cst_283 : f32 to vector<64x128xf32>
    %614 = arith.cmpf oge, %612, %613 : vector<64x128xf32>
    %cst_284 = arith.constant 2.000000e-01 : f32
    %615 = vector.broadcast %cst_284 : f32 to vector<64x128xf32>
    %616 = arith.mulf %615, %612 : vector<64x128xf32>
    %617 = arith.select %614, %612, %616 : vector<64x128xi1>, vector<64x128xf32>
    %c9_285 = arith.constant 9 : index
    %c0_286 = arith.constant 0 : index
    %c0_287 = arith.constant 0 : index
    %618 = vector.load %arg5[%c9_285, %c0_286, %c0_287] : memref<10x64x64xf32, #tpu.memory_space<vmem>>, vector<1x64x64xf32>
    %619 = vector.shape_cast %618 : vector<1x64x64xf32> to vector<64x64xf32>
    %cst_288 = arith.constant dense<0.000000e+00> : vector<64x128xf32>
    %620 = tpu.matmul %619, %617, %cst_288 {dimension_numbers = #tpu.dot_dimension_numbers<[1], [0], [0], [1], [0, 0, 1, 1], [], []>} : vector<64x64xf32>, vector<64x128xf32>, vector<64x128xf32> -> vector<64x128xf32>
    %c9_289 = arith.constant 9 : index
    %c0_290 = arith.constant 0 : index
    %c0_291 = arith.constant 0 : index
    %621 = vector.load %arg6[%c9_289, %c0_290, %c0_291] : memref<10x64x1xf32, #tpu.memory_space<vmem>>, vector<1x64x1xf32>
    %622 = vector.shape_cast %621 : vector<1x64x1xf32> to vector<64x1xf32>
    %623 = vector.broadcast %622 : vector<64x1xf32> to vector<64x128xf32>
    %624 = arith.addf %620, %623 : vector<64x128xf32>
    %cst_292 = arith.constant 0.000000e+00 : f32
    %625 = vector.broadcast %cst_292 : f32 to vector<64x128xf32>
    %626 = arith.cmpf oge, %624, %625 : vector<64x128xf32>
    %cst_293 = arith.constant 2.000000e-01 : f32
    %627 = vector.broadcast %cst_293 : f32 to vector<64x128xf32>
    %628 = arith.mulf %627, %624 : vector<64x128xf32>
    %629 = arith.select %626, %624, %628 : vector<64x128xi1>, vector<64x128xf32>
    %c9_294 = arith.constant 9 : index
    %c0_295 = arith.constant 0 : index
    %c0_296 = arith.constant 0 : index
    %630 = vector.load %arg7[%c9_294, %c0_295, %c0_296] : memref<10x8x64xf32, #tpu.memory_space<vmem>>, vector<1x8x64xf32>
    %631 = vector.shape_cast %630 : vector<1x8x64xf32> to vector<8x64xf32>
    %cst_297 = arith.constant dense<0.000000e+00> : vector<8x128xf32>
    %632 = tpu.matmul %631, %629, %cst_297 {dimension_numbers = #tpu.dot_dimension_numbers<[1], [0], [0], [1], [0, 0, 1, 1], [], []>} : vector<8x64xf32>, vector<64x128xf32>, vector<8x128xf32> -> vector<8x128xf32>
    %c9_298 = arith.constant 9 : index
    %c0_299 = arith.constant 0 : index
    %c0_300 = arith.constant 0 : index
    %633 = vector.load %arg8[%c9_298, %c0_299, %c0_300] : memref<10x8x1xf32, #tpu.memory_space<vmem>>, vector<1x8x1xf32>
    %634 = vector.shape_cast %633 : vector<1x8x1xf32> to vector<8x1xf32>
    %635 = vector.broadcast %634 : vector<8x1xf32> to vector<8x128xf32>
    %636 = arith.addf %632, %635 : vector<8x128xf32>
    %637 = vector.extract_strided_slice %636 {offsets = [0, 0], sizes = [1, 128], strides = [1, 1]} : vector<8x128xf32> to vector<1x128xf32>
    %638 = math.tanh %637 : vector<1x128xf32>
    %cst_301 = arith.constant 2.000000e+00 : f32
    %639 = vector.broadcast %cst_301 : f32 to vector<1x128xf32>
    %640 = arith.mulf %638, %639 : vector<1x128xf32>
    %641 = vector.extract_strided_slice %636 {offsets = [1, 0], sizes = [1, 128], strides = [1, 1]} : vector<8x128xf32> to vector<1x128xf32>
    %642 = math.exp %640 : vector<1x128xf32>
    %643 = arith.mulf %516, %642 : vector<1x128xf32>
    %644 = arith.addf %643, %641 : vector<1x128xf32>
    %645 = arith.addf %581, %640 : vector<1x128xf32>
    %cst_302 = arith.constant 0.000000e+00 : f32
    %646 = vector.broadcast %cst_302 : f32 to vector<5x128xf32>
    %647 = tpu.concatenate %644, %580, %645, %646 in 0 : vector<1x128xf32>, vector<1x128xf32>, vector<1x128xf32>, vector<5x128xf32> -> vector<8x128xf32>
    %c0_303 = arith.constant 0 : index
    %c0_304 = arith.constant 0 : index
    %648 = vector.load %arg9[%c0_303, %c0_304] : memref<8x128xf32, #tpu.memory_space<vmem>>, vector<8x128xf32>
    tpu.vector_store %arg9[%c0_303, %c0_304], %647 {strides = array<i32>} : memref<8x128xf32, #tpu.memory_space<vmem>>, vector<8x128xf32>,
    return
  }
  func.func @transform_0(%arg0: i32) -> (i32, i32) {
    %c0_i32 = arith.constant 0 : i32
    %c0_i32_0 = arith.constant 0 : i32
    return %c0_i32, %arg0 : i32, i32
  }
  func.func @transform_1(%arg0: i32) -> (i32, i32, i32) {
    %c0_i32 = arith.constant 0 : i32
    %c0_i32_0 = arith.constant 0 : i32
    %c0_i32_1 = arith.constant 0 : i32
    %c0_i32_2 = arith.constant 0 : i32
    return %c0_i32, %c0_i32_0, %c0_i32_1 : i32, i32, i32
  }
  func.func @transform_2(%arg0: i32) -> (i32, i32, i32) {
    %c0_i32 = arith.constant 0 : i32
    %c0_i32_0 = arith.constant 0 : i32
    %c0_i32_1 = arith.constant 0 : i32
    %c0_i32_2 = arith.constant 0 : i32
    return %c0_i32, %c0_i32_0, %c0_i32_1 : i32, i32, i32
  }
  func.func @transform_3(%arg0: i32) -> (i32, i32, i32) {
    %c0_i32 = arith.constant 0 : i32
    %c0_i32_0 = arith.constant 0 : i32
    %c0_i32_1 = arith.constant 0 : i32
    %c0_i32_2 = arith.constant 0 : i32
    return %c0_i32, %c0_i32_0, %c0_i32_1 : i32, i32, i32
  }
  func.func @transform_4(%arg0: i32) -> (i32, i32, i32) {
    %c0_i32 = arith.constant 0 : i32
    %c0_i32_0 = arith.constant 0 : i32
    %c0_i32_1 = arith.constant 0 : i32
    %c0_i32_2 = arith.constant 0 : i32
    return %c0_i32, %c0_i32_0, %c0_i32_1 : i32, i32, i32
  }
  func.func @transform_5(%arg0: i32) -> (i32, i32, i32) {
    %c0_i32 = arith.constant 0 : i32
    %c0_i32_0 = arith.constant 0 : i32
    %c0_i32_1 = arith.constant 0 : i32
    %c0_i32_2 = arith.constant 0 : i32
    return %c0_i32, %c0_i32_0, %c0_i32_1 : i32, i32, i32
  }
  func.func @transform_6(%arg0: i32) -> (i32, i32, i32) {
    %c0_i32 = arith.constant 0 : i32
    %c0_i32_0 = arith.constant 0 : i32
    %c0_i32_1 = arith.constant 0 : i32
    %c0_i32_2 = arith.constant 0 : i32
    return %c0_i32, %c0_i32_0, %c0_i32_1 : i32, i32, i32
  }
  func.func @transform_7(%arg0: i32) -> (i32, i32, i32) {
    %c0_i32 = arith.constant 0 : i32
    %c0_i32_0 = arith.constant 0 : i32
    %c0_i32_1 = arith.constant 0 : i32
    %c0_i32_2 = arith.constant 0 : i32
    return %c0_i32, %c0_i32_0, %c0_i32_1 : i32, i32, i32
  }
  func.func @transform_8(%arg0: i32) -> (i32, i32) {
    %c0_i32 = arith.constant 0 : i32
    %c0_i32_0 = arith.constant 0 : i32
    return %c0_i32, %arg0 : i32, i32
  }
}

</mosaic_0001>

<bundles_post_ra>
// kernel: tpu_custom_call.1
= control target key start
LH: loop header
LB: loop body
LE: loop exit
PB: predicated region body
PF: predicated region fallthrough
CT: control target
= control target key end

     0   :  { %v9829_v2 = vmov 3   ;;  %v9830_v3 = vmov 1   ;;  %s12390_s0 = inlined_call_operand.vmem [shape: f32[8,128], index: 0, kind: input, shape index: {}]   ;;  %s12391_s1 = inlined_call_operand.vmem [shape: f32[10,64,4], index: 1, kind: input, shape index: {}]   ;;  %s12392_s2 = inlined_call_operand.vmem [shape: f32[10,64,64], index: 2, kind: input, shape index: {}]   ;;  %s12393_s3 = inlined_call_operand.vmem [shape: f32[10,64,1], index: 3, kind: input, shape index: {}]   ;;  %s12394_s4 = inlined_call_operand.vmem [shape: f32[10,64,64], index: 4, kind: input, shape index: {}]   ;;  %s12395_s5 = inlined_call_operand.vmem [shape: f32[10,64,1], index: 5, kind: input, shape index: {}]   ;;  %s12396_s6 = inlined_call_operand.vmem [shape: f32[10,8,64], index: 6, kind: input, shape index: {}]   ;;  %s12397_s7 = inlined_call_operand.vmem [shape: f32[10,8,1], index: 7, kind: input, shape index: {}]   ;;  %s12398_s8 = inlined_call_operand.hbm [shape: f32[8,128], index: 8, kind: output, shape index: {}]  }
   0x1   :  { %v32_v0 = vld [vmem:[%s12391_s1 + $0x8] sm:$0xff]  ;;  %v31_v1 = vld [vmem:[%s12391_s1] sm:$0xff]  ;;  %9569 = vset.pattern.permute.xlu0 %v9829_v2  ;;  %9563 = vset.pattern.permute.xlu1 %v9830_v3 }
   0x2   :  { %200 = vperm.xlu0 %9569, %v32_v0   ;;  %92 = vperm.xlu1 %9563, %v31_v1  }
   0x3   :  { %13 = vsyncpa [#allocation3], 0  ;;  %v9831_v4 = vmov 2   ;;  %v33_v5 = vld [vmem:[%s12391_s1 + $0x10] sm:$0xff]  ;;  %v36_v6 = vld [vmem:[%s12391_s1 + $0x28] sm:$0xff]  ;;  %v12399_v7 = vmov 0   ;;  %v79_v31 = vlaneseq }
   0x4   :  { %v34_v8 = vld [vmem:[%s12391_s1 + $0x18] sm:$0xff]  ;;  %v37_v9 = vld [vmem:[%s12391_s1 + $0x30] sm:$0xff]  ;;  %v35_v10 = vld [vmem:[%s12391_s1 + $0x20] sm:$0xff]  ;;  %vm315_vm0 = vcmask 523264  }
   0x5   :  { %v38_v11 = vld [vmem:[%s12391_s1 + $0x38] sm:$0xff]  ;;  %v259_v12 = vld [vmem:[%s12392_s2] sm:$0xff]  ;;  %v268_v13 = vld [vmem:[%s12393_s3 + $0x8] sm:$0xff]  ;;  %v9981_v36 = vshrl.u32 %v79_v31, 7 }
   0x6   :  { %9570 = vset.pattern.permute.xlu0 %v9831_v4  ;;  %96 = vperm.xlu1 %9563, %v32_v0   ;;  %v267_v14 = vld [vmem:[%s12393_s3] sm:$0xff]  ;;  %v269_v16 = vld [vmem:[%s12393_s3 + $0x10] sm:$0xff]  ;;  %v270_v18 = vld [vmem:[%s12393_s3 + $0x18] sm:$0xff] }
   0x7   :  { %144 = vperm.xlu0 %9570, %v31_v1   ;;  %8381 = vmatprep.mubr.msk.f32.mxu0 %vm315_vm0, %v259_v12  ;;  %v271_v15 = vld [vmem:[%s12393_s3 + $0x20] sm:$0xff]  ;;  %v273_v17 = vld [vmem:[%s12393_s3 + $0x30] sm:$0xff]  ;;  %v272_v20 = vld [vmem:[%s12393_s3 + $0x28] sm:$0xff]  ;;  %v125_v41 = vsub.s32 2, %v9981_v36  ;;  %v177_v42 = vsub.s32 3, %v9981_v36  ;;  %v9996_v43 = vsub.s32 0, %v9981_v36 }
   0x8   :  { %v477_v19 = vld [vmem:[%s12395_s5] sm:$0xff]  ;;  %v479_v21 = vld [vmem:[%s12395_s5 + $0x10] sm:$0xff]  ;;  %v274_v22 = vld [vmem:[%s12393_s3 + $0x38] sm:$0xff] }
   0x9   :  { %v481_v25 = vld [vmem:[%s12395_s5 + $0x20] sm:$0xff]  ;;  %v478_v26 = vld [vmem:[%s12395_s5 + $0x8] sm:$0xff]  ;;  %v483_v29 = vld [vmem:[%s12395_s5 + $0x30] sm:$0xff] }
   0xa   :  { %9564 = vset.pattern.permute.xlu1 %v9831_v4  ;;  %v480_v30 = vld [vmem:[%s12395_s5 + $0x18] sm:$0xff]  ;;  %v679_v34 = vld [vmem:[%s12397_s7] sm:$0xff]  ;;  %v482_v35 = vld [vmem:[%s12395_s5 + $0x28] sm:$0xff] }
   0xb   :  { %152 = vperm.xlu0 %9570, %v33_v5   ;;  %148 = vperm.xlu1 %9564, %v32_v0   ;;  %v9988_v39 = vld [vmem:[%s12391_s1 + $0x48] sm:$0xff]  ;;  %v484_v40 = vld [vmem:[%s12395_s5 + $0x38] sm:$0xff]  ;;  %v10001_v44 = vld [vmem:[%s12390_s0] sm:$0xff] }
   0xc   :  { %v10007_v47 = vld [vmem:[%s12391_s1 + $0x50] sm:$0xff]  ;;  %v7424_v48 = vld [vmem:[%s12391_s1 + $0x40] sm:$0xff]  ;;  %v10013_v49 = vrot.slane %v10001_v44, %v125_v41  ;;  %v10016_v50 = vrot.slane %v10001_v44, %v177_v42  ;;  %v10020_v51 = vrot.slane %v10001_v44, %v9996_v43  ;;  %v10028_v56 = vld [vmem:[%s12391_s1 + $0x68] sm:$0xff] }
   0xf   :  { %164 = vperm.xlu0 %9570, %v36_v6   ;;  %9565 = vset.pattern.permute.xlu1 %v12399_v7 }
  0x10   :  { %51 = vperm.xlu1 %9565, %v33_v5  }
  0x13   :  { %9574 = vset.pattern.permute.xlu0 %v12399_v7 }
  0x14   :  { %41 = vperm.xlu0 %9574, %v31_v1   ;;  %9566 = vset.pattern.permute.xlu1 %v9830_v3 }
  0x15   :  { %100 = vperm.xlu1 %9566, %v33_v5  }
  0x18   :  { %46 = vperm.xlu0 %9574, %v32_v0  }
  0x19   :  { %104 = vperm.xlu1 %9566, %v34_v8  }
  0x1c   :  { %56 = vperm.xlu0 %9574, %v34_v8  }
  0x1d   :  { %9567 = vset.pattern.permute.xlu1 %v9831_v4 }
  0x1e   :  { %156 = vperm.xlu1 %9567, %v34_v8  }
  0x20   :  { %71 = vperm.xlu0 %9574, %v37_v9  }
  0x22   :  { %9568 = vset.pattern.permute.xlu1 %v9829_v2 }
  0x23   :  { %196 = vperm.xlu1 %9568, %v31_v1  }
  0x24   :  { %9576 = vset.pattern.permute.xlu0 %v9830_v3 }
  0x25   :  { %108 = vperm.xlu0 %9576, %v35_v10  }
  0x27   :  { %9571 = vset.pattern.permute.xlu1 %v12399_v7 }
  0x28   :  { %61 = vperm.xlu1 %9571, %v35_v10  }
  0x29   :  { %120 = vperm.xlu0 %9576, %v38_v11  }
  0x2c   :  { %66 = vperm.xlu1 %9571, %v36_v6  }
  0x2d   :  { %9580 = vset.pattern.permute.xlu0 %v9829_v2 }
  0x2e   :  { %212 = vperm.xlu0 %9580, %v35_v10  }
  0x30   :  { %9572 = vset.pattern.permute.xlu1 %v9830_v3 }
  0x31   :  { %112 = vperm.xlu1 %9572, %v36_v6  }
  0x32   :  { %224 = vperm.xlu0 %9580, %v38_v11  }
  0x35   :  { %9573 = vset.pattern.permute.xlu1 %v9831_v4 }
  0x36   :  { %160 = vperm.xlu1 %9573, %v35_v10   ;;  %9583 = vset.pattern.permute.xlu0 %v12399_v7 }
  0x37   :  { %282 = vperm.xlu0 %9583, %v268_v13  }
  0x3a   :  { %9575 = vset.pattern.permute.xlu1 %v9829_v2 }
  0x3b   :  { %204 = vperm.xlu1 %9575, %v33_v5   ;;  %297 = vperm.xlu0 %9583, %v271_v15  }
  0x3f   :  { %208 = vperm.xlu1 %9575, %v34_v8   ;;  %307 = vperm.xlu0 %9583, %v273_v17  }
  0x43   :  { %9577 = vset.pattern.permute.xlu1 %v12399_v7  ;;  %487 = vperm.xlu0 %9583, %v477_v19  }
  0x44   :  { %76 = vperm.xlu1 %9577, %v38_v11  }
  0x47   :  { %497 = vperm.xlu0 %9583, %v479_v21  }
  0x48   :  { %9578 = vset.pattern.permute.xlu1 %v9830_v3 }
  0x49   :  { %116 = vperm.xlu1 %9578, %v37_v9  }
  0x4b   :  { %507 = vperm.xlu0 %9583, %v481_v25  }
  0x4d   :  { %9579 = vset.pattern.permute.xlu1 %v9831_v4 }
  0x4e   :  { %168 = vperm.xlu1 %9579, %v37_v9  }
  0x4f   :  { %517 = vperm.xlu0 %9583, %v483_v29  }
  0x52   :  { %172 = vperm.xlu1 %9579, %v38_v11  }
  0x53   :  { %682 = vperm.xlu0 %9583, %v679_v34  }
  0x56   :  { %9581 = vset.pattern.permute.xlu1 %v9829_v2 }
  0x57   :  { %216 = vperm.xlu1 %9581, %v36_v6   ;;  %784 = vperm.xlu0 %9583, %v9988_v39  }
  0x5b   :  { %220 = vperm.xlu1 %9581, %v37_v9   ;;  %789 = vperm.xlu0 %9583, %v10007_v47  }
  0x5f   :  { %9582 = vset.pattern.permute.xlu1 %v12399_v7  ;;  %804 = vperm.xlu0 %9583, %v10028_v56  }
  0x60   :  { %277 = vperm.xlu1 %9582, %v267_v14  }
  0x63   :  { %9591 = vset.pattern.permute.xlu0 %v9829_v2 }
  0x64   :  { %287 = vperm.xlu1 %9582, %v269_v16   ;;  %926 = vperm.xlu0 %9591, %v7424_v48  }
  0x68   :  { %292 = vperm.xlu1 %9582, %v270_v18  }
  0x6c   :  { %302 = vperm.xlu1 %9582, %v272_v20  }
  0x70   :  { %312 = vperm.xlu1 %9582, %v274_v22  }
  0x74   :  { %492 = vperm.xlu1 %9582, %v478_v26  }
  0x78   :  { %502 = vperm.xlu1 %9582, %v480_v30  }
  0x7c   :  { %512 = vperm.xlu1 %9582, %v482_v35  }
  0x80   :  { %522 = vperm.xlu1 %9582, %v484_v40  }
  0x81   :  { %v93_v23 = vpop.permute.xlu1 %92  ;;  %v201_v24 = vpop.permute.xlu0 %200 }
  0x82   :  { %v127_v60 = vmul.f32 %v10013_v49, %v93_v23 }
  0x84   :  { %779 = vperm.xlu1 %9582, %v7424_v48  }
  0x85   :  { %v97_v27 = vpop.permute.xlu1 %96 }
  0x86   :  { %v145_v28 = vpop.permute.xlu0 %144  ;;  %v128_v53 = vmul.f32 %v10013_v49, %v97_v27 }
  0x87   :  { %v179_v62 = vmul.f32 %v10016_v50, %v145_v28 }
  0x88   :  { %9584 = vset.pattern.permute.xlu1 %v9830_v3 }
  0x89   :  { %830 = vperm.xlu1 %9584, %v7424_v48  }
  0x8a   :  { %v149_v32 = vpop.permute.xlu1 %148  ;;  %v9973_v33 = vpop.permute.xlu0 %152 }
  0x8b   :  { %v180_v58 = vmul.f32 %v10016_v50, %v149_v32  ;;  %v181_v20 = vmul.f32 %v10016_v50, %v9973_v33 }
  0x8d   :  { %9585 = vset.pattern.permute.xlu1 %v9831_v4 }
  0x8e   :  { %v9983_v37 = vpop.permute.xlu0 %164  ;;  %878 = vperm.xlu1 %9585, %v7424_v48  }
  0x8f   :  { %v52_v38 = vpop.permute.xlu1 %51 }
  0x90   :  { %v85_v19 = vmul.f32 %v10020_v51, %v52_v38 }
  0x92   :  { %882 = vperm.xlu1 %9585, %v9988_v39  }
  0x93   :  { %v42_v45 = vpop.permute.xlu0 %41 }
  0x94   :  { %v101_v46 = vpop.permute.xlu1 %100  ;;  %v83_v57 = vmul.f32 %v10020_v51, %v42_v45 }
  0x95   :  { %v129_v17 = vmul.f32 %v10013_v49, %v101_v46 }
  0x96   :  { %v135_v63 = vadd.f32 %v127_v60, %v83_v57  ;;  %9586 = vset.pattern.permute.xlu1 %v12399_v7 }
  0x97   :  { %v47_v52 = vpop.permute.xlu0 %46  ;;  %v137_v21 = vadd.f32 %v129_v17, %v85_v19 }
  0x98   :  { %v84_v54 = vmul.f32 %v10020_v51, %v47_v52  ;;  %v105_v55 = vpop.permute.xlu1 %104  ;;  %v187_v5 = vadd.f32 %v179_v62, %v135_v63 }
  0x99   :  { %v189_v27 = vadd.f32 %v181_v20, %v137_v21 }
  0x9a   :  { %v136_v59 = vadd.f32 %v128_v53, %v84_v54 }
  0x9b   :  { %v57_v18 = vpop.permute.xlu0 %56 }
  0x9c   :  { %v188_v61 = vadd.f32 %v180_v58, %v136_v59  ;;  %v86_v22 = vmul.f32 %v10020_v51, %v57_v18 }
  0x9d   :  { %v157_v0 = vpop.permute.xlu1 %156 }
  0x9e   :  { %v228_v1 = vadd.f32 %v201_v24, %v188_v61  ;;  %v130_v24 = vmul.f32 %v10013_v49, %v105_v55  ;;  %v182_v26 = vmul.f32 %v10016_v50, %v157_v0 }
  0x9f   :  { %v72_v35 = vpop.permute.xlu0 %71 }
  0xa0   :  { %v244_v9 = vmul.f32 0.2, %v228_v1  ;;  %vm236_vm1 = vcmp.ge.f32.partialorder %v228_v1, 0.0  ;;  %v138_v25 = vadd.f32 %v130_v24, %v86_v22 }
  0xa2   :  { %v197_v6 = vpop.permute.xlu1 %196  ;;  %v252_v13 = vsel %vm236_vm1, %v228_v1, %v244_v9  ;;  %v190_v30 = vadd.f32 %v182_v26, %v138_v25 }
  0xa3   :  { %v227_v8 = vadd.f32 %v197_v6, %v187_v5 }
  0xa4   :  { %v109_v45 = vpop.permute.xlu0 %108 }
  0xa5   :  { %v243_v10 = vmul.f32 0.2, %v227_v8  ;;  %vm235_vm2 = vcmp.ge.f32.partialorder %v227_v8, 0.0  ;;  %v131_v48 = vmul.f32 %v10013_v49, %v109_v45 }
  0xa7   :  { %v62_v11 = vpop.permute.xlu1 %61  ;;  %v251_v12 = vsel %vm235_vm2, %v227_v8, %v243_v10  ;;  %v184_v8 = vmul.f32 %v10016_v50, %v9983_v37  ;;  %vm9834_vm2 = vmmov 0  }
  0xa8   :  { %v9115_v14 = vpack.c.bf16 %v252_v13, %v251_v12  ;;  %v87_v52 = vmul.f32 %v10020_v51, %v62_v11  ;;  %v121_v53 = vpop.permute.xlu0 %120  ;;  %v89_v13 = vmul.f32 %v10020_v51, %v72_v35  ;;  %v263_v35 = vld [vmem:[%s12392_s2 + $0x20] sm:$0xff] }
  0xa9   :  { %v134_v59 = vmul.f32 %v10013_v49, %v121_v53 }
  0xaa   :  { %9116 = vmatprep.subr.bf16.mxu0 %v9115_v14  ;;  %v139_v55 = vadd.f32 %v131_v48, %v87_v52 }
  0xab   :  { %v67_v15 = vpop.permute.xlu1 %66  ;;  %9118 = vmatpush3.bf16.msra.mxu0 %v9115_v14 }
  0xac   :  { %v88_v61 = vmul.f32 %v10020_v51, %v67_v15 }
  0xad   :  { %v213_v63 = vpop.permute.xlu0 %212 }
  0xb0   :  { %v113_v16 = vpop.permute.xlu1 %112 }
  0xb1   :  { %v132_v57 = vmul.f32 %v10013_v49, %v113_v16  ;;  %v225_v11 = vpop.permute.xlu0 %224 }
  0xb3   :  { %v140_v0 = vadd.f32 %v132_v57, %v88_v61 }
  0xb5   :  { %v161_v23 = vpop.permute.xlu1 %160  ;;  %v192_v15 = vadd.f32 %v184_v8, %v140_v0 }
  0xb6   :  { %v183_v54 = vmul.f32 %v10016_v50, %v161_v23 }
  0xb8   :  { %v191_v62 = vadd.f32 %v183_v54, %v139_v55 }
  0xba   :  { %v205_v28 = vpop.permute.xlu1 %204  ;;  %v231_v9 = vadd.f32 %v213_v63, %v191_v62 }
  0xbb   :  { %v229_v29 = vadd.f32 %v205_v28, %v189_v27 }
  0xbc   :  { %v247_v17 = vmul.f32 0.2, %v231_v9  ;;  %vm239_vm5 = vcmp.ge.f32.partialorder %v231_v9, 0.0 }
  0xbd   :  { %v245_v32 = vmul.f32 0.2, %v229_v29  ;;  %vm237_vm3 = vcmp.ge.f32.partialorder %v229_v29, 0.0 }
  0xbe   :  { %v209_v31 = vpop.permute.xlu1 %208  ;;  %v255_v25 = vsel %vm239_vm5, %v231_v9, %v247_v17 }
  0xbf   :  { %v230_v34 = vadd.f32 %v209_v31, %v190_v30  ;;  %v253_v40 = vsel %vm237_vm3, %v229_v29, %v245_v32  ;;  %v260_v31 = vld [vmem:[%s12392_s2 + $0x8] sm:$0xff]  ;;  %v261_v32 = vld [vmem:[%s12392_s2 + $0x10] sm:$0xff] }
  0xc1   :  { %vm238_vm4 = vcmp.ge.f32.partialorder %v230_v34, 0.0  ;;  %v246_v33 = vmul.f32 0.2, %v230_v34 }
  0xc3   :  { %v77_v38 = vpop.permute.xlu1 %76  ;;  %v254_v41 = vsel %vm238_vm4, %v230_v34, %v246_v33  ;;  %v262_v34 = vld [vmem:[%s12392_s2 + $0x18] sm:$0xff]  ;;  %v264_v33 = vld [vmem:[%s12392_s2 + $0x28] sm:$0xff] }
  0xc4   :  { %v9119_v42 = vpack.c.bf16 %v254_v41, %v253_v40  ;;  %v90_v60 = vmul.f32 %v10020_v51, %v77_v38  ;;  %v265_v38 = vld [vmem:[%s12392_s2 + $0x30] sm:$0xff]  ;;  %v266_v40 = vld [vmem:[%s12392_s2 + $0x38] sm:$0xff]  ;;  %v469_v41 = vld [vmem:[%s12394_s4] sm:$0xff] }
  0xc5   :  { %8409 = vmatprep.mubr.msk.f32.mxu1 %vm315_vm0, %v469_v41  ;;  %v9833_v41 = vmov 0.0|0.0  }
  0xc6   :  { %9120 = vmatprep.subr.bf16.mxu0 %v9119_v42  ;;  %v142_v5 = vadd.f32 %v134_v59, %v90_v60 }
  0xc7   :  { %9122 = vmatpush3.bf16.msra.mxu0 %v9119_v42 }
  0xc8   :  { %v117_v46 = vpop.permute.xlu1 %116 }
  0xc9   :  { %v133_v10 = vmul.f32 %v10013_v49, %v117_v46  ;;  %v283_v46 = vpop.permute.xlu0 %282 }
  0xcb   :  { %v141_v18 = vadd.f32 %v133_v10, %v89_v13 }
  0xcd   :  { %v169_v58 = vpop.permute.xlu1 %168 }
  0xce   :  { %v185_v14 = vmul.f32 %v10016_v50, %v169_v58 }
  0xd0   :  { %v193_v22 = vadd.f32 %v185_v14, %v141_v18 }
  0xd1   :  { %v173_v1 = vpop.permute.xlu1 %172 }
  0xd2   :  { %v186_v6 = vmul.f32 %v10016_v50, %v173_v1 }
  0xd4   :  { %v194_v12 = vadd.f32 %v186_v6, %v142_v5  ;;  %v298_v5 = vpop.permute.xlu0 %297 }
  0xd6   :  { %v217_v16 = vpop.permute.xlu1 %216  ;;  %v234_v19 = vadd.f32 %v225_v11, %v194_v12 }
  0xd7   :  { %v232_v20 = vadd.f32 %v217_v16, %v192_v15 }
  0xd8   :  { %v250_v23 = vmul.f32 0.2, %v234_v19  ;;  %vm242_vm7 = vcmp.ge.f32.partialorder %v234_v19, 0.0 }
  0xd9   :  { %vm240_vm6 = vcmp.ge.f32.partialorder %v232_v20, 0.0  ;;  %v248_v21 = vmul.f32 0.2, %v232_v20 }
  0xda   :  { %v221_v37 = vpop.permute.xlu1 %220  ;;  %v258_v29 = vsel %vm242_vm7, %v234_v19, %v250_v23 }
  0xdb   :  { %v233_v24 = vadd.f32 %v221_v37, %v193_v22  ;;  %v256_v26 = vsel %vm240_vm6, %v232_v20, %v248_v21  ;;  %v308_v21 = vpop.permute.xlu0 %307 }
  0xdc   :  { %v9123_v27 = vpack.c.bf16 %v256_v26, %v255_v25 }
  0xdd   :  { %vm241_vm8 = vcmp.ge.f32.partialorder %v233_v24, 0.0  ;;  %v249_v51 = vmul.f32 0.2, %v233_v24 }
  0xde   :  { %9124 = vmatprep.subr.bf16.mxu0 %v9123_v27 }
  0xdf   :  { %9126 = vmatpush3.bf16.msra.mxu0 %v9123_v27  ;;  %v257_v28 = vsel %vm241_vm8, %v233_v24, %v249_v51  ;;  %v278_v42 = vpop.permute.xlu1 %277 }
  0xe0   :  { %v9127_v30 = vpack.c.bf16 %v258_v29, %v257_v28 }
  0xe2   :  { %9128 = vmatprep.subr.bf16.mxu0 %v9127_v30 }
  0xe3   :  { %9130 = vmatpush3.bf16.msra.mxu0 %v9127_v30  ;;  %v288_v45 = vpop.permute.xlu1 %287 }
  0xe4   :  { %9147 = vmatprep.subr.bf16.mxu0 %v9833_v41 }
  0xe6   :  { %8382 = vmatmul.mubr.msk.f32.vlgmr.msra.gmra.mrb[0].mxu0 %vm315_vm0, %v260_v31  ;;  %v470_v31 = vld [vmem:[%s12394_s4 + $0x8] sm:$0xff] }
  0xe7   :  { %8384 = vmatprep.mubr.msk.f32.mxu0 %vm315_vm0, %v261_v32  ;;  %v293_v48 = vpop.permute.xlu1 %292  ;;  %v471_v32 = vld [vmem:[%s12394_s4 + $0x10] sm:$0xff] }
  0xea   :  { %8385 = vmatmul.mubr.msk.f32.gmra.mrb[2].mxu0 %vm315_vm0, %v262_v34  ;;  %v472_v34 = vld [vmem:[%s12394_s4 + $0x18] sm:$0xff] }
  0xeb   :  { %8387 = vmatprep.mubr.msk.f32.mxu0 %vm315_vm0, %v263_v35  ;;  %v303_v63 = vpop.permute.xlu1 %302  ;;  %v473_v35 = vld [vmem:[%s12394_s4 + $0x20] sm:$0xff] }
  0xee   :  { %8388 = vmatmul.mubr.msk.f32.gmra.mrb[4].mxu0 %vm315_vm0, %v264_v33  ;;  %v474_v33 = vld [vmem:[%s12394_s4 + $0x28] sm:$0xff] }
  0xef   :  { %8390 = vmatprep.mubr.msk.f32.mxu0 %vm315_vm0, %v265_v38  ;;  %v313_v18 = vpop.permute.xlu1 %312  ;;  %v475_v38 = vld [vmem:[%s12394_s4 + $0x30] sm:$0xff] }
  0xf2   :  { %8391 = vmatmul.mubr.msk.f32.gmra.mrb[6].mxu0 %vm315_vm0, %v266_v40  ;;  %v476_v40 = vld [vmem:[%s12394_s4 + $0x38] sm:$0xff] }
 0x1b9   :  { %v8383_v52 = vpop.f32.mrb[0].mxu0 }
 0x1ba   :  { %v412_v53 = vadd.f32 %v8383_v52, %v283_v46  ;;  %v406_v54 = vpop.f32.mrb[1].mxu0  ;;  %v7430_v46 = vld [vmem:[%s12391_s1 + $0x70] sm:$0xff]  ;;  %v7431_v52 = vld [vmem:[%s12391_s1 + $0x78] sm:$0xff] }
 0x1bb   :  { %v407_v55 = vadd.f32 %v406_v54, %v278_v42  ;;  %v9835_v42 = vmov 0.0  }
 0x1bc   :  { %v454_v57 = vmul.f32 0.2, %v412_v53  ;;  %vm446_vm9 = vcmp.ge.f32.partialorder %v412_v53, 0.0  ;;  %8437 = vmatprep.mubr.msk.f32.mxu0 %vm9834_vm2, %v9835_v42 }
 0x1bd   :  { %v453_v58 = vmul.f32 0.2, %v407_v55  ;;  %v8386_v59 = vpop.f32.mrb[2].mxu0  ;;  %vm445_vm10 = vcmp.ge.f32.partialorder %v407_v55, 0.0 }
 0x1be   :  { %v422_v60 = vadd.f32 %v8386_v59, %v293_v48  ;;  %v416_v61 = vpop.f32.mrb[3].mxu0  ;;  %v462_v62 = vsel %vm446_vm9, %v412_v53, %v454_v57  ;;  %v7428_v48 = vld [vmem:[%s12391_s1 + $0x60] sm:$0xff] }
 0x1bf   :  { %v417_v0 = vadd.f32 %v416_v61, %v288_v45  ;;  %v461_v1 = vsel %vm445_vm10, %v407_v55, %v453_v58  ;;  %v7427_v45 = vld [vmem:[%s12391_s1 + $0x58] sm:$0xff] }
 0x1c0   :  { %vm448_vm11 = vcmp.ge.f32.partialorder %v422_v60, 0.0  ;;  %v456_v6 = vmul.f32 0.2, %v422_v60  ;;  %v9131_v8 = vpack.c.bf16 %v462_v62, %v461_v1  ;;  %794 = vperm.xlu1 %9586, %v7427_v45   ;;  %938 = vperm.xlu0 %9591, %v7427_v45  }
 0x1c1   :  { %vm447_vm12 = vcmp.ge.f32.partialorder %v417_v0, 0.0  ;;  %v455_v9 = vmul.f32 0.2, %v417_v0  ;;  %v8389_v10 = vpop.f32.mrb[4].mxu0 }
 0x1c2   :  { %v432_v11 = vadd.f32 %v8389_v10, %v303_v63  ;;  %v426_v12 = vpop.f32.mrb[5].mxu0  ;;  %9132 = vmatprep.subr.bf16.mxu1 %v9131_v8  ;;  %v464_v13 = vsel %vm448_vm11, %v422_v60, %v456_v6 }
 0x1c3   :  { %v427_v14 = vadd.f32 %v426_v12, %v298_v5  ;;  %9134 = vmatpush3.bf16.msra.mxu1 %v9131_v8  ;;  %v463_v15 = vsel %vm447_vm12, %v417_v0, %v455_v9 }
 0x1c4   :  { %vm450_vm13 = vcmp.ge.f32.partialorder %v432_v11, 0.0  ;;  %v458_v16 = vmul.f32 0.2, %v432_v11  ;;  %v9135_v17 = vpack.c.bf16 %v464_v13, %v463_v15  ;;  %9587 = vset.pattern.permute.xlu1 %v9830_v3  ;;  %9595 = vset.pattern.permute.xlu0 %v9830_v3 }
 0x1c5   :  { %vm449_vm14 = vcmp.ge.f32.partialorder %v427_v14, 0.0  ;;  %v457_v19 = vmul.f32 0.2, %v427_v14  ;;  %v8392_v20 = vpop.f32.mrb[6].mxu0  ;;  %838 = vperm.xlu1 %9587, %v10007_v47   ;;  %834 = vperm.xlu0 %9595, %v9988_v39  }
 0x1c6   :  { %v442_v22 = vadd.f32 %v8392_v20, %v313_v18  ;;  %v436_v37 = vpop.f32.mrb[7].mxu0  ;;  %9136 = vmatprep.subr.bf16.mxu1 %v9135_v17  ;;  %v466_v23 = vsel %vm450_vm13, %v432_v11, %v458_v16 }
 0x1c7   :  { %v437_v24 = vadd.f32 %v436_v37, %v308_v21  ;;  %9138 = vmatpush3.bf16.msra.mxu1 %v9135_v17  ;;  %v465_v25 = vsel %vm449_vm14, %v427_v14, %v457_v19 }
 0x1c8   :  { %vm452_vm15 = vcmp.ge.f32.partialorder %v442_v22, 0.0  ;;  %v460_v26 = vmul.f32 0.2, %v442_v22  ;;  %v9139_v27 = vpack.c.bf16 %v466_v23, %v465_v25 }
 0x1c9   :  { %vm451_vm1 = vcmp.ge.f32.partialorder %v437_v24, 0.0  ;;  %v459_v51 = vmul.f32 0.2, %v437_v24  ;;  %9588 = vset.pattern.permute.xlu1 %v9831_v4  ;;  %842 = vperm.xlu0 %9595, %v7427_v45  }
 0x1ca   :  { %9140 = vmatprep.subr.bf16.mxu1 %v9139_v27  ;;  %v468_v28 = vsel %vm452_vm15, %v442_v22, %v460_v26  ;;  %886 = vperm.xlu1 %9588, %v10007_v47  }
 0x1cb   :  { %9142 = vmatpush3.bf16.msra.mxu1 %v9139_v27  ;;  %v467_v29 = vsel %vm451_vm1, %v437_v24, %v459_v51 }
 0x1cc   :  { %v9143_v30 = vpack.c.bf16 %v468_v28, %v467_v29 }
 0x1cd   :  { %854 = vperm.xlu0 %9595, %v7430_v46  }
 0x1ce   :  { %9144 = vmatprep.subr.bf16.mxu1 %v9143_v30  ;;  %890 = vperm.xlu1 %9588, %v7427_v45  }
 0x1cf   :  { %9146 = vmatpush3.bf16.msra.mxu1 %v9143_v30 }
 0x1d1   :  { %9597 = vset.pattern.permute.xlu0 %v9831_v4 }
 0x1d2   :  { %8410 = vmatmul.mubr.msk.f32.vlgmr.msra.gmra.mrb[0].mxu1 %vm315_vm0, %v470_v31  ;;  %9589 = vset.pattern.permute.xlu1 %v9829_v2 }
 0x1d3   :  { %8412 = vmatprep.mubr.msk.f32.mxu1 %vm315_vm0, %v471_v32  ;;  %894 = vperm.xlu0 %9597, %v7428_v48  }
 0x1d4   :  { %930 = vperm.xlu1 %9589, %v9988_v39   ;;  %v493_v39 = vpop.permute.xlu1 %492 }
 0x1d6   :  { %8413 = vmatmul.mubr.msk.f32.gmra.mrb[2].mxu1 %vm315_vm0, %v472_v34  ;;  %v678_v34 = vld [vmem:[%s12396_s6] sm:$0xff] }
 0x1d7   :  { %8415 = vmatprep.mubr.msk.f32.mxu1 %vm315_vm0, %v473_v35  ;;  %906 = vperm.xlu0 %9597, %v7431_v52  }
 0x1d8   :  { %9590 = vset.pattern.permute.xlu1 %v12399_v7  ;;  %v503_v53 = vpop.permute.xlu1 %502 }
 0x1d9   :  { %799 = vperm.xlu1 %9590, %v7428_v48  }
 0x1da   :  { %8416 = vmatmul.mubr.msk.f32.gmra.mrb[4].mxu1 %vm315_vm0, %v474_v33 }
 0x1db   :  { %8418 = vmatprep.mubr.msk.f32.mxu1 %vm315_vm0, %v475_v38  ;;  %9601 = vset.pattern.permute.xlu0 %v9829_v2  ;;  %v7432_v38 = vld [vmem:[%s12392_s2 + $0x40] sm:$0xff] }
 0x1dc   :  { %950 = vperm.xlu0 %9601, %v7430_v46  }
 0x1dd   :  { %9592 = vset.pattern.permute.xlu1 %v9830_v3 }
 0x1de   :  { %8419 = vmatmul.mubr.msk.f32.gmra.mrb[6].mxu1 %vm315_vm0, %v476_v40  ;;  %846 = vperm.xlu1 %9592, %v7428_v48  }
 0x1df   :  { %8456 = vmatprep.mubr.msk.f32.mxu1 %vm315_vm0, %v7432_v38 }
 0x1e0   :  { %9603 = vset.pattern.permute.xlu0 %v12399_v7 }
 0x1e2   :  { %850 = vperm.xlu1 %9592, %v10028_v56  }
 0x1e6   :  { %9593 = vset.pattern.permute.xlu1 %v9831_v4 }
 0x1e7   :  { %898 = vperm.xlu1 %9593, %v10028_v56  }
 0x1eb   :  { %9594 = vset.pattern.permute.xlu1 %v9829_v2 }
 0x1ec   :  { %934 = vperm.xlu1 %9594, %v10007_v47   ;;  %v488_v47 = vpop.permute.xlu0 %487 }
 0x1f0   :  { %9596 = vset.pattern.permute.xlu1 %v12399_v7  ;;  %v498_v55 = vpop.permute.xlu0 %497 }
 0x1f1   :  { %809 = vperm.xlu1 %9596, %v7430_v46  }
 0x1f4   :  { %v508_v8 = vpop.permute.xlu0 %507 }
 0x1f5   :  { %814 = vperm.xlu1 %9596, %v7431_v52  }
 0x1f8   :  { %v518_v37 = vpop.permute.xlu0 %517 }
 0x1f9   :  { %9598 = vset.pattern.permute.xlu1 %v9830_v3 }
 0x1fa   :  { %858 = vperm.xlu1 %9598, %v7431_v52  }
 0x1fe   :  { %9599 = vset.pattern.permute.xlu1 %v9831_v4 }
 0x1ff   :  { %902 = vperm.xlu1 %9599, %v7430_v46  }
 0x203   :  { %9600 = vset.pattern.permute.xlu1 %v9829_v2 }
 0x204   :  { %942 = vperm.xlu1 %9600, %v7428_v48   ;;  %v7441_v48 = vld [vmem:[%s12393_s3 + $0x48] sm:$0xff] }
 0x205   :  { %1014 = vperm.xlu0 %9603, %v7441_v48  }
 0x208   :  { %946 = vperm.xlu1 %9600, %v10028_v56   ;;  %v513_v56 = vpop.permute.xlu1 %512 }
 0x20c   :  { %954 = vperm.xlu1 %9600, %v7431_v52   ;;  %v523_v20 = vpop.permute.xlu1 %522  ;;  %v7440_v52 = vld [vmem:[%s12393_s3 + $0x40] sm:$0xff] }
 0x210   :  { %9602 = vset.pattern.permute.xlu1 %v12399_v7  ;;  %v10166_v35 = vpop.permute.xlu1 %779 }
 0x211   :  { %1009 = vperm.xlu1 %9602, %v7440_v52  }
 0x214   :  { %v10168_v33 = vpop.permute.xlu1 %830 }
 0x218   :  { %v10174_v40 = vpop.permute.xlu1 %878 }
 0x21c   :  { %v10176_v45 = vpop.permute.xlu1 %882 }
 0x23f   :  { %v10178_v46 = vpop.permute.xlu1 %794 }
 0x2a5   :  { %v8411_v54 = vpop.f32.mrb[0].mxu1 }
 0x2a6   :  { %v621_v57 = vadd.f32 %v8411_v54, %v493_v39  ;;  %v615_v58 = vpop.f32.mrb[1].mxu1  ;;  %v7444_v39 = vld [vmem:[%s12393_s3 + $0x60] sm:$0xff]  ;;  %v7446_v54 = vld [vmem:[%s12393_s3 + $0x70] sm:$0xff] }
 0x2a7   :  { %v616_v59 = vadd.f32 %v615_v58, %v488_v47  ;;  %v7442_v47 = vld [vmem:[%s12393_s3 + $0x50] sm:$0xff]  ;;  %1029 = vperm.xlu0 %9603, %v7444_v39   ;;  %v7464_v58 = vld [vmem:[%s12395_s5 + $0x40] sm:$0xff] }
 0x2a8   :  { %vm655_vm3 = vcmp.ge.f32.partialorder %v621_v57, 0.0  ;;  %v663_v60 = vmul.f32 0.2, %v621_v57  ;;  %1019 = vperm.xlu1 %9602, %v7442_v47  }
 0x2a9   :  { %vm654_vm4 = vcmp.ge.f32.partialorder %v616_v59, 0.0  ;;  %v662_v61 = vmul.f32 0.2, %v616_v59  ;;  %v8414_v62 = vpop.f32.mrb[2].mxu1 }
 0x2aa   :  { %v671_v63 = vsel %vm655_vm3, %v621_v57, %v663_v60  ;;  %v631_v0 = vadd.f32 %v8414_v62, %v503_v53  ;;  %v625_v1 = vpop.f32.mrb[3].mxu1  ;;  %v10192_v53 = vpop.permute.xlu1 %838  ;;  %v7466_v60 = vld [vmem:[%s12395_s5 + $0x50] sm:$0xff] }
 0x2ab   :  { %v670_v5 = vsel %vm654_vm4, %v616_v59, %v662_v61  ;;  %v626_v6 = vadd.f32 %v625_v1, %v498_v55  ;;  %v7443_v55 = vld [vmem:[%s12393_s3 + $0x58] sm:$0xff]  ;;  %1039 = vperm.xlu0 %9603, %v7446_v54   ;;  %v7445_v59 = vld [vmem:[%s12393_s3 + $0x68] sm:$0xff]  ;;  %v10280_v54 = vsub.s32 1, %v9981_v36 }
 0x2ac   :  { %v9148_v9 = vpack.c.bf16 %v671_v63, %v670_v5  ;;  %vm657_vm5 = vcmp.ge.f32.partialorder %v631_v0, 0.0  ;;  %v665_v10 = vmul.f32 0.2, %v631_v0  ;;  %1024 = vperm.xlu1 %9602, %v7443_v55   ;;  %v7447_v61 = vld [vmem:[%s12393_s3 + $0x78] sm:$0xff]  ;;  %v7468_v63 = vld [vmem:[%s12395_s5 + $0x60] sm:$0xff] }
 0x2ad   :  { %vm656_vm6 = vcmp.ge.f32.partialorder %v626_v6, 0.0  ;;  %v664_v11 = vmul.f32 0.2, %v626_v6  ;;  %v8417_v12 = vpop.f32.mrb[4].mxu1  ;;  %v7467_v5 = vld [vmem:[%s12395_s5 + $0x58] sm:$0xff] }
 0x2ae   :  { %v673_v13 = vsel %vm657_vm5, %v631_v0, %v665_v10  ;;  %v641_v14 = vadd.f32 %v8417_v12, %v513_v56  ;;  %v635_v15 = vpop.f32.mrb[5].mxu1  ;;  %9149 = vmatpush3.bf16.msra.mxu0 %v9148_v9  ;;  %v10200_v57 = vpop.permute.xlu1 %886  ;;  %v7465_v0 = vld [vmem:[%s12395_s5 + $0x48] sm:$0xff]  ;;  %v7470_v56 = vld [vmem:[%s12395_s5 + $0x70] sm:$0xff]  ;;  %v7471_v12 = vld [vmem:[%s12395_s5 + $0x78] sm:$0xff] }
 0x2af   :  { %v672_v16 = vsel %vm656_vm6, %v626_v6, %v664_v11  ;;  %v636_v17 = vadd.f32 %v635_v15, %v508_v8  ;;  %9150 = vmatprep.subr.bf16.mxu0 %v9833_v41  ;;  %1220 = vperm.xlu0 %9603, %v7464_v58   ;;  %v683_v6 = vpop.permute.xlu0 %682  ;;  %v7481_v8 = vld [vmem:[%s12397_s7 + $0x8] sm:$0xff]  ;;  %v10252_v15 = vld [vmem:[%s12391_s1 + $0x90] sm:$0xff]  ;;  %v861_v58 = vmul.f32 %v10168_v33, %v10013_v49 }
 0x2b0   :  { %v9151_v18 = vpack.c.bf16 %v673_v13, %v672_v16  ;;  %vm659_vm7 = vcmp.ge.f32.partialorder %v641_v14, 0.0  ;;  %v667_v19 = vmul.f32 0.2, %v641_v14  ;;  %1034 = vperm.xlu1 %9602, %v7445_v59   ;;  %v7469_v9 = vld [vmem:[%s12395_s5 + $0x68] sm:$0xff]  ;;  %v7483_v16 = vld [vmem:[%s12391_s1 + $0x80] sm:$0xff]  ;;  %v909_v59 = vmul.f32 %v10174_v40, %v10016_v50 }
 0x2b1   :  { %vm658_vm8 = vcmp.ge.f32.partialorder %v636_v17, 0.0  ;;  %v666_v21 = vmul.f32 0.2, %v636_v17  ;;  %v8420_v22 = vpop.f32.mrb[6].mxu1  ;;  %v10241_v11 = vld [vmem:[%s12391_s1 + $0x88] sm:$0xff] }
 0x2b2   :  { %v675_v23 = vsel %vm659_vm7, %v641_v14, %v667_v19  ;;  %v651_v24 = vadd.f32 %v8420_v22, %v523_v20  ;;  %v645_v25 = vpop.f32.mrb[7].mxu1  ;;  %9152 = vmatpush3.bf16.msra.mxu0 %v9151_v18  ;;  %v10214_v62 = vpop.permute.xlu1 %890  ;;  %v10261_v18 = vld [vmem:[%s12391_s1 + $0xa8] sm:$0xff] }
 0x2b3   :  { %v674_v26 = vsel %vm658_vm8, %v636_v17, %v666_v21  ;;  %v646_v27 = vadd.f32 %v645_v25, %v518_v37  ;;  %9153 = vmatprep.subr.bf16.mxu0 %v9833_v41  ;;  %1230 = vperm.xlu0 %9603, %v7466_v60   ;;  %v10246_v13 = vpop.permute.xlu0 %784  ;;  %v910_v60 = vmul.f32 %v10176_v45, %v10016_v50 }
 0x2b4   :  { %v9154_v51 = vpack.c.bf16 %v675_v23, %v674_v26  ;;  %vm661_vm9 = vcmp.ge.f32.partialorder %v651_v24, 0.0  ;;  %v669_v28 = vmul.f32 0.2, %v651_v24  ;;  %1044 = vperm.xlu1 %9602, %v7447_v61   ;;  %v912_v36 = vmul.f32 %v10214_v62, %v10016_v50 }
 0x2b5   :  { %vm660_vm10 = vcmp.ge.f32.partialorder %v646_v27, 0.0  ;;  %v668_v29 = vmul.f32 0.2, %v646_v27 }
 0x2b6   :  { %v677_v30 = vsel %vm661_vm9, %v651_v24, %v669_v28  ;;  %9155 = vmatpush3.bf16.msra.mxu0 %v9154_v51  ;;  %v10222_v1 = vpop.permute.xlu1 %930 }
 0x2b7   :  { %v676_v31 = vsel %vm660_vm10, %v646_v27, %v668_v29  ;;  %9156 = vmatprep.subr.bf16.mxu0 %v9833_v41  ;;  %1240 = vperm.xlu0 %9603, %v7468_v63   ;;  %v790_v17 = vpop.permute.xlu0 %789  ;;  %v863_v63 = vmul.f32 %v10192_v53, %v10013_v49 }
 0x2b8   :  { %v9157_v32 = vpack.c.bf16 %v677_v30, %v676_v31  ;;  %1225 = vperm.xlu1 %9602, %v7465_v0  }
 0x2ba   :  { %9158 = vmatpush3.bf16.msra.mxu0 %v9157_v32  ;;  %v10236_v10 = vpop.permute.xlu1 %799 }
 0x2bb   :  { %1250 = vperm.xlu0 %9603, %v7470_v56   ;;  %v805_v20 = vpop.permute.xlu0 %804 }
 0x2bc   :  { %1235 = vperm.xlu1 %9602, %v7467_v5  }
 0x2bd   :  { %8438 = vmatmul.mubr.msk.f32.vlgmr.msra.gmra.mrb[8].mxu0 %vm315_vm0, %v678_v34 }
 0x2be   :  { %v847_v14 = vpop.permute.xlu1 %846 }
 0x2bf   :  { %1417 = vperm.xlu0 %9603, %v7481_v8   ;;  %v10267_v24 = vpop.permute.xlu0 %926  ;;  %v865_v0 = vmul.f32 %v847_v14, %v10013_v49 }
 0x2c0   :  { %1245 = vperm.xlu1 %9602, %v7469_v9  }
 0x2c2   :  { %v851_v19 = vpop.permute.xlu1 %850 }
 0x2c3   :  { %1519 = vperm.xlu0 %9603, %v10241_v11   ;;  %v10272_v26 = vpop.permute.xlu0 %938  ;;  %v866_v56 = vmul.f32 %v851_v19, %v10013_v49 }
 0x2c4   :  { %1255 = vperm.xlu1 %9602, %v7471_v12  }
 0x2c6   :  { %v899_v21 = vpop.permute.xlu1 %898 }
 0x2c7   :  { %1524 = vperm.xlu0 %9603, %v10252_v15   ;;  %v835_v28 = vpop.permute.xlu0 %834  ;;  %v914_v45 = vmul.f32 %v899_v21, %v10016_v50 }
 0x2c8   :  { %1514 = vperm.xlu1 %9602, %v7483_v16   ;;  %v862_v5 = vmul.f32 %v835_v28, %v10013_v49 }
 0x2ca   :  { %v10269_v25 = vpop.permute.xlu1 %934 }
 0x2cb   :  { %1539 = vperm.xlu0 %9603, %v10261_v18   ;;  %v843_v32 = vpop.permute.xlu0 %842 }
 0x2cc   :  { %9604 = vset.pattern.permute.xlu1 %v9830_v3  ;;  %v864_v53 = vmul.f32 %v843_v32, %v10013_v49 }
 0x2cd   :  { %1565 = vperm.xlu1 %9604, %v7483_v16  }
 0x2ce   :  { %v810_v27 = vpop.permute.xlu1 %809 }
 0x2cf   :  { %9611 = vset.pattern.permute.xlu0 %v9829_v2  ;;  %v855_v38 = vpop.permute.xlu0 %854 }
 0x2d0   :  { %1661 = vperm.xlu0 %9611, %v7483_v16  }
 0x2d1   :  { %9605 = vset.pattern.permute.xlu1 %v9831_v4 }
 0x2d2   :  { %1613 = vperm.xlu1 %9605, %v7483_v16   ;;  %v815_v31 = vpop.permute.xlu1 %814 }
 0x2d3   :  { %v895_v55 = vpop.permute.xlu0 %894 }
 0x2d4   :  { %v913_v62 = vmul.f32 %v895_v55, %v10016_v50 }
 0x2d6   :  { %1617 = vperm.xlu1 %9605, %v10241_v11   ;;  %v859_v34 = vpop.permute.xlu1 %858 }
 0x2d7   :  { %v907_v16 = vpop.permute.xlu0 %906 }
 0x2da   :  { %9606 = vset.pattern.permute.xlu1 %v12399_v7  ;;  %v903_v52 = vpop.permute.xlu1 %902 }
 0x2de   :  { %v943_v33 = vpop.permute.xlu1 %942 }
 0x390   :  { %v754_v22 = vpop.f32.mrb[8].mxu0 }
 0x391   :  { %v755_v37 = vadd.f32 %v754_v22, %v683_v6  ;;  %v8439_v23 = vpop.f32.mrb[9].mxu0  ;;  %v868_v6 = vmul.f32 %v859_v34, %v10013_v49 }
 0x393   :  { %9764 = vtanh.f32 %v755_v37 }
 0x39d   :  { %v9765_v51 = vpop.eup %9764 }
 0x39e   :  { %v10275_v29 = vmul.f32 2.0, %v9765_v51 }
 0x3a0   :  { %v760_v30 = vmul.f32 1.442695, %v10275_v29 }
 0x3a2   :  { %9766 = vpow2.f32 %v760_v30 }
 0x3ac   :  { %v9767_v48 = vpop.eup %9766 }
 0x3ad   :  { %v763_v39 = vrot.slane %v9767_v48, 7 }
 0x3af   :  { %v765_v47 = vmul.f32 %v763_v39, %v10001_v44  ;;  %v911_v44 = vmul.f32 %v10200_v57, %v10016_v50  ;;  %v867_v57 = vmul.f32 %v855_v38, %v10013_v49  ;;  %v915_v38 = vmul.f32 %v903_v52, %v10016_v50 }
 0x3b1   :  { %v10288_v61 = vadd.f32 %v765_v47, %v755_v37 }
 0x3b3   :  { %v820_v40 = vrot.slane %v10288_v61, %v10280_v54 }
 0x3b5   :  { %v825_v8 = vmul.f32 %v820_v40, %v10236_v10  ;;  %v826_v9 = vmul.f32 %v820_v40, %v805_v20  ;;  %v821_v12 = vmul.f32 %v820_v40, %v10166_v35  ;;  %v823_v14 = vmul.f32 %v820_v40, %v790_v17  ;;  %v947_v20 = vpop.permute.xlu1 %946 }
 0x3b6   :  { %v827_v19 = vmul.f32 %v820_v40, %v810_v27  ;;  %v822_v21 = vmul.f32 %v820_v40, %v10246_v13  ;;  %v828_v22 = vmul.f32 %v820_v40, %v815_v31  ;;  %v824_v37 = vmul.f32 %v820_v40, %v10178_v46 }
 0x3b7   :  { %v873_v23 = vadd.f32 %v865_v0, %v825_v8  ;;  %v874_v51 = vadd.f32 %v866_v56, %v826_v9  ;;  %v869_v28 = vadd.f32 %v861_v58, %v821_v12  ;;  %v871_v30 = vadd.f32 %v863_v63, %v823_v14 }
 0x3b8   :  { %v870_v32 = vadd.f32 %v862_v5, %v822_v21  ;;  %v872_v34 = vadd.f32 %v864_v53, %v824_v37  ;;  %v916_v10 = vmul.f32 %v907_v16, %v10016_v50  ;;  %v876_v48 = vadd.f32 %v868_v6, %v828_v22  ;;  %v951_v5 = vpop.permute.xlu0 %950 }
 0x3b9   :  { %v917_v35 = vadd.f32 %v909_v59, %v869_v28  ;;  %v919_v17 = vadd.f32 %v911_v44, %v871_v30  ;;  %v875_v27 = vadd.f32 %v867_v57, %v827_v19  ;;  %v921_v31 = vadd.f32 %v913_v62, %v873_v23  ;;  %v7433_v23 = vld [vmem:[%s12392_s2 + $0x48] sm:$0xff]  ;;  %v7435_v28 = vld [vmem:[%s12392_s2 + $0x58] sm:$0xff]  ;;  %v7436_v30 = vld [vmem:[%s12392_s2 + $0x60] sm:$0xff] }
 0x3ba   :  { %v918_v39 = vadd.f32 %v910_v60, %v870_v32  ;;  %v920_v13 = vadd.f32 %v912_v36, %v872_v34  ;;  %v922_v47 = vadd.f32 %v914_v45, %v874_v51  ;;  %v924_v40 = vadd.f32 %v916_v10, %v876_v48  ;;  %v955_v60 = vpop.permute.xlu1 %954  ;;  %v7434_v51 = vld [vmem:[%s12392_s2 + $0x50] sm:$0xff]  ;;  %v7437_v32 = vld [vmem:[%s12392_s2 + $0x68] sm:$0xff]  ;;  %v7456_v10 = vld [vmem:[%s12394_s4 + $0x40] sm:$0xff] }
 0x3bb   :  { %v957_v46 = vadd.f32 %v10267_v24, %v917_v35  ;;  %v959_v55 = vadd.f32 %v10269_v25, %v919_v17  ;;  %v923_v0 = vadd.f32 %v915_v38, %v875_v27  ;;  %v961_v44 = vadd.f32 %v943_v33, %v921_v31  ;;  %v7438_v34 = vld [vmem:[%s12392_s2 + $0x70] sm:$0xff]  ;;  %v7439_v38 = vld [vmem:[%s12392_s2 + $0x78] sm:$0xff]  ;;  %8484 = vmatprep.mubr.msk.f32.mxu0 %vm315_vm0, %v7456_v10  ;;  %v7461_v10 = vld [vmem:[%s12394_s4 + $0x68] sm:$0xff] }
 0x3bc   :  { %v958_v58 = vadd.f32 %v10222_v1, %v918_v39  ;;  %v960_v63 = vadd.f32 %v10272_v26, %v920_v13  ;;  %v962_v56 = vadd.f32 %v947_v20, %v922_v47  ;;  %v964_v25 = vadd.f32 %v955_v60, %v924_v40  ;;  %v1015_v17 = vpop.permute.xlu0 %1014 }
 0x3bd   :  { %vm965_vm11 = vcmp.ge.f32.partialorder %v957_v46, 0.0  ;;  %v973_v52 = vmul.f32 0.2, %v957_v46  ;;  %v975_v59 = vmul.f32 0.2, %v959_v55  ;;  %vm967_vm12 = vcmp.ge.f32.partialorder %v959_v55, 0.0 }
 0x3be   :  { %vm966_vm13 = vcmp.ge.f32.partialorder %v958_v58, 0.0  ;;  %v974_v36 = vmul.f32 0.2, %v958_v58  ;;  %vm968_vm14 = vcmp.ge.f32.partialorder %v960_v63, 0.0  ;;  %v963_v24 = vadd.f32 %v951_v5, %v923_v0  ;;  %v1010_v20 = vpop.permute.xlu1 %1009 }
 0x3bf   :  { %v981_v45 = vsel %vm965_vm11, %v957_v46, %v973_v52  ;;  %v976_v53 = vmul.f32 0.2, %v960_v63  ;;  %v977_v1 = vmul.f32 0.2, %v961_v44  ;;  %v978_v6 = vmul.f32 0.2, %v962_v56 }
 0x3c0   :  { %v982_v26 = vsel %vm966_vm13, %v958_v58, %v974_v36  ;;  %v983_v57 = vsel %vm967_vm12, %v959_v55, %v975_v59  ;;  %vm969_vm15 = vcmp.ge.f32.partialorder %v961_v44, 0.0  ;;  %vm970_vm1 = vcmp.ge.f32.partialorder %v962_v56, 0.0 }
 0x3c1   :  { %v9159_v62 = vpack.c.bf16 %v982_v26, %v981_v45  ;;  %v984_v8 = vsel %vm968_vm14, %v960_v63, %v976_v53  ;;  %v979_v9 = vmul.f32 0.2, %v963_v24  ;;  %v980_v12 = vmul.f32 0.2, %v964_v25 }
 0x3c2   :  { %v9163_v33 = vpack.c.bf16 %v984_v8, %v983_v57  ;;  %v985_v14 = vsel %vm969_vm15, %v961_v44, %v977_v1  ;;  %v986_v16 = vsel %vm970_vm1, %v962_v56, %v978_v6  ;;  %vm971_vm3 = vcmp.ge.f32.partialorder %v963_v24, 0.0  ;;  %v1020_v35 = vpop.permute.xlu1 %1019  ;;  %v1030_v44 = vpop.permute.xlu0 %1029 }
 0x3c3   :  { %9160 = vmatprep.subr.bf16.mxu1 %v9159_v62  ;;  %vm972_vm4 = vcmp.ge.f32.partialorder %v964_v25, 0.0  ;;  %v9167_v19 = vpack.c.bf16 %v986_v16, %v985_v14  ;;  %v987_v21 = vsel %vm971_vm3, %v963_v24, %v979_v9 }
 0x3c4   :  { %9162 = vmatpush3.bf16.msra.mxu1 %v9159_v62  ;;  %v988_v22 = vsel %vm972_vm4, %v964_v25, %v980_v12 }
 0x3c5   :  { %9164 = vmatprep.subr.bf16.mxu1 %v9163_v33  ;;  %v9171_v37 = vpack.c.bf16 %v988_v22, %v987_v21 }
 0x3c6   :  { %v1025_v48 = vpop.permute.xlu1 %1024 }
 0x3c8   :  { %9166 = vmatpush3.bf16.msra.mxu1 %v9163_v33  ;;  %v1040_v33 = vpop.permute.xlu0 %1039 }
 0x3c9   :  { %9168 = vmatprep.subr.bf16.mxu1 %v9167_v19 }
 0x3ca   :  { %v1035_v0 = vpop.permute.xlu1 %1034 }
 0x3cc   :  { %9170 = vmatpush3.bf16.msra.mxu1 %v9167_v19 }
 0x3cd   :  { %9172 = vmatprep.subr.bf16.mxu1 %v9171_v37 }
 0x3ce   :  { %v1045_v57 = vpop.permute.xlu1 %1044 }
 0x3d0   :  { %9174 = vmatpush3.bf16.msra.mxu1 %v9171_v37 }
 0x3d1   :  { %9191 = vmatprep.subr.bf16.mxu1 %v9833_v41 }
 0x3d3   :  { %8457 = vmatmul.mubr.msk.f32.vlgmr.msra.gmra.mrb[8].mxu1 %vm315_vm0, %v7433_v23 }
 0x3d4   :  { %8459 = vmatprep.mubr.msk.f32.mxu1 %vm315_vm0, %v7434_v51 }
 0x3d7   :  { %8460 = vmatmul.mubr.msk.f32.gmra.mrb[10].mxu1 %vm315_vm0, %v7435_v28 }
 0x3d8   :  { %8462 = vmatprep.mubr.msk.f32.mxu1 %vm315_vm0, %v7436_v30  ;;  %v7457_v30 = vld [vmem:[%s12394_s4 + $0x48] sm:$0xff] }
 0x3db   :  { %8463 = vmatmul.mubr.msk.f32.gmra.mrb[12].mxu1 %vm315_vm0, %v7437_v32  ;;  %v7458_v32 = vld [vmem:[%s12394_s4 + $0x50] sm:$0xff] }
 0x3dc   :  { %8465 = vmatprep.mubr.msk.f32.mxu1 %vm315_vm0, %v7438_v34  ;;  %v7459_v34 = vld [vmem:[%s12394_s4 + $0x58] sm:$0xff] }
 0x3df   :  { %8466 = vmatmul.mubr.msk.f32.gmra.mrb[14].mxu1 %vm315_vm0, %v7439_v38  ;;  %v7460_v38 = vld [vmem:[%s12394_s4 + $0x60] sm:$0xff] }
 0x3e0   :  { %8512 = vmatprep.mubr.msk.f32.mxu1 %vm9834_vm2, %v9835_v42 }
 0x4a6   :  { %v8458_v27 = vpop.f32.mrb[8].mxu1 }
 0x4a7   :  { %v1143_v39 = vadd.f32 %v8458_v27, %v1015_v17  ;;  %v1137_v13 = vpop.f32.mrb[9].mxu1  ;;  %v7486_v17 = vld [vmem:[%s12391_s1 + $0x98] sm:$0xff]  ;;  %v7487_v27 = vld [vmem:[%s12391_s1 + $0xa0] sm:$0xff] }
 0x4a8   :  { %v1138_v31 = vadd.f32 %v1137_v13, %v1010_v20  ;;  %v7462_v20 = vld [vmem:[%s12394_s4 + $0x70] sm:$0xff]  ;;  %1529 = vperm.xlu1 %9606, %v7486_v17   ;;  %1673 = vperm.xlu0 %9611, %v7486_v17  }
 0x4a9   :  { %vm1177_vm5 = vcmp.ge.f32.partialorder %v1143_v39, 0.0  ;;  %v1185_v47 = vmul.f32 0.2, %v1143_v39 }
 0x4aa   :  { %vm1176_vm6 = vcmp.ge.f32.partialorder %v1138_v31, 0.0  ;;  %v1184_v46 = vmul.f32 0.2, %v1138_v31  ;;  %v8461_v55 = vpop.f32.mrb[10].mxu1 }
 0x4ab   :  { %v1153_v58 = vadd.f32 %v8461_v55, %v1025_v48  ;;  %v1147_v63 = vpop.f32.mrb[11].mxu1  ;;  %v1193_v52 = vsel %vm1177_vm5, %v1143_v39, %v1185_v47  ;;  %v7489_v48 = vld [vmem:[%s12391_s1 + $0xb0] sm:$0xff]  ;;  %v7490_v39 = vld [vmem:[%s12391_s1 + $0xb8] sm:$0xff] }
 0x4ac   :  { %v1148_v40 = vadd.f32 %v1147_v63, %v1020_v35  ;;  %v1192_v59 = vsel %vm1176_vm6, %v1138_v31, %v1184_v46  ;;  %v7463_v35 = vld [vmem:[%s12394_s4 + $0x78] sm:$0xff]  ;;  %9607 = vset.pattern.permute.xlu1 %v9830_v3  ;;  %9615 = vset.pattern.permute.xlu0 %v9830_v3 }
 0x4ad   :  { %vm1179_vm7 = vcmp.ge.f32.partialorder %v1153_v58, 0.0  ;;  %v1187_v56 = vmul.f32 0.2, %v1153_v58  ;;  %v9175_v5 = vpack.c.bf16 %v1193_v52, %v1192_v59  ;;  %1573 = vperm.xlu1 %9607, %v10252_v15   ;;  %1569 = vperm.xlu0 %9615, %v10241_v11  }
 0x4ae   :  { %vm1178_vm8 = vcmp.ge.f32.partialorder %v1148_v40, 0.0  ;;  %v1186_v60 = vmul.f32 0.2, %v1148_v40  ;;  %v8464_v36 = vpop.f32.mrb[12].mxu1 }
 0x4af   :  { %v1163_v45 = vadd.f32 %v8464_v36, %v1035_v0  ;;  %v1157_v24 = vpop.f32.mrb[13].mxu1  ;;  %9176 = vmatprep.subr.bf16.mxu0 %v9175_v5  ;;  %v1195_v25 = vsel %vm1179_vm7, %v1153_v58, %v1187_v56 }
 0x4b0   :  { %v1158_v53 = vadd.f32 %v1157_v24, %v1030_v44  ;;  %9178 = vmatpush3.bf16.msra.mxu0 %v9175_v5  ;;  %v1194_v1 = vsel %vm1178_vm8, %v1148_v40, %v1186_v60 }
 0x4b1   :  { %vm1181_vm9 = vcmp.ge.f32.partialorder %v1163_v45, 0.0  ;;  %v1189_v6 = vmul.f32 0.2, %v1163_v45  ;;  %v9179_v26 = vpack.c.bf16 %v1195_v25, %v1194_v1  ;;  %9608 = vset.pattern.permute.xlu1 %v9831_v4  ;;  %1577 = vperm.xlu0 %9615, %v7486_v17  }
 0x4b2   :  { %vm1180_vm10 = vcmp.ge.f32.partialorder %v1158_v53, 0.0  ;;  %v1188_v62 = vmul.f32 0.2, %v1158_v53  ;;  %v8467_v8 = vpop.f32.mrb[14].mxu1  ;;  %1621 = vperm.xlu1 %9608, %v10252_v15  }
 0x4b3   :  { %v1173_v9 = vadd.f32 %v8467_v8, %v1045_v57  ;;  %v1167_v12 = vpop.f32.mrb[15].mxu1  ;;  %9180 = vmatprep.subr.bf16.mxu0 %v9179_v26  ;;  %v1197_v14 = vsel %vm1181_vm9, %v1163_v45, %v1189_v6 }
 0x4b4   :  { %v1168_v16 = vadd.f32 %v1167_v12, %v1040_v33  ;;  %9182 = vmatpush3.bf16.msra.mxu0 %v9179_v26  ;;  %v1196_v19 = vsel %vm1180_vm10, %v1158_v53, %v1188_v62 }
 0x4b5   :  { %vm1183_vm11 = vcmp.ge.f32.partialorder %v1173_v9, 0.0  ;;  %v1191_v21 = vmul.f32 0.2, %v1173_v9  ;;  %v9183_v22 = vpack.c.bf16 %v1197_v14, %v1196_v19  ;;  %1589 = vperm.xlu0 %9615, %v7489_v48  }
 0x4b6   :  { %vm1182_vm12 = vcmp.ge.f32.partialorder %v1168_v16, 0.0  ;;  %v1190_v37 = vmul.f32 0.2, %v1168_v16  ;;  %1625 = vperm.xlu1 %9608, %v7486_v17  }
 0x4b7   :  { %9184 = vmatprep.subr.bf16.mxu0 %v9183_v22  ;;  %v1199_v23 = vsel %vm1183_vm11, %v1173_v9, %v1191_v21 }
 0x4b8   :  { %9186 = vmatpush3.bf16.msra.mxu0 %v9183_v22  ;;  %v1198_v51 = vsel %vm1182_vm12, %v1168_v16, %v1190_v37 }
 0x4b9   :  { %v9187_v28 = vpack.c.bf16 %v1199_v23, %v1198_v51  ;;  %9617 = vset.pattern.permute.xlu0 %v9831_v4 }
 0x4ba   :  { %9609 = vset.pattern.permute.xlu1 %v9829_v2  ;;  %1629 = vperm.xlu0 %9617, %v7487_v27  }
 0x4bb   :  { %9188 = vmatprep.subr.bf16.mxu0 %v9187_v28  ;;  %1665 = vperm.xlu1 %9609, %v10241_v11   ;;  %v1226_v11 = vpop.permute.xlu1 %1225 }
 0x4bc   :  { %9190 = vmatpush3.bf16.msra.mxu0 %v9187_v28 }
 0x4be   :  { %1641 = vperm.xlu0 %9617, %v7490_v39  }
 0x4bf   :  { %8485 = vmatmul.mubr.msk.f32.vlgmr.msra.gmra.mrb[10].mxu0 %vm315_vm0, %v7457_v30  ;;  %9610 = vset.pattern.permute.xlu1 %v12399_v7  ;;  %v1236_v13 = vpop.permute.xlu1 %1235 }
 0x4c0   :  { %8487 = vmatprep.mubr.msk.f32.mxu0 %vm315_vm0, %v7458_v32  ;;  %1534 = vperm.xlu1 %9610, %v7487_v27  }
 0x4c2   :  { %9621 = vset.pattern.permute.xlu0 %v9829_v2 }
 0x4c3   :  { %8488 = vmatmul.mubr.msk.f32.gmra.mrb[12].mxu0 %vm315_vm0, %v7459_v34  ;;  %1685 = vperm.xlu0 %9621, %v7489_v48  }
 0x4c4   :  { %8490 = vmatprep.mubr.msk.f32.mxu0 %vm315_vm0, %v7460_v38  ;;  %9612 = vset.pattern.permute.xlu1 %v9830_v3  ;;  %v7480_v38 = vld [vmem:[%s12396_s6 + $0x8] sm:$0xff] }
 0x4c5   :  { %1581 = vperm.xlu1 %9612, %v7487_v27  }
 0x4c7   :  { %8491 = vmatmul.mubr.msk.f32.gmra.mrb[14].mxu0 %vm315_vm0, %v7461_v10  ;;  %9623 = vset.pattern.permute.xlu0 %v12399_v7 }
 0x4c8   :  { %8493 = vmatprep.mubr.msk.f32.mxu0 %vm315_vm0, %v7462_v20 }
 0x4c9   :  { %1585 = vperm.xlu1 %9612, %v10261_v18  }
 0x4cb   :  { %8494 = vmatmul.mubr.msk.f32.gmra.mrb[16].mxu0 %vm315_vm0, %v7463_v35  ;;  %v7491_v35 = vld [vmem:[%s12392_s2 + $0x80] sm:$0xff] }
 0x4cc   :  { %8531 = vmatprep.mubr.msk.f32.mxu0 %vm315_vm0, %v7491_v35 }
 0x4cd   :  { %9613 = vset.pattern.permute.xlu1 %v9831_v4 }
 0x4ce   :  { %1633 = vperm.xlu1 %9613, %v10261_v18  }
 0x4d2   :  { %9614 = vset.pattern.permute.xlu1 %v9829_v2 }
 0x4d3   :  { %1669 = vperm.xlu1 %9614, %v10252_v15   ;;  %v1221_v15 = vpop.permute.xlu0 %1220 }
 0x4d7   :  { %9616 = vset.pattern.permute.xlu1 %v12399_v7  ;;  %v1231_v47 = vpop.permute.xlu0 %1230 }
 0x4d8   :  { %1544 = vperm.xlu1 %9616, %v7489_v48  }
 0x4db   :  { %v1241_v60 = vpop.permute.xlu0 %1240 }
 0x4dc   :  { %1549 = vperm.xlu1 %9616, %v7490_v39  }
 0x4df   :  { %v1251_v14 = vpop.permute.xlu0 %1250 }
 0x4e0   :  { %9618 = vset.pattern.permute.xlu1 %v9830_v3 }
 0x4e1   :  { %1593 = vperm.xlu1 %9618, %v7490_v39  }
 0x4e5   :  { %9619 = vset.pattern.permute.xlu1 %v9831_v4 }
 0x4e6   :  { %1637 = vperm.xlu1 %9619, %v7489_v48  }
 0x4ea   :  { %9620 = vset.pattern.permute.xlu1 %v9829_v2 }
 0x4eb   :  { %1677 = vperm.xlu1 %9620, %v7487_v27  }
 0x4ef   :  { %1681 = vperm.xlu1 %9620, %v10261_v18   ;;  %v1246_v18 = vpop.permute.xlu1 %1245 }
 0x4f3   :  { %1689 = vperm.xlu1 %9620, %v7490_v39   ;;  %v1256_v33 = vpop.permute.xlu1 %1255  ;;  %v7500_v39 = vld [vmem:[%s12393_s3 + $0x88] sm:$0xff] }
 0x4f4   :  { %1749 = vperm.xlu0 %9623, %v7500_v39  }
 0x4f7   :  { %9622 = vset.pattern.permute.xlu1 %v12399_v7  ;;  %v10422_v10 = vpop.permute.xlu1 %1514 }
 0x4fb   :  { %v10424_v20 = vpop.permute.xlu1 %1565 }
 0x4ff   :  { %v10430_v17 = vpop.permute.xlu1 %1613 }
 0x503   :  { %v10432_v48 = vpop.permute.xlu1 %1617 }
 0x527   :  { %v10434_v27 = vpop.permute.xlu1 %1529 }
 0x592   :  { %v8486_v31 = vpop.f32.mrb[10].mxu0 }
 0x593   :  { %v1354_v46 = vadd.f32 %v8486_v31, %v1226_v11  ;;  %v1348_v55 = vpop.f32.mrb[11].mxu0  ;;  %v7499_v11 = vld [vmem:[%s12393_s3 + $0x80] sm:$0xff]  ;;  %v10448_v31 = vpop.permute.xlu1 %1573 }
 0x594   :  { %v1349_v58 = vadd.f32 %v1348_v55, %v1221_v15  ;;  %1744 = vperm.xlu1 %9622, %v7499_v11   ;;  %v7503_v15 = vld [vmem:[%s12393_s3 + $0xa0] sm:$0xff] }
 0x595   :  { %vm1388_vm13 = vcmp.ge.f32.partialorder %v1354_v46, 0.0  ;;  %v1396_v63 = vmul.f32 0.2, %v1354_v46  ;;  %1764 = vperm.xlu0 %9623, %v7503_v15  }
 0x596   :  { %vm1387_vm14 = vcmp.ge.f32.partialorder %v1349_v58, 0.0  ;;  %v1395_v52 = vmul.f32 0.2, %v1349_v58  ;;  %v8489_v0 = vpop.f32.mrb[12].mxu0 }
 0x597   :  { %v1404_v40 = vsel %vm1388_vm13, %v1354_v46, %v1396_v63  ;;  %v1364_v59 = vadd.f32 %v8489_v0, %v1236_v13  ;;  %v1358_v44 = vpop.f32.mrb[13].mxu0  ;;  %v7501_v13 = vld [vmem:[%s12393_s3 + $0x90] sm:$0xff]  ;;  %v7502_v46 = vld [vmem:[%s12393_s3 + $0x98] sm:$0xff]  ;;  %v10456_v55 = vpop.permute.xlu1 %1621  ;;  %v7504_v63 = vld [vmem:[%s12393_s3 + $0xa8] sm:$0xff] }
 0x598   :  { %v1403_v56 = vsel %vm1387_vm14, %v1349_v58, %v1395_v52  ;;  %v1359_v5 = vadd.f32 %v1358_v44, %v1231_v47  ;;  %1754 = vperm.xlu1 %9622, %v7501_v13   ;;  %v7505_v47 = vld [vmem:[%s12393_s3 + $0xb0] sm:$0xff]  ;;  %v7523_v58 = vld [vmem:[%s12395_s5 + $0x80] sm:$0xff]  ;;  %v7506_v0 = vld [vmem:[%s12393_s3 + $0xb8] sm:$0xff] }
 0x599   :  { %v9192_v36 = vpack.c.bf16 %v1404_v40, %v1403_v56  ;;  %vm1390_vm15 = vcmp.ge.f32.partialorder %v1364_v59, 0.0  ;;  %v1398_v45 = vmul.f32 0.2, %v1364_v59  ;;  %1774 = vperm.xlu0 %9623, %v7505_v47   ;;  %v7525_v52 = vld [vmem:[%s12395_s5 + $0x90] sm:$0xff]  ;;  %v7524_v44 = vld [vmem:[%s12395_s5 + $0x88] sm:$0xff]  ;;  %v9804_v13 = vld [vmem:[%s12390_s0] sm:$0xff] }
 0x59a   :  { %vm1389_vm1 = vcmp.ge.f32.partialorder %v1359_v5, 0.0  ;;  %v1397_v24 = vmul.f32 0.2, %v1359_v5  ;;  %v8492_v25 = vpop.f32.mrb[14].mxu0  ;;  %v7529_v56 = vld [vmem:[%s12395_s5 + $0xb0] sm:$0xff] }
 0x59b   :  { %v1406_v53 = vsel %vm1390_vm15, %v1364_v59, %v1398_v45  ;;  %v1374_v1 = vadd.f32 %v8492_v25, %v1246_v18  ;;  %v1368_v6 = vpop.f32.mrb[15].mxu0  ;;  %9193 = vmatpush3.bf16.msra.mxu1 %v9192_v36  ;;  %v10470_v40 = vpop.permute.xlu1 %1625  ;;  %v7527_v59 = vld [vmem:[%s12395_s5 + $0xa0] sm:$0xff]  ;;  %v7540_v36 = vld [vmem:[%s12397_s7 + $0x10] sm:$0xff]  ;;  %v7528_v45 = vld [vmem:[%s12395_s5 + $0xa8] sm:$0xff] }
 0x59c   :  { %v1405_v26 = vsel %vm1389_vm1, %v1359_v5, %v1397_v24  ;;  %v1369_v57 = vadd.f32 %v1368_v6, %v1241_v60  ;;  %9194 = vmatprep.subr.bf16.mxu1 %v9833_v41  ;;  %1759 = vperm.xlu1 %9622, %v7502_v46   ;;  %v7526_v5 = vld [vmem:[%s12395_s5 + $0x98] sm:$0xff]  ;;  %v1418_v60 = vpop.permute.xlu0 %1417  ;;  %v10497_v25 = vld [vmem:[%s12391_s1 + $0xc8] sm:$0xff] }
 0x59d   :  { %v9195_v62 = vpack.c.bf16 %v1406_v53, %v1405_v26  ;;  %vm1392_vm3 = vcmp.ge.f32.partialorder %v1374_v1, 0.0  ;;  %v1400_v8 = vmul.f32 0.2, %v1374_v1  ;;  %1955 = vperm.xlu0 %9623, %v7523_v58   ;;  %v7530_v53 = vld [vmem:[%s12395_s5 + $0xb8] sm:$0xff]  ;;  %v10508_v26 = vld [vmem:[%s12391_s1 + $0xd0] sm:$0xff] }
 0x59e   :  { %vm1391_vm4 = vcmp.ge.f32.partialorder %v1369_v57, 0.0  ;;  %v1399_v9 = vmul.f32 0.2, %v1369_v57  ;;  %v8495_v12 = vpop.f32.mrb[16].mxu0 }
 0x59f   :  { %v1408_v16 = vsel %vm1392_vm3, %v1374_v1, %v1400_v8  ;;  %v1384_v19 = vadd.f32 %v8495_v12, %v1256_v33  ;;  %v1378_v21 = vpop.f32.mrb[17].mxu0  ;;  %9196 = vmatpush3.bf16.msra.mxu1 %v9195_v62  ;;  %v10478_v18 = vpop.permute.xlu1 %1665  ;;  %v10517_v8 = vld [vmem:[%s12391_s1 + $0xe8] sm:$0xff] }
 0x5a0   :  { %v1407_v22 = vsel %vm1391_vm4, %v1369_v57, %v1399_v9  ;;  %v1379_v37 = vadd.f32 %v1378_v21, %v1251_v14  ;;  %9197 = vmatprep.subr.bf16.mxu1 %v9833_v41  ;;  %1769 = vperm.xlu1 %9622, %v7504_v63   ;;  %v10502_v1 = vpop.permute.xlu0 %1519  ;;  %v7542_v57 = vld [vmem:[%s12391_s1 + $0xc0] sm:$0xff]  ;;  %v1596_v63 = vmul.f32 %v10424_v20, %v10013_v49 }
 0x5a1   :  { %v9198_v23 = vpack.c.bf16 %v1408_v16, %v1407_v22  ;;  %vm1394_vm5 = vcmp.ge.f32.partialorder %v1384_v19, 0.0  ;;  %v1402_v51 = vmul.f32 0.2, %v1384_v19  ;;  %1965 = vperm.xlu0 %9623, %v7525_v52   ;;  %v1644_v52 = vmul.f32 %v10430_v17, %v10016_v50 }
 0x5a2   :  { %vm1393_vm6 = vcmp.ge.f32.partialorder %v1379_v37, 0.0  ;;  %v1401_v28 = vmul.f32 0.2, %v1379_v37 }
 0x5a3   :  { %v1410_v30 = vsel %vm1394_vm5, %v1384_v19, %v1402_v51  ;;  %9199 = vmatpush3.bf16.msra.mxu1 %v9198_v23  ;;  %v10492_v24 = vpop.permute.xlu1 %1534 }
 0x5a4   :  { %v1409_v32 = vsel %vm1393_vm6, %v1379_v37, %v1401_v28  ;;  %9200 = vmatprep.subr.bf16.mxu1 %v9833_v41  ;;  %1779 = vperm.xlu1 %9622, %v7506_v0   ;;  %v1525_v62 = vpop.permute.xlu0 %1524  ;;  %v1645_v0 = vmul.f32 %v10432_v48, %v10016_v50 }
 0x5a5   :  { %v9201_v34 = vpack.c.bf16 %v1410_v30, %v1409_v32  ;;  %1975 = vperm.xlu0 %9623, %v7527_v59  }
 0x5a7   :  { %9202 = vmatpush3.bf16.msra.mxu1 %v9201_v34  ;;  %v1582_v6 = vpop.permute.xlu1 %1581 }
 0x5a8   :  { %1960 = vperm.xlu1 %9622, %v7524_v44   ;;  %v1540_v9 = vpop.permute.xlu0 %1539  ;;  %v1598_v44 = vmul.f32 %v10448_v31, %v10013_v49 }
 0x5a9   :  { %1985 = vperm.xlu0 %9623, %v7529_v56   ;;  %v1646_v56 = vmul.f32 %v10456_v55, %v10016_v50 }
 0x5aa   :  { %8513 = vmatmul.mubr.msk.f32.vlgmr.msra.gmra.mrb[16].mxu1 %vm315_vm0, %v7480_v38 }
 0x5ab   :  { %v1586_v33 = vpop.permute.xlu1 %1585 }
 0x5ac   :  { %1970 = vperm.xlu1 %9622, %v7526_v5   ;;  %v10523_v14 = vpop.permute.xlu0 %1661  ;;  %v1647_v5 = vmul.f32 %v10470_v40, %v10016_v50 }
 0x5ad   :  { %2152 = vperm.xlu0 %9623, %v7540_v36   ;;  %v1601_v36 = vmul.f32 %v1586_v33, %v10013_v49 }
 0x5af   :  { %v1634_v12 = vpop.permute.xlu1 %1633 }
 0x5b0   :  { %1980 = vperm.xlu1 %9622, %v7528_v45   ;;  %v10528_v37 = vpop.permute.xlu0 %1673  ;;  %v1649_v48 = vmul.f32 %v1634_v12, %v10016_v50 }
 0x5b1   :  { %2254 = vperm.xlu0 %9623, %v10497_v25  }
 0x5b3   :  { %v10525_v22 = vpop.permute.xlu1 %1669 }
 0x5b4   :  { %1990 = vperm.xlu1 %9622, %v7530_v53   ;;  %v1570_v51 = vpop.permute.xlu0 %1569 }
 0x5b5   :  { %2259 = vperm.xlu0 %9623, %v10508_v26   ;;  %v1597_v45 = vmul.f32 %v1570_v51, %v10013_v49 }
 0x5b7   :  { %v1545_v23 = vpop.permute.xlu1 %1544 }
 0x5b8   :  { %2249 = vperm.xlu1 %9622, %v7542_v57   ;;  %v1578_v38 = vpop.permute.xlu0 %1577 }
 0x5b9   :  { %2274 = vperm.xlu0 %9623, %v10517_v8   ;;  %v1599_v31 = vmul.f32 %v1578_v38, %v10013_v49 }
 0x5bb   :  { %v1550_v32 = vpop.permute.xlu1 %1549 }
 0x5bc   :  { %9624 = vset.pattern.permute.xlu1 %v9830_v3  ;;  %v1590_v39 = vpop.permute.xlu0 %1589 }
 0x5bd   :  { %2300 = vperm.xlu1 %9624, %v7542_v57   ;;  %9631 = vset.pattern.permute.xlu0 %v9829_v2  ;;  %v1602_v55 = vmul.f32 %v1590_v39, %v10013_v49 }
 0x5be   :  { %2396 = vperm.xlu0 %9631, %v7542_v57  }
 0x5bf   :  { %v1594_v35 = vpop.permute.xlu1 %1593 }
 0x5c0   :  { %v1630_v58 = vpop.permute.xlu0 %1629  ;;  %v1603_v53 = vmul.f32 %v1594_v35, %v10013_v49 }
 0x5c1   :  { %9625 = vset.pattern.permute.xlu1 %v9831_v4  ;;  %v1648_v40 = vmul.f32 %v1630_v58, %v10016_v50 }
 0x5c2   :  { %2348 = vperm.xlu1 %9625, %v7542_v57  }
 0x5c3   :  { %v1638_v11 = vpop.permute.xlu1 %1637 }
 0x5c4   :  { %v1650_v39 = vmul.f32 %v1638_v11, %v10016_v50 }
 0x5c6   :  { %2352 = vperm.xlu1 %9625, %v10497_v25  }
 0x5c7   :  { %v1678_v20 = vpop.permute.xlu1 %1677 }
 0x5ca   :  { %9626 = vset.pattern.permute.xlu1 %v12399_v7 }
 0x67d   :  { %v1489_v16 = vpop.f32.mrb[16].mxu1 }
 0x67e   :  { %v1490_v19 = vadd.f32 %v1489_v16, %v1418_v60  ;;  %v8514_v21 = vpop.f32.mrb[17].mxu1  ;;  %v1600_v60 = vmul.f32 %v1582_v6, %v10013_v49 }
 0x67f   :  { %v1642_v21 = vpop.permute.xlu0 %1641 }
 0x680   :  { %9768 = vtanh.f32 %v1490_v19  ;;  %v1499_v46 = vrot.slane %v1490_v19, 1 }
 0x68a   :  { %v9769_v28 = vpop.eup %9768 }
 0x68b   :  { %v10531_v30 = vmul.f32 2.0, %v9769_v28 }
 0x68d   :  { %v1495_v34 = vmul.f32 1.442695, %v10531_v30 }
 0x68f   :  { %9770 = vpow2.f32 %v1495_v34 }
 0x699   :  { %v9771_v15 = vpop.eup %9770 }
 0x69a   :  { %v1497_v47 = vmul.f32 %v9804_v13, %v9771_v15 }
 0x69c   :  { %v10543_v59 = vadd.f32 %v1499_v46, %v1497_v47 }
 0x69e   :  { %v1555_v17 = vrot.slane %v10543_v59, %v9996_v43 }
 0x6a0   :  { %v1561_v57 = vmul.f32 %v1555_v17, %v1540_v9  ;;  %v1556_v6 = vmul.f32 %v1555_v17, %v10422_v10  ;;  %v1558_v16 = vmul.f32 %v1555_v17, %v1525_v62  ;;  %v1562_v19 = vmul.f32 %v1555_v17, %v1545_v23  ;;  %v1682_v62 = vpop.permute.xlu1 %1681 }
 0x6a1   :  { %v1557_v33 = vmul.f32 %v1555_v17, %v10502_v1  ;;  %v1563_v28 = vmul.f32 %v1555_v17, %v1550_v32  ;;  %v1559_v12 = vmul.f32 %v1555_v17, %v10434_v27  ;;  %v1560_v51 = vmul.f32 %v1555_v17, %v10492_v24 }
 0x6a2   :  { %v1609_v34 = vadd.f32 %v1601_v36, %v1561_v57  ;;  %v1604_v38 = vadd.f32 %v1596_v63, %v1556_v6  ;;  %v1606_v35 = vadd.f32 %v1598_v44, %v1558_v16  ;;  %v1651_v10 = vmul.f32 %v1642_v21, %v10016_v50 }
 0x6a3   :  { %v1605_v15 = vadd.f32 %v1597_v45, %v1557_v33  ;;  %v1607_v13 = vadd.f32 %v1599_v31, %v1559_v12  ;;  %v1608_v9 = vadd.f32 %v1600_v60, %v1560_v51  ;;  %v1611_v46 = vadd.f32 %v1603_v53, %v1563_v28  ;;  %v1686_v31 = vpop.permute.xlu0 %1685 }
 0x6a4   :  { %v1652_v23 = vadd.f32 %v1644_v52, %v1604_v38  ;;  %v1654_v47 = vadd.f32 %v1646_v56, %v1606_v35  ;;  %v1610_v1 = vadd.f32 %v1602_v55, %v1562_v19  ;;  %v1657_v7 = vadd.f32 %v1649_v48, %v1609_v34  ;;  %v7492_v34 = vld [vmem:[%s12392_s2 + $0x88] sm:$0xff]  ;;  %v7493_v38 = vld [vmem:[%s12392_s2 + $0x90] sm:$0xff]  ;;  %v7494_v35 = vld [vmem:[%s12392_s2 + $0x98] sm:$0xff] }
 0x6a5   :  { %v1653_v32 = vadd.f32 %v1645_v0, %v1605_v15  ;;  %v1655_v58 = vadd.f32 %v1647_v5, %v1607_v13  ;;  %v1656_v27 = vadd.f32 %v1648_v40, %v1608_v9  ;;  %v1659_v36 = vadd.f32 %v1651_v10, %v1611_v46  ;;  %v1690_v0 = vpop.permute.xlu1 %1689  ;;  %v7496_v15 = vld [vmem:[%s12392_s2 + $0xa8] sm:$0xff]  ;;  %v7497_v13 = vld [vmem:[%s12392_s2 + $0xb0] sm:$0xff]  ;;  %v7498_v9 = vld [vmem:[%s12392_s2 + $0xb8] sm:$0xff] }
 0x6a6   :  { %v1692_v24 = vadd.f32 %v10523_v14, %v1652_v23  ;;  %v1694_v63 = vadd.f32 %v10525_v22, %v1654_v47  ;;  %v1658_v17 = vadd.f32 %v1650_v39, %v1610_v1  ;;  %v1697_v45 = vadd.f32 %v1682_v62, %v1657_v7  ;;  %v7495_v39 = vld [vmem:[%s12392_s2 + $0xa0] sm:$0xff] }
 0x6a7   :  { %v1693_v11 = vadd.f32 %v10478_v18, %v1653_v32  ;;  %v1695_v44 = vadd.f32 %v10528_v37, %v1655_v58  ;;  %v1696_v56 = vadd.f32 %v1678_v20, %v1656_v27  ;;  %v1699_v22 = vadd.f32 %v1690_v0, %v1659_v36  ;;  %v7515_v10 = vld [vmem:[%s12394_s4 + $0x80] sm:$0xff]  ;;  %v1750_v47 = vpop.permute.xlu0 %1749 }
 0x6a8   :  { %vm1700_vm7 = vcmp.ge.f32.partialorder %v1692_v24, 0.0  ;;  %v1708_v60 = vmul.f32 0.2, %v1692_v24  ;;  %v1710_v52 = vmul.f32 0.2, %v1694_v63  ;;  %vm1702_vm8 = vcmp.ge.f32.partialorder %v1694_v63, 0.0  ;;  %8559 = vmatprep.mubr.msk.f32.mxu1 %vm315_vm0, %v7515_v10 }
 0x6a9   :  { %vm1701_vm9 = vcmp.ge.f32.partialorder %v1693_v11, 0.0  ;;  %v1709_v5 = vmul.f32 0.2, %v1693_v11  ;;  %vm1703_vm10 = vcmp.ge.f32.partialorder %v1695_v44, 0.0  ;;  %v1698_v14 = vadd.f32 %v1686_v31, %v1658_v17  ;;  %v1745_v62 = vpop.permute.xlu1 %1744  ;;  %v7519_v10 = vld [vmem:[%s12394_s4 + $0xa0] sm:$0xff] }
 0x6aa   :  { %v1716_v48 = vsel %vm1700_vm7, %v1692_v24, %v1708_v60  ;;  %v1711_v53 = vmul.f32 0.2, %v1695_v44  ;;  %v1712_v18 = vmul.f32 0.2, %v1696_v56  ;;  %v1713_v55 = vmul.f32 0.2, %v1697_v45 }
 0x6ab   :  { %v1717_v37 = vsel %vm1701_vm9, %v1693_v11, %v1709_v5  ;;  %v1718_v40 = vsel %vm1702_vm8, %v1694_v63, %v1710_v52  ;;  %vm1704_vm11 = vcmp.ge.f32.partialorder %v1696_v56, 0.0  ;;  %vm1705_vm12 = vcmp.ge.f32.partialorder %v1697_v45, 0.0 }
 0x6ac   :  { %v9203_v57 = vpack.c.bf16 %v1717_v37, %v1716_v48  ;;  %v1719_v6 = vsel %vm1703_vm10, %v1695_v44, %v1711_v53  ;;  %v1714_v20 = vmul.f32 0.2, %v1698_v14  ;;  %v1715_v16 = vmul.f32 0.2, %v1699_v22 }
 0x6ad   :  { %v9207_v7 = vpack.c.bf16 %v1719_v6, %v1718_v40  ;;  %v1720_v19 = vsel %vm1704_vm11, %v1696_v56, %v1712_v18  ;;  %v1721_v21 = vsel %vm1705_vm12, %v1697_v45, %v1713_v55  ;;  %vm1706_vm13 = vcmp.ge.f32.partialorder %v1698_v14, 0.0  ;;  %v1755_v23 = vpop.permute.xlu1 %1754  ;;  %v1765_v45 = vpop.permute.xlu0 %1764 }
 0x6ae   :  { %9204 = vmatprep.subr.bf16.mxu0 %v9203_v57  ;;  %vm1707_vm14 = vcmp.ge.f32.partialorder %v1699_v22, 0.0  ;;  %v9211_v33 = vpack.c.bf16 %v1721_v21, %v1720_v19  ;;  %v1722_v28 = vsel %vm1706_vm13, %v1698_v14, %v1714_v20 }
 0x6af   :  { %9206 = vmatpush3.bf16.msra.mxu0 %v9203_v57  ;;  %v1723_v12 = vsel %vm1707_vm14, %v1699_v22, %v1715_v16 }
 0x6b0   :  { %9208 = vmatprep.subr.bf16.mxu0 %v9207_v7  ;;  %v9215_v51 = vpack.c.bf16 %v1723_v12, %v1722_v28 }
 0x6b1   :  { %v1760_v46 = vpop.permute.xlu1 %1759  ;;  %v1775_v20 = vpop.permute.xlu0 %1774 }
 0x6b3   :  { %9210 = vmatpush3.bf16.msra.mxu0 %v9207_v7 }
 0x6b4   :  { %9212 = vmatprep.subr.bf16.mxu0 %v9211_v33 }
 0x6b5   :  { %v1770_v36 = vpop.permute.xlu1 %1769 }
 0x6b7   :  { %9214 = vmatpush3.bf16.msra.mxu0 %v9211_v33 }
 0x6b8   :  { %9216 = vmatprep.subr.bf16.mxu0 %v9215_v51 }
 0x6b9   :  { %v1780_v57 = vpop.permute.xlu1 %1779 }
 0x6bb   :  { %9218 = vmatpush3.bf16.msra.mxu0 %v9215_v51 }
 0x6bc   :  { %9235 = vmatprep.subr.bf16.mxu0 %v9833_v41 }
 0x6be   :  { %8532 = vmatmul.mubr.msk.f32.vlgmr.msra.gmra.mrb[18].mxu0 %vm315_vm0, %v7492_v34 }
 0x6bf   :  { %8534 = vmatprep.mubr.msk.f32.mxu0 %vm315_vm0, %v7493_v38 }
 0x6c2   :  { %8535 = vmatmul.mubr.msk.f32.gmra.mrb[20].mxu0 %vm315_vm0, %v7494_v35 }
 0x6c3   :  { %8537 = vmatprep.mubr.msk.f32.mxu0 %vm315_vm0, %v7495_v39 }
 0x6c6   :  { %8538 = vmatmul.mubr.msk.f32.gmra.mrb[22].mxu0 %vm315_vm0, %v7496_v15  ;;  %v7516_v15 = vld [vmem:[%s12394_s4 + $0x88] sm:$0xff] }
 0x6c7   :  { %8540 = vmatprep.mubr.msk.f32.mxu0 %vm315_vm0, %v7497_v13  ;;  %v7517_v13 = vld [vmem:[%s12394_s4 + $0x90] sm:$0xff] }
 0x6ca   :  { %8541 = vmatmul.mubr.msk.f32.gmra.mrb[24].mxu0 %vm315_vm0, %v7498_v9  ;;  %v7518_v9 = vld [vmem:[%s12394_s4 + $0x98] sm:$0xff] }
 0x6cb   :  { %8587 = vmatprep.mubr.msk.f32.mxu0 %vm9834_vm2, %v9835_v42 }
 0x791   :  { %v8533_v1 = vpop.f32.mrb[18].mxu0 }
 0x792   :  { %v1878_v32 = vadd.f32 %v8533_v1, %v1750_v47  ;;  %v1872_v58 = vpop.f32.mrb[19].mxu0  ;;  %v7522_v47 = vld [vmem:[%s12394_s4 + $0xb8] sm:$0xff]  ;;  %v7548_v1 = vld [vmem:[%s12391_s1 + $0xf0] sm:$0xff] }
 0x793   :  { %v1873_v27 = vadd.f32 %v1872_v58, %v1745_v62  ;;  %v7520_v62 = vld [vmem:[%s12394_s4 + $0xa8] sm:$0xff]  ;;  %v7549_v58 = vld [vmem:[%s12391_s1 + $0xf8] sm:$0xff] }
 0x794   :  { %vm1912_vm15 = vcmp.ge.f32.partialorder %v1878_v32, 0.0  ;;  %v1920_v24 = vmul.f32 0.2, %v1878_v32 }
 0x795   :  { %vm1911_vm1 = vcmp.ge.f32.partialorder %v1873_v27, 0.0  ;;  %v1919_v63 = vmul.f32 0.2, %v1873_v27  ;;  %v8536_v11 = vpop.f32.mrb[20].mxu0 }
 0x796   :  { %v1888_v44 = vadd.f32 %v8536_v11, %v1760_v46  ;;  %v1882_v60 = vpop.f32.mrb[21].mxu0  ;;  %v1928_v17 = vsel %vm1912_vm15, %v1878_v32, %v1920_v24  ;;  %v7545_v46 = vld [vmem:[%s12391_s1 + $0xd8] sm:$0xff]  ;;  %v7546_v32 = vld [vmem:[%s12391_s1 + $0xe0] sm:$0xff] }
 0x797   :  { %v1883_v52 = vadd.f32 %v1882_v60, %v1755_v23  ;;  %v1927_v56 = vsel %vm1911_vm1, %v1873_v27, %v1919_v63  ;;  %v7521_v23 = vld [vmem:[%s12394_s4 + $0xb0] sm:$0xff]  ;;  %2264 = vperm.xlu1 %9626, %v7545_v46   ;;  %2408 = vperm.xlu0 %9631, %v7545_v46   ;;  %v12401_v27 = vmov 0  }
 0x798   :  { %vm1914_vm3 = vcmp.ge.f32.partialorder %v1888_v44, 0.0  ;;  %v1922_v31 = vmul.f32 0.2, %v1888_v44  ;;  %v9219_v0 = vpack.c.bf16 %v1928_v17, %v1927_v56 }
 0x799   :  { %vm1913_vm4 = vcmp.ge.f32.partialorder %v1883_v52, 0.0  ;;  %v1921_v5 = vmul.f32 0.2, %v1883_v52  ;;  %v8539_v48 = vpop.f32.mrb[22].mxu0 }
 0x79a   :  { %v1898_v14 = vadd.f32 %v8539_v48, %v1770_v36  ;;  %v1892_v22 = vpop.f32.mrb[23].mxu0  ;;  %9220 = vmatprep.subr.bf16.mxu1 %v9219_v0  ;;  %v1930_v53 = vsel %vm1914_vm3, %v1888_v44, %v1922_v31 }
 0x79b   :  { %v1893_v18 = vadd.f32 %v1892_v22, %v1765_v45  ;;  %9222 = vmatpush3.bf16.msra.mxu1 %v9219_v0  ;;  %v1929_v55 = vsel %vm1913_vm4, %v1883_v52, %v1921_v5  ;;  %9627 = vset.pattern.permute.xlu1 %v9830_v3 }
 0x79c   :  { %vm1916_vm5 = vcmp.ge.f32.partialorder %v1898_v14, 0.0  ;;  %v1924_v37 = vmul.f32 0.2, %v1898_v14  ;;  %v9223_v40 = vpack.c.bf16 %v1930_v53, %v1929_v55  ;;  %9635 = vset.pattern.permute.xlu0 %v9830_v3  ;;  %2308 = vperm.xlu1 %9627, %v10508_v26  }
 0x79d   :  { %vm1915_vm6 = vcmp.ge.f32.partialorder %v1893_v18, 0.0  ;;  %v1923_v6 = vmul.f32 0.2, %v1893_v18  ;;  %v8542_v7 = vpop.f32.mrb[24].mxu0  ;;  %2304 = vperm.xlu0 %9635, %v10497_v25  }
 0x79e   :  { %v1908_v16 = vadd.f32 %v8542_v7, %v1780_v57  ;;  %v1902_v19 = vpop.f32.mrb[25].mxu0  ;;  %9224 = vmatprep.subr.bf16.mxu1 %v9223_v40  ;;  %v1932_v21 = vsel %vm1916_vm5, %v1898_v14, %v1924_v37 }
 0x79f   :  { %v1903_v33 = vadd.f32 %v1902_v19, %v1775_v20  ;;  %9226 = vmatpush3.bf16.msra.mxu1 %v9223_v40  ;;  %v1931_v28 = vsel %vm1915_vm6, %v1893_v18, %v1923_v6 }
 0x7a0   :  { %vm1918_vm7 = vcmp.ge.f32.partialorder %v1908_v16, 0.0  ;;  %v1926_v12 = vmul.f32 0.2, %v1908_v16  ;;  %v9227_v51 = vpack.c.bf16 %v1932_v21, %v1931_v28  ;;  %9628 = vset.pattern.permute.xlu1 %v9831_v4 }
 0x7a1   :  { %vm1917_vm8 = vcmp.ge.f32.partialorder %v1903_v33, 0.0  ;;  %v1925_v34 = vmul.f32 0.2, %v1903_v33  ;;  %2312 = vperm.xlu0 %9635, %v7545_v46   ;;  %2356 = vperm.xlu1 %9628, %v10508_v26  }
 0x7a2   :  { %9228 = vmatprep.subr.bf16.mxu1 %v9227_v51  ;;  %v1934_v38 = vsel %vm1918_vm7, %v1908_v16, %v1926_v12 }
 0x7a3   :  { %9230 = vmatpush3.bf16.msra.mxu1 %v9227_v51  ;;  %v1933_v35 = vsel %vm1917_vm8, %v1903_v33, %v1925_v34 }
 0x7a4   :  { %v9231_v39 = vpack.c.bf16 %v1934_v38, %v1933_v35 }
 0x7a5   :  { %2324 = vperm.xlu0 %9635, %v7548_v1   ;;  %2360 = vperm.xlu1 %9628, %v7545_v46  }
 0x7a6   :  { %9232 = vmatprep.subr.bf16.mxu1 %v9231_v39 }
 0x7a7   :  { %9234 = vmatpush3.bf16.msra.mxu1 %v9231_v39 }
 0x7a9   :  { %9637 = vset.pattern.permute.xlu0 %v9831_v4  ;;  %9629 = vset.pattern.permute.xlu1 %v9829_v2 }
 0x7aa   :  { %8560 = vmatmul.mubr.msk.f32.vlgmr.msra.gmra.mrb[18].mxu1 %vm315_vm0, %v7516_v15  ;;  %2364 = vperm.xlu0 %9637, %v7546_v32  }
 0x7ab   :  { %8562 = vmatprep.mubr.msk.f32.mxu1 %vm315_vm0, %v7517_v13  ;;  %2400 = vperm.xlu1 %9629, %v10497_v25   ;;  %v1961_v25 = vpop.permute.xlu1 %1960 }
 0x7ae   :  { %8563 = vmatmul.mubr.msk.f32.gmra.mrb[20].mxu1 %vm315_vm0, %v7518_v9  ;;  %2376 = vperm.xlu0 %9637, %v7549_v58  }
 0x7af   :  { %8565 = vmatprep.mubr.msk.f32.mxu1 %vm315_vm0, %v7519_v10  ;;  %9630 = vset.pattern.permute.xlu1 %v12401_v27  ;;  %v1971_v24 = vpop.permute.xlu1 %1970 }
 0x7b0   :  { %2269 = vperm.xlu1 %9630, %v7546_v32  }
 0x7b2   :  { %8566 = vmatmul.mubr.msk.f32.gmra.mrb[22].mxu1 %vm315_vm0, %v7520_v62  ;;  %9641 = vset.pattern.permute.xlu0 %v9829_v2 }
 0x7b3   :  { %8568 = vmatprep.mubr.msk.f32.mxu1 %vm315_vm0, %v7521_v23  ;;  %2420 = vperm.xlu0 %9641, %v7548_v1   ;;  %v7539_v23 = vld [vmem:[%s12396_s6 + $0x10] sm:$0xff] }
 0x7b4   :  { %9632 = vset.pattern.permute.xlu1 %v9830_v3 }
 0x7b5   :  { %2316 = vperm.xlu1 %9632, %v7546_v32  }
 0x7b6   :  { %8569 = vmatmul.mubr.msk.f32.gmra.mrb[24].mxu1 %vm315_vm0, %v7522_v47 }
 0x7b7   :  { %9643 = vset.pattern.permute.xlu0 %v12401_v27 }
 0x7b9   :  { %2320 = vperm.xlu1 %9632, %v10517_v8  }
 0x7bd   :  { %9633 = vset.pattern.permute.xlu1 %v9831_v4 }
 0x7be   :  { %2368 = vperm.xlu1 %9633, %v10517_v8  }
 0x7c2   :  { %9634 = vset.pattern.permute.xlu1 %v9829_v2 }
 0x7c3   :  { %2404 = vperm.xlu1 %9634, %v10508_v26   ;;  %v1956_v26 = vpop.permute.xlu0 %1955 }
 0x7c7   :  { %9636 = vset.pattern.permute.xlu1 %v12401_v27  ;;  %v1966_v11 = vpop.permute.xlu0 %1965 }
 0x7c8   :  { %2279 = vperm.xlu1 %9636, %v7548_v1  }
 0x7cb   :  { %v1976_v14 = vpop.permute.xlu0 %1975 }
 0x7cc   :  { %2284 = vperm.xlu1 %9636, %v7549_v58  }
 0x7cf   :  { %v1986_v28 = vpop.permute.xlu0 %1985 }
 0x7d0   :  { %9638 = vset.pattern.permute.xlu1 %v9830_v3 }
 0x7d1   :  { %2328 = vperm.xlu1 %9638, %v7549_v58  }
 0x7d5   :  { %9639 = vset.pattern.permute.xlu1 %v9831_v4 }
 0x7d6   :  { %2372 = vperm.xlu1 %9639, %v7548_v1   ;;  %v7550_v1 = vld [vmem:[%s12392_s2 + $0xc0] sm:$0xff] }
 0x7d7   :  { %8606 = vmatprep.mubr.msk.f32.mxu1 %vm315_vm0, %v7550_v1 }
 0x7da   :  { %9640 = vset.pattern.permute.xlu1 %v9829_v2 }
 0x7db   :  { %2412 = vperm.xlu1 %9640, %v7546_v32  }
 0x7df   :  { %2416 = vperm.xlu1 %9640, %v10517_v8   ;;  %v1981_v8 = vpop.permute.xlu1 %1980 }
 0x7e3   :  { %2424 = vperm.xlu1 %9640, %v7549_v58   ;;  %v1991_v19 = vpop.permute.xlu1 %1990 }
 0x7e7   :  { %9642 = vset.pattern.permute.xlu1 %v12401_v27  ;;  %v10677_v47 = vpop.permute.xlu1 %2249 }
 0x7eb   :  { %v10679_v46 = vpop.permute.xlu1 %2300 }
 0x7ef   :  { %v10685_v32 = vpop.permute.xlu1 %2348 }
 0x7f3   :  { %v10687_v58 = vpop.permute.xlu1 %2352 }
 0x87d   :  { %v8561_v63 = vpop.f32.mrb[18].mxu1 }
 0x87e   :  { %v2089_v44 = vadd.f32 %v8561_v63, %v1961_v25  ;;  %v2083_v60 = vpop.f32.mrb[19].mxu1  ;;  %v10689_v25 = vpop.permute.xlu1 %2264  ;;  %v7562_v63 = vld [vmem:[%s12393_s3 + $0xe0] sm:$0xff] }
 0x87f   :  { %v2084_v17 = vadd.f32 %v2083_v60, %v1956_v26  ;;  %v7559_v26 = vld [vmem:[%s12393_s3 + $0xc8] sm:$0xff]  ;;  %v7564_v60 = vld [vmem:[%s12393_s3 + $0xf0] sm:$0xff] }
 0x880   :  { %vm2123_vm9 = vcmp.ge.f32.partialorder %v2089_v44, 0.0  ;;  %v2131_v36 = vmul.f32 0.2, %v2089_v44  ;;  %2484 = vperm.xlu0 %9643, %v7559_v26  }
 0x881   :  { %vm2122_vm10 = vcmp.ge.f32.partialorder %v2084_v17, 0.0  ;;  %v2130_v52 = vmul.f32 0.2, %v2084_v17  ;;  %v8564_v56 = vpop.f32.mrb[20].mxu1 }
 0x882   :  { %v2139_v45 = vsel %vm2123_vm9, %v2089_v44, %v2131_v36  ;;  %v2099_v31 = vadd.f32 %v8564_v56, %v1971_v24  ;;  %v2093_v0 = vpop.f32.mrb[21].mxu1  ;;  %v7558_v24 = vld [vmem:[%s12393_s3 + $0xc0] sm:$0xff]  ;;  %v10703_v44 = vpop.permute.xlu1 %2308  ;;  %v7563_v56 = vld [vmem:[%s12393_s3 + $0xe8] sm:$0xff] }
 0x883   :  { %v2138_v5 = vsel %vm2122_vm10, %v2084_v17, %v2130_v52  ;;  %v2094_v48 = vadd.f32 %v2093_v0, %v1966_v11  ;;  %2479 = vperm.xlu1 %9642, %v7558_v24   ;;  %v7560_v11 = vld [vmem:[%s12393_s3 + $0xd0] sm:$0xff]  ;;  %v7561_v17 = vld [vmem:[%s12393_s3 + $0xd8] sm:$0xff]  ;;  %v7582_v52 = vld [vmem:[%s12395_s5 + $0xc0] sm:$0xff] }
 0x884   :  { %v9236_v22 = vpack.c.bf16 %v2139_v45, %v2138_v5  ;;  %vm2125_vm11 = vcmp.ge.f32.partialorder %v2099_v31, 0.0  ;;  %v2133_v53 = vmul.f32 0.2, %v2099_v31  ;;  %2499 = vperm.xlu0 %9643, %v7562_v63   ;;  %v7584_v45 = vld [vmem:[%s12395_s5 + $0xd0] sm:$0xff]  ;;  %v7583_v5 = vld [vmem:[%s12395_s5 + $0xc8] sm:$0xff] }
 0x885   :  { %vm2124_vm12 = vcmp.ge.f32.partialorder %v2094_v48, 0.0  ;;  %v2132_v18 = vmul.f32 0.2, %v2094_v48  ;;  %v8567_v55 = vpop.f32.mrb[22].mxu1 }
 0x886   :  { %v2141_v37 = vsel %vm2125_vm11, %v2099_v31, %v2133_v53  ;;  %v2109_v40 = vadd.f32 %v8567_v55, %v1981_v8  ;;  %v2103_v57 = vpop.f32.mrb[23].mxu1  ;;  %9237 = vmatpush3.bf16.msra.mxu0 %v9236_v22  ;;  %v10711_v36 = vpop.permute.xlu1 %2356  ;;  %v7565_v31 = vld [vmem:[%s12393_s3 + $0xf8] sm:$0xff]  ;;  %v7586_v8 = vld [vmem:[%s12395_s5 + $0xe0] sm:$0xff]  ;;  %v7587_v55 = vld [vmem:[%s12395_s5 + $0xe8] sm:$0xff] }
 0x887   :  { %v2140_v6 = vsel %vm2124_vm12, %v2094_v48, %v2132_v18  ;;  %v2104_v7 = vadd.f32 %v2103_v57, %v1976_v14  ;;  %9238 = vmatprep.subr.bf16.mxu0 %v9833_v41  ;;  %2489 = vperm.xlu1 %9642, %v7560_v11   ;;  %v7588_v14 = vld [vmem:[%s12395_s5 + $0xf0] sm:$0xff]  ;;  %v7585_v22 = vld [vmem:[%s12395_s5 + $0xd8] sm:$0xff]  ;;  %v2153_v53 = vpop.permute.xlu0 %2152 }
 0x888   :  { %v9239_v20 = vpack.c.bf16 %v2141_v37, %v2140_v6  ;;  %vm2127_vm13 = vcmp.ge.f32.partialorder %v2109_v40, 0.0  ;;  %v2135_v16 = vmul.f32 0.2, %v2109_v40  ;;  %2509 = vperm.xlu0 %9643, %v7564_v60   ;;  %v7599_v18 = vld [vmem:[%s12397_s7 + $0x18] sm:$0xff] }
 0x889   :  { %vm2126_vm14 = vcmp.ge.f32.partialorder %v2104_v7, 0.0  ;;  %v2134_v21 = vmul.f32 0.2, %v2104_v7  ;;  %v8570_v33 = vpop.f32.mrb[24].mxu1  ;;  %v7589_v57 = vld [vmem:[%s12395_s5 + $0xf8] sm:$0xff] }
 0x88a   :  { %v2143_v12 = vsel %vm2127_vm13, %v2109_v40, %v2135_v16  ;;  %v2119_v51 = vadd.f32 %v8570_v33, %v1991_v19  ;;  %v2113_v34 = vpop.f32.mrb[25].mxu1  ;;  %9240 = vmatpush3.bf16.msra.mxu0 %v9239_v20  ;;  %v10725_v0 = vpop.permute.xlu1 %2360  ;;  %v10752_v40 = vld [vmem:[%s12391_s1 + $0x108] sm:$0xff]  ;;  %v10763_v20 = vld [vmem:[%s12391_s1 + $0x110] sm:$0xff]  ;;  %v7601_v16 = vld [vmem:[%s12391_s1 + $0x100] sm:$0xff] }
 0x88b   :  { %v2142_v38 = vsel %vm2126_vm14, %v2104_v7, %v2134_v21  ;;  %v2114_v35 = vadd.f32 %v2113_v34, %v1986_v28  ;;  %9241 = vmatprep.subr.bf16.mxu0 %v9833_v41  ;;  %2494 = vperm.xlu1 %9642, %v7561_v17   ;;  %v10757_v6 = vpop.permute.xlu0 %2254  ;;  %v10772_v21 = vld [vmem:[%s12391_s1 + $0x128] sm:$0xff] }
 0x88c   :  { %v9242_v39 = vpack.c.bf16 %v2143_v12, %v2142_v38  ;;  %vm2129_vm15 = vcmp.ge.f32.partialorder %v2119_v51, 0.0  ;;  %v2137_v15 = vmul.f32 0.2, %v2119_v51  ;;  %2690 = vperm.xlu0 %9643, %v7582_v52  }
 0x88d   :  { %vm2128_vm1 = vcmp.ge.f32.partialorder %v2114_v35, 0.0  ;;  %v2136_v13 = vmul.f32 0.2, %v2114_v35 }
 0x88e   :  { %v2145_v9 = vsel %vm2129_vm15, %v2119_v51, %v2137_v15  ;;  %9243 = vmatpush3.bf16.msra.mxu0 %v9242_v39  ;;  %v10733_v48 = vpop.permute.xlu1 %2400 }
 0x88f   :  { %v2144_v10 = vsel %vm2128_vm1, %v2114_v35, %v2136_v13  ;;  %9244 = vmatprep.subr.bf16.mxu0 %v9833_v41  ;;  %2504 = vperm.xlu1 %9642, %v7563_v56   ;;  %v2260_v19 = vpop.permute.xlu0 %2259 }
 0x890   :  { %v9245_v62 = vpack.c.bf16 %v2145_v9, %v2144_v10  ;;  %2700 = vperm.xlu0 %9643, %v7584_v45  }
 0x892   :  { %9246 = vmatpush3.bf16.msra.mxu0 %v9245_v62  ;;  %v10747_v37 = vpop.permute.xlu1 %2269  ;;  %v1502_v62 = vadd.f32 %v10531_v30, %v10275_v29  ;;  %v2379_v29 = vmul.f32 %v10685_v32, %v10016_v50  ;;  %v2380_v30 = vmul.f32 %v10687_v58, %v10016_v50 }
 0x893   :  { %2514 = vperm.xlu1 %9642, %v7565_v31   ;;  %v2275_v28 = vpop.permute.xlu0 %2274 }
 0x894   :  { %2710 = vperm.xlu0 %9643, %v7586_v8   ;;  %v2331_v8 = vmul.f32 %v10679_v46, %v10013_v49 }
 0x895   :  { %8588 = vmatmul.mubr.msk.f32.vlgmr.msra.gmra.mrb[26].mxu0 %vm315_vm0, %v7539_v23 }
 0x896   :  { %v2317_v7 = vpop.permute.xlu1 %2316 }
 0x897   :  { %2695 = vperm.xlu1 %9642, %v7583_v5   ;;  %v10778_v35 = vpop.permute.xlu0 %2396 }
 0x898   :  { %2720 = vperm.xlu0 %9643, %v7588_v14   ;;  %v2333_v14 = vmul.f32 %v10703_v44, %v10013_v49 }
 0x89a   :  { %v2321_v33 = vpop.permute.xlu1 %2320 }
 0x89b   :  { %2705 = vperm.xlu1 %9642, %v7585_v22   ;;  %v10783_v15 = vpop.permute.xlu0 %2408  ;;  %v2381_v22 = vmul.f32 %v10711_v36, %v10016_v50 }
 0x89c   :  { %2887 = vperm.xlu0 %9643, %v7599_v18   ;;  %v2336_v18 = vmul.f32 %v2321_v33, %v10013_v49 }
 0x89e   :  { %v2369_v12 = vpop.permute.xlu1 %2368 }
 0x89f   :  { %2715 = vperm.xlu1 %9642, %v7587_v55   ;;  %v2305_v10 = vpop.permute.xlu0 %2304  ;;  %v2384_v58 = vmul.f32 %v2369_v12, %v10016_v50 }
 0x8a0   :  { %2989 = vperm.xlu0 %9643, %v10752_v40   ;;  %v2332_v55 = vmul.f32 %v2305_v10, %v10013_v49 }
 0x8a2   :  { %v10780_v39 = vpop.permute.xlu1 %2404 }
 0x8a3   :  { %2725 = vperm.xlu1 %9642, %v7589_v57   ;;  %v2313_v63 = vpop.permute.xlu0 %2312 }
 0x8a4   :  { %2994 = vperm.xlu0 %9643, %v10763_v20   ;;  %v2334_v44 = vmul.f32 %v2313_v63, %v10013_v49 }
 0x8a6   :  { %v2280_v13 = vpop.permute.xlu1 %2279 }
 0x8a7   :  { %2984 = vperm.xlu1 %9642, %v7601_v16   ;;  %v2325_v60 = vpop.permute.xlu0 %2324 }
 0x8a8   :  { %3009 = vperm.xlu0 %9643, %v10772_v21   ;;  %v2337_v36 = vmul.f32 %v2325_v60, %v10013_v49 }
 0x8aa   :  { %v2285_v24 = vpop.permute.xlu1 %2284 }
 0x8ab   :  { %9644 = vset.pattern.permute.xlu1 %v9830_v3  ;;  %v2365_v31 = vpop.permute.xlu0 %2364 }
 0x8ac   :  { %3035 = vperm.xlu1 %9644, %v7601_v16   ;;  %9651 = vset.pattern.permute.xlu0 %v9829_v2 }
 0x8ad   :  { %3131 = vperm.xlu0 %9651, %v7601_v16  }
 0x8ae   :  { %v2329_v11 = vpop.permute.xlu1 %2328 }
 0x8af   :  { %v2338_v57 = vmul.f32 %v2329_v11, %v10013_v49 }
 0x8b0   :  { %9645 = vset.pattern.permute.xlu1 %v9831_v4 }
 0x8b1   :  { %3083 = vperm.xlu1 %9645, %v7601_v16  }
 0x8b2   :  { %v2373_v52 = vpop.permute.xlu1 %2372 }
 0x8b5   :  { %3087 = vperm.xlu1 %9645, %v10752_v40  }
 0x8b6   :  { %v2413_v46 = vpop.permute.xlu1 %2412 }
 0x8b9   :  { %9646 = vset.pattern.permute.xlu1 %v12401_v27 }
 0x968   :  { %v2224_v51 = vpop.f32.mrb[26].mxu0 }
 0x969   :  { %v2225_v34 = vadd.f32 %v2224_v51, %v2153_v53  ;;  %v8589_v38 = vpop.f32.mrb[27].mxu0  ;;  %v2335_v53 = vmul.f32 %v2317_v7, %v10013_v49 }
 0x96a   :  { %v2377_v38 = vpop.permute.xlu0 %2376 }
 0x96b   :  { %9772 = vtanh.f32 %v2225_v34 }
 0x975   :  { %v9773_v9 = vpop.eup %9772 }
 0x976   :  { %v2229_v23 = vmul.f32 2.0, %v9773_v9 }
 0x978   :  { %v2230_v1 = vmul.f32 1.442695, %v2229_v23  ;;  %v10788_v26 = vadd.f32 %v2229_v23, %v1502_v62 }
 0x97a   :  { %9774 = vpow2.f32 %v2230_v1 }
 0x984   :  { %v9775_v17 = vpop.eup %9774 }
 0x985   :  { %v2233_v56 = vrot.slane %v9775_v17, 7  ;;  %v2385_v17 = vmul.f32 %v2373_v52, %v10016_v50 }
 0x987   :  { %v2235_v45 = vmul.f32 %v2233_v56, %v10288_v61  ;;  %v2382_v61 = vmul.f32 %v10725_v0, %v10016_v50  ;;  %v2383_v0 = vmul.f32 %v2365_v31, %v10016_v50 }
 0x989   :  { %v10797_v5 = vadd.f32 %v2235_v45, %v2225_v34 }
 0x98b   :  { %v2290_v32 = vrot.slane %v10797_v5, %v10280_v54 }
 0x98d   :  { %v2295_v7 = vmul.f32 %v2290_v32, %v10747_v37  ;;  %v2296_v16 = vmul.f32 %v2290_v32, %v2275_v28  ;;  %v2291_v51 = vmul.f32 %v2290_v32, %v10677_v47  ;;  %v2293_v34 = vmul.f32 %v2290_v32, %v2260_v19  ;;  %v2417_v28 = vpop.permute.xlu1 %2416 }
 0x98e   :  { %v2297_v33 = vmul.f32 %v2290_v32, %v2280_v13  ;;  %v2292_v12 = vmul.f32 %v2290_v32, %v10757_v6  ;;  %v2298_v9 = vmul.f32 %v2290_v32, %v2285_v24  ;;  %v2294_v10 = vmul.f32 %v2290_v32, %v10689_v25 }
 0x98f   :  { %v2343_v62 = vadd.f32 %v2335_v53, %v2295_v7  ;;  %v2344_v23 = vadd.f32 %v2336_v18, %v2296_v16  ;;  %v2339_v1 = vadd.f32 %v2331_v8, %v2291_v51  ;;  %v2341_v63 = vadd.f32 %v2333_v14, %v2293_v34 }
 0x990   :  { %v2340_v11 = vadd.f32 %v2332_v55, %v2292_v12  ;;  %v2342_v60 = vadd.f32 %v2334_v44, %v2294_v10  ;;  %v2386_v37 = vmul.f32 %v2377_v38, %v10016_v50  ;;  %v2346_v56 = vadd.f32 %v2338_v57, %v2298_v9  ;;  %v2421_v44 = vpop.permute.xlu0 %2420 }
 0x991   :  { %v2387_v47 = vadd.f32 %v2379_v29, %v2339_v1  ;;  %v2389_v19 = vadd.f32 %v2381_v22, %v2341_v63  ;;  %v2345_v13 = vadd.f32 %v2337_v36, %v2297_v33  ;;  %v2391_v24 = vadd.f32 %v2383_v0, %v2343_v62  ;;  %v7552_v1 = vld [vmem:[%s12392_s2 + $0xd0] sm:$0xff]  ;;  %v7553_v63 = vld [vmem:[%s12392_s2 + $0xd8] sm:$0xff] }
 0x992   :  { %v2388_v45 = vadd.f32 %v2380_v30, %v2340_v11  ;;  %v2390_v6 = vadd.f32 %v2382_v61, %v2342_v60  ;;  %v2392_v31 = vadd.f32 %v2384_v58, %v2344_v23  ;;  %v2394_v18 = vadd.f32 %v2386_v37, %v2346_v56  ;;  %v2425_v30 = vpop.permute.xlu1 %2424  ;;  %v7551_v23 = vld [vmem:[%s12392_s2 + $0xc8] sm:$0xff]  ;;  %v7554_v11 = vld [vmem:[%s12392_s2 + $0xe0] sm:$0xff]  ;;  %v7557_v37 = vld [vmem:[%s12392_s2 + $0xf8] sm:$0xff] }
 0x993   :  { %v2427_v25 = vadd.f32 %v10778_v35, %v2387_v47  ;;  %v2429_v8 = vadd.f32 %v10780_v39, %v2389_v19  ;;  %v2393_v32 = vadd.f32 %v2385_v17, %v2345_v13  ;;  %v2431_v22 = vadd.f32 %v2413_v46, %v2391_v24  ;;  %v7555_v60 = vld [vmem:[%s12392_s2 + $0xe8] sm:$0xff]  ;;  %v7556_v17 = vld [vmem:[%s12392_s2 + $0xf0] sm:$0xff] }
 0x994   :  { %v2428_v14 = vadd.f32 %v10733_v48, %v2388_v45  ;;  %v2430_v53 = vadd.f32 %v10783_v15, %v2390_v6  ;;  %v2432_v55 = vadd.f32 %v2417_v28, %v2392_v31  ;;  %v2434_v39 = vadd.f32 %v2425_v30, %v2394_v18  ;;  %v7574_v28 = vld [vmem:[%s12394_s4 + $0xc0] sm:$0xff]  ;;  %v2485_v56 = vpop.permute.xlu0 %2484 }
 0x995   :  { %vm2435_vm3 = vcmp.ge.f32.partialorder %v2427_v25, 0.0  ;;  %v2443_v52 = vmul.f32 0.2, %v2427_v25  ;;  %v2445_v29 = vmul.f32 0.2, %v2429_v8  ;;  %vm2437_vm4 = vcmp.ge.f32.partialorder %v2429_v8, 0.0  ;;  %8634 = vmatprep.mubr.msk.f32.mxu0 %vm315_vm0, %v7574_v28 }
 0x996   :  { %vm2436_vm5 = vcmp.ge.f32.partialorder %v2428_v14, 0.0  ;;  %v2444_v61 = vmul.f32 0.2, %v2428_v14  ;;  %vm2438_vm6 = vcmp.ge.f32.partialorder %v2430_v53, 0.0  ;;  %v2433_v35 = vadd.f32 %v2421_v44, %v2393_v32  ;;  %v2480_v47 = vpop.permute.xlu1 %2479  ;;  %v7578_v28 = vld [vmem:[%s12394_s4 + $0xe0] sm:$0xff] }
 0x997   :  { %v2451_v58 = vsel %vm2435_vm3, %v2427_v25, %v2443_v52  ;;  %v2446_v57 = vmul.f32 0.2, %v2430_v53  ;;  %v2447_v48 = vmul.f32 0.2, %v2431_v22  ;;  %v2448_v36 = vmul.f32 0.2, %v2432_v55 }
 0x998   :  { %v2452_v15 = vsel %vm2436_vm5, %v2428_v14, %v2444_v61  ;;  %v2453_v0 = vsel %vm2437_vm4, %v2429_v8, %v2445_v29  ;;  %vm2439_vm7 = vcmp.ge.f32.partialorder %v2431_v22, 0.0  ;;  %vm2440_vm8 = vcmp.ge.f32.partialorder %v2432_v55, 0.0 }
 0x999   :  { %v9247_v7 = vpack.c.bf16 %v2452_v15, %v2451_v58  ;;  %v2454_v16 = vsel %vm2438_vm6, %v2430_v53, %v2446_v57  ;;  %v2449_v51 = vmul.f32 0.2, %v2433_v35  ;;  %v2450_v34 = vmul.f32 0.2, %v2434_v39 }
 0x99a   :  { %v9251_v46 = vpack.c.bf16 %v2454_v16, %v2453_v0  ;;  %v2455_v38 = vsel %vm2439_vm7, %v2431_v22, %v2447_v48  ;;  %v2456_v33 = vsel %vm2440_vm8, %v2432_v55, %v2448_v36  ;;  %vm2441_vm9 = vcmp.ge.f32.partialorder %v2433_v35, 0.0  ;;  %v2490_v19 = vpop.permute.xlu1 %2489  ;;  %v2500_v55 = vpop.permute.xlu0 %2499 }
 0x99b   :  { %9248 = vmatprep.subr.bf16.mxu1 %v9247_v7  ;;  %vm2442_vm10 = vcmp.ge.f32.partialorder %v2434_v39, 0.0  ;;  %v9255_v12 = vpack.c.bf16 %v2456_v33, %v2455_v38  ;;  %v2457_v9 = vsel %vm2441_vm9, %v2433_v35, %v2449_v51 }
 0x99c   :  { %9250 = vmatpush3.bf16.msra.mxu1 %v9247_v7  ;;  %v2458_v10 = vsel %vm2442_vm10, %v2434_v39, %v2450_v34 }
 0x99d   :  { %9252 = vmatprep.subr.bf16.mxu1 %v9251_v46  ;;  %v9259_v62 = vpack.c.bf16 %v2458_v10, %v2457_v9 }
 0x99e   :  { %v2495_v13 = vpop.permute.xlu1 %2494  ;;  %v2510_v51 = vpop.permute.xlu0 %2509 }
 0x9a0   :  { %9254 = vmatpush3.bf16.msra.mxu1 %v9251_v46 }
 0x9a1   :  { %9256 = vmatprep.subr.bf16.mxu1 %v9255_v12 }
 0x9a2   :  { %v2505_v18 = vpop.permute.xlu1 %2504 }
 0x9a4   :  { %9258 = vmatpush3.bf16.msra.mxu1 %v9255_v12 }
 0x9a5   :  { %9260 = vmatprep.subr.bf16.mxu1 %v9259_v62 }
 0x9a6   :  { %v2515_v7 = vpop.permute.xlu1 %2514 }
 0x9a8   :  { %9262 = vmatpush3.bf16.msra.mxu1 %v9259_v62 }
 0x9a9   :  { %9279 = vmatprep.subr.bf16.mxu1 %v9833_v41 }
 0x9ab   :  { %8607 = vmatmul.mubr.msk.f32.vlgmr.msra.gmra.mrb[26].mxu1 %vm315_vm0, %v7551_v23 }
 0x9ac   :  { %8609 = vmatprep.mubr.msk.f32.mxu1 %vm315_vm0, %v7552_v1 }
 0x9af   :  { %8610 = vmatmul.mubr.msk.f32.gmra.mrb[28].mxu1 %vm315_vm0, %v7553_v63 }
 0x9b0   :  { %8612 = vmatprep.mubr.msk.f32.mxu1 %vm315_vm0, %v7554_v11 }
 0x9b3   :  { %8613 = vmatmul.mubr.msk.f32.gmra.mrb[30].mxu1 %vm315_vm0, %v7555_v60  ;;  %v7575_v60 = vld [vmem:[%s12394_s4 + $0xc8] sm:$0xff] }
 0x9b4   :  { %8615 = vmatprep.mubr.msk.f32.mxu1 %vm315_vm0, %v7556_v17  ;;  %v7576_v17 = vld [vmem:[%s12394_s4 + $0xd0] sm:$0xff] }
 0x9b7   :  { %8616 = vmatmul.mubr.msk.f32.gmra.mrb[32].mxu1 %vm315_vm0, %v7557_v37  ;;  %v7577_v37 = vld [vmem:[%s12394_s4 + $0xd8] sm:$0xff] }
 0x9b8   :  { %8662 = vmatprep.mubr.msk.f32.mxu1 %vm9834_vm2, %v9835_v42 }
 0xa7e   :  { %v8608_v45 = vpop.f32.mrb[26].mxu1 }
 0xa7f   :  { %v2613_v6 = vadd.f32 %v8608_v45, %v2485_v56  ;;  %v2607_v24 = vpop.f32.mrb[27].mxu1  ;;  %v7581_v56 = vld [vmem:[%s12394_s4 + $0xf8] sm:$0xff]  ;;  %v7607_v45 = vld [vmem:[%s12391_s1 + $0x130] sm:$0xff] }
 0xa80   :  { %v2608_v31 = vadd.f32 %v2607_v24, %v2480_v47  ;;  %v7579_v47 = vld [vmem:[%s12394_s4 + $0xe8] sm:$0xff]  ;;  %v7608_v24 = vld [vmem:[%s12391_s1 + $0x138] sm:$0xff] }
 0xa81   :  { %vm2647_vm11 = vcmp.ge.f32.partialorder %v2613_v6, 0.0  ;;  %v2655_v25 = vmul.f32 0.2, %v2613_v6 }
 0xa82   :  { %vm2646_vm12 = vcmp.ge.f32.partialorder %v2608_v31, 0.0  ;;  %v2654_v8 = vmul.f32 0.2, %v2608_v31  ;;  %v8611_v14 = vpop.f32.mrb[28].mxu1 }
 0xa83   :  { %v2623_v53 = vadd.f32 %v8611_v14, %v2495_v13  ;;  %v2617_v52 = vpop.f32.mrb[29].mxu1  ;;  %v2663_v32 = vsel %vm2647_vm11, %v2613_v6, %v2655_v25  ;;  %v7604_v13 = vld [vmem:[%s12391_s1 + $0x118] sm:$0xff]  ;;  %v7605_v6 = vld [vmem:[%s12391_s1 + $0x120] sm:$0xff] }
 0xa84   :  { %v2618_v29 = vadd.f32 %v2617_v52, %v2490_v19  ;;  %v2662_v22 = vsel %vm2646_vm12, %v2608_v31, %v2654_v8  ;;  %v7580_v19 = vld [vmem:[%s12394_s4 + $0xf0] sm:$0xff]  ;;  %2999 = vperm.xlu1 %9646, %v7604_v13   ;;  %3143 = vperm.xlu0 %9651, %v7604_v13  }
 0xa85   :  { %vm2649_vm13 = vcmp.ge.f32.partialorder %v2623_v53, 0.0  ;;  %v2657_v44 = vmul.f32 0.2, %v2623_v53  ;;  %v9263_v30 = vpack.c.bf16 %v2663_v32, %v2662_v22 }
 0xa86   :  { %vm2648_vm14 = vcmp.ge.f32.partialorder %v2618_v29, 0.0  ;;  %v2656_v61 = vmul.f32 0.2, %v2618_v29  ;;  %v8614_v58 = vpop.f32.mrb[30].mxu1 }
 0xa87   :  { %v2633_v35 = vadd.f32 %v8614_v58, %v2505_v18  ;;  %v2627_v39 = vpop.f32.mrb[31].mxu1  ;;  %9264 = vmatprep.subr.bf16.mxu0 %v9263_v30  ;;  %v2665_v57 = vsel %vm2649_vm13, %v2623_v53, %v2657_v44 }
 0xa88   :  { %v2628_v48 = vadd.f32 %v2627_v39, %v2500_v55  ;;  %9266 = vmatpush3.bf16.msra.mxu0 %v9263_v30  ;;  %v2664_v36 = vsel %vm2648_vm14, %v2618_v29, %v2656_v61  ;;  %9647 = vset.pattern.permute.xlu1 %v9830_v3 }
 0xa89   :  { %vm2651_vm15 = vcmp.ge.f32.partialorder %v2633_v35, 0.0  ;;  %v2659_v15 = vmul.f32 0.2, %v2633_v35  ;;  %v9267_v0 = vpack.c.bf16 %v2665_v57, %v2664_v36  ;;  %9655 = vset.pattern.permute.xlu0 %v9830_v3  ;;  %3043 = vperm.xlu1 %9647, %v10763_v20  }
 0xa8a   :  { %vm2650_vm1 = vcmp.ge.f32.partialorder %v2628_v48, 0.0  ;;  %v2658_v16 = vmul.f32 0.2, %v2628_v48  ;;  %v8617_v46 = vpop.f32.mrb[32].mxu1  ;;  %3039 = vperm.xlu0 %9655, %v10752_v40  }
 0xa8b   :  { %v2643_v34 = vadd.f32 %v8617_v46, %v2515_v7  ;;  %v2637_v38 = vpop.f32.mrb[33].mxu1  ;;  %9268 = vmatprep.subr.bf16.mxu0 %v9267_v0  ;;  %v2667_v33 = vsel %vm2651_vm15, %v2633_v35, %v2659_v15 }
 0xa8c   :  { %v2638_v12 = vadd.f32 %v2637_v38, %v2510_v51  ;;  %9270 = vmatpush3.bf16.msra.mxu0 %v9267_v0  ;;  %v2666_v9 = vsel %vm2650_vm1, %v2628_v48, %v2658_v16 }
 0xa8d   :  { %vm2653_vm3 = vcmp.ge.f32.partialorder %v2643_v34, 0.0  ;;  %v2661_v10 = vmul.f32 0.2, %v2643_v34  ;;  %v9271_v62 = vpack.c.bf16 %v2667_v33, %v2666_v9  ;;  %9648 = vset.pattern.permute.xlu1 %v9831_v4 }
 0xa8e   :  { %vm2652_vm4 = vcmp.ge.f32.partialorder %v2638_v12, 0.0  ;;  %v2660_v23 = vmul.f32 0.2, %v2638_v12  ;;  %3047 = vperm.xlu0 %9655, %v7604_v13   ;;  %3091 = vperm.xlu1 %9648, %v10763_v20  }
 0xa8f   :  { %9272 = vmatprep.subr.bf16.mxu0 %v9271_v62  ;;  %v2669_v1 = vsel %vm2653_vm3, %v2643_v34, %v2661_v10 }
 0xa90   :  { %9274 = vmatpush3.bf16.msra.mxu0 %v9271_v62  ;;  %v2668_v63 = vsel %vm2652_vm4, %v2638_v12, %v2660_v23 }
 0xa91   :  { %v9275_v11 = vpack.c.bf16 %v2669_v1, %v2668_v63 }
 0xa92   :  { %3059 = vperm.xlu0 %9655, %v7607_v45   ;;  %3095 = vperm.xlu1 %9648, %v7604_v13   ;;  %v7609_v13 = vld [vmem:[%s12392_s2 + $0x100] sm:$0xff] }
 0xa93   :  { %9276 = vmatprep.subr.bf16.mxu0 %v9275_v11 }
 0xa94   :  { %9278 = vmatpush3.bf16.msra.mxu0 %v9275_v11 }
 0xa96   :  { %9657 = vset.pattern.permute.xlu0 %v9831_v4  ;;  %9649 = vset.pattern.permute.xlu1 %v9829_v2 }
 0xa97   :  { %8635 = vmatmul.mubr.msk.f32.vlgmr.msra.gmra.mrb[28].mxu0 %vm315_vm0, %v7575_v60  ;;  %3099 = vperm.xlu0 %9657, %v7605_v6  }
 0xa98   :  { %8637 = vmatprep.mubr.msk.f32.mxu0 %vm315_vm0, %v7576_v17  ;;  %3135 = vperm.xlu1 %9649, %v10752_v40   ;;  %v2696_v40 = vpop.permute.xlu1 %2695 }
 0xa9b   :  { %8638 = vmatmul.mubr.msk.f32.gmra.mrb[30].mxu0 %vm315_vm0, %v7577_v37  ;;  %3111 = vperm.xlu0 %9657, %v7608_v24  }
 0xa9c   :  { %8640 = vmatprep.mubr.msk.f32.mxu0 %vm315_vm0, %v7578_v28  ;;  %9650 = vset.pattern.permute.xlu1 %v12401_v27  ;;  %v2706_v31 = vpop.permute.xlu1 %2705 }
 0xa9d   :  { %3004 = vperm.xlu1 %9650, %v7605_v6  }
 0xa9f   :  { %8641 = vmatmul.mubr.msk.f32.gmra.mrb[32].mxu0 %vm315_vm0, %v7579_v47  ;;  %9661 = vset.pattern.permute.xlu0 %v9829_v2  ;;  %v7598_v47 = vld [vmem:[%s12396_s6 + $0x18] sm:$0xff] }
 0xaa0   :  { %8643 = vmatprep.mubr.msk.f32.mxu0 %vm315_vm0, %v7580_v19  ;;  %3155 = vperm.xlu0 %9661, %v7607_v45  }
 0xaa1   :  { %9652 = vset.pattern.permute.xlu1 %v9830_v3 }
 0xaa2   :  { %3051 = vperm.xlu1 %9652, %v7605_v6  }
 0xaa3   :  { %8644 = vmatmul.mubr.msk.f32.gmra.mrb[34].mxu0 %vm315_vm0, %v7581_v56 }
 0xaa4   :  { %9663 = vset.pattern.permute.xlu0 %v12401_v27  ;;  %8681 = vmatprep.mubr.msk.f32.mxu0 %vm315_vm0, %v7609_v13 }
 0xaa6   :  { %3055 = vperm.xlu1 %9652, %v10772_v21  }
 0xaaa   :  { %9653 = vset.pattern.permute.xlu1 %v9831_v4 }
 0xaab   :  { %3103 = vperm.xlu1 %9653, %v10772_v21  }
 0xaaf   :  { %9654 = vset.pattern.permute.xlu1 %v9829_v2 }
 0xab0   :  { %3139 = vperm.xlu1 %9654, %v10763_v20   ;;  %v2691_v20 = vpop.permute.xlu0 %2690 }
 0xab4   :  { %9656 = vset.pattern.permute.xlu1 %v12401_v27  ;;  %v2701_v8 = vpop.permute.xlu0 %2700 }
 0xab5   :  { %3014 = vperm.xlu1 %9656, %v7607_v45  }
 0xab8   :  { %v2711_v58 = vpop.permute.xlu0 %2710 }
 0xab9   :  { %3019 = vperm.xlu1 %9656, %v7608_v24  }
 0xabc   :  { %v2721_v12 = vpop.permute.xlu0 %2720 }
 0xabd   :  { %9658 = vset.pattern.permute.xlu1 %v9830_v3 }
 0xabe   :  { %3063 = vperm.xlu1 %9658, %v7608_v24  }
 0xac2   :  { %9659 = vset.pattern.permute.xlu1 %v9831_v4 }
 0xac3   :  { %3107 = vperm.xlu1 %9659, %v7607_v45  }
 0xac7   :  { %9660 = vset.pattern.permute.xlu1 %v9829_v2 }
 0xac8   :  { %3147 = vperm.xlu1 %9660, %v7605_v6  }
 0xacc   :  { %3151 = vperm.xlu1 %9660, %v10772_v21   ;;  %v2716_v21 = vpop.permute.xlu1 %2715 }
 0xad0   :  { %3159 = vperm.xlu1 %9660, %v7608_v24   ;;  %v2726_v34 = vpop.permute.xlu1 %2725 }
 0xad4   :  { %9662 = vset.pattern.permute.xlu1 %v12401_v27  ;;  %v10931_v19 = vpop.permute.xlu1 %2984 }
 0xad8   :  { %v10933_v56 = vpop.permute.xlu1 %3035 }
 0xadc   :  { %v10939_v45 = vpop.permute.xlu1 %3083 }
 0xae0   :  { %v10941_v6 = vpop.permute.xlu1 %3087 }
 0xb03   :  { %v10943_v24 = vpop.permute.xlu1 %2999 }
 0xb6a   :  { %v8636_v25 = vpop.f32.mrb[28].mxu0 }
 0xb6b   :  { %v2824_v14 = vadd.f32 %v8636_v25, %v2696_v40  ;;  %v2818_v53 = vpop.f32.mrb[29].mxu0  ;;  %v7618_v40 = vld [vmem:[%s12393_s3 + $0x108] sm:$0xff]  ;;  %v7619_v25 = vld [vmem:[%s12393_s3 + $0x110] sm:$0xff] }
 0xb6c   :  { %v2819_v52 = vadd.f32 %v2818_v53, %v2691_v20  ;;  %v7617_v20 = vld [vmem:[%s12393_s3 + $0x100] sm:$0xff]  ;;  %3219 = vperm.xlu0 %9663, %v7618_v40   ;;  %v7620_v53 = vld [vmem:[%s12393_s3 + $0x118] sm:$0xff] }
 0xb6d   :  { %vm2858_vm5 = vcmp.ge.f32.partialorder %v2824_v14, 0.0  ;;  %v2866_v32 = vmul.f32 0.2, %v2824_v14  ;;  %3214 = vperm.xlu1 %9662, %v7617_v20  }
 0xb6e   :  { %vm2857_vm6 = vcmp.ge.f32.partialorder %v2819_v52, 0.0  ;;  %v2865_v18 = vmul.f32 0.2, %v2819_v52  ;;  %v8639_v29 = vpop.f32.mrb[30].mxu0 }
 0xb6f   :  { %v2874_v22 = vsel %vm2858_vm5, %v2824_v14, %v2866_v32  ;;  %v2834_v55 = vadd.f32 %v8639_v29, %v2706_v31  ;;  %v2828_v44 = vpop.f32.mrb[31].mxu0  ;;  %v7621_v31 = vld [vmem:[%s12393_s3 + $0x120] sm:$0xff]  ;;  %v7623_v14 = vld [vmem:[%s12393_s3 + $0x130] sm:$0xff] }
 0xb70   :  { %v2873_v30 = vsel %vm2857_vm6, %v2819_v52, %v2865_v18  ;;  %v2829_v61 = vadd.f32 %v2828_v44, %v2701_v8  ;;  %v10957_v8 = vpop.permute.xlu1 %3043  ;;  %3234 = vperm.xlu0 %9663, %v7621_v31   ;;  %v7641_v32 = vld [vmem:[%s12395_s5 + $0x100] sm:$0xff]  ;;  %v7622_v18 = vld [vmem:[%s12393_s3 + $0x128] sm:$0xff]  ;;  %v7643_v29 = vld [vmem:[%s12395_s5 + $0x110] sm:$0xff] }
 0xb71   :  { %v9280_v35 = vpack.c.bf16 %v2874_v22, %v2873_v30  ;;  %vm2860_vm7 = vcmp.ge.f32.partialorder %v2834_v55, 0.0  ;;  %v2868_v39 = vmul.f32 0.2, %v2834_v55  ;;  %3224 = vperm.xlu1 %9662, %v7619_v25   ;;  %v7624_v22 = vld [vmem:[%s12393_s3 + $0x138] sm:$0xff]  ;;  %v7645_v44 = vld [vmem:[%s12395_s5 + $0x120] sm:$0xff] }
 0xb72   :  { %vm2859_vm8 = vcmp.ge.f32.partialorder %v2829_v61, 0.0  ;;  %v2867_v57 = vmul.f32 0.2, %v2829_v61  ;;  %v8642_v48 = vpop.f32.mrb[32].mxu0 }
 0xb73   :  { %v2876_v36 = vsel %vm2860_vm7, %v2834_v55, %v2868_v39  ;;  %v2844_v15 = vadd.f32 %v8642_v48, %v2716_v21  ;;  %v2838_v0 = vpop.f32.mrb[33].mxu0  ;;  %9281 = vmatpush3.bf16.msra.mxu1 %v9280_v35  ;;  %v7642_v21 = vld [vmem:[%s12395_s5 + $0x108] sm:$0xff]  ;;  %v2888_v35 = vpop.permute.xlu0 %2887  ;;  %v7658_v39 = vld [vmem:[%s12397_s7 + $0x20] sm:$0xff] }
 0xb74   :  { %v2875_v7 = vsel %vm2859_vm8, %v2829_v61, %v2867_v57  ;;  %v2839_v16 = vadd.f32 %v2838_v0, %v2711_v58  ;;  %9282 = vmatprep.subr.bf16.mxu1 %v9833_v41  ;;  %v10965_v52 = vpop.permute.xlu1 %3091  ;;  %3244 = vperm.xlu0 %9663, %v7623_v14   ;;  %v7647_v61 = vld [vmem:[%s12395_s5 + $0x130] sm:$0xff]  ;;  %v7644_v58 = vld [vmem:[%s12395_s5 + $0x118] sm:$0xff]  ;;  %v7646_v57 = vld [vmem:[%s12395_s5 + $0x128] sm:$0xff] }
 0xb75   :  { %v9283_v46 = vpack.c.bf16 %v2876_v36, %v2875_v7  ;;  %vm2862_vm9 = vcmp.ge.f32.partialorder %v2844_v15, 0.0  ;;  %v2870_v51 = vmul.f32 0.2, %v2844_v15  ;;  %3229 = vperm.xlu1 %9662, %v7620_v53   ;;  %v11006_v36 = vld [vmem:[%s12391_s1 + $0x148] sm:$0xff] }
 0xb76   :  { %vm2861_vm10 = vcmp.ge.f32.partialorder %v2839_v16, 0.0  ;;  %v2869_v38 = vmul.f32 0.2, %v2839_v16  ;;  %v8645_v33 = vpop.f32.mrb[34].mxu0 }
 0xb77   :  { %v2878_v9 = vsel %vm2862_vm9, %v2844_v15, %v2870_v51  ;;  %v2854_v10 = vadd.f32 %v8645_v33, %v2726_v34  ;;  %v2848_v62 = vpop.f32.mrb[35].mxu0  ;;  %9284 = vmatpush3.bf16.msra.mxu1 %v9283_v46  ;;  %v7648_v15 = vld [vmem:[%s12395_s5 + $0x138] sm:$0xff]  ;;  %v11011_v0 = vpop.permute.xlu0 %2989  ;;  %v7660_v46 = vld [vmem:[%s12391_s1 + $0x140] sm:$0xff]  ;;  %v11026_v34 = vld [vmem:[%s12391_s1 + $0x168] sm:$0xff] }
 0xb78   :  { %v2877_v23 = vsel %vm2861_vm10, %v2839_v16, %v2869_v38  ;;  %v2849_v1 = vadd.f32 %v2848_v62, %v2721_v12  ;;  %9285 = vmatprep.subr.bf16.mxu1 %v9833_v41  ;;  %3425 = vperm.xlu0 %9663, %v7641_v32   ;;  %v10979_v55 = vpop.permute.xlu1 %3095  ;;  %v11017_v16 = vld [vmem:[%s12391_s1 + $0x150] sm:$0xff] }
 0xb79   :  { %v9286_v63 = vpack.c.bf16 %v2878_v9, %v2877_v23  ;;  %vm2864_vm11 = vcmp.ge.f32.partialorder %v2854_v10, 0.0  ;;  %v2872_v11 = vmul.f32 0.2, %v2854_v10  ;;  %3239 = vperm.xlu1 %9662, %v7622_v18  }
 0xb7a   :  { %vm2863_vm12 = vcmp.ge.f32.partialorder %v2849_v1, 0.0  ;;  %v2871_v60 = vmul.f32 0.2, %v2849_v1 }
 0xb7b   :  { %v2880_v17 = vsel %vm2864_vm11, %v2854_v10, %v2872_v11  ;;  %9287 = vmatpush3.bf16.msra.mxu1 %v9286_v63  ;;  %v2995_v51 = vpop.permute.xlu0 %2994 }
 0xb7c   :  { %v2879_v37 = vsel %vm2863_vm12, %v2849_v1, %v2871_v60  ;;  %9288 = vmatprep.subr.bf16.mxu1 %v9833_v41  ;;  %3435 = vperm.xlu0 %9663, %v7643_v29   ;;  %v10987_v30 = vpop.permute.xlu1 %3135  ;;  %v3066_v29 = vmul.f32 %v10933_v56, %v10013_v49 }
 0xb7d   :  { %v9289_v28 = vpack.c.bf16 %v2880_v17, %v2879_v37  ;;  %3249 = vperm.xlu1 %9662, %v7624_v22   ;;  %v3114_v22 = vmul.f32 %v10939_v45, %v10016_v50 }
 0xb7f   :  { %9290 = vmatpush3.bf16.msra.mxu1 %v9289_v28  ;;  %v3010_v33 = vpop.permute.xlu0 %3009 }
 0xb80   :  { %3445 = vperm.xlu0 %9663, %v7645_v44   ;;  %v11001_v48 = vpop.permute.xlu1 %3004 }
 0xb81   :  { %3430 = vperm.xlu1 %9662, %v7642_v21   ;;  %v3068_v21 = vmul.f32 %v10957_v8, %v10013_v49 }
 0xb82   :  { %8663 = vmatmul.mubr.msk.f32.vlgmr.msra.gmra.mrb[34].mxu1 %vm315_vm0, %v7598_v47 }
 0xb83   :  { %v11032_v9 = vpop.permute.xlu0 %3131 }
 0xb84   :  { %3455 = vperm.xlu0 %9663, %v7647_v61   ;;  %v3052_v7 = vpop.permute.xlu1 %3051  ;;  %v3116_v61 = vmul.f32 %v10965_v52, %v10016_v50 }
 0xb85   :  { %3440 = vperm.xlu1 %9662, %v7644_v58   ;;  %v3070_v58 = vmul.f32 %v3052_v7, %v10013_v49 }
 0xb87   :  { %v11037_v63 = vpop.permute.xlu0 %3143 }
 0xb88   :  { %3622 = vperm.xlu0 %9663, %v7658_v39   ;;  %v3056_v38 = vpop.permute.xlu1 %3055 }
 0xb89   :  { %3450 = vperm.xlu1 %9662, %v7646_v57  }
 0xb8b   :  { %v3040_v60 = vpop.permute.xlu0 %3039 }
 0xb8c   :  { %3724 = vperm.xlu0 %9663, %v11006_v36   ;;  %v3104_v12 = vpop.permute.xlu1 %3103  ;;  %v3067_v39 = vmul.f32 %v3040_v60, %v10013_v49 }
 0xb8d   :  { %3460 = vperm.xlu1 %9662, %v7648_v15  }
 0xb8f   :  { %v3048_v40 = vpop.permute.xlu0 %3047 }
 0xb90   :  { %3729 = vperm.xlu0 %9663, %v11017_v16   ;;  %v11034_v1 = vpop.permute.xlu1 %3139  ;;  %v3069_v8 = vmul.f32 %v3048_v40, %v10013_v49 }
 0xb91   :  { %3719 = vperm.xlu1 %9662, %v7660_v46  }
 0xb93   :  { %v3060_v31 = vpop.permute.xlu0 %3059 }
 0xb94   :  { %3744 = vperm.xlu0 %9663, %v11026_v34   ;;  %v3015_v11 = vpop.permute.xlu1 %3014  ;;  %v3072_v52 = vmul.f32 %v3060_v31, %v10013_v49 }
 0xb95   :  { %9664 = vset.pattern.permute.xlu1 %v9830_v3 }
 0xb96   :  { %3770 = vperm.xlu1 %9664, %v7660_v46  }
 0xb97   :  { %v3100_v18 = vpop.permute.xlu0 %3099 }
 0xb98   :  { %9671 = vset.pattern.permute.xlu0 %v9829_v2  ;;  %v3020_v28 = vpop.permute.xlu1 %3019 }
 0xb99   :  { %3866 = vperm.xlu0 %9671, %v7660_v46  }
 0xb9a   :  { %9665 = vset.pattern.permute.xlu1 %v9831_v4 }
 0xb9b   :  { %3818 = vperm.xlu1 %9665, %v7660_v46  }
 0xb9c   :  { %v3064_v20 = vpop.permute.xlu1 %3063 }
 0xb9d   :  { %v3073_v57 = vmul.f32 %v3064_v20, %v10013_v49 }
 0xb9f   :  { %3822 = vperm.xlu1 %9665, %v11006_v36  }
 0xba0   :  { %v3108_v25 = vpop.permute.xlu1 %3107 }
 0xba1   :  { %v3120_v40 = vmul.f32 %v3108_v25, %v10016_v50 }
 0xba3   :  { %9666 = vset.pattern.permute.xlu1 %v12401_v27 }
 0xba4   :  { %v3148_v56 = vpop.permute.xlu1 %3147 }
 0xc55   :  { %v2959_v10 = vpop.f32.mrb[34].mxu1 }
 0xc56   :  { %v2960_v62 = vadd.f32 %v2959_v10, %v2888_v35  ;;  %v8664_v23 = vpop.f32.mrb[35].mxu1  ;;  %v3071_v35 = vmul.f32 %v3056_v38, %v10013_v49 }
 0xc58   :  { %9776 = vtanh.f32 %v2960_v62  ;;  %v2969_v32 = vrot.slane %v2960_v62, 1  ;;  %v3112_v62 = vpop.permute.xlu0 %3111 }
 0xc62   :  { %v9777_v17 = vpop.eup %9776 }
 0xc63   :  { %v2964_v37 = vmul.f32 2.0, %v9777_v17 }
 0xc65   :  { %v2965_v47 = vmul.f32 1.442695, %v2964_v37  ;;  %v11041_v13 = vadd.f32 %v2964_v37, %v10788_v26  ;;  %v3115_v26 = vmul.f32 %v10941_v6, %v10016_v50  ;;  %v3119_v6 = vmul.f32 %v3104_v12, %v10016_v50 }
 0xc67   :  { %9778 = vpow2.f32 %v2965_v47 }
 0xc71   :  { %v9779_v14 = vpop.eup %9778 }
 0xc72   :  { %v2967_v53 = vmul.f32 %v9779_v14, %v10543_v59  ;;  %v3117_v59 = vmul.f32 %v10979_v55, %v10016_v50  ;;  %v3118_v55 = vmul.f32 %v3100_v18, %v10016_v50 }
 0xc74   :  { %v11050_v44 = vadd.f32 %v2969_v32, %v2967_v53 }
 0xc76   :  { %v3025_v45 = vrot.slane %v11050_v44, %v9996_v43 }
 0xc78   :  { %v3031_v15 = vmul.f32 %v3025_v45, %v3010_v33  ;;  %v3026_v7 = vmul.f32 %v3025_v45, %v10931_v19  ;;  %v3028_v46 = vmul.f32 %v3025_v45, %v2995_v51  ;;  %v3032_v10 = vmul.f32 %v3025_v45, %v3015_v11  ;;  %v3152_v51 = vpop.permute.xlu1 %3151 }
 0xc79   :  { %v3027_v38 = vmul.f32 %v3025_v45, %v11011_v0  ;;  %v3033_v23 = vmul.f32 %v3025_v45, %v3020_v28  ;;  %v3029_v12 = vmul.f32 %v3025_v45, %v10943_v24  ;;  %v3030_v60 = vmul.f32 %v3025_v45, %v11001_v48 }
 0xc7a   :  { %v3079_v17 = vadd.f32 %v3071_v35, %v3031_v15  ;;  %v3074_v37 = vadd.f32 %v3066_v29, %v3026_v7  ;;  %v3076_v47 = vadd.f32 %v3068_v21, %v3028_v46  ;;  %v3121_v19 = vmul.f32 %v3112_v62, %v10016_v50 }
 0xc7b   :  { %v3075_v20 = vadd.f32 %v3067_v39, %v3027_v38  ;;  %v3077_v31 = vadd.f32 %v3069_v8, %v3029_v12  ;;  %v3078_v33 = vadd.f32 %v3070_v58, %v3030_v60  ;;  %v3081_v53 = vadd.f32 %v3073_v57, %v3033_v23  ;;  %v3156_v8 = vpop.permute.xlu0 %3155 }
 0xc7c   :  { %v3122_v11 = vadd.f32 %v3114_v22, %v3074_v37  ;;  %v3124_v14 = vadd.f32 %v3116_v61, %v3076_v47  ;;  %v3080_v0 = vadd.f32 %v3072_v52, %v3032_v10  ;;  %v3127_v18 = vadd.f32 %v3119_v6, %v3079_v17  ;;  %v7610_v37 = vld [vmem:[%s12392_s2 + $0x108] sm:$0xff]  ;;  %v7611_v47 = vld [vmem:[%s12392_s2 + $0x110] sm:$0xff] }
 0xc7d   :  { %v3123_v28 = vadd.f32 %v3115_v26, %v3075_v20  ;;  %v3125_v32 = vadd.f32 %v3117_v59, %v3077_v31  ;;  %v3126_v24 = vadd.f32 %v3118_v55, %v3078_v33  ;;  %v3129_v35 = vadd.f32 %v3121_v19, %v3081_v53  ;;  %v3160_v26 = vpop.permute.xlu1 %3159  ;;  %v7613_v20 = vld [vmem:[%s12392_s2 + $0x120] sm:$0xff]  ;;  %v7614_v31 = vld [vmem:[%s12392_s2 + $0x128] sm:$0xff]  ;;  %v7615_v33 = vld [vmem:[%s12392_s2 + $0x130] sm:$0xff] }
 0xc7e   :  { %v3162_v48 = vadd.f32 %v11032_v9, %v3122_v11  ;;  %v3164_v29 = vadd.f32 %v11034_v1, %v3124_v14  ;;  %v3128_v45 = vadd.f32 %v3120_v40, %v3080_v0  ;;  %v3167_v39 = vadd.f32 %v3152_v51, %v3127_v18  ;;  %v7612_v40 = vld [vmem:[%s12392_s2 + $0x118] sm:$0xff]  ;;  %v7633_v51 = vld [vmem:[%s12394_s4 + $0x100] sm:$0xff] }
 0xc7f   :  { %v3163_v25 = vadd.f32 %v10987_v30, %v3123_v28  ;;  %v3165_v21 = vadd.f32 %v11037_v63, %v3125_v32  ;;  %v3166_v61 = vadd.f32 %v3148_v56, %v3126_v24  ;;  %v3169_v1 = vadd.f32 %v3160_v26, %v3129_v35  ;;  %v7616_v19 = vld [vmem:[%s12392_s2 + $0x138] sm:$0xff]  ;;  %8709 = vmatprep.mubr.msk.f32.mxu1 %vm315_vm0, %v7633_v51  ;;  %v3220_v53 = vpop.permute.xlu0 %3219  ;;  %v7637_v51 = vld [vmem:[%s12394_s4 + $0x120] sm:$0xff] }
 0xc80   :  { %vm3170_vm13 = vcmp.ge.f32.partialorder %v3162_v48, 0.0  ;;  %v3178_v58 = vmul.f32 0.2, %v3162_v48  ;;  %v3180_v22 = vmul.f32 0.2, %v3164_v29  ;;  %vm3172_vm14 = vcmp.ge.f32.partialorder %v3164_v29, 0.0 }
 0xc81   :  { %vm3171_vm15 = vcmp.ge.f32.partialorder %v3163_v25, 0.0  ;;  %v3179_v59 = vmul.f32 0.2, %v3163_v25  ;;  %vm3173_vm1 = vcmp.ge.f32.partialorder %v3165_v21, 0.0  ;;  %v3168_v9 = vadd.f32 %v3156_v8, %v3128_v45  ;;  %v3215_v11 = vpop.permute.xlu1 %3214 }
 0xc82   :  { %v3186_v6 = vsel %vm3170_vm13, %v3162_v48, %v3178_v58  ;;  %v3181_v57 = vmul.f32 0.2, %v3165_v21  ;;  %v3182_v30 = vmul.f32 0.2, %v3166_v61  ;;  %v3183_v52 = vmul.f32 0.2, %v3167_v39 }
 0xc83   :  { %v3187_v63 = vsel %vm3171_vm15, %v3163_v25, %v3179_v59  ;;  %v3188_v55 = vsel %vm3172_vm14, %v3164_v29, %v3180_v22  ;;  %vm3174_vm3 = vcmp.ge.f32.partialorder %v3166_v61, 0.0  ;;  %vm3175_vm4 = vcmp.ge.f32.partialorder %v3167_v39, 0.0 }
 0xc84   :  { %v9291_v15 = vpack.c.bf16 %v3187_v63, %v3186_v6  ;;  %v3189_v7 = vsel %vm3173_vm1, %v3165_v21, %v3181_v57  ;;  %v3184_v46 = vmul.f32 0.2, %v3168_v9  ;;  %v3185_v10 = vmul.f32 0.2, %v3169_v1 }
 0xc85   :  { %v9295_v56 = vpack.c.bf16 %v3189_v7, %v3188_v55  ;;  %v3190_v62 = vsel %vm3174_vm3, %v3166_v61, %v3182_v30  ;;  %v3191_v38 = vsel %vm3175_vm4, %v3167_v39, %v3183_v52  ;;  %vm3176_vm5 = vcmp.ge.f32.partialorder %v3168_v9, 0.0  ;;  %v3225_v14 = vpop.permute.xlu1 %3224  ;;  %v3235_v39 = vpop.permute.xlu0 %3234 }
 0xc86   :  { %9292 = vmatprep.subr.bf16.mxu0 %v9291_v15  ;;  %vm3177_vm6 = vcmp.ge.f32.partialorder %v3169_v1, 0.0  ;;  %v9299_v23 = vpack.c.bf16 %v3191_v38, %v3190_v62  ;;  %v3192_v12 = vsel %vm3176_vm5, %v3168_v9, %v3184_v46 }
 0xc87   :  { %9294 = vmatpush3.bf16.msra.mxu0 %v9291_v15  ;;  %v3193_v60 = vsel %vm3177_vm6, %v3169_v1, %v3185_v10 }
 0xc88   :  { %9296 = vmatprep.subr.bf16.mxu0 %v9295_v56  ;;  %v9303_v17 = vpack.c.bf16 %v3193_v60, %v3192_v12 }
 0xc89   :  { %v3230_v0 = vpop.permute.xlu1 %3229  ;;  %v3245_v46 = vpop.permute.xlu0 %3244 }
 0xc8b   :  { %9298 = vmatpush3.bf16.msra.mxu0 %v9295_v56 }
 0xc8c   :  { %9300 = vmatprep.subr.bf16.mxu0 %v9299_v23 }
 0xc8d   :  { %v3240_v35 = vpop.permute.xlu1 %3239 }
 0xc8f   :  { %9302 = vmatpush3.bf16.msra.mxu0 %v9299_v23 }
 0xc90   :  { %9304 = vmatprep.subr.bf16.mxu0 %v9303_v17 }
 0xc91   :  { %v3250_v15 = vpop.permute.xlu1 %3249 }
 0xc93   :  { %9306 = vmatpush3.bf16.msra.mxu0 %v9303_v17 }
 0xc94   :  { %9323 = vmatprep.subr.bf16.mxu0 %v9833_v41 }
 0xc96   :  { %8682 = vmatmul.mubr.msk.f32.vlgmr.msra.gmra.mrb[36].mxu0 %vm315_vm0, %v7610_v37 }
 0xc97   :  { %8684 = vmatprep.mubr.msk.f32.mxu0 %vm315_vm0, %v7611_v47 }
 0xc9a   :  { %8685 = vmatmul.mubr.msk.f32.gmra.mrb[38].mxu0 %vm315_vm0, %v7612_v40 }
 0xc9b   :  { %8687 = vmatprep.mubr.msk.f32.mxu0 %vm315_vm0, %v7613_v20 }
 0xc9e   :  { %8688 = vmatmul.mubr.msk.f32.gmra.mrb[40].mxu0 %vm315_vm0, %v7614_v31  ;;  %v7634_v31 = vld [vmem:[%s12394_s4 + $0x108] sm:$0xff] }
 0xc9f   :  { %8690 = vmatprep.mubr.msk.f32.mxu0 %vm315_vm0, %v7615_v33  ;;  %v7635_v33 = vld [vmem:[%s12394_s4 + $0x110] sm:$0xff] }
 0xca2   :  { %8691 = vmatmul.mubr.msk.f32.gmra.mrb[42].mxu0 %vm315_vm0, %v7616_v19  ;;  %v7636_v19 = vld [vmem:[%s12394_s4 + $0x118] sm:$0xff] }
 0xca3   :  { %8737 = vmatprep.mubr.msk.f32.mxu0 %vm9834_vm2, %v9835_v42 }
 0xd69   :  { %v8683_v28 = vpop.f32.mrb[36].mxu0 }
 0xd6a   :  { %v3348_v32 = vadd.f32 %v8683_v28, %v3220_v53  ;;  %v3342_v24 = vpop.f32.mrb[37].mxu0  ;;  %v7640_v53 = vld [vmem:[%s12394_s4 + $0x138] sm:$0xff]  ;;  %v7666_v28 = vld [vmem:[%s12391_s1 + $0x170] sm:$0xff] }
 0xd6b   :  { %v3343_v18 = vadd.f32 %v3342_v24, %v3215_v11  ;;  %v7638_v11 = vld [vmem:[%s12394_s4 + $0x128] sm:$0xff]  ;;  %v7667_v24 = vld [vmem:[%s12391_s1 + $0x178] sm:$0xff] }
 0xd6c   :  { %vm3382_vm7 = vcmp.ge.f32.partialorder %v3348_v32, 0.0  ;;  %v3390_v48 = vmul.f32 0.2, %v3348_v32 }
 0xd6d   :  { %vm3381_vm8 = vcmp.ge.f32.partialorder %v3343_v18, 0.0  ;;  %v3389_v29 = vmul.f32 0.2, %v3343_v18  ;;  %v8686_v25 = vpop.f32.mrb[38].mxu0 }
 0xd6e   :  { %v3358_v21 = vadd.f32 %v8686_v25, %v3230_v0  ;;  %v3352_v58 = vpop.f32.mrb[39].mxu0  ;;  %v3398_v45 = vsel %vm3382_vm7, %v3348_v32, %v3390_v48  ;;  %v7663_v0 = vld [vmem:[%s12391_s1 + $0x158] sm:$0xff]  ;;  %v7664_v32 = vld [vmem:[%s12391_s1 + $0x160] sm:$0xff] }
 0xd6f   :  { %v3353_v22 = vadd.f32 %v3352_v58, %v3225_v14  ;;  %v3397_v61 = vsel %vm3381_vm8, %v3343_v18, %v3389_v29  ;;  %v7639_v14 = vld [vmem:[%s12394_s4 + $0x130] sm:$0xff]  ;;  %3734 = vperm.xlu1 %9666, %v7663_v0   ;;  %3878 = vperm.xlu0 %9671, %v7663_v0  }
 0xd70   :  { %vm3384_vm9 = vcmp.ge.f32.partialorder %v3358_v21, 0.0  ;;  %v3392_v8 = vmul.f32 0.2, %v3358_v21  ;;  %v9307_v26 = vpack.c.bf16 %v3398_v45, %v3397_v61 }
 0xd71   :  { %vm3383_vm10 = vcmp.ge.f32.partialorder %v3353_v22, 0.0  ;;  %v3391_v59 = vmul.f32 0.2, %v3353_v22  ;;  %v8689_v6 = vpop.f32.mrb[40].mxu0 }
 0xd72   :  { %v3368_v9 = vadd.f32 %v8689_v6, %v3240_v35  ;;  %v3362_v1 = vpop.f32.mrb[41].mxu0  ;;  %9308 = vmatprep.subr.bf16.mxu1 %v9307_v26  ;;  %v3400_v57 = vsel %vm3384_vm9, %v3358_v21, %v3392_v8 }
 0xd73   :  { %v3363_v30 = vadd.f32 %v3362_v1, %v3235_v39  ;;  %9310 = vmatpush3.bf16.msra.mxu1 %v9307_v26  ;;  %v3399_v52 = vsel %vm3383_vm10, %v3353_v22, %v3391_v59  ;;  %9667 = vset.pattern.permute.xlu1 %v9830_v3 }
 0xd74   :  { %vm3386_vm11 = vcmp.ge.f32.partialorder %v3368_v9, 0.0  ;;  %v3394_v63 = vmul.f32 0.2, %v3368_v9  ;;  %v9311_v55 = vpack.c.bf16 %v3400_v57, %v3399_v52  ;;  %9675 = vset.pattern.permute.xlu0 %v9830_v3  ;;  %3778 = vperm.xlu1 %9667, %v11017_v16  }
 0xd75   :  { %vm3385_vm12 = vcmp.ge.f32.partialorder %v3363_v30, 0.0  ;;  %v3393_v7 = vmul.f32 0.2, %v3363_v30  ;;  %v8692_v56 = vpop.f32.mrb[42].mxu0  ;;  %3774 = vperm.xlu0 %9675, %v11006_v36  }
 0xd76   :  { %v3378_v10 = vadd.f32 %v8692_v56, %v3250_v15  ;;  %v3372_v62 = vpop.f32.mrb[43].mxu0  ;;  %9312 = vmatprep.subr.bf16.mxu1 %v9311_v55  ;;  %v3402_v38 = vsel %vm3386_vm11, %v3368_v9, %v3394_v63 }
 0xd77   :  { %v3373_v23 = vadd.f32 %v3372_v62, %v3245_v46  ;;  %9314 = vmatpush3.bf16.msra.mxu1 %v9311_v55  ;;  %v3401_v12 = vsel %vm3385_vm12, %v3363_v30, %v3393_v7 }
 0xd78   :  { %vm3388_vm13 = vcmp.ge.f32.partialorder %v3378_v10, 0.0  ;;  %v3396_v60 = vmul.f32 0.2, %v3378_v10  ;;  %v9315_v17 = vpack.c.bf16 %v3402_v38, %v3401_v12  ;;  %9668 = vset.pattern.permute.xlu1 %v9831_v4 }
 0xd79   :  { %vm3387_vm14 = vcmp.ge.f32.partialorder %v3373_v23, 0.0  ;;  %v3395_v37 = vmul.f32 0.2, %v3373_v23  ;;  %3782 = vperm.xlu0 %9675, %v7663_v0   ;;  %3826 = vperm.xlu1 %9668, %v11017_v16  }
 0xd7a   :  { %9316 = vmatprep.subr.bf16.mxu1 %v9315_v17  ;;  %v3404_v47 = vsel %vm3388_vm13, %v3378_v10, %v3396_v60 }
 0xd7b   :  { %9318 = vmatpush3.bf16.msra.mxu1 %v9315_v17  ;;  %v3403_v40 = vsel %vm3387_vm14, %v3373_v23, %v3395_v37 }
 0xd7c   :  { %v9319_v20 = vpack.c.bf16 %v3404_v47, %v3403_v40 }
 0xd7d   :  { %3794 = vperm.xlu0 %9675, %v7666_v28   ;;  %3830 = vperm.xlu1 %9668, %v7663_v0   ;;  %v7668_v0 = vld [vmem:[%s12392_s2 + $0x140] sm:$0xff] }
 0xd7e   :  { %9320 = vmatprep.subr.bf16.mxu1 %v9319_v20 }
 0xd7f   :  { %9322 = vmatpush3.bf16.msra.mxu1 %v9319_v20 }
 0xd81   :  { %9677 = vset.pattern.permute.xlu0 %v9831_v4  ;;  %9669 = vset.pattern.permute.xlu1 %v9829_v2 }
 0xd82   :  { %8710 = vmatmul.mubr.msk.f32.vlgmr.msra.gmra.mrb[36].mxu1 %vm315_vm0, %v7634_v31  ;;  %3834 = vperm.xlu0 %9677, %v7664_v32  }
 0xd83   :  { %8712 = vmatprep.mubr.msk.f32.mxu1 %vm315_vm0, %v7635_v33  ;;  %3870 = vperm.xlu1 %9669, %v11006_v36   ;;  %v3431_v36 = vpop.permute.xlu1 %3430 }
 0xd86   :  { %8713 = vmatmul.mubr.msk.f32.gmra.mrb[38].mxu1 %vm315_vm0, %v7636_v19  ;;  %3846 = vperm.xlu0 %9677, %v7667_v24  }
 0xd87   :  { %8715 = vmatprep.mubr.msk.f32.mxu1 %vm315_vm0, %v7637_v51  ;;  %9670 = vset.pattern.permute.xlu1 %v12401_v27  ;;  %v3441_v18 = vpop.permute.xlu1 %3440 }
 0xd88   :  { %3739 = vperm.xlu1 %9670, %v7664_v32  }
 0xd8a   :  { %8716 = vmatmul.mubr.msk.f32.gmra.mrb[40].mxu1 %vm315_vm0, %v7638_v11  ;;  %9681 = vset.pattern.permute.xlu0 %v9829_v2  ;;  %v7657_v11 = vld [vmem:[%s12396_s6 + $0x20] sm:$0xff] }
 0xd8b   :  { %8718 = vmatprep.mubr.msk.f32.mxu1 %vm315_vm0, %v7639_v14  ;;  %3890 = vperm.xlu0 %9681, %v7666_v28  }
 0xd8c   :  { %9672 = vset.pattern.permute.xlu1 %v9830_v3 }
 0xd8d   :  { %3786 = vperm.xlu1 %9672, %v7664_v32  }
 0xd8e   :  { %8719 = vmatmul.mubr.msk.f32.gmra.mrb[42].mxu1 %vm315_vm0, %v7640_v53 }
 0xd8f   :  { %9683 = vset.pattern.permute.xlu0 %v12401_v27  ;;  %8756 = vmatprep.mubr.msk.f32.mxu1 %vm315_vm0, %v7668_v0 }
 0xd91   :  { %3790 = vperm.xlu1 %9672, %v11026_v34  }
 0xd95   :  { %9673 = vset.pattern.permute.xlu1 %v9831_v4 }
 0xd96   :  { %3838 = vperm.xlu1 %9673, %v11026_v34  }
 0xd9a   :  { %9674 = vset.pattern.permute.xlu1 %v9829_v2 }
 0xd9b   :  { %3874 = vperm.xlu1 %9674, %v11017_v16   ;;  %v3426_v16 = vpop.permute.xlu0 %3425 }
 0xd9f   :  { %9676 = vset.pattern.permute.xlu1 %v12401_v27  ;;  %v3436_v29 = vpop.permute.xlu0 %3435 }
 0xda0   :  { %3749 = vperm.xlu1 %9676, %v7666_v28  }
 0xda3   :  { %v3446_v6 = vpop.permute.xlu0 %3445 }
 0xda4   :  { %3754 = vperm.xlu1 %9676, %v7667_v24  }
 0xda7   :  { %v3456_v23 = vpop.permute.xlu0 %3455 }
 0xda8   :  { %9678 = vset.pattern.permute.xlu1 %v9830_v3 }
 0xda9   :  { %3798 = vperm.xlu1 %9678, %v7667_v24  }
 0xdad   :  { %9679 = vset.pattern.permute.xlu1 %v9831_v4 }
 0xdae   :  { %3842 = vperm.xlu1 %9679, %v7666_v28  }
 0xdb2   :  { %9680 = vset.pattern.permute.xlu1 %v9829_v2 }
 0xdb3   :  { %3882 = vperm.xlu1 %9680, %v7664_v32  }
 0xdb7   :  { %3886 = vperm.xlu1 %9680, %v11026_v34   ;;  %v3451_v34 = vpop.permute.xlu1 %3450 }
 0xdbb   :  { %3894 = vperm.xlu1 %9680, %v7667_v24   ;;  %v3461_v10 = vpop.permute.xlu1 %3460 }
 0xdbf   :  { %9682 = vset.pattern.permute.xlu1 %v12401_v27  ;;  %v11184_v14 = vpop.permute.xlu1 %3719 }
 0xdc3   :  { %v11186_v53 = vpop.permute.xlu1 %3770 }
 0xdc7   :  { %v11192_v28 = vpop.permute.xlu1 %3818 }
 0xdcb   :  { %v11194_v32 = vpop.permute.xlu1 %3822 }
 0xdee   :  { %v11196_v24 = vpop.permute.xlu1 %3734 }
 0xe55   :  { %v8711_v48 = vpop.f32.mrb[36].mxu1 }
 0xe56   :  { %v3559_v25 = vadd.f32 %v8711_v48, %v3431_v36  ;;  %v3553_v21 = vpop.f32.mrb[37].mxu1  ;;  %v7677_v36 = vld [vmem:[%s12393_s3 + $0x148] sm:$0xff]  ;;  %v7678_v48 = vld [vmem:[%s12393_s3 + $0x150] sm:$0xff] }
 0xe57   :  { %v3554_v58 = vadd.f32 %v3553_v21, %v3426_v16  ;;  %v7676_v16 = vld [vmem:[%s12393_s3 + $0x140] sm:$0xff]  ;;  %3954 = vperm.xlu0 %9683, %v7677_v36   ;;  %v7679_v21 = vld [vmem:[%s12393_s3 + $0x158] sm:$0xff] }
 0xe58   :  { %vm3593_vm15 = vcmp.ge.f32.partialorder %v3559_v25, 0.0  ;;  %v3601_v45 = vmul.f32 0.2, %v3559_v25  ;;  %3949 = vperm.xlu1 %9682, %v7676_v16  }
 0xe59   :  { %vm3592_vm1 = vcmp.ge.f32.partialorder %v3554_v58, 0.0  ;;  %v3600_v35 = vmul.f32 0.2, %v3554_v58  ;;  %v8714_v22 = vpop.f32.mrb[38].mxu1 }
 0xe5a   :  { %v3609_v61 = vsel %vm3593_vm15, %v3559_v25, %v3601_v45  ;;  %v3569_v39 = vadd.f32 %v8714_v22, %v3441_v18  ;;  %v3563_v8 = vpop.f32.mrb[39].mxu1  ;;  %v7680_v18 = vld [vmem:[%s12393_s3 + $0x160] sm:$0xff]  ;;  %v7682_v25 = vld [vmem:[%s12393_s3 + $0x170] sm:$0xff] }
 0xe5b   :  { %v3608_v26 = vsel %vm3592_vm1, %v3554_v58, %v3600_v35  ;;  %v3564_v59 = vadd.f32 %v3563_v8, %v3436_v29  ;;  %v11210_v29 = vpop.permute.xlu1 %3778  ;;  %3969 = vperm.xlu0 %9683, %v7680_v18   ;;  %v7700_v45 = vld [vmem:[%s12395_s5 + $0x140] sm:$0xff]  ;;  %v7681_v35 = vld [vmem:[%s12393_s3 + $0x168] sm:$0xff]  ;;  %v7702_v22 = vld [vmem:[%s12395_s5 + $0x150] sm:$0xff] }
 0xe5c   :  { %v9324_v9 = vpack.c.bf16 %v3609_v61, %v3608_v26  ;;  %vm3595_vm3 = vcmp.ge.f32.partialorder %v3569_v39, 0.0  ;;  %v3603_v1 = vmul.f32 0.2, %v3569_v39  ;;  %3959 = vperm.xlu1 %9682, %v7678_v48   ;;  %v7683_v61 = vld [vmem:[%s12393_s3 + $0x178] sm:$0xff]  ;;  %v7704_v8 = vld [vmem:[%s12395_s5 + $0x160] sm:$0xff] }
 0xe5d   :  { %vm3594_vm4 = vcmp.ge.f32.partialorder %v3564_v59, 0.0  ;;  %v3602_v57 = vmul.f32 0.2, %v3564_v59  ;;  %v8717_v30 = vpop.f32.mrb[40].mxu1 }
 0xe5e   :  { %v3611_v52 = vsel %vm3595_vm3, %v3569_v39, %v3603_v1  ;;  %v3579_v63 = vadd.f32 %v8717_v30, %v3451_v34  ;;  %v3573_v55 = vpop.f32.mrb[41].mxu1  ;;  %9325 = vmatpush3.bf16.msra.mxu0 %v9324_v9  ;;  %v7701_v34 = vld [vmem:[%s12395_s5 + $0x148] sm:$0xff]  ;;  %v3623_v9 = vpop.permute.xlu0 %3622 }
 0xe5f   :  { %v3610_v15 = vsel %vm3594_vm4, %v3564_v59, %v3602_v57  ;;  %v3574_v7 = vadd.f32 %v3573_v55, %v3446_v6  ;;  %9326 = vmatprep.subr.bf16.mxu0 %v9833_v41  ;;  %v11218_v58 = vpop.permute.xlu1 %3826  ;;  %3979 = vperm.xlu0 %9683, %v7682_v25   ;;  %v7706_v59 = vld [vmem:[%s12395_s5 + $0x170] sm:$0xff]  ;;  %v7703_v6 = vld [vmem:[%s12395_s5 + $0x158] sm:$0xff]  ;;  %v7717_v1 = vld [vmem:[%s12397_s7 + $0x28] sm:$0xff] }
 0xe60   :  { %v9327_v56 = vpack.c.bf16 %v3611_v52, %v3610_v15  ;;  %vm3597_vm5 = vcmp.ge.f32.partialorder %v3579_v63, 0.0  ;;  %v3605_v46 = vmul.f32 0.2, %v3579_v63  ;;  %3964 = vperm.xlu1 %9682, %v7679_v21   ;;  %v7705_v57 = vld [vmem:[%s12395_s5 + $0x168] sm:$0xff] }
 0xe61   :  { %vm3596_vm6 = vcmp.ge.f32.partialorder %v3574_v7, 0.0  ;;  %v3604_v62 = vmul.f32 0.2, %v3574_v7  ;;  %v8720_v38 = vpop.f32.mrb[42].mxu1  ;;  %v11259_v52 = vld [vmem:[%s12391_s1 + $0x188] sm:$0xff] }
 0xe62   :  { %v3613_v12 = vsel %vm3597_vm5, %v3579_v63, %v3605_v46  ;;  %v3589_v60 = vadd.f32 %v8720_v38, %v3461_v10  ;;  %v3583_v17 = vpop.f32.mrb[43].mxu1  ;;  %9328 = vmatpush3.bf16.msra.mxu0 %v9327_v56  ;;  %v7707_v63 = vld [vmem:[%s12395_s5 + $0x178] sm:$0xff]  ;;  %v11264_v55 = vpop.permute.xlu0 %3724  ;;  %v7719_v56 = vld [vmem:[%s12391_s1 + $0x180] sm:$0xff]  ;;  %v11279_v10 = vld [vmem:[%s12391_s1 + $0x1a8] sm:$0xff] }
 0xe63   :  { %v3612_v37 = vsel %vm3596_vm6, %v3574_v7, %v3604_v62  ;;  %v3584_v47 = vadd.f32 %v3583_v17, %v3456_v23  ;;  %9329 = vmatprep.subr.bf16.mxu0 %v9833_v41  ;;  %4160 = vperm.xlu0 %9683, %v7700_v45   ;;  %v11232_v39 = vpop.permute.xlu1 %3830  ;;  %v11270_v7 = vld [vmem:[%s12391_s1 + $0x190] sm:$0xff] }
 0xe64   :  { %v9330_v40 = vpack.c.bf16 %v3613_v12, %v3612_v37  ;;  %vm3599_vm7 = vcmp.ge.f32.partialorder %v3589_v60, 0.0  ;;  %v3607_v20 = vmul.f32 0.2, %v3589_v60  ;;  %3974 = vperm.xlu1 %9682, %v7681_v35  }
 0xe65   :  { %vm3598_vm8 = vcmp.ge.f32.partialorder %v3584_v47, 0.0  ;;  %v3606_v31 = vmul.f32 0.2, %v3584_v47 }
 0xe66   :  { %v3615_v33 = vsel %vm3599_vm7, %v3589_v60, %v3607_v20  ;;  %9331 = vmatpush3.bf16.msra.mxu0 %v9330_v40  ;;  %v3730_v46 = vpop.permute.xlu0 %3729 }
 0xe67   :  { %v3614_v19 = vsel %vm3598_vm8, %v3584_v47, %v3606_v31  ;;  %9332 = vmatprep.subr.bf16.mxu0 %v9833_v41  ;;  %4170 = vperm.xlu0 %9683, %v7702_v22   ;;  %v11240_v26 = vpop.permute.xlu1 %3870  ;;  %v3801_v22 = vmul.f32 %v11186_v53, %v10013_v49 }
 0xe68   :  { %v9333_v51 = vpack.c.bf16 %v3615_v33, %v3614_v19  ;;  %3984 = vperm.xlu1 %9682, %v7683_v61   ;;  %v3849_v61 = vmul.f32 %v11192_v28, %v10016_v50 }
 0xe6a   :  { %9334 = vmatpush3.bf16.msra.mxu0 %v9333_v51  ;;  %v3745_v38 = vpop.permute.xlu0 %3744 }
 0xe6b   :  { %4180 = vperm.xlu0 %9683, %v7704_v8   ;;  %v11254_v30 = vpop.permute.xlu1 %3739 }
 0xe6c   :  { %4165 = vperm.xlu1 %9682, %v7701_v34   ;;  %v3803_v34 = vmul.f32 %v11210_v29, %v10013_v49 }
 0xe6d   :  { %8738 = vmatmul.mubr.msk.f32.vlgmr.msra.gmra.mrb[44].mxu0 %vm315_vm0, %v7657_v11 }
 0xe6e   :  { %v11285_v37 = vpop.permute.xlu0 %3866 }
 0xe6f   :  { %4190 = vperm.xlu0 %9683, %v7706_v59   ;;  %v3787_v15 = vpop.permute.xlu1 %3786  ;;  %v3851_v59 = vmul.f32 %v11218_v58, %v10016_v50 }
 0xe70   :  { %4175 = vperm.xlu1 %9682, %v7703_v6   ;;  %v3805_v6 = vmul.f32 %v3787_v15, %v10013_v49 }
 0xe72   :  { %v11290_v40 = vpop.permute.xlu0 %3878 }
 0xe73   :  { %4357 = vperm.xlu0 %9683, %v7717_v1   ;;  %v3791_v62 = vpop.permute.xlu1 %3790 }
 0xe74   :  { %4185 = vperm.xlu1 %9682, %v7705_v57  }
 0xe76   :  { %v3775_v33 = vpop.permute.xlu0 %3774 }
 0xe77   :  { %4459 = vperm.xlu0 %9683, %v11259_v52   ;;  %v3839_v23 = vpop.permute.xlu1 %3838  ;;  %v3802_v1 = vmul.f32 %v3775_v33, %v10013_v49 }
 0xe78   :  { %4195 = vperm.xlu1 %9682, %v7707_v63  }
 0xe7a   :  { %v3783_v36 = vpop.permute.xlu0 %3782 }
 0xe7b   :  { %4464 = vperm.xlu0 %9683, %v11270_v7   ;;  %v11287_v47 = vpop.permute.xlu1 %3874  ;;  %v3804_v29 = vmul.f32 %v3783_v36, %v10013_v49 }
 0xe7c   :  { %4454 = vperm.xlu1 %9682, %v7719_v56  }
 0xe7e   :  { %v3795_v18 = vpop.permute.xlu0 %3794 }
 0xe7f   :  { %4479 = vperm.xlu0 %9683, %v11279_v10   ;;  %v3750_v20 = vpop.permute.xlu1 %3749  ;;  %v3807_v58 = vmul.f32 %v3795_v18, %v10013_v49 }
 0xe80   :  { %9684 = vset.pattern.permute.xlu1 %v9830_v3 }
 0xe81   :  { %4505 = vperm.xlu1 %9684, %v7719_v56  }
 0xe82   :  { %v3835_v35 = vpop.permute.xlu0 %3834 }
 0xe83   :  { %9691 = vset.pattern.permute.xlu0 %v9829_v2  ;;  %v3755_v0 = vpop.permute.xlu1 %3754 }
 0xe84   :  { %4601 = vperm.xlu0 %9691, %v7719_v56  }
 0xe85   :  { %9685 = vset.pattern.permute.xlu1 %v9831_v4 }
 0xe86   :  { %4553 = vperm.xlu1 %9685, %v7719_v56  }
 0xe87   :  { %v3799_v16 = vpop.permute.xlu1 %3798 }
 0xe88   :  { %v3808_v57 = vmul.f32 %v3799_v16, %v10013_v49 }
 0xe8a   :  { %4557 = vperm.xlu1 %9685, %v11259_v52  }
 0xe8b   :  { %v3843_v25 = vpop.permute.xlu1 %3842 }
 0xe8e   :  { %9686 = vset.pattern.permute.xlu1 %v12401_v27 }
 0xe8f   :  { %v3883_v53 = vpop.permute.xlu1 %3882 }
 0xf40   :  { %v3694_v12 = vpop.f32.mrb[44].mxu0 }
 0xf41   :  { %v3695_v60 = vadd.f32 %v3694_v12, %v3623_v9  ;;  %v8739_v17 = vpop.f32.mrb[45].mxu0  ;;  %v3806_v9 = vmul.f32 %v3791_v62, %v10013_v49 }
 0xf43   :  { %9780 = vtanh.f32 %v3695_v60 }
 0xf4d   :  { %v9781_v31 = vpop.eup %9780 }
 0xf4e   :  { %v3699_v19 = vmul.f32 2.0, %v9781_v31 }
 0xf50   :  { %v3700_v51 = vmul.f32 1.442695, %v3699_v19  ;;  %v11294_v11 = vadd.f32 %v3699_v19, %v11041_v13  ;;  %v3850_v13 = vmul.f32 %v11194_v32, %v10016_v50  ;;  %v3854_v32 = vmul.f32 %v3839_v23, %v10016_v50 }
 0xf52   :  { %9782 = vpow2.f32 %v3700_v51 }
 0xf5c   :  { %v9783_v48 = vpop.eup %9782 }
 0xf5d   :  { %v3703_v21 = vrot.slane %v9783_v48, 7  ;;  %v3855_v48 = vmul.f32 %v3843_v25, %v10016_v50 }
 0xf5f   :  { %v3705_v45 = vmul.f32 %v3703_v21, %v10797_v5  ;;  %v3852_v5 = vmul.f32 %v11232_v39, %v10016_v50  ;;  %v3853_v39 = vmul.f32 %v3835_v35, %v10016_v50 }
 0xf61   :  { %v11303_v8 = vadd.f32 %v3705_v45, %v3695_v60  ;;  %v3847_v60 = vpop.permute.xlu0 %3846 }
 0xf63   :  { %v3760_v28 = vrot.slane %v11303_v8, %v10280_v54 }
 0xf65   :  { %v3765_v63 = vmul.f32 %v3760_v28, %v11254_v30  ;;  %v3766_v15 = vmul.f32 %v3760_v28, %v3745_v38  ;;  %v3761_v56 = vmul.f32 %v3760_v28, %v11184_v14  ;;  %v3763_v12 = vmul.f32 %v3760_v28, %v3730_v46  ;;  %v3887_v38 = vpop.permute.xlu1 %3886 }
 0xf66   :  { %v3767_v62 = vmul.f32 %v3760_v28, %v3750_v20  ;;  %v3762_v23 = vmul.f32 %v3760_v28, %v11264_v55  ;;  %v3768_v17 = vmul.f32 %v3760_v28, %v3755_v0  ;;  %v3764_v31 = vmul.f32 %v3760_v28, %v11196_v24 }
 0xf67   :  { %v3813_v33 = vadd.f32 %v3805_v6, %v3765_v63  ;;  %v3814_v19 = vadd.f32 %v3806_v9, %v3766_v15  ;;  %v3809_v51 = vadd.f32 %v3801_v22, %v3761_v56  ;;  %v3811_v36 = vadd.f32 %v3803_v34, %v3763_v12 }
 0xf68   :  { %v3810_v16 = vadd.f32 %v3802_v1, %v3762_v23  ;;  %v3812_v18 = vadd.f32 %v3804_v29, %v3764_v31  ;;  %v3856_v30 = vmul.f32 %v3847_v60, %v10016_v50  ;;  %v3816_v21 = vadd.f32 %v3808_v57, %v3768_v17  ;;  %v3891_v29 = vpop.permute.xlu0 %3890 }
 0xf69   :  { %v3857_v14 = vadd.f32 %v3849_v61, %v3809_v51  ;;  %v3859_v46 = vadd.f32 %v3851_v59, %v3811_v36  ;;  %v3815_v20 = vadd.f32 %v3807_v58, %v3767_v62  ;;  %v3861_v0 = vadd.f32 %v3853_v39, %v3813_v33  ;;  %v7670_v51 = vld [vmem:[%s12392_s2 + $0x150] sm:$0xff]  ;;  %v7671_v36 = vld [vmem:[%s12392_s2 + $0x158] sm:$0xff] }
 0xf6a   :  { %v3858_v45 = vadd.f32 %v3850_v13, %v3810_v16  ;;  %v3860_v55 = vadd.f32 %v3852_v5, %v3812_v18  ;;  %v3862_v35 = vadd.f32 %v3854_v32, %v3814_v19  ;;  %v3864_v9 = vadd.f32 %v3856_v30, %v3816_v21  ;;  %v3895_v13 = vpop.permute.xlu1 %3894  ;;  %v7669_v19 = vld [vmem:[%s12392_s2 + $0x148] sm:$0xff]  ;;  %v7672_v16 = vld [vmem:[%s12392_s2 + $0x160] sm:$0xff]  ;;  %v7675_v30 = vld [vmem:[%s12392_s2 + $0x178] sm:$0xff] }
 0xf6b   :  { %v3897_v24 = vadd.f32 %v11285_v37, %v3857_v14  ;;  %v3899_v22 = vadd.f32 %v11287_v47, %v3859_v46  ;;  %v3863_v28 = vadd.f32 %v3855_v48, %v3815_v20  ;;  %v3901_v59 = vadd.f32 %v3883_v53, %v3861_v0  ;;  %v7673_v18 = vld [vmem:[%s12392_s2 + $0x168] sm:$0xff]  ;;  %v7674_v48 = vld [vmem:[%s12392_s2 + $0x170] sm:$0xff] }
 0xf6c   :  { %v3898_v34 = vadd.f32 %v11240_v26, %v3858_v45  ;;  %v3900_v6 = vadd.f32 %v11290_v40, %v3860_v55  ;;  %v3902_v1 = vadd.f32 %v3887_v38, %v3862_v35  ;;  %v3904_v47 = vadd.f32 %v3895_v13, %v3864_v9  ;;  %v7692_v38 = vld [vmem:[%s12394_s4 + $0x140] sm:$0xff]  ;;  %v3955_v21 = vpop.permute.xlu0 %3954 }
 0xf6d   :  { %vm3905_vm9 = vcmp.ge.f32.partialorder %v3897_v24, 0.0  ;;  %v3913_v25 = vmul.f32 0.2, %v3897_v24  ;;  %v3915_v61 = vmul.f32 0.2, %v3899_v22  ;;  %vm3907_vm10 = vcmp.ge.f32.partialorder %v3899_v22, 0.0  ;;  %8784 = vmatprep.mubr.msk.f32.mxu0 %vm315_vm0, %v7692_v38 }
 0xf6e   :  { %vm3906_vm11 = vcmp.ge.f32.partialorder %v3898_v34, 0.0  ;;  %v3914_v5 = vmul.f32 0.2, %v3898_v34  ;;  %vm3908_vm12 = vcmp.ge.f32.partialorder %v3900_v6, 0.0  ;;  %v3903_v37 = vadd.f32 %v3891_v29, %v3863_v28  ;;  %v3950_v14 = vpop.permute.xlu1 %3949  ;;  %v7696_v38 = vld [vmem:[%s12394_s4 + $0x160] sm:$0xff] }
 0xf6f   :  { %v3921_v32 = vsel %vm3905_vm9, %v3897_v24, %v3913_v25  ;;  %v3916_v57 = vmul.f32 0.2, %v3900_v6  ;;  %v3917_v26 = vmul.f32 0.2, %v3901_v59  ;;  %v3918_v58 = vmul.f32 0.2, %v3902_v1 }
 0xf70   :  { %v3922_v40 = vsel %vm3906_vm11, %v3898_v34, %v3914_v5  ;;  %v3923_v39 = vsel %vm3907_vm10, %v3899_v22, %v3915_v61  ;;  %vm3909_vm13 = vcmp.ge.f32.partialorder %v3901_v59, 0.0  ;;  %vm3910_vm14 = vcmp.ge.f32.partialorder %v3902_v1, 0.0 }
 0xf71   :  { %v9335_v63 = vpack.c.bf16 %v3922_v40, %v3921_v32  ;;  %v3924_v15 = vsel %vm3908_vm12, %v3900_v6, %v3916_v57  ;;  %v3919_v56 = vmul.f32 0.2, %v3903_v37  ;;  %v3920_v12 = vmul.f32 0.2, %v3904_v47 }
 0xf72   :  { %v9339_v53 = vpack.c.bf16 %v3924_v15, %v3923_v39  ;;  %v3925_v60 = vsel %vm3909_vm13, %v3901_v59, %v3917_v26  ;;  %v3926_v62 = vsel %vm3910_vm14, %v3902_v1, %v3918_v58  ;;  %vm3911_vm15 = vcmp.ge.f32.partialorder %v3903_v37, 0.0  ;;  %v3960_v46 = vpop.permute.xlu1 %3959  ;;  %v3970_v1 = vpop.permute.xlu0 %3969 }
 0xf73   :  { %9336 = vmatprep.subr.bf16.mxu1 %v9335_v63  ;;  %vm3912_vm1 = vcmp.ge.f32.partialorder %v3904_v47, 0.0  ;;  %v9343_v23 = vpack.c.bf16 %v3926_v62, %v3925_v60  ;;  %v3927_v17 = vsel %vm3911_vm15, %v3903_v37, %v3919_v56 }
 0xf74   :  { %9338 = vmatpush3.bf16.msra.mxu1 %v9335_v63  ;;  %v3928_v31 = vsel %vm3912_vm1, %v3904_v47, %v3920_v12 }
 0xf75   :  { %9340 = vmatprep.subr.bf16.mxu1 %v9339_v53  ;;  %v9347_v33 = vpack.c.bf16 %v3928_v31, %v3927_v17 }
 0xf76   :  { %v3965_v20 = vpop.permute.xlu1 %3964  ;;  %v3980_v56 = vpop.permute.xlu0 %3979 }
 0xf78   :  { %9342 = vmatpush3.bf16.msra.mxu1 %v9339_v53 }
 0xf79   :  { %9344 = vmatprep.subr.bf16.mxu1 %v9343_v23 }
 0xf7a   :  { %v3975_v9 = vpop.permute.xlu1 %3974 }
 0xf7c   :  { %9346 = vmatpush3.bf16.msra.mxu1 %v9343_v23 }
 0xf7d   :  { %9348 = vmatprep.subr.bf16.mxu1 %v9347_v33 }
 0xf7e   :  { %v3985_v63 = vpop.permute.xlu1 %3984 }
 0xf80   :  { %9350 = vmatpush3.bf16.msra.mxu1 %v9347_v33 }
 0xf81   :  { %9367 = vmatprep.subr.bf16.mxu1 %v9833_v41 }
 0xf83   :  { %8757 = vmatmul.mubr.msk.f32.vlgmr.msra.gmra.mrb[44].mxu1 %vm315_vm0, %v7669_v19 }
 0xf84   :  { %8759 = vmatprep.mubr.msk.f32.mxu1 %vm315_vm0, %v7670_v51 }
 0xf87   :  { %8760 = vmatmul.mubr.msk.f32.gmra.mrb[46].mxu1 %vm315_vm0, %v7671_v36 }
 0xf88   :  { %8762 = vmatprep.mubr.msk.f32.mxu1 %vm315_vm0, %v7672_v16 }
 0xf8b   :  { %8763 = vmatmul.mubr.msk.f32.gmra.mrb[48].mxu1 %vm315_vm0, %v7673_v18  ;;  %v7693_v18 = vld [vmem:[%s12394_s4 + $0x148] sm:$0xff] }
 0xf8c   :  { %8765 = vmatprep.mubr.msk.f32.mxu1 %vm315_vm0, %v7674_v48  ;;  %v7694_v48 = vld [vmem:[%s12394_s4 + $0x150] sm:$0xff] }
 0xf8f   :  { %8766 = vmatmul.mubr.msk.f32.gmra.mrb[50].mxu1 %vm315_vm0, %v7675_v30  ;;  %v7695_v30 = vld [vmem:[%s12394_s4 + $0x158] sm:$0xff] }
 0xf90   :  { %8812 = vmatprep.mubr.msk.f32.mxu1 %vm9834_vm2, %v9835_v42 }
0x1056   :  { %v8758_v45 = vpop.f32.mrb[44].mxu1 }
0x1057   :  { %v4083_v55 = vadd.f32 %v8758_v45, %v3955_v21  ;;  %v4077_v0 = vpop.f32.mrb[45].mxu1  ;;  %v7699_v21 = vld [vmem:[%s12394_s4 + $0x178] sm:$0xff]  ;;  %v7725_v45 = vld [vmem:[%s12391_s1 + $0x1b0] sm:$0xff] }
0x1058   :  { %v4078_v35 = vadd.f32 %v4077_v0, %v3950_v14  ;;  %v7697_v14 = vld [vmem:[%s12394_s4 + $0x168] sm:$0xff]  ;;  %v7726_v0 = vld [vmem:[%s12391_s1 + $0x1b8] sm:$0xff] }
0x1059   :  { %vm4117_vm3 = vcmp.ge.f32.partialorder %v4083_v55, 0.0  ;;  %v4125_v24 = vmul.f32 0.2, %v4083_v55 }
0x105a   :  { %vm4116_vm4 = vcmp.ge.f32.partialorder %v4078_v35, 0.0  ;;  %v4124_v22 = vmul.f32 0.2, %v4078_v35  ;;  %v8761_v34 = vpop.f32.mrb[46].mxu1 }
0x105b   :  { %v4093_v6 = vadd.f32 %v8761_v34, %v3965_v20  ;;  %v4087_v25 = vpop.f32.mrb[47].mxu1  ;;  %v4133_v28 = vsel %vm4117_vm3, %v4083_v55, %v4125_v24  ;;  %v7722_v20 = vld [vmem:[%s12391_s1 + $0x198] sm:$0xff]  ;;  %v7723_v55 = vld [vmem:[%s12391_s1 + $0x1a0] sm:$0xff] }
0x105c   :  { %v4088_v61 = vadd.f32 %v4087_v25, %v3960_v46  ;;  %v4132_v59 = vsel %vm4116_vm4, %v4078_v35, %v4124_v22  ;;  %v7698_v46 = vld [vmem:[%s12394_s4 + $0x170] sm:$0xff]  ;;  %4469 = vperm.xlu1 %9686, %v7722_v20   ;;  %4613 = vperm.xlu0 %9691, %v7722_v20  }
0x105d   :  { %vm4119_vm5 = vcmp.ge.f32.partialorder %v4093_v6, 0.0  ;;  %v4127_v29 = vmul.f32 0.2, %v4093_v6  ;;  %v9351_v13 = vpack.c.bf16 %v4133_v28, %v4132_v59 }
0x105e   :  { %vm4118_vm6 = vcmp.ge.f32.partialorder %v4088_v61, 0.0  ;;  %v4126_v5 = vmul.f32 0.2, %v4088_v61  ;;  %v8764_v32 = vpop.f32.mrb[48].mxu1 }
0x105f   :  { %v4103_v37 = vadd.f32 %v8764_v32, %v3975_v9  ;;  %v4097_v47 = vpop.f32.mrb[49].mxu1  ;;  %9352 = vmatprep.subr.bf16.mxu0 %v9351_v13  ;;  %v4135_v57 = vsel %vm4119_vm5, %v4093_v6, %v4127_v29 }
0x1060   :  { %v4098_v26 = vadd.f32 %v4097_v47, %v3970_v1  ;;  %9354 = vmatpush3.bf16.msra.mxu0 %v9351_v13  ;;  %v4134_v58 = vsel %vm4118_vm6, %v4088_v61, %v4126_v5  ;;  %9687 = vset.pattern.permute.xlu1 %v9830_v3 }
0x1061   :  { %vm4121_vm7 = vcmp.ge.f32.partialorder %v4103_v37, 0.0  ;;  %v4129_v40 = vmul.f32 0.2, %v4103_v37  ;;  %v9355_v39 = vpack.c.bf16 %v4135_v57, %v4134_v58  ;;  %9695 = vset.pattern.permute.xlu0 %v9830_v3  ;;  %4513 = vperm.xlu1 %9687, %v11270_v7  }
0x1062   :  { %vm4120_vm8 = vcmp.ge.f32.partialorder %v4098_v26, 0.0  ;;  %v4128_v15 = vmul.f32 0.2, %v4098_v26  ;;  %v8767_v53 = vpop.f32.mrb[50].mxu1  ;;  %4509 = vperm.xlu0 %9695, %v11259_v52  }
0x1063   :  { %v4113_v12 = vadd.f32 %v8767_v53, %v3985_v63  ;;  %v4107_v60 = vpop.f32.mrb[51].mxu1  ;;  %9356 = vmatprep.subr.bf16.mxu0 %v9355_v39  ;;  %v4137_v62 = vsel %vm4121_vm7, %v4103_v37, %v4129_v40 }
0x1064   :  { %v4108_v23 = vadd.f32 %v4107_v60, %v3980_v56  ;;  %9358 = vmatpush3.bf16.msra.mxu0 %v9355_v39  ;;  %v4136_v17 = vsel %vm4120_vm8, %v4098_v26, %v4128_v15 }
0x1065   :  { %vm4123_vm9 = vcmp.ge.f32.partialorder %v4113_v12, 0.0  ;;  %v4131_v31 = vmul.f32 0.2, %v4113_v12  ;;  %v9359_v33 = vpack.c.bf16 %v4137_v62, %v4136_v17  ;;  %9688 = vset.pattern.permute.xlu1 %v9831_v4 }
0x1066   :  { %vm4122_vm10 = vcmp.ge.f32.partialorder %v4108_v23, 0.0  ;;  %v4130_v19 = vmul.f32 0.2, %v4108_v23  ;;  %4517 = vperm.xlu0 %9695, %v7722_v20   ;;  %4561 = vperm.xlu1 %9688, %v11270_v7  }
0x1067   :  { %9360 = vmatprep.subr.bf16.mxu0 %v9359_v33  ;;  %v4139_v51 = vsel %vm4123_vm9, %v4113_v12, %v4131_v31 }
0x1068   :  { %9362 = vmatpush3.bf16.msra.mxu0 %v9359_v33  ;;  %v4138_v36 = vsel %vm4122_vm10, %v4108_v23, %v4130_v19 }
0x1069   :  { %v9363_v16 = vpack.c.bf16 %v4139_v51, %v4138_v36 }
0x106a   :  { %4529 = vperm.xlu0 %9695, %v7725_v45   ;;  %4565 = vperm.xlu1 %9688, %v7722_v20   ;;  %v7727_v20 = vld [vmem:[%s12392_s2 + $0x180] sm:$0xff] }
0x106b   :  { %9364 = vmatprep.subr.bf16.mxu0 %v9363_v16 }
0x106c   :  { %9366 = vmatpush3.bf16.msra.mxu0 %v9363_v16 }
0x106e   :  { %9697 = vset.pattern.permute.xlu0 %v9831_v4  ;;  %9689 = vset.pattern.permute.xlu1 %v9829_v2 }
0x106f   :  { %8785 = vmatmul.mubr.msk.f32.vlgmr.msra.gmra.mrb[46].mxu0 %vm315_vm0, %v7693_v18  ;;  %4569 = vperm.xlu0 %9697, %v7723_v55  }
0x1070   :  { %8787 = vmatprep.mubr.msk.f32.mxu0 %vm315_vm0, %v7694_v48  ;;  %4605 = vperm.xlu1 %9689, %v11259_v52   ;;  %v4166_v52 = vpop.permute.xlu1 %4165 }
0x1073   :  { %8788 = vmatmul.mubr.msk.f32.gmra.mrb[48].mxu0 %vm315_vm0, %v7695_v30  ;;  %4581 = vperm.xlu0 %9697, %v7726_v0  }
0x1074   :  { %8790 = vmatprep.mubr.msk.f32.mxu0 %vm315_vm0, %v7696_v38  ;;  %9690 = vset.pattern.permute.xlu1 %v12401_v27  ;;  %v4176_v35 = vpop.permute.xlu1 %4175 }
0x1075   :  { %4474 = vperm.xlu1 %9690, %v7723_v55  }
0x1077   :  { %8791 = vmatmul.mubr.msk.f32.gmra.mrb[50].mxu0 %vm315_vm0, %v7697_v14  ;;  %9701 = vset.pattern.permute.xlu0 %v9829_v2  ;;  %v7716_v14 = vld [vmem:[%s12396_s6 + $0x28] sm:$0xff] }
0x1078   :  { %8793 = vmatprep.mubr.msk.f32.mxu0 %vm315_vm0, %v7698_v46  ;;  %4625 = vperm.xlu0 %9701, %v7725_v45  }
0x1079   :  { %9692 = vset.pattern.permute.xlu1 %v9830_v3 }
0x107a   :  { %4521 = vperm.xlu1 %9692, %v7723_v55  }
0x107b   :  { %8794 = vmatmul.mubr.msk.f32.gmra.mrb[52].mxu0 %vm315_vm0, %v7699_v21 }
0x107c   :  { %9703 = vset.pattern.permute.xlu0 %v12401_v27  ;;  %8831 = vmatprep.mubr.msk.f32.mxu0 %vm315_vm0, %v7727_v20 }
0x107e   :  { %4525 = vperm.xlu1 %9692, %v11279_v10  }
0x1082   :  { %9693 = vset.pattern.permute.xlu1 %v9831_v4 }
0x1083   :  { %4573 = vperm.xlu1 %9693, %v11279_v10  }
0x1087   :  { %9694 = vset.pattern.permute.xlu1 %v9829_v2 }
0x1088   :  { %4609 = vperm.xlu1 %9694, %v11270_v7   ;;  %v4161_v7 = vpop.permute.xlu0 %4160 }
0x108c   :  { %9696 = vset.pattern.permute.xlu1 %v12401_v27  ;;  %v4171_v22 = vpop.permute.xlu0 %4170 }
0x108d   :  { %4484 = vperm.xlu1 %9696, %v7725_v45  }
0x1090   :  { %v4181_v32 = vpop.permute.xlu0 %4180 }
0x1091   :  { %4489 = vperm.xlu1 %9696, %v7726_v0  }
0x1094   :  { %v4191_v23 = vpop.permute.xlu0 %4190 }
0x1095   :  { %9698 = vset.pattern.permute.xlu1 %v9830_v3 }
0x1096   :  { %4533 = vperm.xlu1 %9698, %v7726_v0  }
0x109a   :  { %9699 = vset.pattern.permute.xlu1 %v9831_v4 }
0x109b   :  { %4577 = vperm.xlu1 %9699, %v7725_v45  }
0x109f   :  { %9700 = vset.pattern.permute.xlu1 %v9829_v2 }
0x10a0   :  { %4617 = vperm.xlu1 %9700, %v7723_v55  }
0x10a4   :  { %4621 = vperm.xlu1 %9700, %v11279_v10   ;;  %v4186_v10 = vpop.permute.xlu1 %4185 }
0x10a8   :  { %4629 = vperm.xlu1 %9700, %v7726_v0   ;;  %v4196_v12 = vpop.permute.xlu1 %4195 }
0x10ac   :  { %9702 = vset.pattern.permute.xlu1 %v12401_v27  ;;  %v11437_v46 = vpop.permute.xlu1 %4454 }
0x10b0   :  { %v11439_v21 = vpop.permute.xlu1 %4505 }
0x10b4   :  { %v11445_v45 = vpop.permute.xlu1 %4553 }
0x10b8   :  { %v11447_v55 = vpop.permute.xlu1 %4557 }
0x10db   :  { %v11449_v0 = vpop.permute.xlu1 %4469 }
0x1142   :  { %v8786_v24 = vpop.f32.mrb[46].mxu0 }
0x1143   :  { %v4294_v34 = vadd.f32 %v8786_v24, %v4166_v52  ;;  %v4288_v6 = vpop.f32.mrb[47].mxu0  ;;  %v7736_v52 = vld [vmem:[%s12393_s3 + $0x188] sm:$0xff]  ;;  %v7737_v24 = vld [vmem:[%s12393_s3 + $0x190] sm:$0xff] }
0x1144   :  { %v4289_v25 = vadd.f32 %v4288_v6, %v4161_v7  ;;  %v7735_v7 = vld [vmem:[%s12393_s3 + $0x180] sm:$0xff]  ;;  %4689 = vperm.xlu0 %9703, %v7736_v52   ;;  %v7738_v6 = vld [vmem:[%s12393_s3 + $0x198] sm:$0xff] }
0x1145   :  { %vm4328_vm11 = vcmp.ge.f32.partialorder %v4294_v34, 0.0  ;;  %v4336_v28 = vmul.f32 0.2, %v4294_v34  ;;  %4684 = vperm.xlu1 %9702, %v7735_v7  }
0x1146   :  { %vm4327_vm12 = vcmp.ge.f32.partialorder %v4289_v25, 0.0  ;;  %v4335_v9 = vmul.f32 0.2, %v4289_v25  ;;  %v8789_v61 = vpop.f32.mrb[48].mxu0 }
0x1147   :  { %v4344_v59 = vsel %vm4328_vm11, %v4294_v34, %v4336_v28  ;;  %v4304_v1 = vadd.f32 %v8789_v61, %v4176_v35  ;;  %v4298_v29 = vpop.f32.mrb[49].mxu0  ;;  %v7739_v35 = vld [vmem:[%s12393_s3 + $0x1a0] sm:$0xff]  ;;  %v7741_v34 = vld [vmem:[%s12393_s3 + $0x1b0] sm:$0xff] }
0x1148   :  { %v4343_v13 = vsel %vm4327_vm12, %v4289_v25, %v4335_v9  ;;  %v4299_v5 = vadd.f32 %v4298_v29, %v4171_v22  ;;  %v11463_v22 = vpop.permute.xlu1 %4513  ;;  %4704 = vperm.xlu0 %9703, %v7739_v35   ;;  %v7759_v28 = vld [vmem:[%s12395_s5 + $0x180] sm:$0xff]  ;;  %v7740_v9 = vld [vmem:[%s12393_s3 + $0x1a8] sm:$0xff]  ;;  %v7761_v61 = vld [vmem:[%s12395_s5 + $0x190] sm:$0xff] }
0x1149   :  { %v9368_v37 = vpack.c.bf16 %v4344_v59, %v4343_v13  ;;  %vm4330_vm13 = vcmp.ge.f32.partialorder %v4304_v1, 0.0  ;;  %v4338_v47 = vmul.f32 0.2, %v4304_v1  ;;  %4694 = vperm.xlu1 %9702, %v7737_v24   ;;  %v7742_v59 = vld [vmem:[%s12393_s3 + $0x1b8] sm:$0xff]  ;;  %v7763_v29 = vld [vmem:[%s12395_s5 + $0x1a0] sm:$0xff] }
0x114a   :  { %vm4329_vm14 = vcmp.ge.f32.partialorder %v4299_v5, 0.0  ;;  %v4337_v57 = vmul.f32 0.2, %v4299_v5  ;;  %v8792_v26 = vpop.f32.mrb[50].mxu0 }
0x114b   :  { %v4346_v58 = vsel %vm4330_vm13, %v4304_v1, %v4338_v47  ;;  %v4314_v40 = vadd.f32 %v8792_v26, %v4186_v10  ;;  %v4308_v39 = vpop.f32.mrb[51].mxu0  ;;  %9369 = vmatpush3.bf16.msra.mxu1 %v9368_v37  ;;  %v7760_v10 = vld [vmem:[%s12395_s5 + $0x188] sm:$0xff]  ;;  %v4358_v37 = vpop.permute.xlu0 %4357  ;;  %v7776_v47 = vld [vmem:[%s12397_s7 + $0x30] sm:$0xff] }
0x114c   :  { %v4345_v63 = vsel %vm4329_vm14, %v4299_v5, %v4337_v57  ;;  %v4309_v15 = vadd.f32 %v4308_v39, %v4181_v32  ;;  %9370 = vmatprep.subr.bf16.mxu1 %v9833_v41  ;;  %v11471_v25 = vpop.permute.xlu1 %4561  ;;  %4714 = vperm.xlu0 %9703, %v7741_v34   ;;  %v7765_v5 = vld [vmem:[%s12395_s5 + $0x1b0] sm:$0xff]  ;;  %v7762_v32 = vld [vmem:[%s12395_s5 + $0x198] sm:$0xff]  ;;  %v7764_v57 = vld [vmem:[%s12395_s5 + $0x1a8] sm:$0xff] }
0x114d   :  { %v9371_v53 = vpack.c.bf16 %v4346_v58, %v4345_v63  ;;  %vm4332_vm15 = vcmp.ge.f32.partialorder %v4314_v40, 0.0  ;;  %v4340_v56 = vmul.f32 0.2, %v4314_v40  ;;  %4699 = vperm.xlu1 %9702, %v7738_v6   ;;  %v11512_v58 = vld [vmem:[%s12391_s1 + $0x1c8] sm:$0xff] }
0x114e   :  { %vm4331_vm1 = vcmp.ge.f32.partialorder %v4309_v15, 0.0  ;;  %v4339_v60 = vmul.f32 0.2, %v4309_v15  ;;  %v8795_v62 = vpop.f32.mrb[52].mxu0 }
0x114f   :  { %v4348_v17 = vsel %vm4332_vm15, %v4314_v40, %v4340_v56  ;;  %v4324_v31 = vadd.f32 %v8795_v62, %v4196_v12  ;;  %v4318_v33 = vpop.f32.mrb[53].mxu0  ;;  %9372 = vmatpush3.bf16.msra.mxu1 %v9371_v53  ;;  %v7766_v40 = vld [vmem:[%s12395_s5 + $0x1b8] sm:$0xff]  ;;  %v11517_v39 = vpop.permute.xlu0 %4459  ;;  %v7778_v53 = vld [vmem:[%s12391_s1 + $0x1c0] sm:$0xff]  ;;  %v11532_v12 = vld [vmem:[%s12391_s1 + $0x1e8] sm:$0xff] }
0x1150   :  { %v4347_v19 = vsel %vm4331_vm1, %v4309_v15, %v4339_v60  ;;  %v4319_v51 = vadd.f32 %v4318_v33, %v4191_v23  ;;  %9373 = vmatprep.subr.bf16.mxu1 %v9833_v41  ;;  %4895 = vperm.xlu0 %9703, %v7759_v28   ;;  %v11485_v1 = vpop.permute.xlu1 %4565  ;;  %v11523_v15 = vld [vmem:[%s12391_s1 + $0x1d0] sm:$0xff] }
0x1151   :  { %v9374_v36 = vpack.c.bf16 %v4348_v17, %v4347_v19  ;;  %vm4334_vm3 = vcmp.ge.f32.partialorder %v4324_v31, 0.0  ;;  %v4342_v16 = vmul.f32 0.2, %v4324_v31  ;;  %4709 = vperm.xlu1 %9702, %v7740_v9  }
0x1152   :  { %vm4333_vm4 = vcmp.ge.f32.partialorder %v4319_v51, 0.0  ;;  %v4341_v18 = vmul.f32 0.2, %v4319_v51 }
0x1153   :  { %v4350_v48 = vsel %vm4334_vm3, %v4324_v31, %v4342_v16  ;;  %9375 = vmatpush3.bf16.msra.mxu1 %v9374_v36  ;;  %v4465_v56 = vpop.permute.xlu0 %4464 }
0x1154   :  { %v4349_v30 = vsel %vm4333_vm4, %v4319_v51, %v4341_v18  ;;  %9376 = vmatprep.subr.bf16.mxu1 %v9833_v41  ;;  %4905 = vperm.xlu0 %9703, %v7761_v61   ;;  %v11493_v13 = vpop.permute.xlu1 %4605  ;;  %v4536_v61 = vmul.f32 %v11439_v21, %v10013_v49 }
0x1155   :  { %v9377_v38 = vpack.c.bf16 %v4350_v48, %v4349_v30  ;;  %4719 = vperm.xlu1 %9702, %v7742_v59   ;;  %v4584_v59 = vmul.f32 %v11445_v45, %v10016_v50 }
0x1157   :  { %9378 = vmatpush3.bf16.msra.mxu1 %v9377_v38  ;;  %v4480_v62 = vpop.permute.xlu0 %4479 }
0x1158   :  { %4915 = vperm.xlu0 %9703, %v7763_v29   ;;  %v11507_v26 = vpop.permute.xlu1 %4474 }
0x1159   :  { %4900 = vperm.xlu1 %9702, %v7760_v10   ;;  %v4538_v10 = vmul.f32 %v11463_v22, %v10013_v49 }
0x115a   :  { %8813 = vmatmul.mubr.msk.f32.vlgmr.msra.gmra.mrb[52].mxu1 %vm315_vm0, %v7716_v14 }
0x115b   :  { %v11538_v17 = vpop.permute.xlu0 %4601 }
0x115c   :  { %4925 = vperm.xlu0 %9703, %v7765_v5   ;;  %v4522_v63 = vpop.permute.xlu1 %4521  ;;  %v4586_v5 = vmul.f32 %v11471_v25, %v10016_v50 }
0x115d   :  { %4910 = vperm.xlu1 %9702, %v7762_v32   ;;  %v4540_v32 = vmul.f32 %v4522_v63, %v10013_v49 }
0x115f   :  { %v11543_v36 = vpop.permute.xlu0 %4613 }
0x1160   :  { %5092 = vperm.xlu0 %9703, %v7776_v47   ;;  %v4526_v60 = vpop.permute.xlu1 %4525 }
0x1161   :  { %4920 = vperm.xlu1 %9702, %v7764_v57  }
0x1163   :  { %v4510_v18 = vpop.permute.xlu0 %4509 }
0x1164   :  { %5194 = vperm.xlu0 %9703, %v11512_v58   ;;  %v4574_v23 = vpop.permute.xlu1 %4573  ;;  %v4537_v47 = vmul.f32 %v4510_v18, %v10013_v49 }
0x1165   :  { %4930 = vperm.xlu1 %9702, %v7766_v40  }
0x1167   :  { %v4518_v52 = vpop.permute.xlu0 %4517 }
0x1168   :  { %5199 = vperm.xlu0 %9703, %v11523_v15   ;;  %v11540_v51 = vpop.permute.xlu1 %4609  ;;  %v4539_v22 = vmul.f32 %v4518_v52, %v10013_v49 }
0x1169   :  { %5189 = vperm.xlu1 %9702, %v7778_v53  }
0x116b   :  { %v4530_v35 = vpop.permute.xlu0 %4529 }
0x116c   :  { %5214 = vperm.xlu0 %9703, %v11532_v12   ;;  %v4485_v16 = vpop.permute.xlu1 %4484  ;;  %v4542_v25 = vmul.f32 %v4530_v35, %v10013_v49 }
0x116d   :  { %9704 = vset.pattern.permute.xlu1 %v9830_v3 }
0x116e   :  { %5240 = vperm.xlu1 %9704, %v7778_v53  }
0x116f   :  { %v4570_v9 = vpop.permute.xlu0 %4569 }
0x1170   :  { %9711 = vset.pattern.permute.xlu0 %v9829_v2  ;;  %v4490_v38 = vpop.permute.xlu1 %4489 }
0x1171   :  { %5336 = vperm.xlu0 %9711, %v7778_v53  }
0x1172   :  { %9705 = vset.pattern.permute.xlu1 %v9831_v4 }
0x1173   :  { %5288 = vperm.xlu1 %9705, %v7778_v53  }
0x1174   :  { %v4534_v7 = vpop.permute.xlu1 %4533 }
0x1175   :  { %v4543_v57 = vmul.f32 %v4534_v7, %v10013_v49 }
0x1177   :  { %5292 = vperm.xlu1 %9705, %v11512_v58  }
0x1178   :  { %v4578_v24 = vpop.permute.xlu1 %4577 }
0x1179   :  { %v4590_v52 = vmul.f32 %v4578_v24, %v10016_v50 }
0x117b   :  { %9706 = vset.pattern.permute.xlu1 %v12401_v27 }
0x117c   :  { %v4618_v21 = vpop.permute.xlu1 %4617 }
0x122d   :  { %v4429_v31 = vpop.f32.mrb[52].mxu1 }
0x122e   :  { %v4430_v33 = vadd.f32 %v4429_v31, %v4358_v37  ;;  %v8814_v19 = vpop.f32.mrb[53].mxu1  ;;  %v4541_v37 = vmul.f32 %v4526_v60, %v10013_v49 }
0x1230   :  { %9784 = vtanh.f32 %v4430_v33  ;;  %v4439_v28 = vrot.slane %v4430_v33, 1  ;;  %v4582_v33 = vpop.permute.xlu0 %4581 }
0x123a   :  { %v9785_v48 = vpop.eup %9784 }
0x123b   :  { %v4434_v30 = vmul.f32 2.0, %v9785_v48 }
0x123d   :  { %v4435_v14 = vmul.f32 1.442695, %v4434_v30  ;;  %v11547_v20 = vadd.f32 %v4434_v30, %v11294_v11  ;;  %v4585_v11 = vmul.f32 %v11447_v55, %v10016_v50  ;;  %v4589_v55 = vmul.f32 %v4574_v23, %v10016_v50 }
0x123f   :  { %9786 = vpow2.f32 %v4435_v14 }
0x1249   :  { %v9787_v34 = vpop.eup %9786 }
0x124a   :  { %v4437_v6 = vmul.f32 %v9787_v34, %v11050_v44  ;;  %v4587_v44 = vmul.f32 %v11485_v1, %v10016_v50  ;;  %v4588_v1 = vmul.f32 %v4570_v9, %v10016_v50 }
0x124c   :  { %v11556_v29 = vadd.f32 %v4439_v28, %v4437_v6 }
0x124e   :  { %v4495_v45 = vrot.slane %v11556_v29, %v9996_v43 }
0x1250   :  { %v4501_v40 = vmul.f32 %v4495_v45, %v4480_v62  ;;  %v4496_v63 = vmul.f32 %v4495_v45, %v11437_v46  ;;  %v4498_v53 = vmul.f32 %v4495_v45, %v4465_v56  ;;  %v4502_v31 = vmul.f32 %v4495_v45, %v4485_v16  ;;  %v4622_v56 = vpop.permute.xlu1 %4621 }
0x1251   :  { %v4497_v60 = vmul.f32 %v4495_v45, %v11517_v39  ;;  %v4503_v19 = vmul.f32 %v4495_v45, %v4490_v38  ;;  %v4499_v23 = vmul.f32 %v4495_v45, %v11449_v0  ;;  %v4500_v18 = vmul.f32 %v4495_v45, %v11507_v26 }
0x1252   :  { %v4549_v48 = vadd.f32 %v4541_v37, %v4501_v40  ;;  %v4544_v30 = vadd.f32 %v4536_v61, %v4496_v63  ;;  %v4546_v14 = vadd.f32 %v4538_v10, %v4498_v53  ;;  %v4591_v46 = vmul.f32 %v4582_v33, %v10016_v50 }
0x1253   :  { %v4545_v7 = vadd.f32 %v4537_v47, %v4497_v60  ;;  %v4547_v35 = vadd.f32 %v4539_v22, %v4499_v23  ;;  %v4548_v62 = vadd.f32 %v4540_v32, %v4500_v18  ;;  %v4551_v6 = vadd.f32 %v4543_v57, %v4503_v19  ;;  %v4626_v22 = vpop.permute.xlu0 %4625 }
0x1254   :  { %v4592_v16 = vadd.f32 %v4584_v59, %v4544_v30  ;;  %v4594_v34 = vadd.f32 %v4586_v5, %v4546_v14  ;;  %v4550_v39 = vadd.f32 %v4542_v25, %v4502_v31  ;;  %v4597_v9 = vadd.f32 %v4589_v55, %v4549_v48  ;;  %v7728_v30 = vld [vmem:[%s12392_s2 + $0x188] sm:$0xff]  ;;  %v7729_v14 = vld [vmem:[%s12392_s2 + $0x190] sm:$0xff] }
0x1255   :  { %v4593_v38 = vadd.f32 %v4585_v11, %v4545_v7  ;;  %v4595_v28 = vadd.f32 %v4587_v44, %v4547_v35  ;;  %v4596_v0 = vadd.f32 %v4588_v1, %v4548_v62  ;;  %v4599_v37 = vadd.f32 %v4591_v46, %v4551_v6  ;;  %v4630_v11 = vpop.permute.xlu1 %4629  ;;  %v7731_v7 = vld [vmem:[%s12392_s2 + $0x1a0] sm:$0xff]  ;;  %v7732_v35 = vld [vmem:[%s12392_s2 + $0x1a8] sm:$0xff]  ;;  %v7733_v62 = vld [vmem:[%s12392_s2 + $0x1b0] sm:$0xff] }
0x1256   :  { %v4632_v26 = vadd.f32 %v11538_v17, %v4592_v16  ;;  %v4634_v61 = vadd.f32 %v11540_v51, %v4594_v34  ;;  %v4598_v45 = vadd.f32 %v4590_v52, %v4550_v39  ;;  %v4637_v47 = vadd.f32 %v4622_v56, %v4597_v9  ;;  %v7730_v52 = vld [vmem:[%s12392_s2 + $0x198] sm:$0xff]  ;;  %v7751_v56 = vld [vmem:[%s12394_s4 + $0x180] sm:$0xff] }
0x1257   :  { %v4633_v24 = vadd.f32 %v11493_v13, %v4593_v38  ;;  %v4635_v10 = vadd.f32 %v11543_v36, %v4595_v28  ;;  %v4636_v5 = vadd.f32 %v4618_v21, %v4596_v0  ;;  %v4639_v51 = vadd.f32 %v4630_v11, %v4599_v37  ;;  %v7734_v46 = vld [vmem:[%s12392_s2 + $0x1b8] sm:$0xff]  ;;  %8859 = vmatprep.mubr.msk.f32.mxu1 %vm315_vm0, %v7751_v56  ;;  %v4690_v6 = vpop.permute.xlu0 %4689  ;;  %v7755_v56 = vld [vmem:[%s12394_s4 + $0x1a0] sm:$0xff] }
0x1258   :  { %vm4640_vm5 = vcmp.ge.f32.partialorder %v4632_v26, 0.0  ;;  %v4648_v32 = vmul.f32 0.2, %v4632_v26  ;;  %v4650_v59 = vmul.f32 0.2, %v4634_v61  ;;  %vm4642_vm6 = vcmp.ge.f32.partialorder %v4634_v61, 0.0 }
0x1259   :  { %vm4641_vm7 = vcmp.ge.f32.partialorder %v4633_v24, 0.0  ;;  %v4649_v44 = vmul.f32 0.2, %v4633_v24  ;;  %vm4643_vm8 = vcmp.ge.f32.partialorder %v4635_v10, 0.0  ;;  %v4638_v17 = vadd.f32 %v4626_v22, %v4598_v45  ;;  %v4685_v16 = vpop.permute.xlu1 %4684 }
0x125a   :  { %v4656_v55 = vsel %vm4640_vm5, %v4632_v26, %v4648_v32  ;;  %v4651_v57 = vmul.f32 0.2, %v4635_v10  ;;  %v4652_v13 = vmul.f32 0.2, %v4636_v5  ;;  %v4653_v25 = vmul.f32 0.2, %v4637_v47 }
0x125b   :  { %v4657_v36 = vsel %vm4641_vm7, %v4633_v24, %v4649_v44  ;;  %v4658_v1 = vsel %vm4642_vm6, %v4634_v61, %v4650_v59  ;;  %vm4644_vm9 = vcmp.ge.f32.partialorder %v4636_v5, 0.0  ;;  %vm4645_vm10 = vcmp.ge.f32.partialorder %v4637_v47, 0.0 }
0x125c   :  { %v9379_v40 = vpack.c.bf16 %v4657_v36, %v4656_v55  ;;  %v4659_v63 = vsel %vm4643_vm8, %v4635_v10, %v4651_v57  ;;  %v4654_v53 = vmul.f32 0.2, %v4638_v17  ;;  %v4655_v31 = vmul.f32 0.2, %v4639_v51 }
0x125d   :  { %v9383_v21 = vpack.c.bf16 %v4659_v63, %v4658_v1  ;;  %v4660_v33 = vsel %vm4644_vm9, %v4636_v5, %v4652_v13  ;;  %v4661_v60 = vsel %vm4645_vm10, %v4637_v47, %v4653_v25  ;;  %vm4646_vm11 = vcmp.ge.f32.partialorder %v4638_v17, 0.0  ;;  %v4695_v34 = vpop.permute.xlu1 %4694  ;;  %v4705_v47 = vpop.permute.xlu0 %4704 }
0x125e   :  { %9380 = vmatprep.subr.bf16.mxu0 %v9379_v40  ;;  %vm4647_vm12 = vcmp.ge.f32.partialorder %v4639_v51, 0.0  ;;  %v9387_v19 = vpack.c.bf16 %v4661_v60, %v4660_v33  ;;  %v4662_v23 = vsel %vm4646_vm11, %v4638_v17, %v4654_v53 }
0x125f   :  { %9382 = vmatpush3.bf16.msra.mxu0 %v9379_v40  ;;  %v4663_v18 = vsel %vm4647_vm12, %v4639_v51, %v4655_v31 }
0x1260   :  { %9384 = vmatprep.subr.bf16.mxu0 %v9383_v21  ;;  %v9391_v48 = vpack.c.bf16 %v4663_v18, %v4662_v23 }
0x1261   :  { %v4700_v39 = vpop.permute.xlu1 %4699  ;;  %v4715_v53 = vpop.permute.xlu0 %4714 }
0x1263   :  { %9386 = vmatpush3.bf16.msra.mxu0 %v9383_v21 }
0x1264   :  { %9388 = vmatprep.subr.bf16.mxu0 %v9387_v19 }
0x1265   :  { %v4710_v37 = vpop.permute.xlu1 %4709 }
0x1267   :  { %9390 = vmatpush3.bf16.msra.mxu0 %v9387_v19 }
0x1268   :  { %9392 = vmatprep.subr.bf16.mxu0 %v9391_v48 }
0x1269   :  { %v4720_v40 = vpop.permute.xlu1 %4719 }
0x126b   :  { %9394 = vmatpush3.bf16.msra.mxu0 %v9391_v48 }
0x126c   :  { %9411 = vmatprep.subr.bf16.mxu0 %v9833_v41 }
0x126e   :  { %8832 = vmatmul.mubr.msk.f32.vlgmr.msra.gmra.mrb[54].mxu0 %vm315_vm0, %v7728_v30 }
0x126f   :  { %8834 = vmatprep.mubr.msk.f32.mxu0 %vm315_vm0, %v7729_v14 }
0x1272   :  { %8835 = vmatmul.mubr.msk.f32.gmra.mrb[56].mxu0 %vm315_vm0, %v7730_v52 }
0x1273   :  { %8837 = vmatprep.mubr.msk.f32.mxu0 %vm315_vm0, %v7731_v7 }
0x1276   :  { %8838 = vmatmul.mubr.msk.f32.gmra.mrb[58].mxu0 %vm315_vm0, %v7732_v35  ;;  %v7752_v35 = vld [vmem:[%s12394_s4 + $0x188] sm:$0xff] }
0x1277   :  { %8840 = vmatprep.mubr.msk.f32.mxu0 %vm315_vm0, %v7733_v62  ;;  %v7753_v62 = vld [vmem:[%s12394_s4 + $0x190] sm:$0xff] }
0x127a   :  { %8841 = vmatmul.mubr.msk.f32.gmra.mrb[60].mxu0 %vm315_vm0, %v7734_v46  ;;  %v7754_v46 = vld [vmem:[%s12394_s4 + $0x198] sm:$0xff] }
0x127b   :  { %8887 = vmatprep.mubr.msk.f32.mxu0 %vm9834_vm2, %v9835_v42 }
0x1341   :  { %v8833_v38 = vpop.f32.mrb[54].mxu0 }
0x1342   :  { %v4818_v28 = vadd.f32 %v8833_v38, %v4690_v6  ;;  %v4812_v0 = vpop.f32.mrb[55].mxu0  ;;  %v7758_v6 = vld [vmem:[%s12394_s4 + $0x1b8] sm:$0xff]  ;;  %v7784_v38 = vld [vmem:[%s12391_s1 + $0x1f0] sm:$0xff] }
0x1343   :  { %v4813_v9 = vadd.f32 %v4812_v0, %v4685_v16  ;;  %v7756_v16 = vld [vmem:[%s12394_s4 + $0x1a8] sm:$0xff]  ;;  %v7785_v0 = vld [vmem:[%s12391_s1 + $0x1f8] sm:$0xff] }
0x1344   :  { %vm4852_vm13 = vcmp.ge.f32.partialorder %v4818_v28, 0.0  ;;  %v4860_v26 = vmul.f32 0.2, %v4818_v28 }
0x1345   :  { %vm4851_vm14 = vcmp.ge.f32.partialorder %v4813_v9, 0.0  ;;  %v4859_v61 = vmul.f32 0.2, %v4813_v9  ;;  %v8836_v24 = vpop.f32.mrb[56].mxu0 }
0x1346   :  { %v4828_v10 = vadd.f32 %v8836_v24, %v4700_v39  ;;  %v4822_v32 = vpop.f32.mrb[57].mxu0  ;;  %v4868_v45 = vsel %vm4852_vm13, %v4818_v28, %v4860_v26  ;;  %v7781_v39 = vld [vmem:[%s12391_s1 + $0x1d8] sm:$0xff]  ;;  %v7782_v28 = vld [vmem:[%s12391_s1 + $0x1e0] sm:$0xff] }
0x1347   :  { %v4823_v59 = vadd.f32 %v4822_v32, %v4695_v34  ;;  %v4867_v5 = vsel %vm4851_vm14, %v4813_v9, %v4859_v61  ;;  %v7757_v34 = vld [vmem:[%s12394_s4 + $0x1b0] sm:$0xff]  ;;  %5204 = vperm.xlu1 %9706, %v7781_v39   ;;  %5348 = vperm.xlu0 %9711, %v7781_v39  }
0x1348   :  { %vm4854_vm15 = vcmp.ge.f32.partialorder %v4828_v10, 0.0  ;;  %v4862_v22 = vmul.f32 0.2, %v4828_v10  ;;  %v9395_v11 = vpack.c.bf16 %v4868_v45, %v4867_v5 }
0x1349   :  { %vm4853_vm1 = vcmp.ge.f32.partialorder %v4823_v59, 0.0  ;;  %v4861_v44 = vmul.f32 0.2, %v4823_v59  ;;  %v8839_v55 = vpop.f32.mrb[58].mxu0 }
0x134a   :  { %v4838_v17 = vadd.f32 %v8839_v55, %v4710_v37  ;;  %v4832_v51 = vpop.f32.mrb[59].mxu0  ;;  %9396 = vmatprep.subr.bf16.mxu1 %v9395_v11  ;;  %v4870_v57 = vsel %vm4854_vm15, %v4828_v10, %v4862_v22 }
0x134b   :  { %v4833_v13 = vadd.f32 %v4832_v51, %v4705_v47  ;;  %9398 = vmatpush3.bf16.msra.mxu1 %v9395_v11  ;;  %v4869_v25 = vsel %vm4853_vm1, %v4823_v59, %v4861_v44  ;;  %9707 = vset.pattern.permute.xlu1 %v9830_v3 }
0x134c   :  { %vm4856_vm3 = vcmp.ge.f32.partialorder %v4838_v17, 0.0  ;;  %v4864_v36 = vmul.f32 0.2, %v4838_v17  ;;  %v9399_v1 = vpack.c.bf16 %v4870_v57, %v4869_v25  ;;  %9715 = vset.pattern.permute.xlu0 %v9830_v3  ;;  %5248 = vperm.xlu1 %9707, %v11523_v15  }
0x134d   :  { %vm4855_vm4 = vcmp.ge.f32.partialorder %v4833_v13, 0.0  ;;  %v4863_v63 = vmul.f32 0.2, %v4833_v13  ;;  %v8842_v21 = vpop.f32.mrb[60].mxu0  ;;  %5244 = vperm.xlu0 %9715, %v11512_v58  }
0x134e   :  { %v4848_v31 = vadd.f32 %v8842_v21, %v4720_v40  ;;  %v4842_v33 = vpop.f32.mrb[61].mxu0  ;;  %9400 = vmatprep.subr.bf16.mxu1 %v9399_v1  ;;  %v4872_v60 = vsel %vm4856_vm3, %v4838_v17, %v4864_v36 }
0x134f   :  { %v4843_v19 = vadd.f32 %v4842_v33, %v4715_v53  ;;  %9402 = vmatpush3.bf16.msra.mxu1 %v9399_v1  ;;  %v4871_v23 = vsel %vm4855_vm4, %v4833_v13, %v4863_v63 }
0x1350   :  { %vm4858_vm5 = vcmp.ge.f32.partialorder %v4848_v31, 0.0  ;;  %v4866_v18 = vmul.f32 0.2, %v4848_v31  ;;  %v9403_v48 = vpack.c.bf16 %v4872_v60, %v4871_v23  ;;  %9708 = vset.pattern.permute.xlu1 %v9831_v4 }
0x1351   :  { %vm4857_vm6 = vcmp.ge.f32.partialorder %v4843_v19, 0.0  ;;  %v4865_v30 = vmul.f32 0.2, %v4843_v19  ;;  %5252 = vperm.xlu0 %9715, %v7781_v39   ;;  %5296 = vperm.xlu1 %9708, %v11523_v15  }
0x1352   :  { %9404 = vmatprep.subr.bf16.mxu1 %v9403_v48  ;;  %v4874_v14 = vsel %vm4858_vm5, %v4848_v31, %v4866_v18 }
0x1353   :  { %9406 = vmatpush3.bf16.msra.mxu1 %v9403_v48  ;;  %v4873_v52 = vsel %vm4857_vm6, %v4843_v19, %v4865_v30 }
0x1354   :  { %v9407_v7 = vpack.c.bf16 %v4874_v14, %v4873_v52 }
0x1355   :  { %5264 = vperm.xlu0 %9715, %v7784_v38   ;;  %5300 = vperm.xlu1 %9708, %v7781_v39   ;;  %v7786_v39 = vld [vmem:[%s12392_s2 + $0x1c0] sm:$0xff] }
0x1356   :  { %9408 = vmatprep.subr.bf16.mxu1 %v9407_v7 }
0x1357   :  { %9410 = vmatpush3.bf16.msra.mxu1 %v9407_v7 }
0x1359   :  { %9717 = vset.pattern.permute.xlu0 %v9831_v4  ;;  %9709 = vset.pattern.permute.xlu1 %v9829_v2 }
0x135a   :  { %8860 = vmatmul.mubr.msk.f32.vlgmr.msra.gmra.mrb[54].mxu1 %vm315_vm0, %v7752_v35  ;;  %5304 = vperm.xlu0 %9717, %v7782_v28  }
0x135b   :  { %8862 = vmatprep.mubr.msk.f32.mxu1 %vm315_vm0, %v7753_v62  ;;  %5340 = vperm.xlu1 %9709, %v11512_v58   ;;  %v4901_v58 = vpop.permute.xlu1 %4900 }
0x135e   :  { %8863 = vmatmul.mubr.msk.f32.gmra.mrb[56].mxu1 %vm315_vm0, %v7754_v46  ;;  %5316 = vperm.xlu0 %9717, %v7785_v0  }
0x135f   :  { %8865 = vmatprep.mubr.msk.f32.mxu1 %vm315_vm0, %v7755_v56  ;;  %9710 = vset.pattern.permute.xlu1 %v12401_v27  ;;  %v4911_v9 = vpop.permute.xlu1 %4910 }
0x1360   :  { %5209 = vperm.xlu1 %9710, %v7782_v28  }
0x1362   :  { %8866 = vmatmul.mubr.msk.f32.gmra.mrb[58].mxu1 %vm315_vm0, %v7756_v16  ;;  %9721 = vset.pattern.permute.xlu0 %v9829_v2  ;;  %v7775_v16 = vld [vmem:[%s12396_s6 + $0x30] sm:$0xff] }
0x1363   :  { %8868 = vmatprep.mubr.msk.f32.mxu1 %vm315_vm0, %v7757_v34  ;;  %5360 = vperm.xlu0 %9721, %v7784_v38  }
0x1364   :  { %9712 = vset.pattern.permute.xlu1 %v9830_v3 }
0x1365   :  { %5256 = vperm.xlu1 %9712, %v7782_v28  }
0x1366   :  { %8869 = vmatmul.mubr.msk.f32.gmra.mrb[60].mxu1 %vm315_vm0, %v7758_v6 }
0x1367   :  { %9723 = vset.pattern.permute.xlu0 %v12401_v27  ;;  %8906 = vmatprep.mubr.msk.f32.mxu1 %vm315_vm0, %v7786_v39 }
0x1369   :  { %5260 = vperm.xlu1 %9712, %v11532_v12  }
0x136d   :  { %9713 = vset.pattern.permute.xlu1 %v9831_v4 }
0x136e   :  { %5308 = vperm.xlu1 %9713, %v11532_v12  }
0x1372   :  { %9714 = vset.pattern.permute.xlu1 %v9829_v2 }
0x1373   :  { %5344 = vperm.xlu1 %9714, %v11523_v15   ;;  %v4896_v15 = vpop.permute.xlu0 %4895 }
0x1377   :  { %9716 = vset.pattern.permute.xlu1 %v12401_v27  ;;  %v4906_v61 = vpop.permute.xlu0 %4905 }
0x1378   :  { %5219 = vperm.xlu1 %9716, %v7784_v38  }
0x137b   :  { %v4916_v55 = vpop.permute.xlu0 %4915 }
0x137c   :  { %5224 = vperm.xlu1 %9716, %v7785_v0  }
0x137f   :  { %v4926_v19 = vpop.permute.xlu0 %4925 }
0x1380   :  { %9718 = vset.pattern.permute.xlu1 %v9830_v3 }
0x1381   :  { %5268 = vperm.xlu1 %9718, %v7785_v0  }
0x1385   :  { %9719 = vset.pattern.permute.xlu1 %v9831_v4 }
0x1386   :  { %5312 = vperm.xlu1 %9719, %v7784_v38  }
0x138a   :  { %9720 = vset.pattern.permute.xlu1 %v9829_v2 }
0x138b   :  { %5352 = vperm.xlu1 %9720, %v7782_v28  }
0x138f   :  { %5356 = vperm.xlu1 %9720, %v11532_v12   ;;  %v4921_v12 = vpop.permute.xlu1 %4920 }
0x1393   :  { %5364 = vperm.xlu1 %9720, %v7785_v0   ;;  %v4931_v31 = vpop.permute.xlu1 %4930 }
0x1397   :  { %9722 = vset.pattern.permute.xlu1 %v12401_v27  ;;  %v11690_v34 = vpop.permute.xlu1 %5189 }
0x139b   :  { %v11692_v6 = vpop.permute.xlu1 %5240 }
0x139f   :  { %v11698_v38 = vpop.permute.xlu1 %5288 }
0x13a3   :  { %v11700_v28 = vpop.permute.xlu1 %5292 }
0x13c6   :  { %v11702_v0 = vpop.permute.xlu1 %5204 }
0x142d   :  { %v8861_v26 = vpop.f32.mrb[54].mxu1 }
0x142e   :  { %v5029_v24 = vadd.f32 %v8861_v26, %v4901_v58  ;;  %v5023_v10 = vpop.f32.mrb[55].mxu1  ;;  %v7795_v58 = vld [vmem:[%s12393_s3 + $0x1c8] sm:$0xff]  ;;  %v7796_v26 = vld [vmem:[%s12393_s3 + $0x1d0] sm:$0xff] }
0x142f   :  { %v5024_v32 = vadd.f32 %v5023_v10, %v4896_v15  ;;  %v7794_v15 = vld [vmem:[%s12393_s3 + $0x1c0] sm:$0xff]  ;;  %5424 = vperm.xlu0 %9723, %v7795_v58   ;;  %v7797_v10 = vld [vmem:[%s12393_s3 + $0x1d8] sm:$0xff] }
0x1430   :  { %vm5063_vm7 = vcmp.ge.f32.partialorder %v5029_v24, 0.0  ;;  %v5071_v45 = vmul.f32 0.2, %v5029_v24  ;;  %5419 = vperm.xlu1 %9722, %v7794_v15  }
0x1431   :  { %vm5062_vm8 = vcmp.ge.f32.partialorder %v5024_v32, 0.0  ;;  %v5070_v37 = vmul.f32 0.2, %v5024_v32  ;;  %v8864_v59 = vpop.f32.mrb[56].mxu1 }
0x1432   :  { %v5079_v5 = vsel %vm5063_vm7, %v5029_v24, %v5071_v45  ;;  %v5039_v47 = vadd.f32 %v8864_v59, %v4911_v9  ;;  %v5033_v22 = vpop.f32.mrb[57].mxu1  ;;  %v7798_v9 = vld [vmem:[%s12393_s3 + $0x1e0] sm:$0xff]  ;;  %v7800_v24 = vld [vmem:[%s12393_s3 + $0x1f0] sm:$0xff] }
0x1433   :  { %v5078_v11 = vsel %vm5062_vm8, %v5024_v32, %v5070_v37  ;;  %v5034_v44 = vadd.f32 %v5033_v22, %v4906_v61  ;;  %v11716_v61 = vpop.permute.xlu1 %5248  ;;  %5439 = vperm.xlu0 %9723, %v7798_v9   ;;  %v7818_v45 = vld [vmem:[%s12395_s5 + $0x1c0] sm:$0xff]  ;;  %v7799_v37 = vld [vmem:[%s12393_s3 + $0x1e8] sm:$0xff]  ;;  %v7820_v59 = vld [vmem:[%s12395_s5 + $0x1d0] sm:$0xff] }
0x1434   :  { %v9412_v17 = vpack.c.bf16 %v5079_v5, %v5078_v11  ;;  %vm5065_vm9 = vcmp.ge.f32.partialorder %v5039_v47, 0.0  ;;  %v5073_v51 = vmul.f32 0.2, %v5039_v47  ;;  %5429 = vperm.xlu1 %9722, %v7796_v26   ;;  %v7801_v5 = vld [vmem:[%s12393_s3 + $0x1f8] sm:$0xff]  ;;  %v7822_v22 = vld [vmem:[%s12395_s5 + $0x1e0] sm:$0xff] }
0x1435   :  { %vm5064_vm10 = vcmp.ge.f32.partialorder %v5034_v44, 0.0  ;;  %v5072_v57 = vmul.f32 0.2, %v5034_v44  ;;  %v8867_v13 = vpop.f32.mrb[58].mxu1 }
0x1436   :  { %v5081_v25 = vsel %vm5065_vm9, %v5039_v47, %v5073_v51  ;;  %v5049_v36 = vadd.f32 %v8867_v13, %v4921_v12  ;;  %v5043_v1 = vpop.f32.mrb[59].mxu1  ;;  %9413 = vmatpush3.bf16.msra.mxu0 %v9412_v17  ;;  %v7819_v12 = vld [vmem:[%s12395_s5 + $0x1c8] sm:$0xff]  ;;  %v5093_v17 = vpop.permute.xlu0 %5092  ;;  %v7835_v51 = vld [vmem:[%s12397_s7 + $0x38] sm:$0xff] }
0x1437   :  { %v5080_v40 = vsel %vm5064_vm10, %v5034_v44, %v5072_v57  ;;  %v5044_v63 = vadd.f32 %v5043_v1, %v4916_v55  ;;  %9414 = vmatprep.subr.bf16.mxu0 %v9833_v41  ;;  %v11724_v32 = vpop.permute.xlu1 %5296  ;;  %5449 = vperm.xlu0 %9723, %v7800_v24   ;;  %v7824_v44 = vld [vmem:[%s12395_s5 + $0x1f0] sm:$0xff]  ;;  %v7821_v55 = vld [vmem:[%s12395_s5 + $0x1d8] sm:$0xff]  ;;  %v7823_v57 = vld [vmem:[%s12395_s5 + $0x1e8] sm:$0xff] }
0x1438   :  { %v9415_v21 = vpack.c.bf16 %v5081_v25, %v5080_v40  ;;  %vm5067_vm11 = vcmp.ge.f32.partialorder %v5049_v36, 0.0  ;;  %v5075_v53 = vmul.f32 0.2, %v5049_v36  ;;  %5434 = vperm.xlu1 %9722, %v7797_v10   ;;  %v11765_v25 = vld [vmem:[%s12391_s1 + $0x208] sm:$0xff] }
0x1439   :  { %vm5066_vm12 = vcmp.ge.f32.partialorder %v5044_v63, 0.0  ;;  %v5074_v33 = vmul.f32 0.2, %v5044_v63  ;;  %v8870_v60 = vpop.f32.mrb[60].mxu1 }
0x143a   :  { %v5083_v23 = vsel %vm5067_vm11, %v5049_v36, %v5075_v53  ;;  %v5059_v18 = vadd.f32 %v8870_v60, %v4931_v31  ;;  %v5053_v48 = vpop.f32.mrb[61].mxu1  ;;  %9416 = vmatpush3.bf16.msra.mxu0 %v9415_v21  ;;  %v7825_v36 = vld [vmem:[%s12395_s5 + $0x1f8] sm:$0xff]  ;;  %v11770_v1 = vpop.permute.xlu0 %5194  ;;  %v7837_v21 = vld [vmem:[%s12391_s1 + $0x200] sm:$0xff]  ;;  %v11785_v31 = vld [vmem:[%s12391_s1 + $0x228] sm:$0xff] }
0x143b   :  { %v5082_v30 = vsel %vm5066_vm12, %v5044_v63, %v5074_v33  ;;  %v5054_v14 = vadd.f32 %v5053_v48, %v4926_v19  ;;  %9417 = vmatprep.subr.bf16.mxu0 %v9833_v41  ;;  %5630 = vperm.xlu0 %9723, %v7818_v45   ;;  %v11738_v47 = vpop.permute.xlu1 %5300  ;;  %v11776_v63 = vld [vmem:[%s12391_s1 + $0x210] sm:$0xff] }
0x143c   :  { %v9418_v52 = vpack.c.bf16 %v5083_v23, %v5082_v30  ;;  %vm5069_vm13 = vcmp.ge.f32.partialorder %v5059_v18, 0.0  ;;  %v5077_v7 = vmul.f32 0.2, %v5059_v18  ;;  %5444 = vperm.xlu1 %9722, %v7799_v37  }
0x143d   :  { %vm5068_vm14 = vcmp.ge.f32.partialorder %v5054_v14, 0.0  ;;  %v5076_v35 = vmul.f32 0.2, %v5054_v14 }
0x143e   :  { %v5085_v62 = vsel %vm5069_vm13, %v5059_v18, %v5077_v7  ;;  %9419 = vmatpush3.bf16.msra.mxu0 %v9418_v52  ;;  %v5200_v53 = vpop.permute.xlu0 %5199 }
0x143f   :  { %v5084_v46 = vsel %vm5068_vm14, %v5054_v14, %v5076_v35  ;;  %9420 = vmatprep.subr.bf16.mxu0 %v9833_v41  ;;  %5640 = vperm.xlu0 %9723, %v7820_v59   ;;  %v11746_v11 = vpop.permute.xlu1 %5340  ;;  %v5271_v59 = vmul.f32 %v11692_v6, %v10013_v49 }
0x1440   :  { %v9421_v56 = vpack.c.bf16 %v5085_v62, %v5084_v46  ;;  %5454 = vperm.xlu1 %9722, %v7801_v5   ;;  %v5319_v5 = vmul.f32 %v11698_v38, %v10016_v50 }
0x1442   :  { %9422 = vmatpush3.bf16.msra.mxu0 %v9421_v56  ;;  %v5215_v60 = vpop.permute.xlu0 %5214 }
0x1443   :  { %5650 = vperm.xlu0 %9723, %v7822_v22   ;;  %v11760_v13 = vpop.permute.xlu1 %5209 }
0x1444   :  { %5635 = vperm.xlu1 %9722, %v7819_v12   ;;  %v5273_v12 = vmul.f32 %v11716_v61, %v10013_v49 }
0x1445   :  { %8888 = vmatmul.mubr.msk.f32.vlgmr.msra.gmra.mrb[62].mxu0 %vm315_vm0, %v7775_v16 }
0x1446   :  { %v11791_v30 = vpop.permute.xlu0 %5336 }
0x1447   :  { %5660 = vperm.xlu0 %9723, %v7824_v44   ;;  %v5257_v40 = vpop.permute.xlu1 %5256  ;;  %v5321_v44 = vmul.f32 %v11724_v32, %v10016_v50 }
0x1448   :  { %5645 = vperm.xlu1 %9722, %v7821_v55   ;;  %v5275_v55 = vmul.f32 %v5257_v40, %v10013_v49 }
0x144a   :  { %v11796_v52 = vpop.permute.xlu0 %5348 }
0x144b   :  { %5827 = vperm.xlu0 %9723, %v7835_v51   ;;  %v5261_v33 = vpop.permute.xlu1 %5260 }
0x144c   :  { %5655 = vperm.xlu1 %9722, %v7823_v57  }
0x144e   :  { %v5245_v62 = vpop.permute.xlu0 %5244 }
0x144f   :  { %5929 = vperm.xlu0 %9723, %v11765_v25   ;;  %v5309_v19 = vpop.permute.xlu1 %5308  ;;  %v5272_v51 = vmul.f32 %v5245_v62, %v10013_v49 }
0x1450   :  { %5665 = vperm.xlu1 %9722, %v7825_v36  }
0x1452   :  { %v5253_v58 = vpop.permute.xlu0 %5252 }
0x1453   :  { %5934 = vperm.xlu0 %9723, %v11776_v63   ;;  %v11793_v14 = vpop.permute.xlu1 %5344  ;;  %v5274_v61 = vmul.f32 %v5253_v58, %v10013_v49 }
0x1454   :  { %5924 = vperm.xlu1 %9722, %v7837_v21  }
0x1456   :  { %v5265_v9 = vpop.permute.xlu0 %5264 }
0x1457   :  { %5949 = vperm.xlu0 %9723, %v11785_v31   ;;  %v5220_v7 = vpop.permute.xlu1 %5219  ;;  %v5277_v32 = vmul.f32 %v5265_v9, %v10013_v49 }
0x1458   :  { %9724 = vset.pattern.permute.xlu1 %v9830_v3 }
0x1459   :  { %5975 = vperm.xlu1 %9724, %v7837_v21  }
0x145a   :  { %v5305_v37 = vpop.permute.xlu0 %5304 }
0x145b   :  { %9731 = vset.pattern.permute.xlu0 %v9829_v2  ;;  %v5225_v39 = vpop.permute.xlu1 %5224 }
0x145c   :  { %6071 = vperm.xlu0 %9731, %v7837_v21  }
0x145d   :  { %9725 = vset.pattern.permute.xlu1 %v9831_v4 }
0x145e   :  { %6023 = vperm.xlu1 %9725, %v7837_v21  }
0x145f   :  { %v5269_v15 = vpop.permute.xlu1 %5268 }
0x1460   :  { %v5278_v57 = vmul.f32 %v5269_v15, %v10013_v49 }
0x1462   :  { %6027 = vperm.xlu1 %9725, %v11765_v25  }
0x1463   :  { %v5313_v24 = vpop.permute.xlu1 %5312 }
0x1466   :  { %9726 = vset.pattern.permute.xlu1 %v12401_v27 }
0x1467   :  { %v5353_v6 = vpop.permute.xlu1 %5352 }
0x1518   :  { %v5164_v23 = vpop.f32.mrb[62].mxu0 }
0x1519   :  { %v5165_v18 = vadd.f32 %v5164_v23, %v5093_v17  ;;  %v8889_v48 = vpop.f32.mrb[63].mxu0  ;;  %v5276_v17 = vmul.f32 %v5261_v33, %v10013_v49 }
0x151b   :  { %9788 = vtanh.f32 %v5165_v18 }
0x1525   :  { %v9789_v35 = vpop.eup %9788 }
0x1526   :  { %v5169_v46 = vmul.f32 2.0, %v9789_v35 }
0x1528   :  { %v5170_v56 = vmul.f32 1.442695, %v5169_v46  ;;  %v11800_v16 = vadd.f32 %v5169_v46, %v11547_v20  ;;  %v5320_v20 = vmul.f32 %v11700_v28, %v10016_v50  ;;  %v5324_v28 = vmul.f32 %v5309_v19, %v10016_v50 }
0x152a   :  { %9790 = vpow2.f32 %v5170_v56 }
0x1534   :  { %v9791_v26 = vpop.eup %9790 }
0x1535   :  { %v5173_v10 = vrot.slane %v9791_v26, 7  ;;  %v5325_v26 = vmul.f32 %v5313_v24, %v10016_v50 }
0x1537   :  { %v5175_v45 = vmul.f32 %v5173_v10, %v11303_v8  ;;  %v5322_v8 = vmul.f32 %v11738_v47, %v10016_v50  ;;  %v5323_v47 = vmul.f32 %v5305_v37, %v10016_v50 }
0x1539   :  { %v11809_v22 = vadd.f32 %v5175_v45, %v5165_v18  ;;  %v5317_v18 = vpop.permute.xlu0 %5316 }
0x153b   :  { %v5230_v38 = vrot.slane %v11809_v22, %v10280_v54 }
0x153d   :  { %v5235_v36 = vmul.f32 %v5230_v38, %v11760_v13  ;;  %v5236_v40 = vmul.f32 %v5230_v38, %v5215_v60  ;;  %v5231_v21 = vmul.f32 %v5230_v38, %v11690_v34  ;;  %v5233_v23 = vmul.f32 %v5230_v38, %v5200_v53  ;;  %v5357_v60 = vpop.permute.xlu1 %5356 }
0x153e   :  { %v5237_v33 = vmul.f32 %v5230_v38, %v5220_v7  ;;  %v5232_v19 = vmul.f32 %v5230_v38, %v11770_v1  ;;  %v5238_v48 = vmul.f32 %v5230_v38, %v5225_v39  ;;  %v5234_v35 = vmul.f32 %v5230_v38, %v11702_v0 }
0x153f   :  { %v5283_v62 = vadd.f32 %v5275_v55, %v5235_v36  ;;  %v5284_v46 = vadd.f32 %v5276_v17, %v5236_v40  ;;  %v5279_v56 = vadd.f32 %v5271_v59, %v5231_v21  ;;  %v5281_v58 = vadd.f32 %v5273_v12, %v5233_v23 }
0x1540   :  { %v5280_v15 = vadd.f32 %v5272_v51, %v5232_v19  ;;  %v5282_v9 = vadd.f32 %v5274_v61, %v5234_v35  ;;  %v5326_v13 = vmul.f32 %v5317_v18, %v10016_v50  ;;  %v5286_v10 = vadd.f32 %v5278_v57, %v5238_v48  ;;  %v5361_v61 = vpop.permute.xlu0 %5360 }
0x1541   :  { %v5327_v34 = vadd.f32 %v5319_v5, %v5279_v56  ;;  %v5329_v53 = vadd.f32 %v5321_v44, %v5281_v58  ;;  %v5285_v7 = vadd.f32 %v5277_v32, %v5237_v33  ;;  %v5331_v39 = vadd.f32 %v5323_v47, %v5283_v62  ;;  %v7788_v56 = vld [vmem:[%s12392_s2 + $0x1d0] sm:$0xff]  ;;  %v7789_v58 = vld [vmem:[%s12392_s2 + $0x1d8] sm:$0xff] }
0x1542   :  { %v5328_v45 = vadd.f32 %v5320_v20, %v5280_v15  ;;  %v5330_v1 = vadd.f32 %v5322_v8, %v5282_v9  ;;  %v5332_v37 = vadd.f32 %v5324_v28, %v5284_v46  ;;  %v5334_v38 = vadd.f32 %v5326_v13, %v5286_v10  ;;  %v5365_v20 = vpop.permute.xlu1 %5364  ;;  %v7787_v46 = vld [vmem:[%s12392_s2 + $0x1c8] sm:$0xff]  ;;  %v7790_v15 = vld [vmem:[%s12392_s2 + $0x1e0] sm:$0xff]  ;;  %v7793_v13 = vld [vmem:[%s12392_s2 + $0x1f8] sm:$0xff] }
0x1543   :  { %v5367_v0 = vadd.f32 %v11791_v30, %v5327_v34  ;;  %v5369_v59 = vadd.f32 %v11793_v14, %v5329_v53  ;;  %v5333_v17 = vadd.f32 %v5325_v26, %v5285_v7  ;;  %v5371_v44 = vadd.f32 %v5353_v6, %v5331_v39  ;;  %v7791_v9 = vld [vmem:[%s12392_s2 + $0x1e8] sm:$0xff]  ;;  %v7792_v26 = vld [vmem:[%s12392_s2 + $0x1f0] sm:$0xff] }
0x1544   :  { %v5368_v12 = vadd.f32 %v11746_v11, %v5328_v45  ;;  %v5370_v55 = vadd.f32 %v11796_v52, %v5330_v1  ;;  %v5372_v51 = vadd.f32 %v5357_v60, %v5332_v37  ;;  %v5374_v14 = vadd.f32 %v5365_v20, %v5334_v38  ;;  %v7810_v60 = vld [vmem:[%s12394_s4 + $0x1c0] sm:$0xff]  ;;  %v5425_v10 = vpop.permute.xlu0 %5424 }
0x1545   :  { %vm5375_vm15 = vcmp.ge.f32.partialorder %v5367_v0, 0.0  ;;  %v5383_v24 = vmul.f32 0.2, %v5367_v0  ;;  %v5385_v5 = vmul.f32 0.2, %v5369_v59  ;;  %vm5377_vm1 = vcmp.ge.f32.partialorder %v5369_v59, 0.0  ;;  %8934 = vmatprep.mubr.msk.f32.mxu0 %vm315_vm0, %v7810_v60 }
0x1546   :  { %vm5376_vm3 = vcmp.ge.f32.partialorder %v5368_v12, 0.0  ;;  %v5384_v8 = vmul.f32 0.2, %v5368_v12  ;;  %vm5378_vm4 = vcmp.ge.f32.partialorder %v5370_v55, 0.0  ;;  %v5373_v30 = vadd.f32 %v5361_v61, %v5333_v17  ;;  %v5420_v34 = vpop.permute.xlu1 %5419  ;;  %v7814_v60 = vld [vmem:[%s12394_s4 + $0x1e0] sm:$0xff] }
0x1547   :  { %v5391_v28 = vsel %vm5375_vm15, %v5367_v0, %v5383_v24  ;;  %v5386_v57 = vmul.f32 0.2, %v5370_v55  ;;  %v5387_v11 = vmul.f32 0.2, %v5371_v44  ;;  %v5388_v32 = vmul.f32 0.2, %v5372_v51 }
0x1548   :  { %v5392_v52 = vsel %vm5376_vm3, %v5368_v12, %v5384_v8  ;;  %v5393_v47 = vsel %vm5377_vm1, %v5369_v59, %v5385_v5  ;;  %vm5379_vm5 = vcmp.ge.f32.partialorder %v5371_v44, 0.0  ;;  %vm5380_vm6 = vcmp.ge.f32.partialorder %v5372_v51, 0.0 }
0x1549   :  { %v9423_v36 = vpack.c.bf16 %v5392_v52, %v5391_v28  ;;  %v5394_v40 = vsel %vm5378_vm4, %v5370_v55, %v5386_v57  ;;  %v5389_v21 = vmul.f32 0.2, %v5373_v30  ;;  %v5390_v23 = vmul.f32 0.2, %v5374_v14 }
0x154a   :  { %v9427_v6 = vpack.c.bf16 %v5394_v40, %v5393_v47  ;;  %v5395_v18 = vsel %vm5379_vm5, %v5371_v44, %v5387_v11  ;;  %v5396_v33 = vsel %vm5380_vm6, %v5372_v51, %v5388_v32  ;;  %vm5381_vm7 = vcmp.ge.f32.partialorder %v5373_v30, 0.0  ;;  %v5430_v53 = vpop.permute.xlu1 %5429  ;;  %v5440_v51 = vpop.permute.xlu0 %5439 }
0x154b   :  { %9424 = vmatprep.subr.bf16.mxu1 %v9423_v36  ;;  %vm5382_vm8 = vcmp.ge.f32.partialorder %v5374_v14, 0.0  ;;  %v9431_v19 = vpack.c.bf16 %v5396_v33, %v5395_v18  ;;  %v5397_v48 = vsel %vm5381_vm7, %v5373_v30, %v5389_v21 }
0x154c   :  { %9426 = vmatpush3.bf16.msra.mxu1 %v9423_v36  ;;  %v5398_v35 = vsel %vm5382_vm8, %v5374_v14, %v5390_v23 }
0x154d   :  { %9428 = vmatprep.subr.bf16.mxu1 %v9427_v6  ;;  %v9435_v62 = vpack.c.bf16 %v5398_v35, %v5397_v48 }
0x154e   :  { %v5435_v7 = vpop.permute.xlu1 %5434  ;;  %v5450_v21 = vpop.permute.xlu0 %5449 }
0x1550   :  { %9430 = vmatpush3.bf16.msra.mxu1 %v9427_v6 }
0x1551   :  { %9432 = vmatprep.subr.bf16.mxu1 %v9431_v19 }
0x1552   :  { %v5445_v17 = vpop.permute.xlu1 %5444 }
0x1554   :  { %9434 = vmatpush3.bf16.msra.mxu1 %v9431_v19 }
0x1555   :  { %9436 = vmatprep.subr.bf16.mxu1 %v9435_v62 }
0x1556   :  { %v5455_v36 = vpop.permute.xlu1 %5454 }
0x1558   :  { %9438 = vmatpush3.bf16.msra.mxu1 %v9435_v62 }
0x1559   :  { %9455 = vmatprep.subr.bf16.mxu1 %v9833_v41 }
0x155b   :  { %8907 = vmatmul.mubr.msk.f32.vlgmr.msra.gmra.mrb[62].mxu1 %vm315_vm0, %v7787_v46 }
0x155c   :  { %8909 = vmatprep.mubr.msk.f32.mxu1 %vm315_vm0, %v7788_v56 }
0x155f   :  { %8910 = vmatmul.mubr.msk.f32.gmra.mrb[64].mxu1 %vm315_vm0, %v7789_v58 }
0x1560   :  { %8912 = vmatprep.mubr.msk.f32.mxu1 %vm315_vm0, %v7790_v15 }
0x1563   :  { %8913 = vmatmul.mubr.msk.f32.gmra.mrb[66].mxu1 %vm315_vm0, %v7791_v9  ;;  %v7811_v9 = vld [vmem:[%s12394_s4 + $0x1c8] sm:$0xff] }
0x1564   :  { %8915 = vmatprep.mubr.msk.f32.mxu1 %vm315_vm0, %v7792_v26  ;;  %v7812_v26 = vld [vmem:[%s12394_s4 + $0x1d0] sm:$0xff] }
0x1567   :  { %8916 = vmatmul.mubr.msk.f32.gmra.mrb[68].mxu1 %vm315_vm0, %v7793_v13  ;;  %v7813_v13 = vld [vmem:[%s12394_s4 + $0x1d8] sm:$0xff] }
0x1568   :  { %8962 = vmatprep.mubr.msk.f32.mxu1 %vm9834_vm2, %v9835_v42 }
0x162e   :  { %v8908_v45 = vpop.f32.mrb[62].mxu1 }
0x162f   :  { %v5553_v1 = vadd.f32 %v8908_v45, %v5425_v10  ;;  %v5547_v39 = vpop.f32.mrb[63].mxu1  ;;  %v7817_v10 = vld [vmem:[%s12394_s4 + $0x1f8] sm:$0xff]  ;;  %v7843_v45 = vld [vmem:[%s12391_s1 + $0x230] sm:$0xff] }
0x1630   :  { %v5548_v37 = vadd.f32 %v5547_v39, %v5420_v34  ;;  %v7815_v34 = vld [vmem:[%s12394_s4 + $0x1e8] sm:$0xff]  ;;  %v7844_v39 = vld [vmem:[%s12391_s1 + $0x238] sm:$0xff] }
0x1631   :  { %vm5587_vm9 = vcmp.ge.f32.partialorder %v5553_v1, 0.0  ;;  %v5595_v0 = vmul.f32 0.2, %v5553_v1 }
0x1632   :  { %vm5586_vm10 = vcmp.ge.f32.partialorder %v5548_v37, 0.0  ;;  %v5594_v59 = vmul.f32 0.2, %v5548_v37  ;;  %v8911_v12 = vpop.f32.mrb[64].mxu1 }
0x1633   :  { %v5563_v55 = vadd.f32 %v8911_v12, %v5435_v7  ;;  %v5557_v24 = vpop.f32.mrb[65].mxu1  ;;  %v5603_v38 = vsel %vm5587_vm9, %v5553_v1, %v5595_v0  ;;  %v7840_v7 = vld [vmem:[%s12391_s1 + $0x218] sm:$0xff]  ;;  %v7841_v1 = vld [vmem:[%s12391_s1 + $0x220] sm:$0xff] }
0x1634   :  { %v5558_v5 = vadd.f32 %v5557_v24, %v5430_v53  ;;  %v5602_v44 = vsel %vm5586_vm10, %v5548_v37, %v5594_v59  ;;  %v7816_v53 = vld [vmem:[%s12394_s4 + $0x1f0] sm:$0xff]  ;;  %5939 = vperm.xlu1 %9726, %v7840_v7   ;;  %6083 = vperm.xlu0 %9731, %v7840_v7  }
0x1635   :  { %vm5589_vm11 = vcmp.ge.f32.partialorder %v5563_v55, 0.0  ;;  %v5597_v61 = vmul.f32 0.2, %v5563_v55  ;;  %v9439_v20 = vpack.c.bf16 %v5603_v38, %v5602_v44 }
0x1636   :  { %vm5588_vm12 = vcmp.ge.f32.partialorder %v5558_v5, 0.0  ;;  %v5596_v8 = vmul.f32 0.2, %v5558_v5  ;;  %v8914_v28 = vpop.f32.mrb[66].mxu1 }
0x1637   :  { %v5573_v30 = vadd.f32 %v8914_v28, %v5445_v17  ;;  %v5567_v14 = vpop.f32.mrb[67].mxu1  ;;  %9440 = vmatprep.subr.bf16.mxu0 %v9439_v20  ;;  %v5605_v57 = vsel %vm5589_vm11, %v5563_v55, %v5597_v61 }
0x1638   :  { %v5568_v11 = vadd.f32 %v5567_v14, %v5440_v51  ;;  %9442 = vmatpush3.bf16.msra.mxu0 %v9439_v20  ;;  %v5604_v32 = vsel %vm5588_vm12, %v5558_v5, %v5596_v8  ;;  %9727 = vset.pattern.permute.xlu1 %v9830_v3 }
0x1639   :  { %vm5591_vm13 = vcmp.ge.f32.partialorder %v5573_v30, 0.0  ;;  %v5599_v52 = vmul.f32 0.2, %v5573_v30  ;;  %v9443_v47 = vpack.c.bf16 %v5605_v57, %v5604_v32  ;;  %9735 = vset.pattern.permute.xlu0 %v9830_v3  ;;  %5983 = vperm.xlu1 %9727, %v11776_v63  }
0x163a   :  { %vm5590_vm14 = vcmp.ge.f32.partialorder %v5568_v11, 0.0  ;;  %v5598_v40 = vmul.f32 0.2, %v5568_v11  ;;  %v8917_v6 = vpop.f32.mrb[68].mxu1  ;;  %5979 = vperm.xlu0 %9735, %v11765_v25  }
0x163b   :  { %v5583_v23 = vadd.f32 %v8917_v6, %v5455_v36  ;;  %v5577_v18 = vpop.f32.mrb[69].mxu1  ;;  %9444 = vmatprep.subr.bf16.mxu0 %v9443_v47  ;;  %v5607_v33 = vsel %vm5591_vm13, %v5573_v30, %v5599_v52 }
0x163c   :  { %v5578_v19 = vadd.f32 %v5577_v18, %v5450_v21  ;;  %9446 = vmatpush3.bf16.msra.mxu0 %v9443_v47  ;;  %v5606_v48 = vsel %vm5590_vm14, %v5568_v11, %v5598_v40 }
0x163d   :  { %vm5593_vm15 = vcmp.ge.f32.partialorder %v5583_v23, 0.0  ;;  %v5601_v35 = vmul.f32 0.2, %v5583_v23  ;;  %v9447_v62 = vpack.c.bf16 %v5607_v33, %v5606_v48  ;;  %9728 = vset.pattern.permute.xlu1 %v9831_v4 }
0x163e   :  { %vm5592_vm1 = vcmp.ge.f32.partialorder %v5578_v19, 0.0  ;;  %v5600_v46 = vmul.f32 0.2, %v5578_v19  ;;  %5987 = vperm.xlu0 %9735, %v7840_v7   ;;  %6031 = vperm.xlu1 %9728, %v11776_v63  }
0x163f   :  { %9448 = vmatprep.subr.bf16.mxu0 %v9447_v62  ;;  %v5609_v56 = vsel %vm5593_vm15, %v5583_v23, %v5601_v35 }
0x1640   :  { %9450 = vmatpush3.bf16.msra.mxu0 %v9447_v62  ;;  %v5608_v58 = vsel %vm5592_vm1, %v5578_v19, %v5600_v46 }
0x1641   :  { %v9451_v15 = vpack.c.bf16 %v5609_v56, %v5608_v58 }
0x1642   :  { %5999 = vperm.xlu0 %9735, %v7843_v45   ;;  %6035 = vperm.xlu1 %9728, %v7840_v7   ;;  %v7845_v7 = vld [vmem:[%s12392_s2 + $0x200] sm:$0xff] }
0x1643   :  { %9452 = vmatprep.subr.bf16.mxu0 %v9451_v15 }
0x1644   :  { %9454 = vmatpush3.bf16.msra.mxu0 %v9451_v15 }
0x1646   :  { %9737 = vset.pattern.permute.xlu0 %v9831_v4  ;;  %9729 = vset.pattern.permute.xlu1 %v9829_v2 }
0x1647   :  { %8935 = vmatmul.mubr.msk.f32.vlgmr.msra.gmra.mrb[64].mxu0 %vm315_vm0, %v7811_v9  ;;  %6039 = vperm.xlu0 %9737, %v7841_v1  }
0x1648   :  { %8937 = vmatprep.mubr.msk.f32.mxu0 %vm315_vm0, %v7812_v26  ;;  %6075 = vperm.xlu1 %9729, %v11765_v25   ;;  %v5636_v25 = vpop.permute.xlu1 %5635 }
0x164b   :  { %8938 = vmatmul.mubr.msk.f32.gmra.mrb[66].mxu0 %vm315_vm0, %v7813_v13  ;;  %6051 = vperm.xlu0 %9737, %v7844_v39  }
0x164c   :  { %8940 = vmatprep.mubr.msk.f32.mxu0 %vm315_vm0, %v7814_v60  ;;  %9730 = vset.pattern.permute.xlu1 %v12401_v27  ;;  %v5646_v37 = vpop.permute.xlu1 %5645 }
0x164d   :  { %5944 = vperm.xlu1 %9730, %v7841_v1  }
0x164f   :  { %8941 = vmatmul.mubr.msk.f32.gmra.mrb[68].mxu0 %vm315_vm0, %v7815_v34  ;;  %9741 = vset.pattern.permute.xlu0 %v9829_v2  ;;  %v7834_v34 = vld [vmem:[%s12396_s6 + $0x38] sm:$0xff] }
0x1650   :  { %8943 = vmatprep.mubr.msk.f32.mxu0 %vm315_vm0, %v7816_v53  ;;  %6095 = vperm.xlu0 %9741, %v7843_v45  }
0x1651   :  { %9732 = vset.pattern.permute.xlu1 %v9830_v3 }
0x1652   :  { %5991 = vperm.xlu1 %9732, %v7841_v1  }
0x1653   :  { %8944 = vmatmul.mubr.msk.f32.gmra.mrb[70].mxu0 %vm315_vm0, %v7817_v10 }
0x1654   :  { %9743 = vset.pattern.permute.xlu0 %v12401_v27  ;;  %8981 = vmatprep.mubr.msk.f32.mxu0 %vm315_vm0, %v7845_v7 }
0x1656   :  { %5995 = vperm.xlu1 %9732, %v11785_v31  }
0x165a   :  { %9733 = vset.pattern.permute.xlu1 %v9831_v4 }
0x165b   :  { %6043 = vperm.xlu1 %9733, %v11785_v31  }
0x165f   :  { %9734 = vset.pattern.permute.xlu1 %v9829_v2 }
0x1660   :  { %6079 = vperm.xlu1 %9734, %v11776_v63   ;;  %v5631_v63 = vpop.permute.xlu0 %5630 }
0x1664   :  { %9736 = vset.pattern.permute.xlu1 %v12401_v27  ;;  %v5641_v59 = vpop.permute.xlu0 %5640 }
0x1665   :  { %5954 = vperm.xlu1 %9736, %v7843_v45  }
0x1668   :  { %v5651_v28 = vpop.permute.xlu0 %5650 }
0x1669   :  { %5959 = vperm.xlu1 %9736, %v7844_v39  }
0x166c   :  { %v5661_v19 = vpop.permute.xlu0 %5660 }
0x166d   :  { %9738 = vset.pattern.permute.xlu1 %v9830_v3 }
0x166e   :  { %6003 = vperm.xlu1 %9738, %v7844_v39  }
0x1672   :  { %9739 = vset.pattern.permute.xlu1 %v9831_v4 }
0x1673   :  { %6047 = vperm.xlu1 %9739, %v7843_v45  }
0x1677   :  { %9740 = vset.pattern.permute.xlu1 %v9829_v2 }
0x1678   :  { %6087 = vperm.xlu1 %9740, %v7841_v1  }
0x167c   :  { %6091 = vperm.xlu1 %9740, %v11785_v31   ;;  %v5656_v31 = vpop.permute.xlu1 %5655 }
0x1680   :  { %6099 = vperm.xlu1 %9740, %v7844_v39   ;;  %v5666_v23 = vpop.permute.xlu1 %5665 }
0x1684   :  { %9742 = vset.pattern.permute.xlu1 %v12401_v27  ;;  %v11943_v53 = vpop.permute.xlu1 %5924 }
0x1688   :  { %v11945_v10 = vpop.permute.xlu1 %5975 }
0x168c   :  { %v11951_v45 = vpop.permute.xlu1 %6023 }
0x1690   :  { %v11953_v1 = vpop.permute.xlu1 %6027 }
0x16b3   :  { %v11955_v39 = vpop.permute.xlu1 %5939 }
0x171a   :  { %v8936_v0 = vpop.f32.mrb[64].mxu0 }
0x171b   :  { %v5764_v12 = vadd.f32 %v8936_v0, %v5636_v25  ;;  %v5758_v55 = vpop.f32.mrb[65].mxu0  ;;  %v7854_v25 = vld [vmem:[%s12393_s3 + $0x208] sm:$0xff]  ;;  %v7855_v0 = vld [vmem:[%s12393_s3 + $0x210] sm:$0xff] }
0x171c   :  { %v5759_v24 = vadd.f32 %v5758_v55, %v5631_v63  ;;  %v7853_v63 = vld [vmem:[%s12393_s3 + $0x200] sm:$0xff]  ;;  %6159 = vperm.xlu0 %9743, %v7854_v25   ;;  %v7856_v55 = vld [vmem:[%s12393_s3 + $0x218] sm:$0xff] }
0x171d   :  { %vm5798_vm3 = vcmp.ge.f32.partialorder %v5764_v12, 0.0  ;;  %v5806_v38 = vmul.f32 0.2, %v5764_v12  ;;  %6154 = vperm.xlu1 %9742, %v7853_v63  }
0x171e   :  { %vm5797_vm4 = vcmp.ge.f32.partialorder %v5759_v24, 0.0  ;;  %v5805_v17 = vmul.f32 0.2, %v5759_v24  ;;  %v8939_v5 = vpop.f32.mrb[66].mxu0 }
0x171f   :  { %v5814_v44 = vsel %vm5798_vm3, %v5764_v12, %v5806_v38  ;;  %v5774_v51 = vadd.f32 %v8939_v5, %v5646_v37  ;;  %v5768_v61 = vpop.f32.mrb[67].mxu0  ;;  %v7857_v37 = vld [vmem:[%s12393_s3 + $0x220] sm:$0xff]  ;;  %v7859_v12 = vld [vmem:[%s12393_s3 + $0x230] sm:$0xff] }
0x1720   :  { %v5813_v20 = vsel %vm5797_vm4, %v5759_v24, %v5805_v17  ;;  %v5769_v8 = vadd.f32 %v5768_v61, %v5641_v59  ;;  %v11969_v59 = vpop.permute.xlu1 %5983  ;;  %6174 = vperm.xlu0 %9743, %v7857_v37   ;;  %v7877_v38 = vld [vmem:[%s12395_s5 + $0x200] sm:$0xff]  ;;  %v7858_v17 = vld [vmem:[%s12393_s3 + $0x228] sm:$0xff]  ;;  %v7879_v5 = vld [vmem:[%s12395_s5 + $0x210] sm:$0xff] }
0x1721   :  { %v9456_v30 = vpack.c.bf16 %v5814_v44, %v5813_v20  ;;  %vm5800_vm5 = vcmp.ge.f32.partialorder %v5774_v51, 0.0  ;;  %v5808_v14 = vmul.f32 0.2, %v5774_v51  ;;  %6164 = vperm.xlu1 %9742, %v7855_v0   ;;  %v7860_v44 = vld [vmem:[%s12393_s3 + $0x238] sm:$0xff]  ;;  %v7881_v61 = vld [vmem:[%s12395_s5 + $0x220] sm:$0xff] }
0x1722   :  { %vm5799_vm6 = vcmp.ge.f32.partialorder %v5769_v8, 0.0  ;;  %v5807_v57 = vmul.f32 0.2, %v5769_v8  ;;  %v8942_v11 = vpop.f32.mrb[68].mxu0 }
0x1723   :  { %v5816_v32 = vsel %vm5800_vm5, %v5774_v51, %v5808_v14  ;;  %v5784_v52 = vadd.f32 %v8942_v11, %v5656_v31  ;;  %v5778_v47 = vpop.f32.mrb[69].mxu0  ;;  %9457 = vmatpush3.bf16.msra.mxu1 %v9456_v30  ;;  %v7878_v31 = vld [vmem:[%s12395_s5 + $0x208] sm:$0xff]  ;;  %v5828_v30 = vpop.permute.xlu0 %5827  ;;  %v7894_v14 = vld [vmem:[%s12397_s7 + $0x40] sm:$0xff] }
0x1724   :  { %v5815_v36 = vsel %vm5799_vm6, %v5769_v8, %v5807_v57  ;;  %v5779_v40 = vadd.f32 %v5778_v47, %v5651_v28  ;;  %9458 = vmatprep.subr.bf16.mxu1 %v9833_v41  ;;  %v11977_v24 = vpop.permute.xlu1 %6031  ;;  %6184 = vperm.xlu0 %9743, %v7859_v12   ;;  %v7883_v8 = vld [vmem:[%s12395_s5 + $0x230] sm:$0xff]  ;;  %v7880_v28 = vld [vmem:[%s12395_s5 + $0x218] sm:$0xff]  ;;  %v7882_v57 = vld [vmem:[%s12395_s5 + $0x228] sm:$0xff] }
0x1725   :  { %v9459_v6 = vpack.c.bf16 %v5816_v32, %v5815_v36  ;;  %vm5802_vm7 = vcmp.ge.f32.partialorder %v5784_v52, 0.0  ;;  %v5810_v21 = vmul.f32 0.2, %v5784_v52  ;;  %6169 = vperm.xlu1 %9742, %v7856_v55   ;;  %v12018_v32 = vld [vmem:[%s12391_s1 + $0x248] sm:$0xff] }
0x1726   :  { %vm5801_vm8 = vcmp.ge.f32.partialorder %v5779_v40, 0.0  ;;  %v5809_v18 = vmul.f32 0.2, %v5779_v40  ;;  %v8945_v33 = vpop.f32.mrb[70].mxu0 }
0x1727   :  { %v5818_v48 = vsel %vm5802_vm7, %v5784_v52, %v5810_v21  ;;  %v5794_v35 = vadd.f32 %v8945_v33, %v5666_v23  ;;  %v5788_v62 = vpop.f32.mrb[71].mxu0  ;;  %9460 = vmatpush3.bf16.msra.mxu1 %v9459_v6  ;;  %v7884_v52 = vld [vmem:[%s12395_s5 + $0x238] sm:$0xff]  ;;  %v12023_v47 = vpop.permute.xlu0 %5929  ;;  %v7896_v6 = vld [vmem:[%s12391_s1 + $0x240] sm:$0xff]  ;;  %v12038_v23 = vld [vmem:[%s12391_s1 + $0x268] sm:$0xff] }
0x1728   :  { %v5817_v46 = vsel %vm5801_vm8, %v5779_v40, %v5809_v18  ;;  %v5789_v56 = vadd.f32 %v5788_v62, %v5661_v19  ;;  %9461 = vmatprep.subr.bf16.mxu1 %v9833_v41  ;;  %6365 = vperm.xlu0 %9743, %v7877_v38   ;;  %v11991_v51 = vpop.permute.xlu1 %6035  ;;  %v12029_v40 = vld [vmem:[%s12391_s1 + $0x250] sm:$0xff] }
0x1729   :  { %v9462_v58 = vpack.c.bf16 %v5818_v48, %v5817_v46  ;;  %vm5804_vm9 = vcmp.ge.f32.partialorder %v5794_v35, 0.0  ;;  %v5812_v15 = vmul.f32 0.2, %v5794_v35  ;;  %6179 = vperm.xlu1 %9742, %v7858_v17  }
0x172a   :  { %vm5803_vm10 = vcmp.ge.f32.partialorder %v5789_v56, 0.0  ;;  %v5811_v9 = vmul.f32 0.2, %v5789_v56 }
0x172b   :  { %v5820_v26 = vsel %vm5804_vm9, %v5794_v35, %v5812_v15  ;;  %9463 = vmatpush3.bf16.msra.mxu1 %v9462_v58  ;;  %v5935_v21 = vpop.permute.xlu0 %5934 }
0x172c   :  { %v5819_v13 = vsel %vm5803_vm10, %v5789_v56, %v5811_v9  ;;  %9464 = vmatprep.subr.bf16.mxu1 %v9833_v41  ;;  %6375 = vperm.xlu0 %9743, %v7879_v5   ;;  %v11999_v20 = vpop.permute.xlu1 %6075  ;;  %v6006_v5 = vmul.f32 %v11945_v10, %v10013_v49 }
0x172d   :  { %v9465_v60 = vpack.c.bf16 %v5820_v26, %v5819_v13  ;;  %6189 = vperm.xlu1 %9742, %v7860_v44   ;;  %v6054_v44 = vmul.f32 %v11951_v45, %v10016_v50 }
0x172f   :  { %9466 = vmatpush3.bf16.msra.mxu1 %v9465_v60  ;;  %v5950_v33 = vpop.permute.xlu0 %5949 }
0x1730   :  { %6385 = vperm.xlu0 %9743, %v7881_v61   ;;  %v12013_v11 = vpop.permute.xlu1 %5944 }
0x1731   :  { %6370 = vperm.xlu1 %9742, %v7878_v31   ;;  %v6008_v31 = vmul.f32 %v11969_v59, %v10013_v49 }
0x1732   :  { %8963 = vmatmul.mubr.msk.f32.vlgmr.msra.gmra.mrb[70].mxu1 %vm315_vm0, %v7834_v34 }
0x1733   :  { %v12044_v48 = vpop.permute.xlu0 %6071 }
0x1734   :  { %6395 = vperm.xlu0 %9743, %v7883_v8   ;;  %v5992_v36 = vpop.permute.xlu1 %5991  ;;  %v6056_v8 = vmul.f32 %v11977_v24, %v10016_v50 }
0x1735   :  { %6380 = vperm.xlu1 %9742, %v7880_v28   ;;  %v6010_v28 = vmul.f32 %v5992_v36, %v10013_v49 }
0x1737   :  { %v12049_v58 = vpop.permute.xlu0 %6083 }
0x1738   :  { %6562 = vperm.xlu0 %9743, %v7894_v14   ;;  %v5996_v18 = vpop.permute.xlu1 %5995 }
0x1739   :  { %6390 = vperm.xlu1 %9742, %v7882_v57  }
0x173b   :  { %v5980_v9 = vpop.permute.xlu0 %5979 }
0x173c   :  { %6664 = vperm.xlu0 %9743, %v12018_v32   ;;  %v6044_v19 = vpop.permute.xlu1 %6043  ;;  %v6007_v14 = vmul.f32 %v5980_v9, %v10013_v49 }
0x173d   :  { %6400 = vperm.xlu1 %9742, %v7884_v52  }
0x173f   :  { %v5988_v25 = vpop.permute.xlu0 %5987 }
0x1740   :  { %6669 = vperm.xlu0 %9743, %v12029_v40   ;;  %v12046_v56 = vpop.permute.xlu1 %6079  ;;  %v6009_v59 = vmul.f32 %v5988_v25, %v10013_v49 }
0x1741   :  { %6659 = vperm.xlu1 %9742, %v7896_v6  }
0x1743   :  { %v6000_v37 = vpop.permute.xlu0 %5999 }
0x1744   :  { %6684 = vperm.xlu0 %9743, %v12038_v23   ;;  %v5955_v15 = vpop.permute.xlu1 %5954  ;;  %v6012_v24 = vmul.f32 %v6000_v37, %v10013_v49 }
0x1745   :  { %9744 = vset.pattern.permute.xlu1 %v9830_v3 }
0x1746   :  { %6710 = vperm.xlu1 %9744, %v7896_v6  }
0x1747   :  { %v6040_v17 = vpop.permute.xlu0 %6039 }
0x1748   :  { %9751 = vset.pattern.permute.xlu0 %v9829_v2  ;;  %v5960_v60 = vpop.permute.xlu1 %5959 }
0x1749   :  { %6806 = vperm.xlu0 %9751, %v7896_v6  }
0x174a   :  { %9745 = vset.pattern.permute.xlu1 %v9831_v4 }
0x174b   :  { %6758 = vperm.xlu1 %9745, %v7896_v6  }
0x174c   :  { %v6004_v63 = vpop.permute.xlu1 %6003 }
0x174d   :  { %v6013_v57 = vmul.f32 %v6004_v63, %v10013_v49 }
0x174f   :  { %6762 = vperm.xlu1 %9745, %v12018_v32  }
0x1750   :  { %v6048_v0 = vpop.permute.xlu1 %6047 }
0x1753   :  { %9746 = vset.pattern.permute.xlu1 %v12401_v27 }
0x1754   :  { %v6088_v10 = vpop.permute.xlu1 %6087 }
0x1805   :  { %v5899_v35 = vpop.f32.mrb[70].mxu1 }
0x1806   :  { %v5900_v62 = vadd.f32 %v5899_v35, %v5828_v30  ;;  %v8964_v46 = vpop.f32.mrb[71].mxu1  ;;  %v6011_v30 = vmul.f32 %v5996_v18, %v10013_v49 }
0x1808   :  { %9792 = vtanh.f32 %v5900_v62  ;;  %v5909_v38 = vrot.slane %v5900_v62, 1 }
0x1812   :  { %v9793_v26 = vpop.eup %9792 }
0x1813   :  { %v5904_v13 = vmul.f32 2.0, %v9793_v26 }
0x1815   :  { %v5905_v34 = vmul.f32 1.442695, %v5904_v13  ;;  %v12053_v7 = vadd.f32 %v5904_v13, %v11800_v16  ;;  %v6055_v16 = vmul.f32 %v11953_v1, %v10016_v50  ;;  %v6059_v1 = vmul.f32 %v6044_v19, %v10016_v50 }
0x1817   :  { %9794 = vpow2.f32 %v5905_v34  ;;  %v6060_v34 = vmul.f32 %v6048_v0, %v10016_v50 }
0x1821   :  { %v9795_v12 = vpop.eup %9794 }
0x1822   :  { %v5907_v55 = vmul.f32 %v9795_v12, %v11556_v29  ;;  %v6057_v29 = vmul.f32 %v11991_v51, %v10016_v50  ;;  %v6058_v51 = vmul.f32 %v6040_v17, %v10016_v50 }
0x1824   :  { %v12062_v61 = vadd.f32 %v5909_v38, %v5907_v55 }
0x1826   :  { %v5965_v45 = vrot.slane %v12062_v61, %v9996_v43  ;;  %v6052_v43 = vpop.permute.xlu0 %6051 }
0x1828   :  { %v5971_v52 = vmul.f32 %v5965_v45, %v5950_v33  ;;  %v5966_v36 = vmul.f32 %v5965_v45, %v11943_v53  ;;  %v5968_v6 = vmul.f32 %v5965_v45, %v5935_v21  ;;  %v5972_v35 = vmul.f32 %v5965_v45, %v5955_v15  ;;  %v6092_v21 = vpop.permute.xlu1 %6091 }
0x1829   :  { %v5967_v18 = vmul.f32 %v5965_v45, %v12023_v47  ;;  %v5973_v62 = vmul.f32 %v5965_v45, %v5960_v60  ;;  %v5969_v19 = vmul.f32 %v5965_v45, %v11955_v39  ;;  %v5970_v46 = vmul.f32 %v5965_v45, %v12013_v11 }
0x182a   :  { %v6019_v9 = vadd.f32 %v6011_v30, %v5971_v52  ;;  %v6014_v26 = vadd.f32 %v6006_v5, %v5966_v36  ;;  %v6016_v13 = vadd.f32 %v6008_v31, %v5968_v6  ;;  %v6061_v53 = vmul.f32 %v6052_v43, %v10016_v50 }
0x182b   :  { %v6015_v25 = vadd.f32 %v6007_v14, %v5967_v18  ;;  %v6017_v63 = vadd.f32 %v6009_v59, %v5969_v19  ;;  %v6018_v33 = vadd.f32 %v6010_v28, %v5970_v46  ;;  %v6021_v12 = vadd.f32 %v6013_v57, %v5973_v62  ;;  %v6096_v14 = vpop.permute.xlu0 %6095 }
0x182c   :  { %v6062_v15 = vadd.f32 %v6054_v44, %v6014_v26  ;;  %v6064_v37 = vadd.f32 %v6056_v8, %v6016_v13  ;;  %v6020_v47 = vadd.f32 %v6012_v24, %v5972_v35  ;;  %v6067_v38 = vadd.f32 %v6059_v1, %v6019_v9  ;;  %v7846_v9 = vld [vmem:[%s12392_s2 + $0x208] sm:$0xff]  ;;  %v7847_v26 = vld [vmem:[%s12392_s2 + $0x210] sm:$0xff]  ;;  %v7848_v13 = vld [vmem:[%s12392_s2 + $0x218] sm:$0xff] }
0x182d   :  { %v6063_v60 = vadd.f32 %v6055_v16, %v6015_v25  ;;  %v6065_v55 = vadd.f32 %v6057_v29, %v6017_v63  ;;  %v6066_v39 = vadd.f32 %v6058_v51, %v6018_v33  ;;  %v6069_v45 = vadd.f32 %v6061_v53, %v6021_v12  ;;  %v6100_v16 = vpop.permute.xlu1 %6099  ;;  %v7850_v25 = vld [vmem:[%s12392_s2 + $0x228] sm:$0xff]  ;;  %v7851_v63 = vld [vmem:[%s12392_s2 + $0x230] sm:$0xff]  ;;  %v7852_v33 = vld [vmem:[%s12392_s2 + $0x238] sm:$0xff] }
0x182e   :  { %v6102_v11 = vadd.f32 %v12044_v48, %v6062_v15  ;;  %v6104_v17 = vadd.f32 %v12046_v56, %v6064_v37  ;;  %v6068_v28 = vadd.f32 %v6060_v34, %v6020_v47  ;;  %v6107_v30 = vadd.f32 %v6092_v21, %v6067_v38  ;;  %v7849_v34 = vld [vmem:[%s12392_s2 + $0x220] sm:$0xff] }
0x182f   :  { %v6103_v0 = vadd.f32 %v11999_v20, %v6063_v60  ;;  %v6105_v5 = vadd.f32 %v12049_v58, %v6065_v55  ;;  %v6106_v8 = vadd.f32 %v6088_v10, %v6066_v39  ;;  %v6109_v56 = vadd.f32 %v6100_v16, %v6069_v45  ;;  %v7869_v53 = vld [vmem:[%s12394_s4 + $0x200] sm:$0xff]  ;;  %v6160_v37 = vpop.permute.xlu0 %6159 }
0x1830   :  { %vm6110_vm11 = vcmp.ge.f32.partialorder %v6102_v11, 0.0  ;;  %v6118_v31 = vmul.f32 0.2, %v6102_v11  ;;  %v6120_v44 = vmul.f32 0.2, %v6104_v17  ;;  %vm6112_vm12 = vcmp.ge.f32.partialorder %v6104_v17, 0.0  ;;  %9009 = vmatprep.mubr.msk.f32.mxu1 %vm315_vm0, %v7869_v53 }
0x1831   :  { %vm6111_vm13 = vcmp.ge.f32.partialorder %v6103_v0, 0.0  ;;  %v6119_v29 = vmul.f32 0.2, %v6103_v0  ;;  %vm6113_vm14 = vcmp.ge.f32.partialorder %v6105_v5, 0.0  ;;  %v6108_v48 = vadd.f32 %v6096_v14, %v6068_v28  ;;  %v6155_v21 = vpop.permute.xlu1 %6154  ;;  %v7874_v53 = vld [vmem:[%s12394_s4 + $0x228] sm:$0xff] }
0x1832   :  { %v6126_v1 = vsel %vm6110_vm11, %v6102_v11, %v6118_v31  ;;  %v6121_v59 = vmul.f32 0.2, %v6105_v5  ;;  %v6122_v20 = vmul.f32 0.2, %v6106_v8  ;;  %v6123_v57 = vmul.f32 0.2, %v6107_v30 }
0x1833   :  { %v6127_v58 = vsel %vm6111_vm13, %v6103_v0, %v6119_v29  ;;  %v6128_v24 = vsel %vm6112_vm12, %v6104_v17, %v6120_v44  ;;  %vm6114_vm15 = vcmp.ge.f32.partialorder %v6106_v8, 0.0  ;;  %vm6115_vm1 = vcmp.ge.f32.partialorder %v6107_v30, 0.0 }
0x1834   :  { %v9467_v51 = vpack.c.bf16 %v6127_v58, %v6126_v1  ;;  %v6129_v52 = vsel %vm6113_vm14, %v6105_v5, %v6121_v59  ;;  %v6124_v36 = vmul.f32 0.2, %v6108_v48  ;;  %v6125_v6 = vmul.f32 0.2, %v6109_v56 }
0x1835   :  { %v9471_v10 = vpack.c.bf16 %v6129_v52, %v6128_v24  ;;  %v6130_v35 = vsel %vm6114_vm15, %v6106_v8, %v6122_v20  ;;  %v6131_v43 = vsel %vm6115_vm1, %v6107_v30, %v6123_v57  ;;  %vm6116_vm3 = vcmp.ge.f32.partialorder %v6108_v48, 0.0  ;;  %v6165_v15 = vpop.permute.xlu1 %6164  ;;  %v6175_v8 = vpop.permute.xlu0 %6174 }
0x1836   :  { %9468 = vmatprep.subr.bf16.mxu0 %v9467_v51  ;;  %vm6117_vm4 = vcmp.ge.f32.partialorder %v6109_v56, 0.0  ;;  %v9475_v18 = vpack.c.bf16 %v6131_v43, %v6130_v35  ;;  %v6132_v62 = vsel %vm6116_vm3, %v6108_v48, %v6124_v36 }
0x1837   :  { %9470 = vmatpush3.bf16.msra.mxu0 %v9467_v51  ;;  %v6133_v19 = vsel %vm6117_vm4, %v6109_v56, %v6125_v6 }
0x1838   :  { %9472 = vmatprep.subr.bf16.mxu0 %v9471_v10  ;;  %v9479_v46 = vpack.c.bf16 %v6133_v19, %v6132_v62 }
0x1839   :  { %v6170_v12 = vpop.permute.xlu1 %6169 }
0x183b   :  { %9474 = vmatpush3.bf16.msra.mxu0 %v9471_v10  ;;  %v6185_v10 = vpop.permute.xlu0 %6184 }
0x183c   :  { %9476 = vmatprep.subr.bf16.mxu0 %v9475_v18 }
0x183d   :  { %v6180_v28 = vpop.permute.xlu1 %6179 }
0x183f   :  { %9478 = vmatpush3.bf16.msra.mxu0 %v9475_v18 }
0x1840   :  { %9480 = vmatprep.subr.bf16.mxu0 %v9479_v46 }
0x1841   :  { %v6190_v24 = vpop.permute.xlu1 %6189 }
0x1843   :  { %9482 = vmatpush3.bf16.msra.mxu0 %v9479_v46 }
0x1844   :  { %9499 = vmatprep.subr.bf16.mxu0 %v9833_v41 }
0x1846   :  { %8982 = vmatmul.mubr.msk.f32.vlgmr.msra.gmra.mrb[72].mxu0 %vm315_vm0, %v7846_v9 }
0x1847   :  { %8984 = vmatprep.mubr.msk.f32.mxu0 %vm315_vm0, %v7847_v26 }
0x184a   :  { %8985 = vmatmul.mubr.msk.f32.gmra.mrb[74].mxu0 %vm315_vm0, %v7848_v13 }
0x184b   :  { %8987 = vmatprep.mubr.msk.f32.mxu0 %vm315_vm0, %v7849_v34  ;;  %v7870_v34 = vld [vmem:[%s12394_s4 + $0x208] sm:$0xff] }
0x184e   :  { %8988 = vmatmul.mubr.msk.f32.gmra.mrb[76].mxu0 %vm315_vm0, %v7850_v25  ;;  %v7871_v25 = vld [vmem:[%s12394_s4 + $0x210] sm:$0xff] }
0x184f   :  { %8990 = vmatprep.mubr.msk.f32.mxu0 %vm315_vm0, %v7851_v63  ;;  %v7872_v63 = vld [vmem:[%s12394_s4 + $0x218] sm:$0xff] }
0x1852   :  { %8991 = vmatmul.mubr.msk.f32.gmra.mrb[78].mxu0 %vm315_vm0, %v7852_v33  ;;  %v7873_v33 = vld [vmem:[%s12394_s4 + $0x220] sm:$0xff] }
0x1853   :  { %9037 = vmatprep.mubr.msk.f32.mxu0 %vm9834_vm2, %v9835_v42 }
0x1919   :  { %v8983_v47 = vpop.f32.mrb[72].mxu0 }
0x191a   :  { %v6288_v60 = vadd.f32 %v8983_v47, %v6160_v37  ;;  %v6282_v55 = vpop.f32.mrb[73].mxu0  ;;  %v7899_v37 = vld [vmem:[%s12391_s1 + $0x258] sm:$0xff]  ;;  %v7900_v47 = vld [vmem:[%s12391_s1 + $0x260] sm:$0xff] }
0x191b   :  { %v6283_v39 = vadd.f32 %v6282_v55, %v6155_v21  ;;  %v7875_v21 = vld [vmem:[%s12394_s4 + $0x230] sm:$0xff]  ;;  %6674 = vperm.xlu1 %9746, %v7899_v37   ;;  %6818 = vperm.xlu0 %9751, %v7899_v37  }
0x191c   :  { %vm6322_vm5 = vcmp.ge.f32.partialorder %v6288_v60, 0.0  ;;  %v6330_v38 = vmul.f32 0.2, %v6288_v60 }
0x191d   :  { %vm6321_vm6 = vcmp.ge.f32.partialorder %v6283_v39, 0.0  ;;  %v6329_v11 = vmul.f32 0.2, %v6283_v39  ;;  %v8986_v17 = vpop.f32.mrb[74].mxu0 }
0x191e   :  { %v6298_v0 = vadd.f32 %v8986_v17, %v6170_v12  ;;  %v6292_v5 = vpop.f32.mrb[75].mxu0  ;;  %v6338_v31 = vsel %vm6322_vm5, %v6288_v60, %v6330_v38  ;;  %v7902_v12 = vld [vmem:[%s12391_s1 + $0x270] sm:$0xff]  ;;  %v7903_v60 = vld [vmem:[%s12391_s1 + $0x278] sm:$0xff] }
0x191f   :  { %v6293_v45 = vadd.f32 %v6292_v5, %v6165_v15  ;;  %v6337_v44 = vsel %vm6321_vm6, %v6283_v39, %v6329_v11  ;;  %v7876_v15 = vld [vmem:[%s12394_s4 + $0x238] sm:$0xff]  ;;  %9747 = vset.pattern.permute.xlu1 %v9830_v3  ;;  %9755 = vset.pattern.permute.xlu0 %v9830_v3 }
0x1920   :  { %vm6324_vm7 = vcmp.ge.f32.partialorder %v6298_v0, 0.0  ;;  %v6332_v30 = vmul.f32 0.2, %v6298_v0  ;;  %v9483_v14 = vpack.c.bf16 %v6338_v31, %v6337_v44  ;;  %6718 = vperm.xlu1 %9747, %v12029_v40   ;;  %6714 = vperm.xlu0 %9755, %v12018_v32  }
0x1921   :  { %vm6323_vm8 = vcmp.ge.f32.partialorder %v6293_v45, 0.0  ;;  %v6331_v16 = vmul.f32 0.2, %v6293_v45  ;;  %v8989_v29 = vpop.f32.mrb[76].mxu0 }
0x1922   :  { %v6308_v1 = vadd.f32 %v8989_v29, %v6180_v28  ;;  %v6302_v48 = vpop.f32.mrb[77].mxu0  ;;  %9484 = vmatprep.subr.bf16.mxu1 %v9483_v14  ;;  %v6340_v56 = vsel %vm6324_vm7, %v6298_v0, %v6332_v30 }
0x1923   :  { %v6303_v59 = vadd.f32 %v6302_v48, %v6175_v8  ;;  %9486 = vmatpush3.bf16.msra.mxu1 %v9483_v14  ;;  %v6339_v20 = vsel %vm6323_vm8, %v6293_v45, %v6331_v16 }
0x1924   :  { %vm6326_vm9 = vcmp.ge.f32.partialorder %v6308_v1, 0.0  ;;  %v6334_v57 = vmul.f32 0.2, %v6308_v1  ;;  %v9487_v58 = vpack.c.bf16 %v6340_v56, %v6339_v20  ;;  %9748 = vset.pattern.permute.xlu1 %v9831_v4  ;;  %6722 = vperm.xlu0 %9755, %v7899_v37  }
0x1925   :  { %vm6325_vm10 = vcmp.ge.f32.partialorder %v6303_v59, 0.0  ;;  %v6333_v51 = vmul.f32 0.2, %v6303_v59  ;;  %v8992_v52 = vpop.f32.mrb[78].mxu0  ;;  %6766 = vperm.xlu1 %9748, %v12029_v40  }
0x1926   :  { %v6318_v36 = vadd.f32 %v8992_v52, %v6190_v24  ;;  %v6312_v6 = vpop.f32.mrb[79].mxu0  ;;  %9488 = vmatprep.subr.bf16.mxu1 %v9487_v58  ;;  %v6342_v35 = vsel %vm6326_vm9, %v6308_v1, %v6334_v57 }
0x1927   :  { %v6313_v43 = vadd.f32 %v6312_v6, %v6185_v10  ;;  %9490 = vmatpush3.bf16.msra.mxu1 %v9487_v58  ;;  %v6341_v18 = vsel %vm6325_vm10, %v6303_v59, %v6333_v51 }
0x1928   :  { %vm6328_vm11 = vcmp.ge.f32.partialorder %v6318_v36, 0.0  ;;  %v6336_v62 = vmul.f32 0.2, %v6318_v36  ;;  %v9491_v19 = vpack.c.bf16 %v6342_v35, %v6341_v18  ;;  %6734 = vperm.xlu0 %9755, %v7902_v12  }
0x1929   :  { %vm6327_vm12 = vcmp.ge.f32.partialorder %v6313_v43, 0.0  ;;  %v6335_v46 = vmul.f32 0.2, %v6313_v43  ;;  %6770 = vperm.xlu1 %9748, %v7899_v37   ;;  %v7913_v37 = vld [vmem:[%s12393_s3 + $0x248] sm:$0xff] }
0x192a   :  { %9492 = vmatprep.subr.bf16.mxu1 %v9491_v19  ;;  %v6344_v9 = vsel %vm6328_vm11, %v6318_v36, %v6336_v62 }
0x192b   :  { %9494 = vmatpush3.bf16.msra.mxu1 %v9491_v19  ;;  %v6343_v26 = vsel %vm6327_vm12, %v6313_v43, %v6335_v46 }
0x192c   :  { %v9495_v13 = vpack.c.bf16 %v6344_v9, %v6343_v26  ;;  %9757 = vset.pattern.permute.xlu0 %v9831_v4 }
0x192d   :  { %9749 = vset.pattern.permute.xlu1 %v9829_v2  ;;  %6774 = vperm.xlu0 %9757, %v7900_v47  }
0x192e   :  { %9496 = vmatprep.subr.bf16.mxu1 %v9495_v13  ;;  %6810 = vperm.xlu1 %9749, %v12018_v32   ;;  %v6371_v32 = vpop.permute.xlu1 %6370 }
0x192f   :  { %9498 = vmatpush3.bf16.msra.mxu1 %v9495_v13  ;;  %v7893_v13 = vld [vmem:[%s12396_s6 + $0x40] sm:$0xff] }
0x1931   :  { %6786 = vperm.xlu0 %9757, %v7903_v60  }
0x1932   :  { %9010 = vmatmul.mubr.msk.f32.vlgmr.msra.gmra.mrb[72].mxu1 %vm315_vm0, %v7870_v34  ;;  %9750 = vset.pattern.permute.xlu1 %v12401_v27  ;;  %v6381_v55 = vpop.permute.xlu1 %6380 }
0x1933   :  { %9012 = vmatprep.mubr.msk.f32.mxu1 %vm315_vm0, %v7871_v25  ;;  %6679 = vperm.xlu1 %9750, %v7900_v47  }
0x1935   :  { %9761 = vset.pattern.permute.xlu0 %v9829_v2 }
0x1936   :  { %9013 = vmatmul.mubr.msk.f32.gmra.mrb[74].mxu1 %vm315_vm0, %v7872_v63  ;;  %6830 = vperm.xlu0 %9761, %v7902_v12   ;;  %v7904_v63 = vld [vmem:[%s12392_s2 + $0x240] sm:$0xff] }
0x1937   :  { %9015 = vmatprep.mubr.msk.f32.mxu1 %vm315_vm0, %v7873_v33  ;;  %9752 = vset.pattern.permute.xlu1 %v9830_v3 }
0x1938   :  { %6726 = vperm.xlu1 %9752, %v7900_v47  }
0x193a   :  { %9016 = vmatmul.mubr.msk.f32.gmra.mrb[76].mxu1 %vm315_vm0, %v7874_v53  ;;  %9763 = vset.pattern.permute.xlu0 %v12401_v27 }
0x193b   :  { %9018 = vmatprep.mubr.msk.f32.mxu1 %vm315_vm0, %v7875_v21  ;;  %6894 = vperm.xlu0 %9763, %v7913_v37  }
0x193c   :  { %6730 = vperm.xlu1 %9752, %v12038_v23  }
0x193e   :  { %9019 = vmatmul.mubr.msk.f32.gmra.mrb[78].mxu1 %vm315_vm0, %v7876_v15  ;;  %v7912_v15 = vld [vmem:[%s12393_s3 + $0x240] sm:$0xff] }
0x193f   :  { %9056 = vmatprep.mubr.msk.f32.mxu1 %vm315_vm0, %v7904_v63 }
0x1940   :  { %9753 = vset.pattern.permute.xlu1 %v9831_v4 }
0x1941   :  { %6778 = vperm.xlu1 %9753, %v12038_v23  }
0x1945   :  { %9754 = vset.pattern.permute.xlu1 %v9829_v2 }
0x1946   :  { %6814 = vperm.xlu1 %9754, %v12029_v40   ;;  %v6366_v40 = vpop.permute.xlu0 %6365 }
0x194a   :  { %9756 = vset.pattern.permute.xlu1 %v12401_v27  ;;  %v6376_v38 = vpop.permute.xlu0 %6375 }
0x194b   :  { %6689 = vperm.xlu1 %9756, %v7902_v12  }
0x194f   :  { %6694 = vperm.xlu1 %9756, %v7903_v60  }
0x1953   :  { %9758 = vset.pattern.permute.xlu1 %v9830_v3 }
0x1954   :  { %6738 = vperm.xlu1 %9758, %v7903_v60  }
0x1958   :  { %9759 = vset.pattern.permute.xlu1 %v9831_v4 }
0x1959   :  { %6782 = vperm.xlu1 %9759, %v7902_v12   ;;  %v7914_v12 = vld [vmem:[%s12393_s3 + $0x250] sm:$0xff] }
0x195d   :  { %9760 = vset.pattern.permute.xlu1 %v9829_v2 }
0x195e   :  { %6822 = vperm.xlu1 %9760, %v7900_v47   ;;  %v7916_v47 = vld [vmem:[%s12393_s3 + $0x260] sm:$0xff] }
0x195f   :  { %6909 = vperm.xlu0 %9763, %v7916_v47  }
0x1962   :  { %6826 = vperm.xlu1 %9760, %v12038_v23   ;;  %v6391_v23 = vpop.permute.xlu1 %6390 }
0x1966   :  { %6834 = vperm.xlu1 %9760, %v7903_v60   ;;  %v6401_v58 = vpop.permute.xlu1 %6400 }
0x196a   :  { %9762 = vset.pattern.permute.xlu1 %v12401_v27  ;;  %v6386_v27 = vpop.permute.xlu0 %6385  ;;  %v12196_v34 = vpop.permute.xlu1 %6659 }
0x196b   :  { %6889 = vperm.xlu1 %9762, %v7912_v15  }
0x196e   :  { %v6396_v52 = vpop.permute.xlu0 %6395  ;;  %v12198_v25 = vpop.permute.xlu1 %6710 }
0x196f   :  { %6899 = vperm.xlu1 %9762, %v7914_v12   ;;  %v6741_v63 = vmul.f32 %v12198_v25, %v10013_v49 }
0x1972   :  { %v12204_v33 = vpop.permute.xlu1 %6758 }
0x1973   :  { %v6789_v15 = vmul.f32 %v12204_v33, %v10016_v50 }
0x1976   :  { %v12206_v53 = vpop.permute.xlu1 %6762 }
0x199a   :  { %v12208_v21 = vpop.permute.xlu1 %6674 }
0x199f   :  { %v12222_v60 = vpop.permute.xlu1 %6718 }
0x19a0   :  { %v6743_v12 = vmul.f32 %v12222_v60, %v10013_v49 }
0x1a05   :  { %v9011_v39 = vpop.f32.mrb[72].mxu1 }
0x1a06   :  { %v6499_v11 = vadd.f32 %v9011_v39, %v6371_v32  ;;  %v6493_v17 = vpop.f32.mrb[73].mxu1  ;;  %v7915_v32 = vld [vmem:[%s12393_s3 + $0x258] sm:$0xff]  ;;  %v7917_v39 = vld [vmem:[%s12393_s3 + $0x268] sm:$0xff] }
0x1a07   :  { %v6494_v3 = vadd.f32 %v6493_v17, %v6366_v40  ;;  %v7918_v40 = vld [vmem:[%s12393_s3 + $0x270] sm:$0xff]  ;;  %6904 = vperm.xlu1 %9762, %v7915_v32  }
0x1a08   :  { %vm6533_vm13 = vcmp.ge.f32.partialorder %v6499_v11, 0.0  ;;  %v6541_v0 = vmul.f32 0.2, %v6499_v11  ;;  %6919 = vperm.xlu0 %9763, %v7918_v40   ;;  %v7938_v17 = vld [vmem:[%s12395_s5 + $0x250] sm:$0xff] }
0x1a09   :  { %vm6532_vm14 = vcmp.ge.f32.partialorder %v6494_v3, 0.0  ;;  %v6540_v4 = vmul.f32 0.2, %v6494_v3  ;;  %v9014_v5 = vpop.f32.mrb[74].mxu1 }
0x1a0a   :  { %v6549_v2 = vsel %vm6533_vm13, %v6499_v11, %v6541_v0  ;;  %v6509_v31 = vadd.f32 %v9014_v5, %v6381_v55  ;;  %v6503_v28 = vpop.f32.mrb[75].mxu1  ;;  %v12230_v55 = vpop.permute.xlu1 %6766  ;;  %v7919_v11 = vld [vmem:[%s12393_s3 + $0x278] sm:$0xff]  ;;  %v7937_v0 = vld [vmem:[%s12395_s5 + $0x248] sm:$0xff] }
0x1a0b   :  { %v6548_v45 = vsel %vm6532_vm14, %v6494_v3, %v6540_v4  ;;  %v6504_v44 = vadd.f32 %v6503_v28, %v6376_v38  ;;  %v7936_v38 = vld [vmem:[%s12395_s5 + $0x240] sm:$0xff]  ;;  %6914 = vperm.xlu1 %9762, %v7917_v39   ;;  %v6563_v28 = vpop.permute.xlu0 %6562  ;;  %v6791_v47 = vmul.f32 %v12230_v55, %v10016_v50 }
0x1a0c   :  { %v9500_v8 = vpack.c.bf16 %v6549_v2, %v6548_v45  ;;  %vm6535_vm15 = vcmp.ge.f32.partialorder %v6509_v31, 0.0  ;;  %v6543_v30 = vmul.f32 0.2, %v6509_v31  ;;  %7100 = vperm.xlu0 %9763, %v7936_v38   ;;  %v7940_v4 = vld [vmem:[%s12395_s5 + $0x260] sm:$0xff]  ;;  %v7939_v2 = vld [vmem:[%s12395_s5 + $0x258] sm:$0xff]  ;;  %v7953_v45 = vld [vmem:[%s12397_s7 + $0x48] sm:$0xff] }
0x1a0d   :  { %vm6534_vm1 = vcmp.ge.f32.partialorder %v6504_v44, 0.0  ;;  %v6542_v14 = vmul.f32 0.2, %v6504_v44  ;;  %v9017_v16 = vpop.f32.mrb[76].mxu1 }
0x1a0e   :  { %v6551_v29 = vsel %vm6535_vm15, %v6509_v31, %v6543_v30  ;;  %v6519_v1 = vadd.f32 %v9017_v16, %v6391_v23  ;;  %v6513_v48 = vpop.f32.mrb[77].mxu1  ;;  %9501 = vmatpush3.bf16.msra.mxu0 %v9500_v8  ;;  %v6771_v3 = vpop.permute.xlu1 %6770  ;;  %v7942_v31 = vld [vmem:[%s12395_s5 + $0x270] sm:$0xff]  ;;  %v7941_v23 = vld [vmem:[%s12395_s5 + $0x268] sm:$0xff] }
0x1a0f   :  { %v6550_v56 = vsel %vm6534_vm1, %v6504_v44, %v6542_v14  ;;  %v6514_v59 = vadd.f32 %v6513_v48, %v6386_v27  ;;  %9502 = vmatprep.subr.bf16.mxu0 %v9833_v41  ;;  %6924 = vperm.xlu1 %9762, %v7919_v11   ;;  %v7943_v27 = vld [vmem:[%s12395_s5 + $0x278] sm:$0xff]  ;;  %v6665_v8 = vpop.permute.xlu0 %6664 }
0x1a10   :  { %v9503_v20 = vpack.c.bf16 %v6551_v29, %v6550_v56  ;;  %vm6537_vm3 = vcmp.ge.f32.partialorder %v6519_v1, 0.0  ;;  %v6545_v57 = vmul.f32 0.2, %v6519_v1  ;;  %7110 = vperm.xlu0 %9763, %v7938_v17  }
0x1a11   :  { %vm6536_vm4 = vcmp.ge.f32.partialorder %v6514_v59, 0.0  ;;  %v6544_v24 = vmul.f32 0.2, %v6514_v59  ;;  %v9020_v51 = vpop.f32.mrb[78].mxu1 }
0x1a12   :  { %v6553_v10 = vsel %vm6537_vm3, %v6519_v1, %v6545_v57  ;;  %v6529_v36 = vadd.f32 %v9020_v51, %v6401_v58  ;;  %v6523_v6 = vpop.f32.mrb[79].mxu1  ;;  %9504 = vmatpush3.bf16.msra.mxu0 %v9503_v20  ;;  %v12250_v5 = vpop.permute.xlu1 %6810 }
0x1a13   :  { %v6552_v35 = vsel %vm6536_vm4, %v6514_v59, %v6544_v24  ;;  %v6524_v43 = vadd.f32 %v6523_v6, %v6396_v52  ;;  %9505 = vmatprep.subr.bf16.mxu0 %v9833_v41  ;;  %7105 = vperm.xlu1 %9762, %v7937_v0   ;;  %v6670_v14 = vpop.permute.xlu0 %6669 }
0x1a14   :  { %v9506_v18 = vpack.c.bf16 %v6553_v10, %v6552_v35  ;;  %vm6539_vm5 = vcmp.ge.f32.partialorder %v6529_v36, 0.0  ;;  %v6547_v62 = vmul.f32 0.2, %v6529_v36  ;;  %7120 = vperm.xlu0 %9763, %v7940_v4  }
0x1a15   :  { %vm6538_vm6 = vcmp.ge.f32.partialorder %v6524_v43, 0.0  ;;  %v6546_v19 = vmul.f32 0.2, %v6524_v43 }
0x1a16   :  { %v6555_v46 = vsel %vm6539_vm5, %v6529_v36, %v6547_v62  ;;  %9507 = vmatpush3.bf16.msra.mxu0 %v9506_v18  ;;  %v6680_v44 = vpop.permute.xlu1 %6679 }
0x1a17   :  { %v6554_v9 = vsel %vm6538_vm6, %v6524_v43, %v6546_v19  ;;  %9508 = vmatprep.subr.bf16.mxu0 %v9833_v41  ;;  %7115 = vperm.xlu1 %9762, %v7939_v2   ;;  %v6685_v29 = vpop.permute.xlu0 %6684 }
0x1a18   :  { %v9509_v26 = vpack.c.bf16 %v6555_v46, %v6554_v9  ;;  %7130 = vperm.xlu0 %9763, %v7942_v31  }
0x1a1a   :  { %9510 = vmatpush3.bf16.msra.mxu0 %v9509_v26  ;;  %v6727_v30 = vpop.permute.xlu1 %6726 }
0x1a1b   :  { %7125 = vperm.xlu1 %9762, %v7941_v23   ;;  %v12267_v20 = vpop.permute.xlu0 %6806  ;;  %v6745_v32 = vmul.f32 %v6727_v30, %v10013_v49 }
0x1a1c   :  { %7297 = vperm.xlu0 %9763, %v7953_v45  }
0x1a1d   :  { %9038 = vmatmul.mubr.msk.f32.vlgmr.msra.gmra.mrb[80].mxu0 %vm315_vm0, %v7893_v13 }
0x1a1e   :  { %v6731_v16 = vpop.permute.xlu1 %6730 }
0x1a1f   :  { %7135 = vperm.xlu1 %9762, %v7943_v27   ;;  %v12269_v58 = vpop.permute.xlu0 %6818  ;;  %v6746_v33 = vmul.f32 %v6731_v16, %v10013_v49 }
0x1a22   :  { %v6779_v1 = vpop.permute.xlu1 %6778 }
0x1a23   :  { %v6715_v52 = vpop.permute.xlu0 %6714 }
0x1a24   :  { %v6742_v39 = vmul.f32 %v6715_v52, %v10013_v49 }
0x1a26   :  { %v6815_v57 = vpop.permute.xlu1 %6814 }
0x1a27   :  { %v6723_v43 = vpop.permute.xlu0 %6722 }
0x1a28   :  { %v6744_v38 = vmul.f32 %v6723_v43, %v10013_v49 }
0x1a2a   :  { %v6690_v24 = vpop.permute.xlu1 %6689 }
0x1a2b   :  { %v6735_v62 = vpop.permute.xlu0 %6734 }
0x1a2c   :  { %v6747_v55 = vmul.f32 %v6735_v62, %v10013_v49 }
0x1a2e   :  { %v6695_v35 = vpop.permute.xlu1 %6694 }
0x1a2f   :  { %v6775_v13 = vpop.permute.xlu0 %6774 }
0x1a30   :  { %v6793_v11 = vmul.f32 %v6775_v13, %v10016_v50 }
0x1a32   :  { %v6739_v18 = vpop.permute.xlu1 %6738 }
0x1a33   :  { %v6748_v60 = vmul.f32 %v6739_v18, %v10013_v49 }
0x1a36   :  { %v6783_v46 = vpop.permute.xlu1 %6782 }
0x1a37   :  { %v6795_v49 = vmul.f32 %v6783_v46, %v10016_v50 }
0x1a3a   :  { %v6823_v40 = vpop.permute.xlu1 %6822 }
0x1af0   :  { %v6634_v48 = vpop.f32.mrb[80].mxu0 }
0x1af1   :  { %v6635_v56 = vadd.f32 %v6634_v48, %v6563_v28  ;;  %v9039_v59 = vpop.f32.mrb[81].mxu0 }
0x1af3   :  { %9796 = vtanh.f32 %v6635_v56 }
0x1afd   :  { %v9797_v51 = vpop.eup %9796 }
0x1afe   :  { %v6639_v10 = vmul.f32 2.0, %v9797_v51 }
0x1b00   :  { %v6640_v36 = vmul.f32 1.442695, %v6639_v10  ;;  %v12272_v6 = vadd.f32 %v6639_v10, %v12053_v7  ;;  %v6790_v7 = vmul.f32 %v12206_v53, %v10016_v50  ;;  %v6794_v53 = vmul.f32 %v6779_v1, %v10016_v50 }
0x1b02   :  { %9798 = vpow2.f32 %v6640_v36 }
0x1b0c   :  { %v9799_v19 = vpop.eup %9798 }
0x1b0d   :  { %v6643_v9 = vrot.slane %v9799_v19, 7 }
0x1b0f   :  { %v6645_v26 = vmul.f32 %v6643_v9, %v11809_v22  ;;  %v6792_v22 = vmul.f32 %v6771_v3, %v10016_v50 }
0x1b11   :  { %v12281_v37 = vadd.f32 %v6645_v26, %v6635_v56 }
0x1b13   :  { %v6700_v25 = vrot.slane %v12281_v37, %v10280_v54  ;;  %v6787_v54 = vpop.permute.xlu0 %6786 }
0x1b15   :  { %v6705_v17 = vmul.f32 %v6700_v25, %v6680_v44  ;;  %v6706_v3 = vmul.f32 %v6700_v25, %v6685_v29  ;;  %v6701_v0 = vmul.f32 %v6700_v25, %v12196_v34  ;;  %v6703_v4 = vmul.f32 %v6700_v25, %v6670_v14  ;;  %v6827_v29 = vpop.permute.xlu1 %6826 }
0x1b16   :  { %v6707_v2 = vmul.f32 %v6700_v25, %v6690_v24  ;;  %v6702_v31 = vmul.f32 %v6700_v25, %v6665_v8  ;;  %v6708_v28 = vmul.f32 %v6700_v25, %v6695_v35  ;;  %v6704_v23 = vmul.f32 %v6700_v25, %v12208_v21 }
0x1b17   :  { %v6753_v45 = vadd.f32 %v6745_v32, %v6705_v17  ;;  %v6754_v27 = vadd.f32 %v6746_v33, %v6706_v3  ;;  %v6749_v30 = vadd.f32 %v6741_v63, %v6701_v0  ;;  %v6751_v16 = vadd.f32 %v6743_v12, %v6703_v4  ;;  %v6831_v9 = vpop.permute.xlu0 %6830  ;;  %v7906_v17 = vld [vmem:[%s12392_s2 + $0x250] sm:$0xff]  ;;  %v7907_v3 = vld [vmem:[%s12392_s2 + $0x258] sm:$0xff]  ;;  %v7908_v0 = vld [vmem:[%s12392_s2 + $0x260] sm:$0xff] }
0x1b18   :  { %v6750_v1 = vadd.f32 %v6742_v39, %v6702_v31  ;;  %v6752_v48 = vadd.f32 %v6744_v38, %v6704_v23  ;;  %v6796_v44 = vmul.f32 %v6787_v54, %v10016_v50  ;;  %v6756_v14 = vadd.f32 %v6748_v60, %v6708_v28  ;;  %v7909_v4 = vld [vmem:[%s12392_s2 + $0x268] sm:$0xff]  ;;  %v7910_v54 = vld [vmem:[%s12392_s2 + $0x270] sm:$0xff]  ;;  %v7928_v31 = vld [vmem:[%s12394_s4 + $0x240] sm:$0xff] }
0x1b19   :  { %v6797_v56 = vadd.f32 %v6789_v15, %v6749_v30  ;;  %v6799_v34 = vadd.f32 %v6791_v47, %v6751_v16  ;;  %v6755_v59 = vadd.f32 %v6747_v55, %v6707_v2  ;;  %v6801_v51 = vadd.f32 %v6793_v11, %v6753_v45  ;;  %v6835_v26 = vpop.permute.xlu1 %6834  ;;  %v7905_v11 = vld [vmem:[%s12392_s2 + $0x248] sm:$0xff]  ;;  %v7911_v2 = vld [vmem:[%s12392_s2 + $0x278] sm:$0xff]  ;;  %9084 = vmatprep.mubr.msk.f32.mxu0 %vm315_vm0, %v7928_v31 }
0x1b1a   :  { %v6798_v24 = vadd.f32 %v6790_v7, %v6750_v1  ;;  %v6800_v8 = vadd.f32 %v6792_v22, %v6752_v48  ;;  %v6802_v52 = vadd.f32 %v6794_v53, %v6754_v27  ;;  %v6804_v50 = vadd.f32 %v6796_v44, %v6756_v14 }
0x1b1b   :  { %v6837_v21 = vadd.f32 %v12267_v20, %v6797_v56  ;;  %v6839_v10 = vadd.f32 %v6815_v57, %v6799_v34  ;;  %v6803_v18 = vadd.f32 %v6795_v49, %v6755_v59  ;;  %v6841_v19 = vadd.f32 %v6823_v40, %v6801_v51  ;;  %v6895_v45 = vpop.permute.xlu0 %6894 }
0x1b1c   :  { %v6838_v36 = vadd.f32 %v12250_v5, %v6798_v24  ;;  %v6840_v35 = vadd.f32 %v12269_v58, %v6800_v8  ;;  %v6842_v46 = vadd.f32 %v6827_v29, %v6802_v52  ;;  %v6844_v57 = vadd.f32 %v6835_v26, %v6804_v50 }
0x1b1d   :  { %vm6845_vm7 = vcmp.ge.f32.partialorder %v6837_v21, 0.0  ;;  %v6853_v43 = vmul.f32 0.2, %v6837_v21  ;;  %v6855_v62 = vmul.f32 0.2, %v6839_v10  ;;  %vm6847_vm8 = vcmp.ge.f32.partialorder %v6839_v10, 0.0  ;;  %v6890_v28 = vpop.permute.xlu1 %6889 }
0x1b1e   :  { %vm6846_vm9 = vcmp.ge.f32.partialorder %v6838_v36, 0.0  ;;  %v6854_v13 = vmul.f32 0.2, %v6838_v36  ;;  %vm6848_vm10 = vcmp.ge.f32.partialorder %v6840_v35, 0.0  ;;  %v6843_v20 = vadd.f32 %v6831_v9, %v6803_v18 }
0x1b1f   :  { %v6861_v63 = vsel %vm6845_vm7, %v6837_v21, %v6853_v43  ;;  %v6856_v15 = vmul.f32 0.2, %v6840_v35  ;;  %v6857_v5 = vmul.f32 0.2, %v6841_v19  ;;  %v6858_v7 = vmul.f32 0.2, %v6842_v46  ;;  %v6910_v8 = vpop.permute.xlu0 %6909 }
0x1b20   :  { %v6862_v58 = vsel %vm6846_vm9, %v6838_v36, %v6854_v13  ;;  %v6863_v12 = vsel %vm6847_vm8, %v6839_v10, %v6855_v62  ;;  %vm6849_vm11 = vcmp.ge.f32.partialorder %v6841_v19, 0.0  ;;  %vm6850_vm12 = vcmp.ge.f32.partialorder %v6842_v46, 0.0 }
0x1b21   :  { %v9511_v47 = vpack.c.bf16 %v6862_v58, %v6861_v63  ;;  %v6864_v22 = vsel %vm6848_vm10, %v6840_v35, %v6856_v15  ;;  %v6859_v40 = vmul.f32 0.2, %v6843_v20  ;;  %v6860_v25 = vmul.f32 0.2, %v6844_v57  ;;  %v6900_v23 = vpop.permute.xlu1 %6899 }
0x1b22   :  { %v9515_v32 = vpack.c.bf16 %v6864_v22, %v6863_v12  ;;  %v6865_v33 = vsel %vm6849_vm11, %v6841_v19, %v6857_v5  ;;  %v6866_v53 = vsel %vm6850_vm12, %v6842_v46, %v6858_v7  ;;  %vm6851_vm13 = vcmp.ge.f32.partialorder %v6843_v20, 0.0 }
0x1b23   :  { %9512 = vmatprep.subr.bf16.mxu1 %v9511_v47  ;;  %vm6852_vm14 = vcmp.ge.f32.partialorder %v6844_v57, 0.0  ;;  %v9519_v39 = vpack.c.bf16 %v6866_v53, %v6865_v33  ;;  %v6867_v38 = vsel %vm6851_vm13, %v6843_v20, %v6859_v40  ;;  %v6920_v13 = vpop.permute.xlu0 %6919  ;;  %v7929_v40 = vld [vmem:[%s12394_s4 + $0x248] sm:$0xff]  ;;  %v7931_v33 = vld [vmem:[%s12394_s4 + $0x258] sm:$0xff]  ;;  %v7932_v53 = vld [vmem:[%s12394_s4 + $0x260] sm:$0xff] }
0x1b24   :  { %9514 = vmatpush3.bf16.msra.mxu1 %v9511_v47  ;;  %v6868_v60 = vsel %vm6852_vm14, %v6844_v57, %v6860_v25  ;;  %v7930_v25 = vld [vmem:[%s12394_s4 + $0x250] sm:$0xff] }
0x1b25   :  { %9516 = vmatprep.subr.bf16.mxu1 %v9515_v32  ;;  %v9523_v55 = vpack.c.bf16 %v6868_v60, %v6867_v38  ;;  %v6905_v27 = vpop.permute.xlu1 %6904  ;;  %v7934_v38 = vld [vmem:[%s12394_s4 + $0x270] sm:$0xff]  ;;  %v7935_v60 = vld [vmem:[%s12394_s4 + $0x278] sm:$0xff] }
0x1b28   :  { %9518 = vmatpush3.bf16.msra.mxu1 %v9515_v32 }
0x1b29   :  { %9520 = vmatprep.subr.bf16.mxu1 %v9519_v39  ;;  %v6915_v14 = vpop.permute.xlu1 %6914 }
0x1b2c   :  { %9522 = vmatpush3.bf16.msra.mxu1 %v9519_v39  ;;  %v7933_v39 = vld [vmem:[%s12394_s4 + $0x268] sm:$0xff] }
0x1b2d   :  { %9524 = vmatprep.subr.bf16.mxu1 %v9523_v55  ;;  %v6925_v46 = vpop.permute.xlu1 %6924 }
0x1b30   :  { %9526 = vmatpush3.bf16.msra.mxu1 %v9523_v55 }
0x1b31   :  { %9543 = vmatprep.subr.bf16.mxu1 %v9833_v41  ;;  %v7106_v55 = vpop.permute.xlu1 %7105 }
0x1b33   :  { %9057 = vmatmul.mubr.msk.f32.vlgmr.msra.gmra.mrb[80].mxu1 %vm315_vm0, %v7905_v11  ;;  %v7101_v11 = vpop.permute.xlu0 %7100 }
0x1b34   :  { %9059 = vmatprep.mubr.msk.f32.mxu1 %vm315_vm0, %v7906_v17 }
0x1b35   :  { %v7116_v17 = vpop.permute.xlu1 %7115 }
0x1b37   :  { %9060 = vmatmul.mubr.msk.f32.gmra.mrb[82].mxu1 %vm315_vm0, %v7907_v3 }
0x1b38   :  { %9062 = vmatprep.mubr.msk.f32.mxu1 %vm315_vm0, %v7908_v0  ;;  %v7111_v0 = vpop.permute.xlu0 %7110 }
0x1b3b   :  { %9063 = vmatmul.mubr.msk.f32.gmra.mrb[84].mxu1 %vm315_vm0, %v7909_v4 }
0x1b3c   :  { %9065 = vmatprep.mubr.msk.f32.mxu1 %vm315_vm0, %v7910_v54 }
0x1b3f   :  { %9066 = vmatmul.mubr.msk.f32.gmra.mrb[86].mxu1 %vm315_vm0, %v7911_v2 }
0x1b40   :  { %9112 = vmatprep.mubr.msk.f32.mxu1 %vm9834_vm2, %v9835_v42 }
0x1c06   :  { %v9058_v30 = vpop.f32.mrb[80].mxu1 }
0x1c07   :  { %v7023_v16 = vadd.f32 %v9058_v30, %v6895_v45  ;;  %v7017_v1 = vpop.f32.mrb[81].mxu1 }
0x1c08   :  { %v7018_v48 = vadd.f32 %v7017_v1, %v6890_v28 }
0x1c09   :  { %vm7057_vm15 = vcmp.ge.f32.partialorder %v7023_v16, 0.0  ;;  %v7065_v49 = vmul.f32 0.2, %v7023_v16 }
0x1c0a   :  { %vm7056_vm1 = vcmp.ge.f32.partialorder %v7018_v48, 0.0  ;;  %v7064_v44 = vmul.f32 0.2, %v7018_v48  ;;  %v9061_v29 = vpop.f32.mrb[82].mxu1 }
0x1c0b   :  { %v7033_v42 = vadd.f32 %v9061_v29, %v6905_v27  ;;  %v7027_v56 = vpop.f32.mrb[83].mxu1  ;;  %v7073_v34 = vsel %vm7057_vm15, %v7023_v16, %v7065_v49  ;;  %v7126_v16 = vpop.permute.xlu1 %7125 }
0x1c0c   :  { %v7028_v59 = vadd.f32 %v7027_v56, %v6900_v23  ;;  %v7072_v24 = vsel %vm7056_vm1, %v7018_v48, %v7064_v44  ;;  %v7121_v49 = vpop.permute.xlu0 %7120  ;;  %vm7386_vm1 = vcmask 1040384  }
0x1c0d   :  { %vm7059_vm2 = vcmp.ge.f32.partialorder %v7033_v42, 0.0  ;;  %v7067_v51 = vmul.f32 0.2, %v7033_v42  ;;  %v9527_v52 = vpack.c.bf16 %v7073_v34, %v7072_v24 }
0x1c0e   :  { %vm7058_vm3 = vcmp.ge.f32.partialorder %v7028_v59, 0.0  ;;  %v7066_v21 = vmul.f32 0.2, %v7028_v59  ;;  %v9064_v10 = vpop.f32.mrb[84].mxu1 }
0x1c0f   :  { %v7043_v36 = vadd.f32 %v9064_v10, %v6915_v14  ;;  %v7037_v35 = vpop.f32.mrb[85].mxu1  ;;  %9528 = vmatprep.subr.bf16.mxu0 %v9527_v52  ;;  %v7075_v43 = vsel %vm7059_vm2, %v7033_v42, %v7067_v51  ;;  %vm7388_vm2 = vcmask 1041408  }
0x1c10   :  { %v7038_v18 = vadd.f32 %v7037_v35, %v6910_v8  ;;  %9530 = vmatpush3.bf16.msra.mxu0 %v9527_v52  ;;  %v7074_v50 = vsel %vm7058_vm3, %v7028_v59, %v7066_v21  ;;  %v7136_v21 = vpop.permute.xlu1 %7135  ;;  %v7131_v35 = vpop.permute.xlu0 %7130 }
0x1c11   :  { %vm7061_vm4 = vcmp.ge.f32.partialorder %v7043_v36, 0.0  ;;  %v7069_v62 = vmul.f32 0.2, %v7043_v36  ;;  %v9531_v19 = vpack.c.bf16 %v7075_v43, %v7074_v50 }
0x1c12   :  { %vm7060_vm5 = vcmp.ge.f32.partialorder %v7038_v18, 0.0  ;;  %v7068_v9 = vmul.f32 0.2, %v7038_v18  ;;  %v9067_v26 = vpop.f32.mrb[86].mxu1 }
0x1c13   :  { %v7053_v63 = vadd.f32 %v9067_v26, %v6925_v46  ;;  %v7047_v20 = vpop.f32.mrb[87].mxu1  ;;  %9532 = vmatprep.subr.bf16.mxu0 %v9531_v19  ;;  %v7077_v57 = vsel %vm7061_vm4, %v7043_v36, %v7069_v62 }
0x1c14   :  { %v7048_v15 = vadd.f32 %v7047_v20, %v6920_v13  ;;  %9534 = vmatpush3.bf16.msra.mxu0 %v9531_v19  ;;  %v7076_v5 = vsel %vm7060_vm5, %v7038_v18, %v7068_v9 }
0x1c15   :  { %vm7063_vm6 = vcmp.ge.f32.partialorder %v7053_v63, 0.0  ;;  %v7071_v7 = vmul.f32 0.2, %v7053_v63  ;;  %v9535_v58 = vpack.c.bf16 %v7077_v57, %v7076_v5  ;;  %v7952_v57 = vld [vmem:[%s12396_s6 + $0x48] sm:$0xff]  ;;  %s9836_s6 = smov [#allocation2]  }
0x1c16   :  { %vm7062_vm7 = vcmp.ge.f32.partialorder %v7048_v15, 0.0  ;;  %v7070_v12 = vmul.f32 0.2, %v7048_v15  ;;  %s7399_s19 = sshll.u32 %s9836_s6, 4  ;;  %s7400_s19 = int_to_ptr.vmem [resolvable:$true] %s7399_s19 }
0x1c17   :  { %9536 = vmatprep.subr.bf16.mxu0 %v9535_v58  ;;  %v7079_v47 = vsel %vm7063_vm6, %v7053_v63, %v7071_v7  ;;  %s9805_s20 = scalar_lea.vmem %s7400_s19, 128  ;;  %p9810_p1 = scmp.lt.s32.totalorder %s7400_s19, %s7400_s19 }
0x1c18   :  { %9538 = vmatpush3.bf16.msra.mxu0 %v9535_v58  ;;  %v7078_v22 = vsel %vm7062_vm7, %v7048_v15, %v7070_v12  ;;  %v7298_v15 = vpop.permute.xlu0 %7297  ;;  %p9806_p0 = scmp.ne.s32.totalorder %s7400_s19, %s9805_s20  ;;  %p9811_p2 = scmp.lt.s32.totalorder %s9805_s20, %s9805_s20 }
0x1c19   :  { %v9539_v32 = vpack.c.bf16 %v7079_v47, %v7078_v22 }
0x1c1a   :  { %p9812_p3 = por %p9811_p2, %p9810_p1 }
0x1c1b   :  { %9540 = vmatprep.subr.bf16.mxu0 %v9539_v32 }
0x1c1c   :  { %9542 = vmatpush3.bf16.msra.mxu0 %v9539_v32  ;;  %p9813_p4 = pnand %p9812_p3, %p9806_p0 }
0x1c1f   :  { %9085 = vmatmul.mubr.msk.f32.vlgmr.msra.gmra.mrb[82].mxu0 %vm315_vm0, %v7929_v40 }
0x1c20   :  { %9087 = vmatprep.mubr.msk.f32.mxu0 %vm315_vm0, %v7930_v25 }
0x1c23   :  { %9088 = vmatmul.mubr.msk.f32.gmra.mrb[84].mxu0 %vm315_vm0, %v7931_v33 }
0x1c24   :  { %9090 = vmatprep.mubr.msk.f32.mxu0 %vm315_vm0, %v7932_v53 }
0x1c27   :  { %9091 = vmatmul.mubr.msk.f32.gmra.mrb[86].mxu0 %vm315_vm0, %v7933_v39 }
0x1c28   :  { %9093 = vmatprep.mubr.msk.f32.mxu0 %vm315_vm0, %v7934_v38 }
0x1c2b   :  { %9094 = vmatmul.mubr.msk.f32.gmra.mrb[88].mxu0 %vm315_vm0, %v7935_v60 }
0x1cf2   :  { %v9086_v3 = vpop.f32.mrb[82].mxu0 }
0x1cf3   :  { %v7234_v4 = vadd.f32 %v9086_v3, %v7106_v55  ;;  %v7228_v54 = vpop.f32.mrb[83].mxu0 }
0x1cf4   :  { %v7229_v2 = vadd.f32 %v7228_v54, %v7101_v11 }
0x1cf5   :  { %vm7268_vm8 = vcmp.ge.f32.partialorder %v7234_v4, 0.0  ;;  %v7276_v31 = vmul.f32 0.2, %v7234_v4 }
0x1cf6   :  { %vm7267_vm9 = vcmp.ge.f32.partialorder %v7229_v2, 0.0  ;;  %v7275_v28 = vmul.f32 0.2, %v7229_v2  ;;  %v9089_v23 = vpop.f32.mrb[84].mxu0 }
0x1cf7   :  { %v7284_v45 = vsel %vm7268_vm8, %v7234_v4, %v7276_v31  ;;  %v7244_v27 = vadd.f32 %v9089_v23, %v7116_v17  ;;  %v7238_v30 = vpop.f32.mrb[85].mxu0 }
0x1cf8   :  { %v7283_v1 = vsel %vm7267_vm9, %v7229_v2, %v7275_v28  ;;  %v7239_v48 = vadd.f32 %v7238_v30, %v7111_v0 }
0x1cf9   :  { %v9544_v44 = vpack.c.bf16 %v7284_v45, %v7283_v1  ;;  %vm7270_vm10 = vcmp.ge.f32.partialorder %v7244_v27, 0.0  ;;  %v7278_v29 = vmul.f32 0.2, %v7244_v27 }
0x1cfa   :  { %vm7269_vm11 = vcmp.ge.f32.partialorder %v7239_v48, 0.0  ;;  %v7277_v42 = vmul.f32 0.2, %v7239_v48  ;;  %v9092_v56 = vpop.f32.mrb[86].mxu0 }
0x1cfb   :  { %v7286_v34 = vsel %vm7270_vm10, %v7244_v27, %v7278_v29  ;;  %v7254_v14 = vadd.f32 %v9092_v56, %v7126_v16  ;;  %v7248_v59 = vpop.f32.mrb[87].mxu0  ;;  %9545 = vmatpush3.bf16.msra.mxu1 %v9544_v44 }
0x1cfc   :  { %v7285_v24 = vsel %vm7269_vm11, %v7239_v48, %v7277_v42  ;;  %v7249_v8 = vadd.f32 %v7248_v59, %v7121_v49  ;;  %9546 = vmatprep.subr.bf16.mxu1 %v9833_v41 }
0x1cfd   :  { %v9547_v51 = vpack.c.bf16 %v7286_v34, %v7285_v24  ;;  %vm7272_vm12 = vcmp.ge.f32.partialorder %v7254_v14, 0.0  ;;  %v7280_v52 = vmul.f32 0.2, %v7254_v14 }
0x1cfe   :  { %vm7271_vm13 = vcmp.ge.f32.partialorder %v7249_v8, 0.0  ;;  %v7279_v10 = vmul.f32 0.2, %v7249_v8  ;;  %v9095_v36 = vpop.f32.mrb[88].mxu0 }
0x1cff   :  { %v7288_v43 = vsel %vm7272_vm12, %v7254_v14, %v7280_v52  ;;  %v7264_v18 = vadd.f32 %v9095_v36, %v7136_v21  ;;  %v7258_v50 = vpop.f32.mrb[89].mxu0  ;;  %9548 = vmatpush3.bf16.msra.mxu1 %v9547_v51 }
0x1d00   :  { %v7287_v62 = vsel %vm7271_vm13, %v7249_v8, %v7279_v10  ;;  %v7259_v19 = vadd.f32 %v7258_v50, %v7131_v35  ;;  %9549 = vmatprep.subr.bf16.mxu1 %v9833_v41 }
0x1d01   :  { %v9550_v46 = vpack.c.bf16 %v7288_v43, %v7287_v62  ;;  %vm7274_vm14 = vcmp.ge.f32.partialorder %v7264_v18, 0.0  ;;  %v7282_v9 = vmul.f32 0.2, %v7264_v18 }
0x1d02   :  { %vm7273_vm15 = vcmp.ge.f32.partialorder %v7259_v19, 0.0  ;;  %v7281_v26 = vmul.f32 0.2, %v7259_v19 }
0x1d03   :  { %v7290_v13 = vsel %vm7274_vm14, %v7264_v18, %v7282_v9  ;;  %9551 = vmatpush3.bf16.msra.mxu1 %v9550_v46 }
0x1d04   :  { %v7289_v63 = vsel %vm7273_vm15, %v7259_v19, %v7281_v26  ;;  %9552 = vmatprep.subr.bf16.mxu1 %v9833_v41 }
0x1d05   :  { %v9553_v20 = vpack.c.bf16 %v7290_v13, %v7289_v63 }
0x1d07   :  { %9554 = vmatpush3.bf16.msra.mxu1 %v9553_v20 }
0x1d0a   :  { %9113 = vmatmul.mubr.msk.f32.vlgmr.msra.gmra.mrb[88].mxu1 %vm315_vm0, %v7952_v57  ;;  %vm7390_vm0 = vcmask 1042432  }
0x1ddd   :  { %v7369_v5 = vpop.f32.mrb[88].mxu1 }
0x1dde   :  { %v7370_v7 = vadd.f32 %v7369_v5, %v7298_v15  ;;  %v9114_v58 = vpop.f32.mrb[89].mxu1 }
0x1de0   :  { %9800 = vtanh.f32 %v7370_v7  ;;  %v7379_v25 = vrot.slane %v7370_v7, 1 }
0x1dea   :  { %v9801_v12 = vpop.eup %9800 }
0x1deb   :  { %v7374_v47 = vmul.f32 2.0, %v9801_v12 }
0x1ded   :  { %v7375_v22 = vmul.f32 1.442695, %v7374_v47  ;;  %v7382_v32 = vadd.f32 %v7374_v47, %v12272_v6 }
0x1def   :  { %9802 = vpow2.f32 %v7375_v22  ;;  %v7384_v53 = vrot.slane %v7382_v32, 6 }
0x1df9   :  { %v9803_v41 = vpop.eup %9802 }
0x1dfa   :  { %v7377_v40 = vmul.f32 %v9803_v41, %v12062_v61 }
0x1dfc   :  { %v7381_v33 = vadd.f32 %v7379_v25, %v7377_v40 }
0x1dfe   :  { %v7387_v39 = vsel %vm7386_vm1, %v7381_v33, %v12281_v37 }
0x1dff   :  { %v7389_v38 = vsel %vm7388_vm2, %v7387_v39, %v7384_v53 }
0x1e00   :  { %v7391_v60 = vsel %vm7390_vm0, %v7389_v38, 0.0 }
0x1e01   :  { %7392 = vst [vmem:[#allocation2] sm:$0xff] %v7391_v60 }
0x1e02   :  { %9816 = shalt.err (!%p9813_p4)
}
0x1e03   :  { %s9817_s23 = scalar_lea.hbm %s12398_s8, 128 }
0x1e04   :  { %p9818_p5 = scmp.ne.s32.totalorder %s12398_s8, %s9817_s23  ;;  %p9821_p6 = scmp.lt.u32.totalorder %s9817_s23, %s12398_s8 }
0x1e06   :  { %p9823_p7 = pnand %p9821_p6, %p9818_p5 }
0x1e08   :  { %9826 = shalt.err (!%p9823_p7)
}
0x1e09   :  { %7402 = dma.vmem_to_hbm [thread:$0]  %s7400_s19, 128, %s12398_s8, [#allocation3]  }
0x1e0a   :  { %9827 = dma.done.wait [#allocation3], 128  }
0x1e0b   :  { %9828 = vsyncadd [#allocation3], 4294967168 }
0x1e0c   :  { %7406 = vsyncpa [#allocation3], 1 }

</bundles_post_ra>
